<compile_context>
chip_gen: v7x
topology: tpu7x:2x2x1
jax: 0.10.0
libtpu: 0.0.40
codegen_flags: <defaults>
</compile_context>

<pallas_src>
import functools

import jax
import jax.numpy as jnp
import numpy as np
from jax import lax
from jax.experimental import pallas as pl
from jax.experimental.pallas import tpu as pltpu

_LANE = 128


def _round_up(x, m):
    return (x + m - 1) // m * m


def _fused_head_kernel(*refs, H, W, cin, cins_p, couts_p):
    """Fused 5-layer 3x3-conv head for one batch element.

    refs = (x_ref, w1, b1, ..., w5, b5, o_ref, buf0, buf1, slab)
      x_ref : (H, W, cin)                input tile (N squeezed)
      w_l   : (9*cins_p[l], couts_p[l])  zero-padded weights, (ky,kx,cin)-major
      b_l   : (1, couts_p[l])            zero-padded bias (f32)
      o_ref : (H, W, couts_p[-1])        final sigmoid output (f32)
      buf0/buf1 : (H+2, W+2, Cbuf) f32   ping-pong padded activations
      slab  : (H, W, 9*Kmax)             im2col patch slab (compute dtype)
    """
    n_layers = len(cins_p)
    x_ref = refs[0]
    w_refs = refs[1:1 + 2 * n_layers:2]
    b_refs = refs[2:2 + 2 * n_layers:2]
    o_ref = refs[1 + 2 * n_layers]
    buf0, buf1, slab = refs[2 + 2 * n_layers:]
    bufs = (buf0, buf1)

    # Zero the ping-pong buffers once per grid step: this supplies both the
    # 1-pixel zero halo ("same" padding) and the zero lane-padding channels.
    buf0[...] = jnp.zeros_like(buf0)
    buf1[...] = jnp.zeros_like(buf1)
    # Stage the input tile into the interior of buffer 0.
    buf0[1:H + 1, 1:W + 1, :cin] = x_ref[...].astype(buf0.dtype)

    for l in range(n_layers):
        src = bufs[l % 2]
        k = cins_p[l]
        cout = couts_p[l]

        # im2col: 9 shifted windows of the padded activation -> (H, W, 9*k).
        for dy in range(3):
            for dx in range(3):
                t = dy * 3 + dx
                slab[:, :, t * k:(t + 1) * k] = (
                    src[dy:dy + H, dx:dx + W, :k].astype(slab.dtype))

        patches = slab[:, :, :9 * k].reshape(H * W, 9 * k)
        # One MXU matmul per layer, K = 9*k, f32 accumulation.
        acc = jnp.dot(patches, w_refs[l][...],
                      preferred_element_type=jnp.float32)
        acc = acc + b_refs[l][...]                       # (1, cout), f32

        if l < n_layers - 1:
            acc = jnp.maximum(acc, 0.0)                  # ReLU (f32 epilogue)
            dst = bufs[(l + 1) % 2]
            dst[1:H + 1, 1:W + 1, :cout] = (
                acc.reshape(H, W, cout).astype(dst.dtype))
        else:
            acc = jax.nn.sigmoid(acc)                    # output activation
            o_ref[...] = acc.reshape(H, W, cout).astype(o_ref.dtype)


def fused_classification_head(x_nhwc, params, *, compute_dtype=jnp.float32):
    """Runs the fused 5-conv head. params: list of (w_hwio, bias) unpadded."""
    N, H, W, Cin = x_nhwc.shape
    cins = [w.shape[2] for w, _ in params]
    couts = [w.shape[3] for w, _ in params]
    assert cins[0] == Cin, (cins[0], Cin)
    cins_p = [_round_up(c, _LANE) for c in cins]
    couts_p = [_round_up(c, _LANE) for c in couts]

    # Zero-pad weights/bias to lane-dense channel counts; flatten weights to
    # (9*Cin_pad, Cout_pad) in (ky, kx, cin) K-major order to match the
    # in-kernel im2col slab layout.  Bias stays f32 (f32 epilogue).
    flat_inputs = [x_nhwc]
    in_specs = [pl.BlockSpec((pl.Squeezed(), H, W, Cin),
                             lambda n: (n, 0, 0, 0))]
    for (w, b), cip, cop in zip(params, cins_p, couts_p):
        wp = jnp.zeros((3, 3, cip, cop), compute_dtype)
        wp = wp.at[:, :, :w.shape[2], :w.shape[3]].set(w.astype(compute_dtype))
        wp = wp.reshape(9 * cip, cop)
        bp = jnp.zeros((1, cop), jnp.float32).at[0, :b.shape[0]].set(
            b.astype(jnp.float32))
        flat_inputs += [wp, bp]
        in_specs.append(pl.BlockSpec((9 * cip, cop), lambda n: (0, 0)))
        in_specs.append(pl.BlockSpec((1, cop), lambda n: (0, 0)))

    cbuf = max(cins_p + couts_p[:-1])     # channels of ping-pong buffers
    kmax = max(cins_p)                    # channels per tap in the slab
    cout_p = couts_p[-1]

    scratch_shapes = [
        pltpu.VMEM((H + 2, W + 2, cbuf), jnp.float32),   # ping (padded act)
        pltpu.VMEM((H + 2, W + 2, cbuf), jnp.float32),   # pong (padded act)
        pltpu.VMEM((H, W, 9 * kmax), compute_dtype),     # im2col patch slab
    ]

    # Cost estimate for XLA scheduling around the kernel.
    flops = 2 * N * H * W * sum(9 * ci * co for ci, co in zip(cins_p, couts_p))
    transcendentals = N * H * W * cout_p                 # sigmoid
    bytes_accessed = int(
        x_nhwc.size * x_nhwc.dtype.itemsize
        + N * H * W * cout_p * 4
        + sum(int(a.size) * a.dtype.itemsize for a in flat_inputs[1:]))

    # Explicit VMEM budget: scratch + (double-buffered) params and I/O, with
    # headroom, capped below v7x's 64 MiB physical VMEM.
    est = 4 * 2 * (H + 2) * (W + 2) * cbuf
    est += jnp.dtype(compute_dtype).itemsize * H * W * 9 * kmax
    est += 2 * sum(int(a.size) * a.dtype.itemsize for a in flat_inputs[1:])
    est += 2 * (H * W * Cin * x_nhwc.dtype.itemsize + H * W * cout_p * 4)
    est += H * W * cout_p * 4                            # f32 accumulator
    vmem_limit = int(min(48 << 20, max(32 << 20, 2 * est)))

    kernel = functools.partial(
        _fused_head_kernel, H=H, W=W, cin=Cin,
        cins_p=tuple(cins_p), couts_p=tuple(couts_p))

    return pl.pallas_call(
        kernel,
        out_shape=jax.ShapeDtypeStruct((N, H, W, cout_p), jnp.float32),
        grid=(N,),
        in_specs=in_specs,
        out_specs=pl.BlockSpec((pl.Squeezed(), H, W, cout_p),
                               lambda n: (n, 0, 0, 0)),
        scratch_shapes=scratch_shapes,
        compiler_params=pltpu.CompilerParams(
            dimension_semantics=("parallel",),
            vmem_limit_bytes=vmem_limit),
        cost_estimate=pl.CostEstimate(
            flops=flops, transcendentals=transcendentals,
            bytes_accessed=bytes_accessed),
    )(*flat_inputs)


def classification_model_forward(params, x_nchw, num_anchors, num_classes,
                                 compute_dtype=jnp.float32):
    """Matches ClassificationModel.forward: (N,C,H,W) -> (N, H*W*A, K)."""
    x = jnp.transpose(x_nchw, (0, 2, 3, 1))           # NCHW -> NHWC (lane-dense)
    N, H, W, _ = x.shape
    out = fused_classification_head(x, params, compute_dtype=compute_dtype)
    out = out[..., :num_anchors * num_classes]        # drop lane padding
    # out is already NHWC == PyTorch permute(0,2,3,1); the two .view() calls
    # collapse into a single layout-preserving reshape.
    return out.reshape(N, H * W * num_anchors, num_classes)


def init_classification_model_params(key, num_features_in, num_anchors,
                                     num_classes, feature_size):
    """PyTorch-default-style uniform init; HWIO weight layout."""
    cins = [num_features_in] + [feature_size] * 4
    couts = [feature_size] * 4 + [num_anchors * num_classes]
    params = []
    for cin, cout in zip(cins, couts):
        key, kw, kb = jax.random.split(key, 3)
        bound = 1.0 / np.sqrt(cin * 9)
        w = jax.random.uniform(kw, (3, 3, cin, cout), jnp.float32,
                               minval=-bound, maxval=bound)
        b = jax.random.uniform(kb, (cout,), jnp.float32,
                               minval=-bound, maxval=bound)
        params.append((w, b))
    return params


# ----------------------------- pure-JAX reference ----------------------------
def _conv3x3_ref(x, w, b, act):
    y = lax.conv_general_dilated(x, w, window_strides=(1, 1), padding="SAME",
                                 dimension_numbers=("NHWC", "HWIO", "NHWC"))
    y = y + b
    return jnp.maximum(y, 0.0) if act == "relu" else jax.nn.sigmoid(y)


def classification_model_forward_ref(params, x_nchw, num_anchors, num_classes):
    out = jnp.transpose(x_nchw, (0, 2, 3, 1))
    acts = ["relu"] * (len(params) - 1) + ["sigmoid"]
    for (w, b), act in zip(params, acts):
        out = _conv3x3_ref(out, w, b, act)
    N, H, W, _ = out.shape
    return out.reshape(N, H * W * num_anchors, num_classes)


if __name__ == "__main__":
    # Small ClassificationModel-consistent config.
    num_features_in = 4
    num_anchors = 3
    num_classes = 16
    feature_size = 32
    N, H, W = 2, 16, 16

    key = jax.random.PRNGKey(0)
    key, kx = jax.random.split(key)
    x = jax.random.normal(kx, (N, num_features_in, H, W), jnp.float32)  # NCHW

    params = init_classification_model_params(
        key, num_features_in, num_anchors, num_classes, feature_size)

    ref = jax.block_until_ready(
        classification_model_forward_ref(params, x, num_anchors, num_classes))

    # f32 compute path (matches PyTorch module semantics tightly).
    out = classification_model_forward(params, x, num_anchors, num_classes,
                                       compute_dtype=jnp.float32)
    out = jax.block_until_ready(out)
    assert out.shape == (N, H * W * num_anchors, num_classes), out.shape
    np.testing.assert_allclose(np.asarray(out), np.asarray(ref),
                               rtol=3e-4, atol=3e-5)

    # bf16 MXU path (f32 accumulation + f32 epilogue): looser tolerance.
    out_bf16 = classification_model_forward(params, x, num_anchors, num_classes,
                                            compute_dtype=jnp.bfloat16)
    out_bf16 = jax.block_until_ready(out_bf16)
    np.testing.assert_allclose(np.asarray(out_bf16), np.asarray(ref),
                               rtol=5e-2, atol=3e-2)

    print("KERNEL_OK")
</pallas_src>

<mosaic_0001>
module attributes {stable_mosaic.version = 11 : i64} {
  func.func @_fused_head_kernel(%arg0: i32, %arg1: memref<1x16x16x4xf32, #tpu.memory_space<vmem>>, %arg2: memref<1152x128xf32, #tpu.memory_space<vmem>>, %arg3: memref<1x128xf32, #tpu.memory_space<vmem>>, %arg4: memref<1152x128xf32, #tpu.memory_space<vmem>>, %arg5: memref<1x128xf32, #tpu.memory_space<vmem>>, %arg6: memref<1152x128xf32, #tpu.memory_space<vmem>>, %arg7: memref<1x128xf32, #tpu.memory_space<vmem>>, %arg8: memref<1152x128xf32, #tpu.memory_space<vmem>>, %arg9: memref<1x128xf32, #tpu.memory_space<vmem>>, %arg10: memref<1152x128xf32, #tpu.memory_space<vmem>>, %arg11: memref<1x128xf32, #tpu.memory_space<vmem>>, %arg12: memref<1x16x16x128xf32, #tpu.memory_space<vmem>>, %arg13: memref<18x18x128xf32, #tpu.memory_space<vmem>>, %arg14: memref<18x18x128xf32, #tpu.memory_space<vmem>>, %arg15: memref<16x16x1152xf32, #tpu.memory_space<vmem>>) attributes {dimension_semantics = [#tpu.dimension_semantics<parallel>], iteration_bounds = array<i64: 2>, scalar_prefetch = 0 : i64, scratch_operands = 3 : i64, tpu.core_type = #tpu.core_type<tc>, window_params = [{transform_indices = @transform_0, window_bounds = array<i64: 1, 16, 16, 4>}, {pipeline_mode = #tpu.pipeline_mode<synchronous>, transform_indices = @transform_1, window_bounds = array<i64: 1152, 128>}, {pipeline_mode = #tpu.pipeline_mode<synchronous>, transform_indices = @transform_2, window_bounds = array<i64: 1, 128>}, {pipeline_mode = #tpu.pipeline_mode<synchronous>, transform_indices = @transform_3, window_bounds = array<i64: 1152, 128>}, {pipeline_mode = #tpu.pipeline_mode<synchronous>, transform_indices = @transform_4, window_bounds = array<i64: 1, 128>}, {pipeline_mode = #tpu.pipeline_mode<synchronous>, transform_indices = @transform_5, window_bounds = array<i64: 1152, 128>}, {pipeline_mode = #tpu.pipeline_mode<synchronous>, transform_indices = @transform_6, window_bounds = array<i64: 1, 128>}, {pipeline_mode = #tpu.pipeline_mode<synchronous>, transform_indices = @transform_7, window_bounds = array<i64: 1152, 128>}, {pipeline_mode = #tpu.pipeline_mode<synchronous>, transform_indices = @transform_8, window_bounds = array<i64: 1, 128>}, {pipeline_mode = #tpu.pipeline_mode<synchronous>, transform_indices = @transform_9, window_bounds = array<i64: 1152, 128>}, {pipeline_mode = #tpu.pipeline_mode<synchronous>, transform_indices = @transform_10, window_bounds = array<i64: 1, 128>}, {transform_indices = @transform_11, window_bounds = array<i64: 1, 16, 16, 128>}]} {
    %cst = arith.constant 0.000000e+00 : f32
    %0 = vector.broadcast %cst : f32 to vector<18x18x128xf32>
    %c0 = arith.constant 0 : index
    %c0_0 = arith.constant 0 : index
    %c0_1 = arith.constant 0 : index
    %1 = vector.load %arg13[%c0, %c0_0, %c0_1] : memref<18x18x128xf32, #tpu.memory_space<vmem>>, vector<18x18x128xf32>
    tpu.vector_store %arg13[%c0, %c0_0, %c0_1], %0 {strides = array<i32>} : memref<18x18x128xf32, #tpu.memory_space<vmem>>, vector<18x18x128xf32>,
    %cst_2 = arith.constant 0.000000e+00 : f32
    %2 = vector.broadcast %cst_2 : f32 to vector<18x18x128xf32>
    %c0_3 = arith.constant 0 : index
    %c0_4 = arith.constant 0 : index
    %c0_5 = arith.constant 0 : index
    %3 = vector.load %arg14[%c0_3, %c0_4, %c0_5] : memref<18x18x128xf32, #tpu.memory_space<vmem>>, vector<18x18x128xf32>
    tpu.vector_store %arg14[%c0_3, %c0_4, %c0_5], %2 {strides = array<i32>} : memref<18x18x128xf32, #tpu.memory_space<vmem>>, vector<18x18x128xf32>,
    %c0_6 = arith.constant 0 : index
    %c0_7 = arith.constant 0 : index
    %c0_8 = arith.constant 0 : index
    %c0_9 = arith.constant 0 : index
    %4 = vector.load %arg1[%c0_6, %c0_7, %c0_8, %c0_9] : memref<1x16x16x4xf32, #tpu.memory_space<vmem>>, vector<1x16x16x4xf32>
    %5 = vector.shape_cast %4 : vector<1x16x16x4xf32> to vector<16x16x4xf32>
    %c1 = arith.constant 1 : index
    %c1_10 = arith.constant 1 : index
    %c0_11 = arith.constant 0 : index
    %6 = vector.load %arg13[%c1, %c1_10, %c0_11] : memref<18x18x128xf32, #tpu.memory_space<vmem>>, vector<16x16x4xf32>
    tpu.vector_store %arg13[%c1, %c1_10, %c0_11], %5 {strides = array<i32>} : memref<18x18x128xf32, #tpu.memory_space<vmem>>, vector<16x16x4xf32>,
    %c0_12 = arith.constant 0 : index
    %c0_13 = arith.constant 0 : index
    %c0_14 = arith.constant 0 : index
    %7 = vector.load %arg13[%c0_12, %c0_13, %c0_14] : memref<18x18x128xf32, #tpu.memory_space<vmem>>, vector<16x16x128xf32>
    %c0_15 = arith.constant 0 : index
    %c0_16 = arith.constant 0 : index
    %c0_17 = arith.constant 0 : index
    %8 = vector.load %arg15[%c0_15, %c0_16, %c0_17] : memref<16x16x1152xf32, #tpu.memory_space<vmem>>, vector<16x16x128xf32>
    tpu.vector_store %arg15[%c0_15, %c0_16, %c0_17], %7 {strides = array<i32>} : memref<16x16x1152xf32, #tpu.memory_space<vmem>>, vector<16x16x128xf32>,
    %c0_18 = arith.constant 0 : index
    %c1_19 = arith.constant 1 : index
    %c0_20 = arith.constant 0 : index
    %9 = vector.load %arg13[%c0_18, %c1_19, %c0_20] : memref<18x18x128xf32, #tpu.memory_space<vmem>>, vector<16x16x128xf32>
    %c0_21 = arith.constant 0 : index
    %c0_22 = arith.constant 0 : index
    %c128 = arith.constant 128 : index
    %10 = vector.load %arg15[%c0_21, %c0_22, %c128] : memref<16x16x1152xf32, #tpu.memory_space<vmem>>, vector<16x16x128xf32>
    tpu.vector_store %arg15[%c0_21, %c0_22, %c128], %9 {strides = array<i32>} : memref<16x16x1152xf32, #tpu.memory_space<vmem>>, vector<16x16x128xf32>,
    %c0_23 = arith.constant 0 : index
    %c2 = arith.constant 2 : index
    %c0_24 = arith.constant 0 : index
    %11 = vector.load %arg13[%c0_23, %c2, %c0_24] : memref<18x18x128xf32, #tpu.memory_space<vmem>>, vector<16x16x128xf32>
    %c0_25 = arith.constant 0 : index
    %c0_26 = arith.constant 0 : index
    %c256 = arith.constant 256 : index
    %12 = vector.load %arg15[%c0_25, %c0_26, %c256] : memref<16x16x1152xf32, #tpu.memory_space<vmem>>, vector<16x16x128xf32>
    tpu.vector_store %arg15[%c0_25, %c0_26, %c256], %11 {strides = array<i32>} : memref<16x16x1152xf32, #tpu.memory_space<vmem>>, vector<16x16x128xf32>,
    %c1_27 = arith.constant 1 : index
    %c0_28 = arith.constant 0 : index
    %c0_29 = arith.constant 0 : index
    %13 = vector.load %arg13[%c1_27, %c0_28, %c0_29] : memref<18x18x128xf32, #tpu.memory_space<vmem>>, vector<16x16x128xf32>
    %c0_30 = arith.constant 0 : index
    %c0_31 = arith.constant 0 : index
    %c384 = arith.constant 384 : index
    %14 = vector.load %arg15[%c0_30, %c0_31, %c384] : memref<16x16x1152xf32, #tpu.memory_space<vmem>>, vector<16x16x128xf32>
    tpu.vector_store %arg15[%c0_30, %c0_31, %c384], %13 {strides = array<i32>} : memref<16x16x1152xf32, #tpu.memory_space<vmem>>, vector<16x16x128xf32>,
    %c1_32 = arith.constant 1 : index
    %c1_33 = arith.constant 1 : index
    %c0_34 = arith.constant 0 : index
    %15 = vector.load %arg13[%c1_32, %c1_33, %c0_34] : memref<18x18x128xf32, #tpu.memory_space<vmem>>, vector<16x16x128xf32>
    %c0_35 = arith.constant 0 : index
    %c0_36 = arith.constant 0 : index
    %c512 = arith.constant 512 : index
    %16 = vector.load %arg15[%c0_35, %c0_36, %c512] : memref<16x16x1152xf32, #tpu.memory_space<vmem>>, vector<16x16x128xf32>
    tpu.vector_store %arg15[%c0_35, %c0_36, %c512], %15 {strides = array<i32>} : memref<16x16x1152xf32, #tpu.memory_space<vmem>>, vector<16x16x128xf32>,
    %c1_37 = arith.constant 1 : index
    %c2_38 = arith.constant 2 : index
    %c0_39 = arith.constant 0 : index
    %17 = vector.load %arg13[%c1_37, %c2_38, %c0_39] : memref<18x18x128xf32, #tpu.memory_space<vmem>>, vector<16x16x128xf32>
    %c0_40 = arith.constant 0 : index
    %c0_41 = arith.constant 0 : index
    %c640 = arith.constant 640 : index
    %18 = vector.load %arg15[%c0_40, %c0_41, %c640] : memref<16x16x1152xf32, #tpu.memory_space<vmem>>, vector<16x16x128xf32>
    tpu.vector_store %arg15[%c0_40, %c0_41, %c640], %17 {strides = array<i32>} : memref<16x16x1152xf32, #tpu.memory_space<vmem>>, vector<16x16x128xf32>,
    %c2_42 = arith.constant 2 : index
    %c0_43 = arith.constant 0 : index
    %c0_44 = arith.constant 0 : index
    %19 = vector.load %arg13[%c2_42, %c0_43, %c0_44] : memref<18x18x128xf32, #tpu.memory_space<vmem>>, vector<16x16x128xf32>
    %c0_45 = arith.constant 0 : index
    %c0_46 = arith.constant 0 : index
    %c768 = arith.constant 768 : index
    %20 = vector.load %arg15[%c0_45, %c0_46, %c768] : memref<16x16x1152xf32, #tpu.memory_space<vmem>>, vector<16x16x128xf32>
    tpu.vector_store %arg15[%c0_45, %c0_46, %c768], %19 {strides = array<i32>} : memref<16x16x1152xf32, #tpu.memory_space<vmem>>, vector<16x16x128xf32>,
    %c2_47 = arith.constant 2 : index
    %c1_48 = arith.constant 1 : index
    %c0_49 = arith.constant 0 : index
    %21 = vector.load %arg13[%c2_47, %c1_48, %c0_49] : memref<18x18x128xf32, #tpu.memory_space<vmem>>, vector<16x16x128xf32>
    %c0_50 = arith.constant 0 : index
    %c0_51 = arith.constant 0 : index
    %c896 = arith.constant 896 : index
    %22 = vector.load %arg15[%c0_50, %c0_51, %c896] : memref<16x16x1152xf32, #tpu.memory_space<vmem>>, vector<16x16x128xf32>
    tpu.vector_store %arg15[%c0_50, %c0_51, %c896], %21 {strides = array<i32>} : memref<16x16x1152xf32, #tpu.memory_space<vmem>>, vector<16x16x128xf32>,
    %c2_52 = arith.constant 2 : index
    %c2_53 = arith.constant 2 : index
    %c0_54 = arith.constant 0 : index
    %23 = vector.load %arg13[%c2_52, %c2_53, %c0_54] : memref<18x18x128xf32, #tpu.memory_space<vmem>>, vector<16x16x128xf32>
    %c0_55 = arith.constant 0 : index
    %c0_56 = arith.constant 0 : index
    %c1024 = arith.constant 1024 : index
    %24 = vector.load %arg15[%c0_55, %c0_56, %c1024] : memref<16x16x1152xf32, #tpu.memory_space<vmem>>, vector<16x16x128xf32>
    tpu.vector_store %arg15[%c0_55, %c0_56, %c1024], %23 {strides = array<i32>} : memref<16x16x1152xf32, #tpu.memory_space<vmem>>, vector<16x16x128xf32>,
    %c0_57 = arith.constant 0 : index
    %c0_58 = arith.constant 0 : index
    %c0_59 = arith.constant 0 : index
    %25 = vector.load %arg15[%c0_57, %c0_58, %c0_59] : memref<16x16x1152xf32, #tpu.memory_space<vmem>>, vector<16x16x1152xf32>
    %26 = vector.shape_cast %25 : vector<16x16x1152xf32> to vector<256x1152xf32>
    %c0_60 = arith.constant 0 : index
    %c0_61 = arith.constant 0 : index
    %27 = vector.load %arg2[%c0_60, %c0_61] : memref<1152x128xf32, #tpu.memory_space<vmem>>, vector<1152x128xf32>
    %cst_62 = arith.constant dense<0.000000e+00> : vector<256x128xf32>
    %28 = tpu.matmul %26, %27, %cst_62 {dimension_numbers = #tpu.dot_dimension_numbers<[1], [0], [0], [1], [0, 0, 1, 1], [], []>} : vector<256x1152xf32>, vector<1152x128xf32>, vector<256x128xf32> -> vector<256x128xf32>
    %c0_63 = arith.constant 0 : index
    %c0_64 = arith.constant 0 : index
    %29 = vector.load %arg3[%c0_63, %c0_64] : memref<1x128xf32, #tpu.memory_space<vmem>>, vector<1x128xf32>
    %30 = vector.broadcast %29 : vector<1x128xf32> to vector<256x128xf32>
    %31 = arith.addf %28, %30 : vector<256x128xf32>
    %cst_65 = arith.constant 0.000000e+00 : f32
    %32 = vector.broadcast %cst_65 : f32 to vector<256x128xf32>
    %33 = arith.maximumf %31, %32 : vector<256x128xf32>
    %34 = vector.shape_cast %33 : vector<256x128xf32> to vector<16x16x128xf32>
    %c1_66 = arith.constant 1 : index
    %c1_67 = arith.constant 1 : index
    %c0_68 = arith.constant 0 : index
    %35 = vector.load %arg14[%c1_66, %c1_67, %c0_68] : memref<18x18x128xf32, #tpu.memory_space<vmem>>, vector<16x16x128xf32>
    tpu.vector_store %arg14[%c1_66, %c1_67, %c0_68], %34 {strides = array<i32>} : memref<18x18x128xf32, #tpu.memory_space<vmem>>, vector<16x16x128xf32>,
    %c0_69 = arith.constant 0 : index
    %c0_70 = arith.constant 0 : index
    %c0_71 = arith.constant 0 : index
    %36 = vector.load %arg14[%c0_69, %c0_70, %c0_71] : memref<18x18x128xf32, #tpu.memory_space<vmem>>, vector<16x16x128xf32>
    %c0_72 = arith.constant 0 : index
    %c0_73 = arith.constant 0 : index
    %c0_74 = arith.constant 0 : index
    %37 = vector.load %arg15[%c0_72, %c0_73, %c0_74] : memref<16x16x1152xf32, #tpu.memory_space<vmem>>, vector<16x16x128xf32>
    tpu.vector_store %arg15[%c0_72, %c0_73, %c0_74], %36 {strides = array<i32>} : memref<16x16x1152xf32, #tpu.memory_space<vmem>>, vector<16x16x128xf32>,
    %c0_75 = arith.constant 0 : index
    %c1_76 = arith.constant 1 : index
    %c0_77 = arith.constant 0 : index
    %38 = vector.load %arg14[%c0_75, %c1_76, %c0_77] : memref<18x18x128xf32, #tpu.memory_space<vmem>>, vector<16x16x128xf32>
    %c0_78 = arith.constant 0 : index
    %c0_79 = arith.constant 0 : index
    %c128_80 = arith.constant 128 : index
    %39 = vector.load %arg15[%c0_78, %c0_79, %c128_80] : memref<16x16x1152xf32, #tpu.memory_space<vmem>>, vector<16x16x128xf32>
    tpu.vector_store %arg15[%c0_78, %c0_79, %c128_80], %38 {strides = array<i32>} : memref<16x16x1152xf32, #tpu.memory_space<vmem>>, vector<16x16x128xf32>,
    %c0_81 = arith.constant 0 : index
    %c2_82 = arith.constant 2 : index
    %c0_83 = arith.constant 0 : index
    %40 = vector.load %arg14[%c0_81, %c2_82, %c0_83] : memref<18x18x128xf32, #tpu.memory_space<vmem>>, vector<16x16x128xf32>
    %c0_84 = arith.constant 0 : index
    %c0_85 = arith.constant 0 : index
    %c256_86 = arith.constant 256 : index
    %41 = vector.load %arg15[%c0_84, %c0_85, %c256_86] : memref<16x16x1152xf32, #tpu.memory_space<vmem>>, vector<16x16x128xf32>
    tpu.vector_store %arg15[%c0_84, %c0_85, %c256_86], %40 {strides = array<i32>} : memref<16x16x1152xf32, #tpu.memory_space<vmem>>, vector<16x16x128xf32>,
    %c1_87 = arith.constant 1 : index
    %c0_88 = arith.constant 0 : index
    %c0_89 = arith.constant 0 : index
    %42 = vector.load %arg14[%c1_87, %c0_88, %c0_89] : memref<18x18x128xf32, #tpu.memory_space<vmem>>, vector<16x16x128xf32>
    %c0_90 = arith.constant 0 : index
    %c0_91 = arith.constant 0 : index
    %c384_92 = arith.constant 384 : index
    %43 = vector.load %arg15[%c0_90, %c0_91, %c384_92] : memref<16x16x1152xf32, #tpu.memory_space<vmem>>, vector<16x16x128xf32>
    tpu.vector_store %arg15[%c0_90, %c0_91, %c384_92], %42 {strides = array<i32>} : memref<16x16x1152xf32, #tpu.memory_space<vmem>>, vector<16x16x128xf32>,
    %c1_93 = arith.constant 1 : index
    %c1_94 = arith.constant 1 : index
    %c0_95 = arith.constant 0 : index
    %44 = vector.load %arg14[%c1_93, %c1_94, %c0_95] : memref<18x18x128xf32, #tpu.memory_space<vmem>>, vector<16x16x128xf32>
    %c0_96 = arith.constant 0 : index
    %c0_97 = arith.constant 0 : index
    %c512_98 = arith.constant 512 : index
    %45 = vector.load %arg15[%c0_96, %c0_97, %c512_98] : memref<16x16x1152xf32, #tpu.memory_space<vmem>>, vector<16x16x128xf32>
    tpu.vector_store %arg15[%c0_96, %c0_97, %c512_98], %44 {strides = array<i32>} : memref<16x16x1152xf32, #tpu.memory_space<vmem>>, vector<16x16x128xf32>,
    %c1_99 = arith.constant 1 : index
    %c2_100 = arith.constant 2 : index
    %c0_101 = arith.constant 0 : index
    %46 = vector.load %arg14[%c1_99, %c2_100, %c0_101] : memref<18x18x128xf32, #tpu.memory_space<vmem>>, vector<16x16x128xf32>
    %c0_102 = arith.constant 0 : index
    %c0_103 = arith.constant 0 : index
    %c640_104 = arith.constant 640 : index
    %47 = vector.load %arg15[%c0_102, %c0_103, %c640_104] : memref<16x16x1152xf32, #tpu.memory_space<vmem>>, vector<16x16x128xf32>
    tpu.vector_store %arg15[%c0_102, %c0_103, %c640_104], %46 {strides = array<i32>} : memref<16x16x1152xf32, #tpu.memory_space<vmem>>, vector<16x16x128xf32>,
    %c2_105 = arith.constant 2 : index
    %c0_106 = arith.constant 0 : index
    %c0_107 = arith.constant 0 : index
    %48 = vector.load %arg14[%c2_105, %c0_106, %c0_107] : memref<18x18x128xf32, #tpu.memory_space<vmem>>, vector<16x16x128xf32>
    %c0_108 = arith.constant 0 : index
    %c0_109 = arith.constant 0 : index
    %c768_110 = arith.constant 768 : index
    %49 = vector.load %arg15[%c0_108, %c0_109, %c768_110] : memref<16x16x1152xf32, #tpu.memory_space<vmem>>, vector<16x16x128xf32>
    tpu.vector_store %arg15[%c0_108, %c0_109, %c768_110], %48 {strides = array<i32>} : memref<16x16x1152xf32, #tpu.memory_space<vmem>>, vector<16x16x128xf32>,
    %c2_111 = arith.constant 2 : index
    %c1_112 = arith.constant 1 : index
    %c0_113 = arith.constant 0 : index
    %50 = vector.load %arg14[%c2_111, %c1_112, %c0_113] : memref<18x18x128xf32, #tpu.memory_space<vmem>>, vector<16x16x128xf32>
    %c0_114 = arith.constant 0 : index
    %c0_115 = arith.constant 0 : index
    %c896_116 = arith.constant 896 : index
    %51 = vector.load %arg15[%c0_114, %c0_115, %c896_116] : memref<16x16x1152xf32, #tpu.memory_space<vmem>>, vector<16x16x128xf32>
    tpu.vector_store %arg15[%c0_114, %c0_115, %c896_116], %50 {strides = array<i32>} : memref<16x16x1152xf32, #tpu.memory_space<vmem>>, vector<16x16x128xf32>,
    %c2_117 = arith.constant 2 : index
    %c2_118 = arith.constant 2 : index
    %c0_119 = arith.constant 0 : index
    %52 = vector.load %arg14[%c2_117, %c2_118, %c0_119] : memref<18x18x128xf32, #tpu.memory_space<vmem>>, vector<16x16x128xf32>
    %c0_120 = arith.constant 0 : index
    %c0_121 = arith.constant 0 : index
    %c1024_122 = arith.constant 1024 : index
    %53 = vector.load %arg15[%c0_120, %c0_121, %c1024_122] : memref<16x16x1152xf32, #tpu.memory_space<vmem>>, vector<16x16x128xf32>
    tpu.vector_store %arg15[%c0_120, %c0_121, %c1024_122], %52 {strides = array<i32>} : memref<16x16x1152xf32, #tpu.memory_space<vmem>>, vector<16x16x128xf32>,
    %c0_123 = arith.constant 0 : index
    %c0_124 = arith.constant 0 : index
    %c0_125 = arith.constant 0 : index
    %54 = vector.load %arg15[%c0_123, %c0_124, %c0_125] : memref<16x16x1152xf32, #tpu.memory_space<vmem>>, vector<16x16x1152xf32>
    %55 = vector.shape_cast %54 : vector<16x16x1152xf32> to vector<256x1152xf32>
    %c0_126 = arith.constant 0 : index
    %c0_127 = arith.constant 0 : index
    %56 = vector.load %arg4[%c0_126, %c0_127] : memref<1152x128xf32, #tpu.memory_space<vmem>>, vector<1152x128xf32>
    %cst_128 = arith.constant dense<0.000000e+00> : vector<256x128xf32>
    %57 = tpu.matmul %55, %56, %cst_128 {dimension_numbers = #tpu.dot_dimension_numbers<[1], [0], [0], [1], [0, 0, 1, 1], [], []>} : vector<256x1152xf32>, vector<1152x128xf32>, vector<256x128xf32> -> vector<256x128xf32>
    %c0_129 = arith.constant 0 : index
    %c0_130 = arith.constant 0 : index
    %58 = vector.load %arg5[%c0_129, %c0_130] : memref<1x128xf32, #tpu.memory_space<vmem>>, vector<1x128xf32>
    %59 = vector.broadcast %58 : vector<1x128xf32> to vector<256x128xf32>
    %60 = arith.addf %57, %59 : vector<256x128xf32>
    %cst_131 = arith.constant 0.000000e+00 : f32
    %61 = vector.broadcast %cst_131 : f32 to vector<256x128xf32>
    %62 = arith.maximumf %60, %61 : vector<256x128xf32>
    %63 = vector.shape_cast %62 : vector<256x128xf32> to vector<16x16x128xf32>
    %c1_132 = arith.constant 1 : index
    %c1_133 = arith.constant 1 : index
    %c0_134 = arith.constant 0 : index
    %64 = vector.load %arg13[%c1_132, %c1_133, %c0_134] : memref<18x18x128xf32, #tpu.memory_space<vmem>>, vector<16x16x128xf32>
    tpu.vector_store %arg13[%c1_132, %c1_133, %c0_134], %63 {strides = array<i32>} : memref<18x18x128xf32, #tpu.memory_space<vmem>>, vector<16x16x128xf32>,
    %c0_135 = arith.constant 0 : index
    %c0_136 = arith.constant 0 : index
    %c0_137 = arith.constant 0 : index
    %65 = vector.load %arg13[%c0_135, %c0_136, %c0_137] : memref<18x18x128xf32, #tpu.memory_space<vmem>>, vector<16x16x128xf32>
    %c0_138 = arith.constant 0 : index
    %c0_139 = arith.constant 0 : index
    %c0_140 = arith.constant 0 : index
    %66 = vector.load %arg15[%c0_138, %c0_139, %c0_140] : memref<16x16x1152xf32, #tpu.memory_space<vmem>>, vector<16x16x128xf32>
    tpu.vector_store %arg15[%c0_138, %c0_139, %c0_140], %65 {strides = array<i32>} : memref<16x16x1152xf32, #tpu.memory_space<vmem>>, vector<16x16x128xf32>,
    %c0_141 = arith.constant 0 : index
    %c1_142 = arith.constant 1 : index
    %c0_143 = arith.constant 0 : index
    %67 = vector.load %arg13[%c0_141, %c1_142, %c0_143] : memref<18x18x128xf32, #tpu.memory_space<vmem>>, vector<16x16x128xf32>
    %c0_144 = arith.constant 0 : index
    %c0_145 = arith.constant 0 : index
    %c128_146 = arith.constant 128 : index
    %68 = vector.load %arg15[%c0_144, %c0_145, %c128_146] : memref<16x16x1152xf32, #tpu.memory_space<vmem>>, vector<16x16x128xf32>
    tpu.vector_store %arg15[%c0_144, %c0_145, %c128_146], %67 {strides = array<i32>} : memref<16x16x1152xf32, #tpu.memory_space<vmem>>, vector<16x16x128xf32>,
    %c0_147 = arith.constant 0 : index
    %c2_148 = arith.constant 2 : index
    %c0_149 = arith.constant 0 : index
    %69 = vector.load %arg13[%c0_147, %c2_148, %c0_149] : memref<18x18x128xf32, #tpu.memory_space<vmem>>, vector<16x16x128xf32>
    %c0_150 = arith.constant 0 : index
    %c0_151 = arith.constant 0 : index
    %c256_152 = arith.constant 256 : index
    %70 = vector.load %arg15[%c0_150, %c0_151, %c256_152] : memref<16x16x1152xf32, #tpu.memory_space<vmem>>, vector<16x16x128xf32>
    tpu.vector_store %arg15[%c0_150, %c0_151, %c256_152], %69 {strides = array<i32>} : memref<16x16x1152xf32, #tpu.memory_space<vmem>>, vector<16x16x128xf32>,
    %c1_153 = arith.constant 1 : index
    %c0_154 = arith.constant 0 : index
    %c0_155 = arith.constant 0 : index
    %71 = vector.load %arg13[%c1_153, %c0_154, %c0_155] : memref<18x18x128xf32, #tpu.memory_space<vmem>>, vector<16x16x128xf32>
    %c0_156 = arith.constant 0 : index
    %c0_157 = arith.constant 0 : index
    %c384_158 = arith.constant 384 : index
    %72 = vector.load %arg15[%c0_156, %c0_157, %c384_158] : memref<16x16x1152xf32, #tpu.memory_space<vmem>>, vector<16x16x128xf32>
    tpu.vector_store %arg15[%c0_156, %c0_157, %c384_158], %71 {strides = array<i32>} : memref<16x16x1152xf32, #tpu.memory_space<vmem>>, vector<16x16x128xf32>,
    %c1_159 = arith.constant 1 : index
    %c1_160 = arith.constant 1 : index
    %c0_161 = arith.constant 0 : index
    %73 = vector.load %arg13[%c1_159, %c1_160, %c0_161] : memref<18x18x128xf32, #tpu.memory_space<vmem>>, vector<16x16x128xf32>
    %c0_162 = arith.constant 0 : index
    %c0_163 = arith.constant 0 : index
    %c512_164 = arith.constant 512 : index
    %74 = vector.load %arg15[%c0_162, %c0_163, %c512_164] : memref<16x16x1152xf32, #tpu.memory_space<vmem>>, vector<16x16x128xf32>
    tpu.vector_store %arg15[%c0_162, %c0_163, %c512_164], %73 {strides = array<i32>} : memref<16x16x1152xf32, #tpu.memory_space<vmem>>, vector<16x16x128xf32>,
    %c1_165 = arith.constant 1 : index
    %c2_166 = arith.constant 2 : index
    %c0_167 = arith.constant 0 : index
    %75 = vector.load %arg13[%c1_165, %c2_166, %c0_167] : memref<18x18x128xf32, #tpu.memory_space<vmem>>, vector<16x16x128xf32>
    %c0_168 = arith.constant 0 : index
    %c0_169 = arith.constant 0 : index
    %c640_170 = arith.constant 640 : index
    %76 = vector.load %arg15[%c0_168, %c0_169, %c640_170] : memref<16x16x1152xf32, #tpu.memory_space<vmem>>, vector<16x16x128xf32>
    tpu.vector_store %arg15[%c0_168, %c0_169, %c640_170], %75 {strides = array<i32>} : memref<16x16x1152xf32, #tpu.memory_space<vmem>>, vector<16x16x128xf32>,
    %c2_171 = arith.constant 2 : index
    %c0_172 = arith.constant 0 : index
    %c0_173 = arith.constant 0 : index
    %77 = vector.load %arg13[%c2_171, %c0_172, %c0_173] : memref<18x18x128xf32, #tpu.memory_space<vmem>>, vector<16x16x128xf32>
    %c0_174 = arith.constant 0 : index
    %c0_175 = arith.constant 0 : index
    %c768_176 = arith.constant 768 : index
    %78 = vector.load %arg15[%c0_174, %c0_175, %c768_176] : memref<16x16x1152xf32, #tpu.memory_space<vmem>>, vector<16x16x128xf32>
    tpu.vector_store %arg15[%c0_174, %c0_175, %c768_176], %77 {strides = array<i32>} : memref<16x16x1152xf32, #tpu.memory_space<vmem>>, vector<16x16x128xf32>,
    %c2_177 = arith.constant 2 : index
    %c1_178 = arith.constant 1 : index
    %c0_179 = arith.constant 0 : index
    %79 = vector.load %arg13[%c2_177, %c1_178, %c0_179] : memref<18x18x128xf32, #tpu.memory_space<vmem>>, vector<16x16x128xf32>
    %c0_180 = arith.constant 0 : index
    %c0_181 = arith.constant 0 : index
    %c896_182 = arith.constant 896 : index
    %80 = vector.load %arg15[%c0_180, %c0_181, %c896_182] : memref<16x16x1152xf32, #tpu.memory_space<vmem>>, vector<16x16x128xf32>
    tpu.vector_store %arg15[%c0_180, %c0_181, %c896_182], %79 {strides = array<i32>} : memref<16x16x1152xf32, #tpu.memory_space<vmem>>, vector<16x16x128xf32>,
    %c2_183 = arith.constant 2 : index
    %c2_184 = arith.constant 2 : index
    %c0_185 = arith.constant 0 : index
    %81 = vector.load %arg13[%c2_183, %c2_184, %c0_185] : memref<18x18x128xf32, #tpu.memory_space<vmem>>, vector<16x16x128xf32>
    %c0_186 = arith.constant 0 : index
    %c0_187 = arith.constant 0 : index
    %c1024_188 = arith.constant 1024 : index
    %82 = vector.load %arg15[%c0_186, %c0_187, %c1024_188] : memref<16x16x1152xf32, #tpu.memory_space<vmem>>, vector<16x16x128xf32>
    tpu.vector_store %arg15[%c0_186, %c0_187, %c1024_188], %81 {strides = array<i32>} : memref<16x16x1152xf32, #tpu.memory_space<vmem>>, vector<16x16x128xf32>,
    %c0_189 = arith.constant 0 : index
    %c0_190 = arith.constant 0 : index
    %c0_191 = arith.constant 0 : index
    %83 = vector.load %arg15[%c0_189, %c0_190, %c0_191] : memref<16x16x1152xf32, #tpu.memory_space<vmem>>, vector<16x16x1152xf32>
    %84 = vector.shape_cast %83 : vector<16x16x1152xf32> to vector<256x1152xf32>
    %c0_192 = arith.constant 0 : index
    %c0_193 = arith.constant 0 : index
    %85 = vector.load %arg6[%c0_192, %c0_193] : memref<1152x128xf32, #tpu.memory_space<vmem>>, vector<1152x128xf32>
    %cst_194 = arith.constant dense<0.000000e+00> : vector<256x128xf32>
    %86 = tpu.matmul %84, %85, %cst_194 {dimension_numbers = #tpu.dot_dimension_numbers<[1], [0], [0], [1], [0, 0, 1, 1], [], []>} : vector<256x1152xf32>, vector<1152x128xf32>, vector<256x128xf32> -> vector<256x128xf32>
    %c0_195 = arith.constant 0 : index
    %c0_196 = arith.constant 0 : index
    %87 = vector.load %arg7[%c0_195, %c0_196] : memref<1x128xf32, #tpu.memory_space<vmem>>, vector<1x128xf32>
    %88 = vector.broadcast %87 : vector<1x128xf32> to vector<256x128xf32>
    %89 = arith.addf %86, %88 : vector<256x128xf32>
    %cst_197 = arith.constant 0.000000e+00 : f32
    %90 = vector.broadcast %cst_197 : f32 to vector<256x128xf32>
    %91 = arith.maximumf %89, %90 : vector<256x128xf32>
    %92 = vector.shape_cast %91 : vector<256x128xf32> to vector<16x16x128xf32>
    %c1_198 = arith.constant 1 : index
    %c1_199 = arith.constant 1 : index
    %c0_200 = arith.constant 0 : index
    %93 = vector.load %arg14[%c1_198, %c1_199, %c0_200] : memref<18x18x128xf32, #tpu.memory_space<vmem>>, vector<16x16x128xf32>
    tpu.vector_store %arg14[%c1_198, %c1_199, %c0_200], %92 {strides = array<i32>} : memref<18x18x128xf32, #tpu.memory_space<vmem>>, vector<16x16x128xf32>,
    %c0_201 = arith.constant 0 : index
    %c0_202 = arith.constant 0 : index
    %c0_203 = arith.constant 0 : index
    %94 = vector.load %arg14[%c0_201, %c0_202, %c0_203] : memref<18x18x128xf32, #tpu.memory_space<vmem>>, vector<16x16x128xf32>
    %c0_204 = arith.constant 0 : index
    %c0_205 = arith.constant 0 : index
    %c0_206 = arith.constant 0 : index
    %95 = vector.load %arg15[%c0_204, %c0_205, %c0_206] : memref<16x16x1152xf32, #tpu.memory_space<vmem>>, vector<16x16x128xf32>
    tpu.vector_store %arg15[%c0_204, %c0_205, %c0_206], %94 {strides = array<i32>} : memref<16x16x1152xf32, #tpu.memory_space<vmem>>, vector<16x16x128xf32>,
    %c0_207 = arith.constant 0 : index
    %c1_208 = arith.constant 1 : index
    %c0_209 = arith.constant 0 : index
    %96 = vector.load %arg14[%c0_207, %c1_208, %c0_209] : memref<18x18x128xf32, #tpu.memory_space<vmem>>, vector<16x16x128xf32>
    %c0_210 = arith.constant 0 : index
    %c0_211 = arith.constant 0 : index
    %c128_212 = arith.constant 128 : index
    %97 = vector.load %arg15[%c0_210, %c0_211, %c128_212] : memref<16x16x1152xf32, #tpu.memory_space<vmem>>, vector<16x16x128xf32>
    tpu.vector_store %arg15[%c0_210, %c0_211, %c128_212], %96 {strides = array<i32>} : memref<16x16x1152xf32, #tpu.memory_space<vmem>>, vector<16x16x128xf32>,
    %c0_213 = arith.constant 0 : index
    %c2_214 = arith.constant 2 : index
    %c0_215 = arith.constant 0 : index
    %98 = vector.load %arg14[%c0_213, %c2_214, %c0_215] : memref<18x18x128xf32, #tpu.memory_space<vmem>>, vector<16x16x128xf32>
    %c0_216 = arith.constant 0 : index
    %c0_217 = arith.constant 0 : index
    %c256_218 = arith.constant 256 : index
    %99 = vector.load %arg15[%c0_216, %c0_217, %c256_218] : memref<16x16x1152xf32, #tpu.memory_space<vmem>>, vector<16x16x128xf32>
    tpu.vector_store %arg15[%c0_216, %c0_217, %c256_218], %98 {strides = array<i32>} : memref<16x16x1152xf32, #tpu.memory_space<vmem>>, vector<16x16x128xf32>,
    %c1_219 = arith.constant 1 : index
    %c0_220 = arith.constant 0 : index
    %c0_221 = arith.constant 0 : index
    %100 = vector.load %arg14[%c1_219, %c0_220, %c0_221] : memref<18x18x128xf32, #tpu.memory_space<vmem>>, vector<16x16x128xf32>
    %c0_222 = arith.constant 0 : index
    %c0_223 = arith.constant 0 : index
    %c384_224 = arith.constant 384 : index
    %101 = vector.load %arg15[%c0_222, %c0_223, %c384_224] : memref<16x16x1152xf32, #tpu.memory_space<vmem>>, vector<16x16x128xf32>
    tpu.vector_store %arg15[%c0_222, %c0_223, %c384_224], %100 {strides = array<i32>} : memref<16x16x1152xf32, #tpu.memory_space<vmem>>, vector<16x16x128xf32>,
    %c1_225 = arith.constant 1 : index
    %c1_226 = arith.constant 1 : index
    %c0_227 = arith.constant 0 : index
    %102 = vector.load %arg14[%c1_225, %c1_226, %c0_227] : memref<18x18x128xf32, #tpu.memory_space<vmem>>, vector<16x16x128xf32>
    %c0_228 = arith.constant 0 : index
    %c0_229 = arith.constant 0 : index
    %c512_230 = arith.constant 512 : index
    %103 = vector.load %arg15[%c0_228, %c0_229, %c512_230] : memref<16x16x1152xf32, #tpu.memory_space<vmem>>, vector<16x16x128xf32>
    tpu.vector_store %arg15[%c0_228, %c0_229, %c512_230], %102 {strides = array<i32>} : memref<16x16x1152xf32, #tpu.memory_space<vmem>>, vector<16x16x128xf32>,
    %c1_231 = arith.constant 1 : index
    %c2_232 = arith.constant 2 : index
    %c0_233 = arith.constant 0 : index
    %104 = vector.load %arg14[%c1_231, %c2_232, %c0_233] : memref<18x18x128xf32, #tpu.memory_space<vmem>>, vector<16x16x128xf32>
    %c0_234 = arith.constant 0 : index
    %c0_235 = arith.constant 0 : index
    %c640_236 = arith.constant 640 : index
    %105 = vector.load %arg15[%c0_234, %c0_235, %c640_236] : memref<16x16x1152xf32, #tpu.memory_space<vmem>>, vector<16x16x128xf32>
    tpu.vector_store %arg15[%c0_234, %c0_235, %c640_236], %104 {strides = array<i32>} : memref<16x16x1152xf32, #tpu.memory_space<vmem>>, vector<16x16x128xf32>,
    %c2_237 = arith.constant 2 : index
    %c0_238 = arith.constant 0 : index
    %c0_239 = arith.constant 0 : index
    %106 = vector.load %arg14[%c2_237, %c0_238, %c0_239] : memref<18x18x128xf32, #tpu.memory_space<vmem>>, vector<16x16x128xf32>
    %c0_240 = arith.constant 0 : index
    %c0_241 = arith.constant 0 : index
    %c768_242 = arith.constant 768 : index
    %107 = vector.load %arg15[%c0_240, %c0_241, %c768_242] : memref<16x16x1152xf32, #tpu.memory_space<vmem>>, vector<16x16x128xf32>
    tpu.vector_store %arg15[%c0_240, %c0_241, %c768_242], %106 {strides = array<i32>} : memref<16x16x1152xf32, #tpu.memory_space<vmem>>, vector<16x16x128xf32>,
    %c2_243 = arith.constant 2 : index
    %c1_244 = arith.constant 1 : index
    %c0_245 = arith.constant 0 : index
    %108 = vector.load %arg14[%c2_243, %c1_244, %c0_245] : memref<18x18x128xf32, #tpu.memory_space<vmem>>, vector<16x16x128xf32>
    %c0_246 = arith.constant 0 : index
    %c0_247 = arith.constant 0 : index
    %c896_248 = arith.constant 896 : index
    %109 = vector.load %arg15[%c0_246, %c0_247, %c896_248] : memref<16x16x1152xf32, #tpu.memory_space<vmem>>, vector<16x16x128xf32>
    tpu.vector_store %arg15[%c0_246, %c0_247, %c896_248], %108 {strides = array<i32>} : memref<16x16x1152xf32, #tpu.memory_space<vmem>>, vector<16x16x128xf32>,
    %c2_249 = arith.constant 2 : index
    %c2_250 = arith.constant 2 : index
    %c0_251 = arith.constant 0 : index
    %110 = vector.load %arg14[%c2_249, %c2_250, %c0_251] : memref<18x18x128xf32, #tpu.memory_space<vmem>>, vector<16x16x128xf32>
    %c0_252 = arith.constant 0 : index
    %c0_253 = arith.constant 0 : index
    %c1024_254 = arith.constant 1024 : index
    %111 = vector.load %arg15[%c0_252, %c0_253, %c1024_254] : memref<16x16x1152xf32, #tpu.memory_space<vmem>>, vector<16x16x128xf32>
    tpu.vector_store %arg15[%c0_252, %c0_253, %c1024_254], %110 {strides = array<i32>} : memref<16x16x1152xf32, #tpu.memory_space<vmem>>, vector<16x16x128xf32>,
    %c0_255 = arith.constant 0 : index
    %c0_256 = arith.constant 0 : index
    %c0_257 = arith.constant 0 : index
    %112 = vector.load %arg15[%c0_255, %c0_256, %c0_257] : memref<16x16x1152xf32, #tpu.memory_space<vmem>>, vector<16x16x1152xf32>
    %113 = vector.shape_cast %112 : vector<16x16x1152xf32> to vector<256x1152xf32>
    %c0_258 = arith.constant 0 : index
    %c0_259 = arith.constant 0 : index
    %114 = vector.load %arg8[%c0_258, %c0_259] : memref<1152x128xf32, #tpu.memory_space<vmem>>, vector<1152x128xf32>
    %cst_260 = arith.constant dense<0.000000e+00> : vector<256x128xf32>
    %115 = tpu.matmul %113, %114, %cst_260 {dimension_numbers = #tpu.dot_dimension_numbers<[1], [0], [0], [1], [0, 0, 1, 1], [], []>} : vector<256x1152xf32>, vector<1152x128xf32>, vector<256x128xf32> -> vector<256x128xf32>
    %c0_261 = arith.constant 0 : index
    %c0_262 = arith.constant 0 : index
    %116 = vector.load %arg9[%c0_261, %c0_262] : memref<1x128xf32, #tpu.memory_space<vmem>>, vector<1x128xf32>
    %117 = vector.broadcast %116 : vector<1x128xf32> to vector<256x128xf32>
    %118 = arith.addf %115, %117 : vector<256x128xf32>
    %cst_263 = arith.constant 0.000000e+00 : f32
    %119 = vector.broadcast %cst_263 : f32 to vector<256x128xf32>
    %120 = arith.maximumf %118, %119 : vector<256x128xf32>
    %121 = vector.shape_cast %120 : vector<256x128xf32> to vector<16x16x128xf32>
    %c1_264 = arith.constant 1 : index
    %c1_265 = arith.constant 1 : index
    %c0_266 = arith.constant 0 : index
    %122 = vector.load %arg13[%c1_264, %c1_265, %c0_266] : memref<18x18x128xf32, #tpu.memory_space<vmem>>, vector<16x16x128xf32>
    tpu.vector_store %arg13[%c1_264, %c1_265, %c0_266], %121 {strides = array<i32>} : memref<18x18x128xf32, #tpu.memory_space<vmem>>, vector<16x16x128xf32>,
    %c0_267 = arith.constant 0 : index
    %c0_268 = arith.constant 0 : index
    %c0_269 = arith.constant 0 : index
    %123 = vector.load %arg13[%c0_267, %c0_268, %c0_269] : memref<18x18x128xf32, #tpu.memory_space<vmem>>, vector<16x16x128xf32>
    %c0_270 = arith.constant 0 : index
    %c0_271 = arith.constant 0 : index
    %c0_272 = arith.constant 0 : index
    %124 = vector.load %arg15[%c0_270, %c0_271, %c0_272] : memref<16x16x1152xf32, #tpu.memory_space<vmem>>, vector<16x16x128xf32>
    tpu.vector_store %arg15[%c0_270, %c0_271, %c0_272], %123 {strides = array<i32>} : memref<16x16x1152xf32, #tpu.memory_space<vmem>>, vector<16x16x128xf32>,
    %c0_273 = arith.constant 0 : index
    %c1_274 = arith.constant 1 : index
    %c0_275 = arith.constant 0 : index
    %125 = vector.load %arg13[%c0_273, %c1_274, %c0_275] : memref<18x18x128xf32, #tpu.memory_space<vmem>>, vector<16x16x128xf32>
    %c0_276 = arith.constant 0 : index
    %c0_277 = arith.constant 0 : index
    %c128_278 = arith.constant 128 : index
    %126 = vector.load %arg15[%c0_276, %c0_277, %c128_278] : memref<16x16x1152xf32, #tpu.memory_space<vmem>>, vector<16x16x128xf32>
    tpu.vector_store %arg15[%c0_276, %c0_277, %c128_278], %125 {strides = array<i32>} : memref<16x16x1152xf32, #tpu.memory_space<vmem>>, vector<16x16x128xf32>,
    %c0_279 = arith.constant 0 : index
    %c2_280 = arith.constant 2 : index
    %c0_281 = arith.constant 0 : index
    %127 = vector.load %arg13[%c0_279, %c2_280, %c0_281] : memref<18x18x128xf32, #tpu.memory_space<vmem>>, vector<16x16x128xf32>
    %c0_282 = arith.constant 0 : index
    %c0_283 = arith.constant 0 : index
    %c256_284 = arith.constant 256 : index
    %128 = vector.load %arg15[%c0_282, %c0_283, %c256_284] : memref<16x16x1152xf32, #tpu.memory_space<vmem>>, vector<16x16x128xf32>
    tpu.vector_store %arg15[%c0_282, %c0_283, %c256_284], %127 {strides = array<i32>} : memref<16x16x1152xf32, #tpu.memory_space<vmem>>, vector<16x16x128xf32>,
    %c1_285 = arith.constant 1 : index
    %c0_286 = arith.constant 0 : index
    %c0_287 = arith.constant 0 : index
    %129 = vector.load %arg13[%c1_285, %c0_286, %c0_287] : memref<18x18x128xf32, #tpu.memory_space<vmem>>, vector<16x16x128xf32>
    %c0_288 = arith.constant 0 : index
    %c0_289 = arith.constant 0 : index
    %c384_290 = arith.constant 384 : index
    %130 = vector.load %arg15[%c0_288, %c0_289, %c384_290] : memref<16x16x1152xf32, #tpu.memory_space<vmem>>, vector<16x16x128xf32>
    tpu.vector_store %arg15[%c0_288, %c0_289, %c384_290], %129 {strides = array<i32>} : memref<16x16x1152xf32, #tpu.memory_space<vmem>>, vector<16x16x128xf32>,
    %c1_291 = arith.constant 1 : index
    %c1_292 = arith.constant 1 : index
    %c0_293 = arith.constant 0 : index
    %131 = vector.load %arg13[%c1_291, %c1_292, %c0_293] : memref<18x18x128xf32, #tpu.memory_space<vmem>>, vector<16x16x128xf32>
    %c0_294 = arith.constant 0 : index
    %c0_295 = arith.constant 0 : index
    %c512_296 = arith.constant 512 : index
    %132 = vector.load %arg15[%c0_294, %c0_295, %c512_296] : memref<16x16x1152xf32, #tpu.memory_space<vmem>>, vector<16x16x128xf32>
    tpu.vector_store %arg15[%c0_294, %c0_295, %c512_296], %131 {strides = array<i32>} : memref<16x16x1152xf32, #tpu.memory_space<vmem>>, vector<16x16x128xf32>,
    %c1_297 = arith.constant 1 : index
    %c2_298 = arith.constant 2 : index
    %c0_299 = arith.constant 0 : index
    %133 = vector.load %arg13[%c1_297, %c2_298, %c0_299] : memref<18x18x128xf32, #tpu.memory_space<vmem>>, vector<16x16x128xf32>
    %c0_300 = arith.constant 0 : index
    %c0_301 = arith.constant 0 : index
    %c640_302 = arith.constant 640 : index
    %134 = vector.load %arg15[%c0_300, %c0_301, %c640_302] : memref<16x16x1152xf32, #tpu.memory_space<vmem>>, vector<16x16x128xf32>
    tpu.vector_store %arg15[%c0_300, %c0_301, %c640_302], %133 {strides = array<i32>} : memref<16x16x1152xf32, #tpu.memory_space<vmem>>, vector<16x16x128xf32>,
    %c2_303 = arith.constant 2 : index
    %c0_304 = arith.constant 0 : index
    %c0_305 = arith.constant 0 : index
    %135 = vector.load %arg13[%c2_303, %c0_304, %c0_305] : memref<18x18x128xf32, #tpu.memory_space<vmem>>, vector<16x16x128xf32>
    %c0_306 = arith.constant 0 : index
    %c0_307 = arith.constant 0 : index
    %c768_308 = arith.constant 768 : index
    %136 = vector.load %arg15[%c0_306, %c0_307, %c768_308] : memref<16x16x1152xf32, #tpu.memory_space<vmem>>, vector<16x16x128xf32>
    tpu.vector_store %arg15[%c0_306, %c0_307, %c768_308], %135 {strides = array<i32>} : memref<16x16x1152xf32, #tpu.memory_space<vmem>>, vector<16x16x128xf32>,
    %c2_309 = arith.constant 2 : index
    %c1_310 = arith.constant 1 : index
    %c0_311 = arith.constant 0 : index
    %137 = vector.load %arg13[%c2_309, %c1_310, %c0_311] : memref<18x18x128xf32, #tpu.memory_space<vmem>>, vector<16x16x128xf32>
    %c0_312 = arith.constant 0 : index
    %c0_313 = arith.constant 0 : index
    %c896_314 = arith.constant 896 : index
    %138 = vector.load %arg15[%c0_312, %c0_313, %c896_314] : memref<16x16x1152xf32, #tpu.memory_space<vmem>>, vector<16x16x128xf32>
    tpu.vector_store %arg15[%c0_312, %c0_313, %c896_314], %137 {strides = array<i32>} : memref<16x16x1152xf32, #tpu.memory_space<vmem>>, vector<16x16x128xf32>,
    %c2_315 = arith.constant 2 : index
    %c2_316 = arith.constant 2 : index
    %c0_317 = arith.constant 0 : index
    %139 = vector.load %arg13[%c2_315, %c2_316, %c0_317] : memref<18x18x128xf32, #tpu.memory_space<vmem>>, vector<16x16x128xf32>
    %c0_318 = arith.constant 0 : index
    %c0_319 = arith.constant 0 : index
    %c1024_320 = arith.constant 1024 : index
    %140 = vector.load %arg15[%c0_318, %c0_319, %c1024_320] : memref<16x16x1152xf32, #tpu.memory_space<vmem>>, vector<16x16x128xf32>
    tpu.vector_store %arg15[%c0_318, %c0_319, %c1024_320], %139 {strides = array<i32>} : memref<16x16x1152xf32, #tpu.memory_space<vmem>>, vector<16x16x128xf32>,
    %c0_321 = arith.constant 0 : index
    %c0_322 = arith.constant 0 : index
    %c0_323 = arith.constant 0 : index
    %141 = vector.load %arg15[%c0_321, %c0_322, %c0_323] : memref<16x16x1152xf32, #tpu.memory_space<vmem>>, vector<16x16x1152xf32>
    %142 = vector.shape_cast %141 : vector<16x16x1152xf32> to vector<256x1152xf32>
    %c0_324 = arith.constant 0 : index
    %c0_325 = arith.constant 0 : index
    %143 = vector.load %arg10[%c0_324, %c0_325] : memref<1152x128xf32, #tpu.memory_space<vmem>>, vector<1152x128xf32>
    %cst_326 = arith.constant dense<0.000000e+00> : vector<256x128xf32>
    %144 = tpu.matmul %142, %143, %cst_326 {dimension_numbers = #tpu.dot_dimension_numbers<[1], [0], [0], [1], [0, 0, 1, 1], [], []>} : vector<256x1152xf32>, vector<1152x128xf32>, vector<256x128xf32> -> vector<256x128xf32>
    %c0_327 = arith.constant 0 : index
    %c0_328 = arith.constant 0 : index
    %145 = vector.load %arg11[%c0_327, %c0_328] : memref<1x128xf32, #tpu.memory_space<vmem>>, vector<1x128xf32>
    %146 = vector.broadcast %145 : vector<1x128xf32> to vector<256x128xf32>
    %147 = arith.addf %144, %146 : vector<256x128xf32>
    %148 = arith.negf %147 : vector<256x128xf32>
    %149 = math.exp %148 : vector<256x128xf32>
    %cst_329 = arith.constant 1.000000e+00 : f32
    %150 = vector.broadcast %cst_329 : f32 to vector<256x128xf32>
    %151 = arith.addf %150, %149 : vector<256x128xf32>
    %152 = arith.divf %150, %151 : vector<256x128xf32>
    %153 = vector.shape_cast %152 : vector<256x128xf32> to vector<16x16x128xf32>
    %c0_330 = arith.constant 0 : index
    %c0_331 = arith.constant 0 : index
    %c0_332 = arith.constant 0 : index
    %c0_333 = arith.constant 0 : index
    %154 = vector.load %arg12[%c0_330, %c0_331, %c0_332, %c0_333] : memref<1x16x16x128xf32, #tpu.memory_space<vmem>>, vector<1x16x16x128xf32>
    %155 = vector.shape_cast %154 : vector<1x16x16x128xf32> to vector<16x16x128xf32>
    %156 = vector.shape_cast %153 : vector<16x16x128xf32> to vector<1x16x16x128xf32>
    tpu.vector_store %arg12[%c0_330, %c0_331, %c0_332, %c0_333], %156 {strides = array<i32>} : memref<1x16x16x128xf32, #tpu.memory_space<vmem>>, vector<1x16x16x128xf32>,
    return
  }
  func.func @transform_0(%arg0: i32) -> (i32, i32, i32, i32) {
    %c0_i32 = arith.constant 0 : i32
    %c0_i32_0 = arith.constant 0 : i32
    %c0_i32_1 = arith.constant 0 : i32
    %c0_i32_2 = arith.constant 0 : i32
    return %arg0, %c0_i32, %c0_i32_0, %c0_i32_1 : i32, i32, i32, i32
  }
  func.func @transform_1(%arg0: i32) -> (i32, i32) {
    %c0_i32 = arith.constant 0 : i32
    %c0_i32_0 = arith.constant 0 : i32
    %c0_i32_1 = arith.constant 0 : i32
    return %c0_i32, %c0_i32_0 : i32, i32
  }
  func.func @transform_2(%arg0: i32) -> (i32, i32) {
    %c0_i32 = arith.constant 0 : i32
    %c0_i32_0 = arith.constant 0 : i32
    %c0_i32_1 = arith.constant 0 : i32
    return %c0_i32, %c0_i32_0 : i32, i32
  }
  func.func @transform_3(%arg0: i32) -> (i32, i32) {
    %c0_i32 = arith.constant 0 : i32
    %c0_i32_0 = arith.constant 0 : i32
    %c0_i32_1 = arith.constant 0 : i32
    return %c0_i32, %c0_i32_0 : i32, i32
  }
  func.func @transform_4(%arg0: i32) -> (i32, i32) {
    %c0_i32 = arith.constant 0 : i32
    %c0_i32_0 = arith.constant 0 : i32
    %c0_i32_1 = arith.constant 0 : i32
    return %c0_i32, %c0_i32_0 : i32, i32
  }
  func.func @transform_5(%arg0: i32) -> (i32, i32) {
    %c0_i32 = arith.constant 0 : i32
    %c0_i32_0 = arith.constant 0 : i32
    %c0_i32_1 = arith.constant 0 : i32
    return %c0_i32, %c0_i32_0 : i32, i32
  }
  func.func @transform_6(%arg0: i32) -> (i32, i32) {
    %c0_i32 = arith.constant 0 : i32
    %c0_i32_0 = arith.constant 0 : i32
    %c0_i32_1 = arith.constant 0 : i32
    return %c0_i32, %c0_i32_0 : i32, i32
  }
  func.func @transform_7(%arg0: i32) -> (i32, i32) {
    %c0_i32 = arith.constant 0 : i32
    %c0_i32_0 = arith.constant 0 : i32
    %c0_i32_1 = arith.constant 0 : i32
    return %c0_i32, %c0_i32_0 : i32, i32
  }
  func.func @transform_8(%arg0: i32) -> (i32, i32) {
    %c0_i32 = arith.constant 0 : i32
    %c0_i32_0 = arith.constant 0 : i32
    %c0_i32_1 = arith.constant 0 : i32
    return %c0_i32, %c0_i32_0 : i32, i32
  }
  func.func @transform_9(%arg0: i32) -> (i32, i32) {
    %c0_i32 = arith.constant 0 : i32
    %c0_i32_0 = arith.constant 0 : i32
    %c0_i32_1 = arith.constant 0 : i32
    return %c0_i32, %c0_i32_0 : i32, i32
  }
  func.func @transform_10(%arg0: i32) -> (i32, i32) {
    %c0_i32 = arith.constant 0 : i32
    %c0_i32_0 = arith.constant 0 : i32
    %c0_i32_1 = arith.constant 0 : i32
    return %c0_i32, %c0_i32_0 : i32, i32
  }
  func.func @transform_11(%arg0: i32) -> (i32, i32, i32, i32) {
    %c0_i32 = arith.constant 0 : i32
    %c0_i32_0 = arith.constant 0 : i32
    %c0_i32_1 = arith.constant 0 : i32
    %c0_i32_2 = arith.constant 0 : i32
    return %arg0, %c0_i32, %c0_i32_0, %c0_i32_1 : i32, i32, i32, i32
  }
}

</mosaic_0001>

<bundles_post_ra>
// kernel: tpu_custom_call.1
= control target key start
LH: loop header
LB: loop body
LE: loop exit
PB: predicated region body
PF: predicated region fallthrough
CT: control target
= control target key end

     0   :  { %s18897_s0 = inlined_call_operand.vmem [shape: f32[2,16,16,4], index: 0, kind: input, shape index: {}]   ;;  %s18898_s1 = inlined_call_operand.hbm [shape: f32[1152,128], index: 1, kind: input, shape index: {}]   ;;  %s18899_s2 = inlined_call_operand.vmem [shape: f32[1,128], index: 2, kind: input, shape index: {}]   ;;  %s18900_s3 = inlined_call_operand.hbm [shape: f32[1152,128], index: 3, kind: input, shape index: {}]   ;;  %s18901_s4 = inlined_call_operand.vmem [shape: f32[1,128], index: 4, kind: input, shape index: {}]   ;;  %s18902_s5 = inlined_call_operand.hbm [shape: f32[1152,128], index: 5, kind: input, shape index: {}]   ;;  %s18903_s6 = inlined_call_operand.vmem [shape: f32[1,128], index: 6, kind: input, shape index: {}]   ;;  %s18904_s7 = inlined_call_operand.hbm [shape: f32[1152,128], index: 7, kind: input, shape index: {}]   ;;  %s18905_s8 = inlined_call_operand.vmem [shape: f32[1,128], index: 8, kind: input, shape index: {}]   ;;  %s18906_s9 = inlined_call_operand.hbm [shape: f32[1152,128], index: 9, kind: input, shape index: {}]   ;;  %s18907_s10 = inlined_call_operand.vmem [shape: f32[1,128], index: 10, kind: input, shape index: {}]   ;;  %s18908_s11 = inlined_call_operand.hbm [shape: f32[2,16,16,128], index: 11, kind: output, shape index: {}]  }
   0x1   :  { %18993 = sst [smem:[#allocation57_spill]] %s18900_s3 }
   0x2   :  { %18994 = sst [smem:[#allocation58_spill]] %s18908_s11 }
   0x3   :  { %16 = vsyncpa [#allocation6], 0 }
   0x4   :  { %17 = vsyncpa [#allocation9], 0 }
   0x5   :  { %18 = vsyncpa [#allocation12], 0 }
   0x6   :  { %19 = vsyncpa [#allocation7], 0 }
   0x7   :  { %21 = vsyncpa [#allocation7 + $0x1], 0  ;;  %s15381_s17 = smov 0   ;;  %s15383_s18 = smov 0  }
   0x8   :  { %s15385_s19 = smov 0   ;;  %s15387_s20 = smov 0  }
   0x9 LB: > { %18995 = sst [smem:[#allocation19_spill]] %s15295_s17  ;;  %s15402_s21 = sadd.s32 4294967295, %s15307_s20   ;;  %s15307_s20 = sphi %s15387_s20, %s19211_s20   ;;  %s15303_s19 = sphi %s15385_s19, %s19213_s19   ;;  %s15299_s18 = sphi %s15383_s18, %s19215_s18   ;;  %s15295_s17 = sphi %s15381_s17, %s19214_s17  }
   0xa   : > { %18996 = sst [smem:[#allocation20_spill]] %s15303_s19  ;;  %s11941_s22 = sadd.s32 4294967294, %s15307_s20  }
   0xb   : > { %18997 = sst [smem:[#allocation21_spill]] %s15307_s20  ;;  %s15406_s23 = sadd.s32 1, %s15307_s20  }
   0xc   : > { %18998 = sst [smem:[#allocation22_spill]] %s15406_s23  ;;  %s270_s24 = sadd.s32 1, %s15303_s19 }
   0xd   : > { %s267_s25 = ssub.s32 %s15307_s20, %s15406_s23  ;;  %p280_p0 = scmp.ne.s32.totalorder %s15303_s19, %s15299_s18 }
   0xe   : > { %p268_p1 = scmp.eq.s32.totalorder %s267_s25, 0  ;;  %p281_p2 = scmp.eq.s32.totalorder %s15402_s21, 1 }
   0xf   : > { %p286_p3 = scmp.ne.s32.totalorder %s15299_s18, %s15295_s17  ;;  %p287_p4 = scmp.eq.s32.totalorder %s11941_s22, 1 }
  0x10   : > { %s15417_s26 = scalar_select %p268_p1, %s15303_s19, %s270_s24  }
  0x11   : > { %p15419_p5 = por %p281_p2, %p280_p0  ;;  %p15423_p6 = por %p287_p4, %p286_p3 }
  0x12   : > { %18999 = sst [smem:[#allocation23_spill]] %s15417_s26  ;;  %p11942_p7 = scmp.ge.s32.totalorder %s15307_s20, 1 }
  0x13   : > { %s19000_s27 = scalar_select %p15419_p5, 1, 0 }
  0x14   : > { %s19001_s28 = scalar_select %p15423_p6, 1, 0 }
  0x15   : > { %p294_p8 = scmp.lt.s32.totalorder %s15307_s20, 3  ;;  %p18912_p9 = scmp.eq.s32.totalorder %s15402_s21, 0 }
  0x16   : > { %19002 = sst [smem:[#allocation24_spill]] %s19001_s28  ;;  %s15309_s30 = smov [#allocation8]  }
  0x17   : > { %p15430_p10 = pnand %p11942_p7, %p294_p8  ;;  %s322_s12 = sshll.u32 %s15309_s30, 4  ;;  %s15436_s12 = int_to_ptr.vmem [resolvable:$true] %s322_s12 }
  0x18   : > { %s15310_s14 = smov [#allocation11]   ;;  %s15311_s16 = smov [#allocation5]  }
  0x19   : > { %s19003_s29 = scalar_select %p15430_p10, 1, 0 }
  0x1a   : > { %p14884_p11 = pneg %p15430_p10  ;;  %s354_s15 = sshll.u32 %s15310_s14, 4  ;;  %s15444_s15 = int_to_ptr.vmem [resolvable:$true] %s354_s15 }
  0x1b   : > { %s15446_s22 = sshll.u32 %s15311_s16, 4  ;;  %s19005_s3 = sld [smem:[#allocation57_spill]]  ;;  %s307_s22 = int_to_ptr.vmem [resolvable:$true] %s15446_s22 }
  0x1c   : > { %p15440_p12 = pnand %p18912_p9, %p14884_p11 }
  0x1e   : > { %p15456_p0 = pneg %p15440_p12 }
  0x21   : > { %s15093_s26 = scalar_lea.hbm %s19005_s3, 18432 }
  0x22   : > { %p15094_p13 = scmp.ne.s32.totalorder %s19005_s3, %s15093_s26  ;;  %p15100_p3 = scmp.lt.u32.totalorder %s15093_s26, %s19005_s3 }
  0x24   : > { %p15096_p1 = pnand %p15456_p0, %p15094_p13 }
  0x26   : > { %p15097_p2 = pneg %p15096_p1 }
  0x28   : > { %p15102_p4 = pnand %p15100_p3, %p15097_p2 }
  0x2a   : > { %15105 = shalt.err (!%p15102_p4)
}
  0x2b   : > { %s15106_s19 = scalar_lea.vmem %s15436_s12, 18432  ;;  %p15114_p9 = scmp.lt.s32.totalorder %s15436_s12, %s15436_s12 }
  0x2c   : > { %p15107_p7 = scmp.ne.s32.totalorder %s15436_s12, %s15106_s19  ;;  %p15115_p6 = scmp.lt.s32.totalorder %s15106_s19, %s15106_s19 }
  0x2e   : > { %p15109_p8 = pnand %p15107_p7, %p15456_p0  ;;  %p15116_p13 = por %p15115_p6, %p15114_p9 }
  0x30   : > { %p15110_p11 = pneg %p15109_p8 }
  0x32   : > { %p15117_p1 = pnand %p15116_p13, %p15110_p11 }
  0x34   : > { %15120 = shalt.err (!%p15117_p1)
}
  0x35   : > { %s15312_s24 = smov 128   ;;  %s15313_s26 = smov 8  }
  0x36   : > { %14890 = dma.hbm_to_vmem [thread:$0]  (!%p15440_p12), %s19005_s3, 18432, %s15436_s12, [#allocation9], %s15312_s24, %s15312_s24, %s15313_s26  }
  0x37   : > { %s15121_s19 = scalar_lea.hbm %s18904_s7, 18432 }
  0x38   : > { %p15122_p6 = scmp.ne.s32.totalorder %s18904_s7, %s15121_s19  ;;  %p15128_p3 = scmp.lt.u32.totalorder %s15121_s19, %s18904_s7 }
  0x3a   : > { %p15124_p9 = pnand %p15122_p6, %p15456_p0 }
  0x3c   : > { %p15125_p2 = pneg %p15124_p9 }
  0x3e   : > { %p15130_p4 = pnand %p15128_p3, %p15125_p2 }
  0x40   : > { %15133 = shalt.err (!%p15130_p4)
}
  0x41   : > { %s15134_s12 = scalar_lea.vmem %s15444_s15, 18432  ;;  %p15142_p13 = scmp.lt.s32.totalorder %s15444_s15, %s15444_s15 }
  0x42   : > { %p15135_p7 = scmp.ne.s32.totalorder %s15444_s15, %s15134_s12  ;;  %p15143_p1 = scmp.lt.s32.totalorder %s15134_s12, %s15134_s12 }
  0x44   : > { %p15137_p8 = pnand %p15135_p7, %p15456_p0  ;;  %p15144_p6 = por %p15143_p1, %p15142_p13 }
  0x46   : > { %p15138_p11 = pneg %p15137_p8 }
  0x48   : > { %p15145_p9 = pnand %p15144_p6, %p15138_p11 }
  0x4a   : > { %15148 = shalt.err (!%p15145_p9)
}
  0x4b   : > { %14896 = dma.hbm_to_vmem [thread:$0]  (!%p15440_p12), %s18904_s7, 18432, %s15444_s15, [#allocation12], %s15312_s24, %s15312_s24, %s15313_s26  }
  0x4c   : > { %s15149_s25 = scalar_lea.hbm %s18898_s1, 18432 }
  0x4d   : > { %p15150_p2 = scmp.ne.s32.totalorder %s18898_s1, %s15149_s25  ;;  %p15156_p7 = scmp.lt.u32.totalorder %s15149_s25, %s18898_s1 }
  0x4f   : > { %p15152_p3 = pnand %p15150_p2, %p15456_p0 }
  0x51   : > { %p15153_p4 = pneg %p15152_p3 }
  0x53   : > { %p15158_p8 = pnand %p15156_p7, %p15153_p4 }
  0x55   : > { %15161 = shalt.err (!%p15158_p8)
}
  0x56   : > { %s15162_s12 = scalar_lea.vmem %s307_s22, 18432  ;;  %p15170_p6 = scmp.lt.s32.totalorder %s307_s22, %s307_s22 }
  0x57   : > { %p15163_p11 = scmp.ne.s32.totalorder %s307_s22, %s15162_s12  ;;  %p15171_p9 = scmp.lt.s32.totalorder %s15162_s12, %s15162_s12 }
  0x59   : > { %p15165_p13 = pnand %p15163_p11, %p15456_p0  ;;  %p15172_p5 = por %p15171_p9, %p15170_p6 }
  0x5b   : > { %p15166_p1 = pneg %p15165_p13 }
  0x5d   : > { %p15173_p10 = pnand %p15172_p5, %p15166_p1 }
  0x5f   : > { %15176 = shalt.err (!%p15173_p10)
}
  0x60   : > { %14887 = dma.hbm_to_vmem [thread:$0]  (!%p15440_p12), %s18898_s1, 18432, %s307_s22, [#allocation6], %s15312_s24, %s15312_s24, %s15313_s26  }
  0x61   : > { %s15314_s17 = smov [#allocation10]   ;;  %s15315_s28 = smov [#allocation13]  }
  0x62   : > { %s338_s20 = sshll.u32 %s15314_s17, 4  ;;  %s370_s25 = sshll.u32 %s15315_s28, 4  ;;  %s339_s20 = int_to_ptr.vmem [resolvable:$true] %s338_s20  ;;  %s371_s25 = int_to_ptr.vmem [resolvable:$true] %s370_s25 }
  0x63   : > { %s15177_s16 = scalar_lea.hbm %s18902_s5, 18432 }
  0x64   : > { %p15178_p5 = scmp.ne.s32.totalorder %s18902_s5, %s15177_s16  ;;  %p15184_p3 = scmp.lt.u32.totalorder %s15177_s16, %s18902_s5 }
  0x66   : > { %p15180_p10 = pnand %p15178_p5, %p15456_p0 }
  0x68   : > { %p15181_p2 = pneg %p15180_p10 }
  0x6a   : > { %p15186_p4 = pnand %p15184_p3, %p15181_p2 }
  0x6c   : > { %15189 = shalt.err (!%p15186_p4)
}
  0x6d   : > { %s15190_s22 = scalar_lea.vmem %s339_s20, 18432  ;;  %p15198_p13 = scmp.lt.s32.totalorder %s339_s20, %s339_s20 }
  0x6e   : > { %p15191_p7 = scmp.ne.s32.totalorder %s339_s20, %s15190_s22  ;;  %p15199_p1 = scmp.lt.s32.totalorder %s15190_s22, %s15190_s22 }
  0x70   : > { %p15193_p8 = pnand %p15191_p7, %p15456_p0  ;;  %p15200_p6 = por %p15199_p1, %p15198_p13 }
  0x72   : > { %p15194_p11 = pneg %p15193_p8 }
  0x74   : > { %p15201_p9 = pnand %p15200_p6, %p15194_p11 }
  0x76   : > { %15204 = shalt.err (!%p15201_p9)
}
  0x77   : > { %14893 = dma.hbm_to_vmem [thread:$0]  (!%p15440_p12), %s18902_s5, 18432, %s339_s20, [#allocation9], %s15312_s24, %s15312_s24, %s15313_s26  }
  0x78   : > { %s15205_s30 = scalar_lea.hbm %s18906_s9, 18432 }
  0x79   : > { %p15206_p5 = scmp.ne.s32.totalorder %s18906_s9, %s15205_s30  ;;  %p15212_p3 = scmp.lt.u32.totalorder %s15205_s30, %s18906_s9 }
  0x7b   : > { %p15208_p10 = pnand %p15206_p5, %p15456_p0 }
  0x7d   : > { %p15209_p2 = pneg %p15208_p10 }
  0x7f   : > { %p15214_p4 = pnand %p15212_p3, %p15209_p2 }
  0x81   : > { %15217 = shalt.err (!%p15214_p4)
}
  0x82   : > { %s15218_s15 = scalar_lea.vmem %s371_s25, 18432  ;;  %p15226_p13 = scmp.lt.s32.totalorder %s371_s25, %s371_s25 }
  0x83   : > { %p15219_p7 = scmp.ne.s32.totalorder %s371_s25, %s15218_s15  ;;  %p15227_p1 = scmp.lt.s32.totalorder %s15218_s15, %s15218_s15 }
  0x85   : > { %p15221_p8 = pnand %p15219_p7, %p15456_p0  ;;  %p15228_p6 = por %p15227_p1, %p15226_p13 }
  0x87   : > { %p15222_p11 = pneg %p15221_p8 }
  0x89   : > { %p15229_p9 = pnand %p15228_p6, %p15222_p11 }
  0x8b   : > { %15232 = shalt.err (!%p15229_p9)
}
  0x8c   : > { %14899 = dma.hbm_to_vmem [thread:$0]  (!%p15440_p12), %s18906_s9, 18432, %s371_s25, [#allocation12], %s15312_s24, %s15312_s24, %s15313_s26  }
  0x8d   : > { %p19007_p5 = scmp.ne.s32.totalorder %s19003_s29, 0 }
  0x8f   : > { %397 = sbr.rel (%p19007_p5) target bundleno = 3203 (0xc83), region = 64 }
  0x96   : > { %p19008_p0 = scmp.eq.s32.totalorder %s15402_s21, 0 }
  0x98   : > { %15278 = dma.done.wait (%p19008_p0), [#allocation6], 18432   ;;  %p19009_p10 = pmov %p19008_p0 }
  0x99   : > { %p19010_p2 = pmov %p19008_p0 }
  0x9a   : > { %15280 = vsyncadd (%p19009_p10), [#allocation6], 4294948864 }
  0x9b   : > { %15282 = dma.done.wait (%p19010_p2), [#allocation9], 36864   ;;  %p19011_p3 = pmov %p19008_p0 }
  0x9c   : > { %p19012_p4 = pmov %p19008_p0 }
  0x9d   : > { %15284 = vsyncadd (%p19011_p3), [#allocation9], 4294930432 }
  0x9e   : > { %15286 = dma.done.wait (%p19012_p4), [#allocation12], 36864   ;;  %p19013_p12 = pmov %p19008_p0 }
  0x9f   : > { %v18919_v0 = vmov 0.0|0.0   ;;  %v15317_v1 = vmov 0.0   ;;  %p453_p7 = scmp.lt.s32.totalorder %s15402_s21, 1  ;;  %v1497_v2 = vld [vmem:[#allocation5] sm:$0xff]  ;;  %v1498_v3 = vld [vmem:[#allocation5 + $0x8] sm:$0xff]  ;;  %v1499_v4 = vld [vmem:[#allocation5 + $0x10] sm:$0xff] }
  0xa0   : > { %15288 = vsyncadd (%p19013_p12), [#allocation12], 4294930432  ;;  %12642 = vmatprep.subr.bf16.mxu0 %v18919_v0  ;;  %458 = vst [vmem:[#allocation2] sm:$0xff] %v15317_v1  ;;  %v12643_v5 = vpack.c.bf16 %v1498_v3, %v1497_v2  ;;  %v1500_v6 = vld [vmem:[#allocation5 + $0x18] sm:$0xff]  ;;  %v1501_v8 = vld [vmem:[#allocation5 + $0x20] sm:$0xff]  ;;  %vm599_vm0 = vcmask 31744  }
  0xa1   : > { %459 = vst [vmem:[#allocation2 + $0x8] sm:$0xff] %v15317_v1  ;;  %460 = vst [vmem:[#allocation2 + $0x10] sm:$0x3] %v15317_v1  ;;  %s454_s23 = scalar_select %p453_p7, %s15402_s21, 1  ;;  %v12646_v7 = vpack.c.bf16 %v1500_v6, %v1499_v4  ;;  %v1502_v9 = vld [vmem:[#allocation5 + $0x28] sm:$0xff]  ;;  %v1503_v11 = vld [vmem:[#allocation5 + $0x30] sm:$0xff] }
  0xa2   : > { %461 = vst [vmem:[#allocation2 + $0x18] sm:$0xff] %v15317_v1  ;;  %462 = vst [vmem:[#allocation2 + $0x20] sm:$0xff] %v15317_v1  ;;  %12644 = vmatpush1.bf16.msra.mxu0 %v12643_v5  ;;  %v12649_v10 = vpack.c.bf16 %v1502_v9, %v1501_v8  ;;  %v1504_v12 = vld [vmem:[#allocation5 + $0x38] sm:$0xff]  ;;  %v1505_v15 = vld [vmem:[#allocation5 + $0x40] sm:$0xff]  ;;  %s450_s15 = sand.u32 1, %s15299_s18   ;;  %p19206_p11 = scmp.ne.s32.totalorder %s19000_s27, 0 }
  0xa3   : > { %463 = vst [vmem:[#allocation2 + $0x28] sm:$0x3] %v15317_v1  ;;  %464 = vst [vmem:[#allocation2 + $0x30] sm:$0xff] %v15317_v1  ;;  %12645 = vmatprep.subr.bf16.mxu0 %v18919_v0  ;;  %s12000_s29 = sshll.u32 %s454_s23, 8  ;;  %v12652_v14 = vpack.c.bf16 %v1504_v12, %v1503_v11  ;;  %v1506_v16 = vld [vmem:[#allocation5 + $0x48] sm:$0xff]  ;;  %v1507_v24 = vld [vmem:[#allocation5 + $0x50] sm:$0xff] }
  0xa4   : > { %465 = vst [vmem:[#allocation2 + $0x38] sm:$0xff] %v15317_v1  ;;  %466 = vst [vmem:[#allocation2 + $0x40] sm:$0x3] %v15317_v1  ;;  %s15700_s26 = scalar_lea.vmem %s18897_s0, %s12000_s29  ;;  %v12655_v22 = vpack.c.bf16 %v1506_v16, %v1505_v15  ;;  %v1508_v25 = vld [vmem:[#allocation5 + $0x58] sm:$0xff]  ;;  %v1509_v33 = vld [vmem:[#allocation5 + $0x60] sm:$0xff]  ;;  %s11955_s20 = sshll.u32 %s450_s15, 8 }
  0xa5   : > { %467 = vst [vmem:[#allocation2 + $0x48] sm:$0xff] %v15317_v1  ;;  %468 = vst [vmem:[#allocation2 + $0x50] sm:$0xff] %v15317_v1  ;;  %v566_v17 = vld [vmem:[%s15700_s26] sm:$0xff]  ;;  %v567_v18 = vld [vmem:[%s15700_s26 + $0x8] sm:$0xff]  ;;  %v12658_v31 = vpack.c.bf16 %v1508_v25, %v1507_v24  ;;  %s18762_s22 = scalar_lea.vmem [#allocation14], %s11955_s20  ;;  %s12001_s23 = sshll.u32 %s15402_s21, 12 }
  0xa6   : > { %469 = vst [vmem:[#allocation2 + $0x58] sm:$0x3] %v15317_v1  ;;  %470 = vst [vmem:[#allocation2 + $0x60] sm:$0xff] %v15317_v1  ;;  %12647 = vmatpush1.bf16.msra.mxu0 %v12646_v7  ;;  %v568_v19 = vld [vmem:[%s15700_s26 + $0x10] sm:$0xff]  ;;  %v569_v20 = vld [vmem:[%s15700_s26 + $0x18] sm:$0xff]  ;;  %s11829_s29 = sshll.u32 %s18762_s22, 4  ;;  %s18851_s29 = int_to_ptr.vmem [resolvable:$true] %s11829_s29 }
  0xa7   : > { %471 = vst [vmem:[#allocation2 + $0x68] sm:$0xff] %v15317_v1  ;;  %472 = vst [vmem:[#allocation2 + $0x70] sm:$0x3] %v15317_v1  ;;  %12648 = vmatprep.subr.bf16.mxu0 %v18919_v0  ;;  %v570_v21 = vld [vmem:[%s15700_s26 + $0x20] sm:$0xff]  ;;  %v571_v23 = vld [vmem:[%s15700_s26 + $0x28] sm:$0xff]  ;;  %s18856_s3 = scalar_lea.sflag [#allocation7], %s450_s15 }
  0xa8   : > { %473 = vst [vmem:[#allocation2 + $0x78] sm:$0xff] %v15317_v1  ;;  %474 = vst [vmem:[#allocation2 + $0x80] sm:$0xff] %v15317_v1  ;;  %v696_v13 = vld [vmem:[#allocation2 + $0x1] sm:$0xff]  ;;  %v572_v26 = vld [vmem:[%s15700_s26 + $0x30] sm:$0xff]  ;;  %s15233_s11 = scalar_lea.vmem %s18851_s29, 4096  ;;  %s15318_s21 = smov [#allocation14]  }
  0xa9   : > { %475 = vst [vmem:[#allocation2 + $0x88] sm:$0x3] %v15317_v1  ;;  %476 = vst [vmem:[#allocation2 + $0x90] sm:$0xff] %v15317_v1  ;;  %1712 = vmatprep.mubr.f32.mxu0 %v696_v13  ;;  %v573_v27 = vld [vmem:[%s15700_s26 + $0x38] sm:$0xff]  ;;  %v574_v28 = vld [vmem:[%s15700_s26 + $0x40] sm:$0xff]  ;;  %p15234_p8 = scmp.ne.s32.totalorder %s18851_s29, %s15233_s11  ;;  %s15237_s17 = sshll.u32 %s15318_s21, 4  ;;  %s15238_s17 = int_to_ptr.vmem [resolvable:$false] %s15237_s17 }
  0xaa   : > { %477 = vst [vmem:[#allocation2 + $0x98] sm:$0xff] %v15317_v1  ;;  %478 = vst [vmem:[#allocation2 + $0xa0] sm:$0x3] %v15317_v1  ;;  %12650 = vmatpush1.bf16.msra.mxu0 %v12649_v10  ;;  %v575_v29 = vld [vmem:[%s15700_s26 + $0x48] sm:$0xff]  ;;  %v576_v30 = vld [vmem:[%s15700_s26 + $0x50] sm:$0xff]  ;;  %s15239_s28 = scalar_lea.vmem %s15238_s17, 8192  ;;  %p15240_p6 = scmp.lt.s32.totalorder %s18851_s29, %s15238_s17 }
  0xab   : > { %479 = vst [vmem:[#allocation2 + $0xa8] sm:$0xff] %v15317_v1  ;;  %480 = vst [vmem:[#allocation2 + $0xb0] sm:$0xff] %v15317_v1  ;;  %12651 = vmatprep.subr.bf16.mxu0 %v18919_v0  ;;  %v577_v32 = vld [vmem:[%s15700_s26 + $0x58] sm:$0xff]  ;;  %v1510_v34 = vld [vmem:[#allocation5 + $0x68] sm:$0xff]  ;;  %p15235_p13 = pnand %p15234_p8, %p19206_p11  ;;  %p15241_p9 = scmp.lt.s32.totalorder %s15239_s28, %s15233_s11 }
  0xac   : > { %481 = vst [vmem:[#allocation2 + $0xb8] sm:$0x3] %v15317_v1  ;;  %482 = vst [vmem:[#allocation2 + $0xc0] sm:$0xff] %v15317_v1  ;;  %v578_v35 = vld [vmem:[%s15700_s26 + $0x60] sm:$0xff]  ;;  %v12661_v36 = vpack.c.bf16 %v1510_v34, %v1509_v33  ;;  %v1511_v37 = vld [vmem:[#allocation5 + $0x70] sm:$0xff] }
  0xad   : > { %483 = vst [vmem:[#allocation2 + $0xc8] sm:$0xff] %v15317_v1  ;;  %484 = vst [vmem:[#allocation2 + $0xd0] sm:$0x3] %v15317_v1  ;;  %v1512_v38 = vld [vmem:[#allocation5 + $0x78] sm:$0xff]  ;;  %v1513_v40 = vld [vmem:[#allocation5 + $0x80] sm:$0xff]  ;;  %p15236_p1 = pneg %p15235_p13  ;;  %p15242_p5 = por %p15241_p9, %p15240_p6 }
  0xae   : > { %485 = vst [vmem:[#allocation2 + $0xd8] sm:$0xff] %v15317_v1  ;;  %486 = vst [vmem:[#allocation2 + $0xe0] sm:$0xff] %v15317_v1  ;;  %12653 = vmatpush1.bf16.msra.mxu0 %v12652_v14  ;;  %v12664_v39 = vpack.c.bf16 %v1512_v38, %v1511_v37  ;;  %v1514_v41 = vld [vmem:[#allocation5 + $0x88] sm:$0xff]  ;;  %v580_v43 = vld [vmem:[%s15700_s26 + $0x70] sm:$0xff] }
  0xaf   : > { %487 = vst [vmem:[#allocation2 + $0xe8] sm:$0x3] %v15317_v1  ;;  %488 = vst [vmem:[#allocation2 + $0xf0] sm:$0xff] %v15317_v1  ;;  %12654 = vmatprep.subr.bf16.mxu0 %v18919_v0  ;;  %v579_v42 = vld [vmem:[%s15700_s26 + $0x68] sm:$0xff]  ;;  %v12667_v44 = vpack.c.bf16 %v1514_v41, %v1513_v40  ;;  %v1515_v45 = vld [vmem:[#allocation5 + $0x90] sm:$0xff]  ;;  %p15243_p0 = pnand %p15242_p5, %p15236_p1 }
  0xb0   : > { %489 = vst [vmem:[#allocation2 + $0xf8] sm:$0xff] %v15317_v1  ;;  %490 = vst [vmem:[#allocation2 + $0x100] sm:$0x3] %v15317_v1  ;;  %v581_v46 = vld [vmem:[%s15700_s26 + $0x78] sm:$0xff]  ;;  %v582_v47 = vld [vmem:[%s15700_s26 + $0x80] sm:$0xff] }
  0xb1   : > { %491 = vst [vmem:[#allocation2 + $0x108] sm:$0xff] %v15317_v1  ;;  %492 = vst [vmem:[#allocation2 + $0x110] sm:$0xff] %v15317_v1  ;;  %v1516_v48 = vld [vmem:[#allocation5 + $0x98] sm:$0xff]  ;;  %v583_v49 = vld [vmem:[%s15700_s26 + $0x88] sm:$0xff] }
  0xb2   : > { %493 = vst [vmem:[#allocation2 + $0x118] sm:$0x3] %v15317_v1  ;;  %494 = vst [vmem:[#allocation2 + $0x120] sm:$0xff] %v15317_v1  ;;  %12656 = vmatpush1.bf16.msra.mxu0 %v12655_v22  ;;  %v584_v50 = vld [vmem:[%s15700_s26 + $0x90] sm:$0xff]  ;;  %v585_v51 = vld [vmem:[%s15700_s26 + $0x98] sm:$0xff]  ;;  %v12670_v53 = vpack.c.bf16 %v1516_v48, %v1515_v45 }
  0xb3   : > { %495 = vst [vmem:[#allocation2 + $0x128] sm:$0xff] %v15317_v1  ;;  %496 = vst [vmem:[#allocation2 + $0x130] sm:$0x3] %v15317_v1  ;;  %12657 = vmatprep.subr.bf16.mxu0 %v18919_v0  ;;  %v586_v52 = vld [vmem:[%s15700_s26 + $0xa0] sm:$0xff]  ;;  %v587_v55 = vld [vmem:[%s15700_s26 + $0xa8] sm:$0xff] }
  0xb4   : > { %497 = vst [vmem:[#allocation2 + $0x138] sm:$0xff] %v15317_v1  ;;  %498 = vst [vmem:[#allocation2 + $0x140] sm:$0xff] %v15317_v1  ;;  %v1517_v54 = vld [vmem:[#allocation5 + $0xa0] sm:$0xff]  ;;  %v588_v56 = vld [vmem:[%s15700_s26 + $0xb0] sm:$0xff] }
  0xb5   : > { %499 = vst [vmem:[#allocation2 + $0x148] sm:$0x3] %v15317_v1  ;;  %500 = vst [vmem:[#allocation2 + $0x150] sm:$0xff] %v15317_v1  ;;  %v1518_v57 = vld [vmem:[#allocation5 + $0xa8] sm:$0xff]  ;;  %v589_v58 = vld [vmem:[%s15700_s26 + $0xb8] sm:$0xff] }
  0xb6   : > { %501 = vst [vmem:[#allocation2 + $0x158] sm:$0xff] %v15317_v1  ;;  %502 = vst [vmem:[#allocation2 + $0x160] sm:$0x3] %v15317_v1  ;;  %12659 = vmatpush1.bf16.msra.mxu0 %v12658_v31  ;;  %v590_v59 = vld [vmem:[%s15700_s26 + $0xc0] sm:$0xff]  ;;  %v591_v60 = vld [vmem:[%s15700_s26 + $0xc8] sm:$0xff]  ;;  %v12673_v61 = vpack.c.bf16 %v1518_v57, %v1517_v54 }
  0xb7   : > { %503 = vst [vmem:[#allocation2 + $0x168] sm:$0xff] %v15317_v1  ;;  %504 = vst [vmem:[#allocation2 + $0x170] sm:$0xff] %v15317_v1  ;;  %12660 = vmatprep.subr.bf16.mxu0 %v18919_v0  ;;  %v1519_v62 = vld [vmem:[#allocation5 + $0xb0] sm:$0xff]  ;;  %v1520_v63 = vld [vmem:[#allocation5 + $0xb8] sm:$0xff] }
  0xb8   : > { %505 = vst [vmem:[#allocation2 + $0x178] sm:$0x3] %v15317_v1  ;;  %506 = vst [vmem:[#allocation2 + $0x180] sm:$0xff] %v15317_v1  ;;  %v12676_v2 = vpack.c.bf16 %v1520_v63, %v1519_v62  ;;  %v1521_v3 = vld [vmem:[#allocation5 + $0xc0] sm:$0xff]  ;;  %v1522_v4 = vld [vmem:[#allocation5 + $0xc8] sm:$0xff] }
  0xb9   : > { %507 = vst [vmem:[#allocation2 + $0x188] sm:$0xff] %v15317_v1  ;;  %508 = vst [vmem:[#allocation2 + $0x190] sm:$0x3] %v15317_v1  ;;  %v12679_v5 = vpack.c.bf16 %v1522_v4, %v1521_v3  ;;  %v592_v6 = vld [vmem:[%s15700_s26 + $0xd0] sm:$0xff]  ;;  %v593_v7 = vld [vmem:[%s15700_s26 + $0xd8] sm:$0xff] }
  0xba   : > { %509 = vst [vmem:[#allocation2 + $0x198] sm:$0xff] %v15317_v1  ;;  %510 = vst [vmem:[#allocation2 + $0x1a0] sm:$0xff] %v15317_v1  ;;  %12662 = vmatpush1.bf16.msra.mxu0 %v12661_v36  ;;  %v1523_v8 = vld [vmem:[#allocation5 + $0xd0] sm:$0xff]  ;;  %v1524_v9 = vld [vmem:[#allocation5 + $0xd8] sm:$0xff] }
  0xbb   : > { %511 = vst [vmem:[#allocation2 + $0x1a8] sm:$0x3] %v15317_v1  ;;  %512 = vst [vmem:[#allocation3] sm:$0xff] %v15317_v1  ;;  %12663 = vmatprep.subr.bf16.mxu0 %v18919_v0  ;;  %v594_v10 = vld [vmem:[%s15700_s26 + $0xe0] sm:$0xff]  ;;  %v12682_v11 = vpack.c.bf16 %v1524_v9, %v1523_v8  ;;  %v1526_v13 = vld [vmem:[#allocation5 + $0xe8] sm:$0xff] }
  0xbc   : > { %513 = vst [vmem:[#allocation3 + $0x8] sm:$0xff] %v15317_v1  ;;  %514 = vst [vmem:[#allocation3 + $0x10] sm:$0x3] %v15317_v1  ;;  %v1525_v12 = vld [vmem:[#allocation5 + $0xe0] sm:$0xff]  ;;  %v595_v14 = vld [vmem:[%s15700_s26 + $0xe8] sm:$0xff] }
  0xbd   : > { %515 = vst [vmem:[#allocation3 + $0x18] sm:$0xff] %v15317_v1  ;;  %516 = vst [vmem:[#allocation3 + $0x20] sm:$0xff] %v15317_v1  ;;  %v12685_v15 = vpack.c.bf16 %v1526_v13, %v1525_v12  ;;  %v1527_v16 = vld [vmem:[#allocation5 + $0xf0] sm:$0xff]  ;;  %v1532_v24 = vld [vmem:[#allocation5 + $0x118] sm:$0xff] }
  0xbe   : > { %517 = vst [vmem:[#allocation3 + $0x28] sm:$0x3] %v15317_v1  ;;  %518 = vst [vmem:[#allocation3 + $0x30] sm:$0xff] %v15317_v1  ;;  %12665 = vmatpush1.bf16.msra.mxu0 %v12664_v39  ;;  %v697_v22 = vld [vmem:[#allocation2 + $0x9] sm:$0xff]  ;;  %v1536_v33 = vld [vmem:[#allocation5 + $0x138] sm:$0xff] }
  0xbf   : > { %519 = vst [vmem:[#allocation3 + $0x38] sm:$0xff] %v15317_v1  ;;  %520 = vst [vmem:[#allocation3 + $0x40] sm:$0x3] %v15317_v1  ;;  %12666 = vmatprep.subr.bf16.mxu0 %v18919_v0  ;;  %v1537_v36 = vld [vmem:[#allocation5 + $0x140] sm:$0xff]  ;;  %v1538_v37 = vld [vmem:[#allocation5 + $0x148] sm:$0xff] }
  0xc0   : > { %521 = vst [vmem:[#allocation3 + $0x48] sm:$0xff] %v15317_v1  ;;  %522 = vst [vmem:[#allocation3 + $0x50] sm:$0xff] %v15317_v1  ;;  %v12703_v39 = vpack.c.bf16 %v1538_v37, %v1537_v36  ;;  %v1542_v48 = vld [vmem:[#allocation5 + $0x168] sm:$0xff]  ;;  %v1545_v57 = vld [vmem:[#allocation5 + $0x180] sm:$0xff] }
  0xc1   : > { %523 = vst [vmem:[#allocation3 + $0x58] sm:$0x3] %v15317_v1  ;;  %524 = vst [vmem:[#allocation3 + $0x60] sm:$0xff] %v15317_v1  ;;  %v1547_v62 = vld [vmem:[#allocation5 + $0x190] sm:$0xff]  ;;  %v1548_v63 = vld [vmem:[#allocation5 + $0x198] sm:$0xff] }
  0xc2   : > { %525 = vst [vmem:[#allocation3 + $0x68] sm:$0xff] %v15317_v1  ;;  %526 = vst [vmem:[#allocation3 + $0x70] sm:$0x3] %v15317_v1  ;;  %12668 = vmatpush1.bf16.msra.mxu0 %v12667_v44  ;;  %v12718_v3 = vpack.c.bf16 %v1548_v63, %v1547_v62 }
  0xc3   : > { %527 = vst [vmem:[#allocation3 + $0x78] sm:$0xff] %v15317_v1  ;;  %528 = vst [vmem:[#allocation3 + $0x80] sm:$0xff] %v15317_v1  ;;  %12669 = vmatprep.subr.bf16.mxu0 %v18919_v0 }
  0xc4   : > { %529 = vst [vmem:[#allocation3 + $0x88] sm:$0x3] %v15317_v1  ;;  %530 = vst [vmem:[#allocation3 + $0x90] sm:$0xff] %v15317_v1 }
  0xc5   : > { %531 = vst [vmem:[#allocation3 + $0x98] sm:$0xff] %v15317_v1  ;;  %532 = vst [vmem:[#allocation3 + $0xa0] sm:$0x3] %v15317_v1 }
  0xc6   : > { %533 = vst [vmem:[#allocation3 + $0xa8] sm:$0xff] %v15317_v1  ;;  %534 = vst [vmem:[#allocation3 + $0xb0] sm:$0xff] %v15317_v1  ;;  %12671 = vmatpush1.bf16.msra.mxu0 %v12670_v53  ;;  %v1544_v53 = vld [vmem:[#allocation5 + $0x178] sm:$0xff] }
  0xc7   : > { %535 = vst [vmem:[#allocation3 + $0xb8] sm:$0x3] %v15317_v1  ;;  %536 = vst [vmem:[#allocation3 + $0xc0] sm:$0xff] %v15317_v1  ;;  %12672 = vmatprep.subr.bf16.mxu0 %v18919_v0 }
  0xc8   : > { %537 = vst [vmem:[#allocation3 + $0xc8] sm:$0xff] %v15317_v1  ;;  %538 = vst [vmem:[#allocation3 + $0xd0] sm:$0x3] %v15317_v1 }
  0xc9   : > { %539 = vst [vmem:[#allocation3 + $0xd8] sm:$0xff] %v15317_v1  ;;  %540 = vst [vmem:[#allocation3 + $0xe0] sm:$0xff] %v15317_v1 }
  0xca   : > { %541 = vst [vmem:[#allocation3 + $0xe8] sm:$0x3] %v15317_v1  ;;  %542 = vst [vmem:[#allocation3 + $0xf0] sm:$0xff] %v15317_v1  ;;  %12674 = vmatpush1.bf16.msra.mxu0 %v12673_v61 }
  0xcb   : > { %543 = vst [vmem:[#allocation3 + $0xf8] sm:$0xff] %v15317_v1  ;;  %544 = vst [vmem:[#allocation3 + $0x100] sm:$0x3] %v15317_v1  ;;  %12675 = vmatprep.subr.bf16.mxu0 %v18919_v0 }
  0xcc   : > { %545 = vst [vmem:[#allocation3 + $0x108] sm:$0xff] %v15317_v1  ;;  %546 = vst [vmem:[#allocation3 + $0x110] sm:$0xff] %v15317_v1 }
  0xcd   : > { %547 = vst [vmem:[#allocation3 + $0x118] sm:$0x3] %v15317_v1  ;;  %548 = vst [vmem:[#allocation3 + $0x120] sm:$0xff] %v15317_v1 }
  0xce   : > { %549 = vst [vmem:[#allocation3 + $0x128] sm:$0xff] %v15317_v1  ;;  %550 = vst [vmem:[#allocation3 + $0x130] sm:$0x3] %v15317_v1  ;;  %12677 = vmatpush1.bf16.msra.mxu0 %v12676_v2 }
  0xcf   : > { %551 = vst [vmem:[#allocation3 + $0x138] sm:$0xff] %v15317_v1  ;;  %552 = vst [vmem:[#allocation3 + $0x140] sm:$0xff] %v15317_v1  ;;  %12678 = vmatprep.subr.bf16.mxu0 %v18919_v0 }
  0xd0   : > { %553 = vst [vmem:[#allocation3 + $0x148] sm:$0x3] %v15317_v1  ;;  %554 = vst [vmem:[#allocation3 + $0x150] sm:$0xff] %v15317_v1 }
  0xd1   : > { %555 = vst [vmem:[#allocation3 + $0x158] sm:$0xff] %v15317_v1  ;;  %556 = vst [vmem:[#allocation3 + $0x160] sm:$0x3] %v15317_v1 }
  0xd2   : > { %557 = vst [vmem:[#allocation3 + $0x168] sm:$0xff] %v15317_v1  ;;  %558 = vst [vmem:[#allocation3 + $0x170] sm:$0xff] %v15317_v1  ;;  %12680 = vmatpush1.bf16.msra.mxu0 %v12679_v5  ;;  %v1549_v5 = vld [vmem:[#allocation5 + $0x1a0] sm:$0xff] }
  0xd3   : > { %559 = vst [vmem:[#allocation3 + $0x178] sm:$0x3] %v15317_v1  ;;  %560 = vst [vmem:[#allocation3 + $0x180] sm:$0xff] %v15317_v1  ;;  %12681 = vmatprep.subr.bf16.mxu0 %v18919_v0 }
  0xd4   : > { %561 = vst [vmem:[#allocation3 + $0x188] sm:$0xff] %v15317_v1  ;;  %562 = vst [vmem:[#allocation3 + $0x190] sm:$0x3] %v15317_v1 }
  0xd5   : > { %563 = vst [vmem:[#allocation3 + $0x198] sm:$0xff] %v15317_v1  ;;  %564 = vst [vmem:[#allocation3 + $0x1a0] sm:$0xff] %v15317_v1 }
  0xd6   : > { %565 = vst [vmem:[#allocation3 + $0x1a8] sm:$0x3] %v15317_v1  ;;  %600 = vst.msk [vmem:[#allocation2 + $0x19] sm:$0xff] %vm599_vm0, %v566_v17  ;;  %12683 = vmatpush1.bf16.msra.mxu0 %v12682_v11  ;;  %v1528_v17 = vld [vmem:[#allocation5 + $0xf8] sm:$0xff] }
  0xd7   : > { %601 = vst.msk [vmem:[#allocation2 + $0x21] sm:$0xff] %vm599_vm0, %v567_v18  ;;  %602 = vst.msk [vmem:[#allocation2 + $0x31] sm:$0xff] %vm599_vm0, %v568_v19  ;;  %12684 = vmatprep.subr.bf16.mxu0 %v18919_v0  ;;  %v12688_v18 = vpack.c.bf16 %v1528_v17, %v1527_v16  ;;  %v1529_v19 = vld [vmem:[#allocation5 + $0x100] sm:$0xff]  ;;  %v1552_v11 = vld [vmem:[#allocation5 + $0x1b8] sm:$0xff] }
  0xd8   : > { %603 = vst.msk [vmem:[#allocation2 + $0x39] sm:$0xff] %vm599_vm0, %v569_v20  ;;  %604 = vst.msk [vmem:[#allocation2 + $0x49] sm:$0xff] %vm599_vm0, %v570_v21  ;;  %v1530_v20 = vld [vmem:[#allocation5 + $0x108] sm:$0xff] }
  0xd9   : > { %605 = vst.msk [vmem:[#allocation2 + $0x51] sm:$0xff] %vm599_vm0, %v571_v23  ;;  %606 = vst.msk [vmem:[#allocation2 + $0x61] sm:$0xff] %vm599_vm0, %v572_v26  ;;  %v12691_v21 = vpack.c.bf16 %v1530_v20, %v1529_v19  ;;  %v1531_v23 = vld [vmem:[#allocation5 + $0x110] sm:$0xff]  ;;  %v1554_v16 = vld [vmem:[#allocation5 + $0x1c8] sm:$0xff] }
  0xda   : > { %607 = vst.msk [vmem:[#allocation2 + $0x69] sm:$0xff] %vm599_vm0, %v573_v27  ;;  %608 = vst.msk [vmem:[#allocation2 + $0x79] sm:$0xff] %vm599_vm0, %v574_v28  ;;  %12686 = vmatpush1.bf16.msra.mxu0 %v12685_v15  ;;  %v12694_v25 = vpack.c.bf16 %v1532_v24, %v1531_v23  ;;  %v1533_v27 = vld [vmem:[#allocation5 + $0x120] sm:$0xff]  ;;  %v1534_v28 = vld [vmem:[#allocation5 + $0x128] sm:$0xff] }
  0xdb   : > { %609 = vst.msk [vmem:[#allocation2 + $0x81] sm:$0xff] %vm599_vm0, %v575_v29  ;;  %610 = vst.msk [vmem:[#allocation2 + $0x91] sm:$0xff] %vm599_vm0, %v576_v30  ;;  %12687 = vmatprep.subr.bf16.mxu0 %v18919_v0  ;;  %v12697_v30 = vpack.c.bf16 %v1534_v28, %v1533_v27  ;;  %v1553_v15 = vld [vmem:[#allocation5 + $0x1c0] sm:$0xff]  ;;  %v1555_v20 = vld [vmem:[#allocation5 + $0x1d0] sm:$0xff] }
  0xdc   : > { %611 = vst.msk [vmem:[#allocation2 + $0x99] sm:$0xff] %vm599_vm0, %v577_v32  ;;  %612 = vst.msk [vmem:[#allocation2 + $0xa9] sm:$0xff] %vm599_vm0, %v578_v35  ;;  %v1535_v32 = vld [vmem:[#allocation5 + $0x130] sm:$0xff]  ;;  %v1558_v27 = vld [vmem:[#allocation5 + $0x1e8] sm:$0xff] }
  0xdd   : > { %613 = vst.msk [vmem:[#allocation2 + $0xb1] sm:$0xff] %vm599_vm0, %v579_v42  ;;  %614 = vst.msk [vmem:[#allocation2 + $0xc1] sm:$0xff] %vm599_vm0, %v580_v43  ;;  %v15777_v26 = vld [vmem:[#allocation2 + $0x19] sm:$0xff]  ;;  %v1539_v42 = vld [vmem:[#allocation5 + $0x150] sm:$0xff] }
  0xde   : > { %615 = vst.msk [vmem:[#allocation2 + $0xc9] sm:$0xff] %vm599_vm0, %v581_v46  ;;  %616 = vst.msk [vmem:[#allocation2 + $0xd9] sm:$0xff] %vm599_vm0, %v582_v47  ;;  %12689 = vmatpush1.bf16.msra.mxu0 %v12688_v18  ;;  %v15782_v29 = vld [vmem:[#allocation2 + $0x18] sm:$0xff]  ;;  %v15784_v31 = vld [vmem:[#allocation2 + $0x21] sm:$0xff]  ;;  %v12727_v18 = vpack.c.bf16 %v1554_v16, %v1553_v15 }
  0xdf   : > { %617 = vst.msk [vmem:[#allocation2 + $0xe1] sm:$0xff] %vm599_vm0, %v583_v49  ;;  %618 = vst.msk [vmem:[#allocation2 + $0xf1] sm:$0xff] %vm599_vm0, %v584_v50  ;;  %12690 = vmatprep.subr.bf16.mxu0 %v18919_v0  ;;  %v15789_v34 = vld [vmem:[#allocation2 + $0x20] sm:$0xff]  ;;  %v15791_v35 = vld [vmem:[#allocation2 + $0x31] sm:$0xff] }
  0xe0   : > { %619 = vst.msk [vmem:[#allocation2 + $0xf9] sm:$0xff] %vm599_vm0, %v585_v51  ;;  %620 = vst.msk [vmem:[#allocation2 + $0x109] sm:$0xff] %vm599_vm0, %v586_v52  ;;  %v15796_v38 = vld [vmem:[#allocation2 + $0x30] sm:$0xff]  ;;  %v15800_v41 = vld [vmem:[#allocation2 + $0x39] sm:$0xff] }
  0xe1   : > { %621 = vst.msk [vmem:[#allocation2 + $0x111] sm:$0xff] %vm599_vm0, %v587_v55  ;;  %622 = vst.msk [vmem:[#allocation2 + $0x121] sm:$0xff] %vm599_vm0, %v588_v56  ;;  %1713 = vmatmul.mubr.f32.vlgmr.msra.gmra.mrb[0].mxu0 %v15317_v1  ;;  %v15798_v40 = vld [vmem:[#allocation2 + $0x32] sm:$0xff]  ;;  %v15808_v46 = vld [vmem:[#allocation2 + $0x49] sm:$0xff] }
  0xe2   : > { %623 = vst.msk [vmem:[#allocation2 + $0x129] sm:$0xff] %vm599_vm0, %v589_v58  ;;  %624 = vst.msk [vmem:[#allocation2 + $0x139] sm:$0xff] %vm599_vm0, %v590_v59  ;;  %12692 = vmatpush1.bf16.msra.mxu0 %v12691_v21  ;;  %1717 = vmatprep.mubr.f32.mxu0 %v697_v22  ;;  %v1540_v43 = vld [vmem:[#allocation5 + $0x158] sm:$0xff]  ;;  %v1541_v47 = vld [vmem:[#allocation5 + $0x160] sm:$0xff] }
  0xe3   : > { %625 = vst.msk [vmem:[#allocation2 + $0x141] sm:$0xff] %vm599_vm0, %v591_v60  ;;  %626 = vst.msk [vmem:[#allocation2 + $0x151] sm:$0xff] %vm599_vm0, %v592_v6  ;;  %12693 = vmatprep.subr.bf16.mxu0 %v18919_v0  ;;  %12274 = vmatprep.mubr.f32.mxu1 %v15798_v40  ;;  %v15806_v44 = vld [vmem:[#allocation2 + $0x38] sm:$0xff]  ;;  %v12706_v45 = vpack.c.bf16 %v1540_v43, %v1539_v42  ;;  %v15813_v49 = vld [vmem:[#allocation2 + $0x48] sm:$0xff]  ;;  %v12709_v50 = vpack.c.bf16 %v1542_v48, %v1541_v47 }
  0xe4   : > { %627 = vst.msk [vmem:[#allocation2 + $0x159] sm:$0xff] %vm599_vm0, %v593_v7  ;;  %628 = vst.msk [vmem:[#allocation2 + $0x169] sm:$0xff] %vm599_vm0, %v594_v10  ;;  %v15815_v51 = vld [vmem:[#allocation2 + $0x51] sm:$0xff]  ;;  %v15822_v56 = vld [vmem:[#allocation2 + $0x61] sm:$0xff] }
  0xe5   : > { %629 = vst.msk [vmem:[#allocation2 + $0x171] sm:$0xff] %vm599_vm0, %v595_v14  ;;  %1718 = vmatmul.mubr.f32.gmra.mrb[2].mxu0 %v15317_v1  ;;  %v12700_v1 = vpack.c.bf16 %v1536_v33, %v1535_v32  ;;  %v1543_v52 = vld [vmem:[#allocation5 + $0x170] sm:$0xff]  ;;  %v1546_v58 = vld [vmem:[#allocation5 + $0x188] sm:$0xff]  ;;  %v15827_v59 = vld [vmem:[#allocation2 + $0x60] sm:$0xff] }
  0xe6   : > { %1722 = vmatprep.mubr.f32.mxu0 %v15777_v26  ;;  %12695 = vmatpush1.bf16.msra.mxu0 %v12694_v25  ;;  %v15820_v54 = vld [vmem:[#allocation2 + $0x50] sm:$0xff]  ;;  %v12712_v55 = vpack.c.bf16 %v1544_v53, %v1543_v52  ;;  %v12715_v60 = vpack.c.bf16 %v1546_v58, %v1545_v57  ;;  %v15834_v2 = vld [vmem:[#allocation2 + $0x68] sm:$0xff]  ;;  %v15836_v4 = vld [vmem:[#allocation2 + $0x79] sm:$0xff] }
  0xe7   : > { %12696 = vmatprep.subr.bf16.mxu0 %v18919_v0  ;;  %v15829_v61 = vld [vmem:[#allocation2 + $0x69] sm:$0xff]  ;;  %v15841_v7 = vld [vmem:[#allocation2 + $0x78] sm:$0xff]  ;;  %v15843_v9 = vld [vmem:[#allocation2 + $0x81] sm:$0xff] }
  0xe8   : > { %v1550_v6 = vld [vmem:[#allocation5 + $0x1a8] sm:$0xff]  ;;  %v1551_v10 = vld [vmem:[#allocation5 + $0x1b0] sm:$0xff]  ;;  %v15848_v12 = vld [vmem:[#allocation2 + $0x80] sm:$0xff] }
  0xe9   : > { %1723 = vmatmul.mubr.f32.gmra.mrb[4].mxu0 %v15782_v29  ;;  %v12721_v8 = vpack.c.bf16 %v1550_v6, %v1549_v5  ;;  %v12724_v13 = vpack.c.bf16 %v1552_v11, %v1551_v10  ;;  %v15850_v14 = vld [vmem:[#allocation2 + $0x91] sm:$0xff]  ;;  %v15857_v19 = vld [vmem:[#allocation2 + $0x99] sm:$0xff]  ;;  %v15864_v24 = vld [vmem:[#allocation2 + $0xa9] sm:$0xff] }
  0xea   : > { %1727 = vmatprep.mubr.f32.mxu0 %v15784_v31  ;;  %12698 = vmatpush1.bf16.msra.mxu0 %v12697_v30  ;;  %v15855_v17 = vld [vmem:[#allocation2 + $0x90] sm:$0xff]  ;;  %v1556_v21 = vld [vmem:[#allocation5 + $0x1d8] sm:$0xff]  ;;  %v1557_v25 = vld [vmem:[#allocation5 + $0x1e0] sm:$0xff] }
  0xeb   : > { %12699 = vmatprep.subr.bf16.mxu0 %v18919_v0  ;;  %v15862_v22 = vld [vmem:[#allocation2 + $0x98] sm:$0xff]  ;;  %v12730_v23 = vpack.c.bf16 %v1556_v21, %v1555_v20  ;;  %v15869_v28 = vld [vmem:[#allocation2 + $0xa8] sm:$0xff]  ;;  %v12733_v30 = vpack.c.bf16 %v1558_v27, %v1557_v25  ;;  %v1559_v33 = vld [vmem:[#allocation5 + $0x1f0] sm:$0xff] }
  0xec   : > { %v15871_v32 = vld [vmem:[#allocation2 + $0xb1] sm:$0xff]  ;;  %v15883_v42 = vld [vmem:[#allocation2 + $0xc0] sm:$0xff]  ;;  %v15885_v43 = vld [vmem:[#allocation2 + $0xc9] sm:$0xff] }
  0xed   : > { %1728 = vmatmul.mubr.f32.gmra.mrb[6].mxu0 %v15789_v34  ;;  %v15876_v36 = vld [vmem:[#allocation2 + $0xb0] sm:$0xff]  ;;  %v15892_v47 = vld [vmem:[#allocation2 + $0xd9] sm:$0xff]  ;;  %v15920_v62 = vld [vmem:[#allocation2 + $0x108] sm:$0xff] }
  0xee   : > { %1732 = vmatprep.mubr.f32.mxu0 %v15791_v35  ;;  %12701 = vmatpush1.bf16.msra.mxu0 %v12700_v1  ;;  %v1560_v1 = vld [vmem:[#allocation5 + $0x1f8] sm:$0xff]  ;;  %v15902_v52 = vld [vmem:[#allocation2 + $0xe0] sm:$0xff]  ;;  %v15938_v10 = vld [vmem:[#allocation2 + $0x128] sm:$0xff] }
  0xef   : > { %12702 = vmatprep.subr.bf16.mxu0 %v18919_v0  ;;  %v12736_v37 = vpack.c.bf16 %v1560_v1, %v1559_v33  ;;  %v15896_v48 = vld [vmem:[#allocation2 + $0xd8] sm:$0xff]  ;;  %v15928_v5 = vld [vmem:[#allocation2 + $0x121] sm:$0xff]  ;;  %v15956_v20 = vld [vmem:[#allocation2 + $0x150] sm:$0xff] }
  0xf0   : > { %v15904_v53 = vld [vmem:[#allocation2 + $0xf1] sm:$0xff]  ;;  %v15910_v57 = vld [vmem:[#allocation2 + $0xf9] sm:$0xff]  ;;  %19015 = vst [vmem:[#allocation26_spill] sm:$0xff] %v15928_v5  ;;  %v15946_v15 = vld [vmem:[#allocation2 + $0x141] sm:$0xff] }
  0xf1   : > { %1733 = vmatmul.mubr.f32.gmra.mrb[8].mxu0 %v15796_v38  ;;  %v15914_v58 = vld [vmem:[#allocation2 + $0xf8] sm:$0xff]  ;;  %v15932_v6 = vld [vmem:[#allocation2 + $0x120] sm:$0xff]  ;;  %19018 = vst [vmem:[#allocation29_spill] sm:$0xff] %v15946_v15  ;;  %v15966_v27 = vld [vmem:[#allocation2 + $0x169] sm:$0xff] }
  0xf2   : > { %1737 = vmatprep.mubr.f32.mxu0 %v15800_v41  ;;  %12704 = vmatpush1.bf16.msra.mxu0 %v12703_v39  ;;  %v15878_v39 = vld [vmem:[#allocation2 + $0xc1] sm:$0xff]  ;;  %v15922_v63 = vld [vmem:[#allocation2 + $0x111] sm:$0xff]  ;;  %v15940_v11 = vld [vmem:[#allocation2 + $0x139] sm:$0xff]  ;;  %19021 = vst [vmem:[#allocation32_spill] sm:$0xff] %v15966_v27 }
  0xf3   : > { %12705 = vmatprep.subr.bf16.mxu0 %v18919_v0  ;;  %19014 = vst [vmem:[#allocation25_spill] sm:$0xff] %v15922_v63  ;;  %19017 = vst [vmem:[#allocation28_spill] sm:$0xff] %v15940_v11  ;;  %v15950_v16 = vld [vmem:[#allocation2 + $0x140] sm:$0xff]  ;;  %v15964_v25 = vld [vmem:[#allocation2 + $0x158] sm:$0xff] }
  0xf4   : > { %v15958_v21 = vld [vmem:[#allocation2 + $0x159] sm:$0xff]  ;;  %v15972_v33 = vld [vmem:[#allocation2 + $0x168] sm:$0xff]  ;;  %v15974_v1 = vld [vmem:[#allocation2 + $0x171] sm:$0xff] }
  0xf5   : > { %1738 = vmatmul.mubr.f32.gmra.mrb[10].mxu0 %v15806_v44  ;;  %19020 = vst [vmem:[#allocation31_spill] sm:$0xff] %v15958_v21  ;;  %19022 = vst [vmem:[#allocation33_spill] sm:$0xff] %v15974_v1 }
  0xf6   : > { %1742 = vmatprep.mubr.f32.mxu0 %v15808_v46  ;;  %12707 = vmatpush1.bf16.msra.mxu0 %v12706_v45  ;;  %v15890_v45 = vld [vmem:[#allocation2 + $0xc8] sm:$0xff] }
  0xf7   : > { %12708 = vmatprep.subr.bf16.mxu0 %v18919_v0 }
  0xf9   : > { %1743 = vmatmul.mubr.f32.gmra.mrb[12].mxu0 %v15813_v49 }
  0xfa   : > { %1747 = vmatprep.mubr.f32.mxu0 %v15815_v51  ;;  %12710 = vmatpush1.bf16.msra.mxu0 %v12709_v50  ;;  %v15898_v50 = vld [vmem:[#allocation2 + $0xe1] sm:$0xff] }
  0xfb   : > { %12711 = vmatprep.subr.bf16.mxu0 %v18919_v0 }
  0xfd   : > { %1748 = vmatmul.mubr.f32.gmra.mrb[14].mxu0 %v15820_v54 }
  0xfe   : > { %1752 = vmatprep.mubr.f32.mxu0 %v15822_v56  ;;  %12713 = vmatpush1.bf16.msra.mxu0 %v12712_v55  ;;  %v15908_v55 = vld [vmem:[#allocation2 + $0xf0] sm:$0xff] }
  0xff   : > { %12714 = vmatprep.subr.bf16.mxu0 %v18919_v0 }
 0x101   : > { %1753 = vmatmul.mubr.f32.gmra.mrb[16].mxu0 %v15827_v59 }
 0x102   : > { %1757 = vmatprep.mubr.f32.mxu0 %v15829_v61  ;;  %12716 = vmatpush1.bf16.msra.mxu0 %v12715_v60  ;;  %v15916_v60 = vld [vmem:[#allocation2 + $0x109] sm:$0xff] }
 0x103   : > { %12717 = vmatprep.subr.bf16.mxu0 %v18919_v0 }
 0x105   : > { %1758 = vmatmul.mubr.f32.gmra.mrb[18].mxu0 %v15834_v2 }
 0x106   : > { %1762 = vmatprep.mubr.f32.mxu0 %v15836_v4  ;;  %12719 = vmatpush1.bf16.msra.mxu0 %v12718_v3  ;;  %v15926_v3 = vld [vmem:[#allocation2 + $0x110] sm:$0xff] }
 0x107   : > { %12720 = vmatprep.subr.bf16.mxu0 %v18919_v0 }
 0x109   : > { %1763 = vmatmul.mubr.f32.gmra.mrb[20].mxu0 %v15841_v7 }
 0x10a   : > { %1767 = vmatprep.mubr.f32.mxu0 %v15843_v9  ;;  %12722 = vmatpush1.bf16.msra.mxu0 %v12721_v8  ;;  %v15934_v8 = vld [vmem:[#allocation2 + $0x129] sm:$0xff] }
 0x10b   : > { %12723 = vmatprep.subr.bf16.mxu0 %v18919_v0  ;;  %19016 = vst [vmem:[#allocation27_spill] sm:$0xff] %v15934_v8 }
 0x10d   : > { %1768 = vmatmul.mubr.f32.gmra.mrb[22].mxu0 %v15848_v12 }
 0x10e   : > { %1772 = vmatprep.mubr.f32.mxu0 %v15850_v14  ;;  %12725 = vmatpush1.bf16.msra.mxu0 %v12724_v13  ;;  %v15944_v13 = vld [vmem:[#allocation2 + $0x138] sm:$0xff] }
 0x10f   : > { %12726 = vmatprep.subr.bf16.mxu0 %v18919_v0 }
 0x111   : > { %1773 = vmatmul.mubr.f32.gmra.mrb[24].mxu0 %v15855_v17 }
 0x112   : > { %1777 = vmatprep.mubr.f32.mxu0 %v15857_v19  ;;  %12728 = vmatpush1.bf16.msra.mxu0 %v12727_v18  ;;  %v15952_v18 = vld [vmem:[#allocation2 + $0x151] sm:$0xff] }
 0x113   : > { %12729 = vmatprep.subr.bf16.mxu0 %v18919_v0  ;;  %19019 = vst [vmem:[#allocation30_spill] sm:$0xff] %v15952_v18 }
 0x115   : > { %1778 = vmatmul.mubr.f32.gmra.mrb[26].mxu0 %v15862_v22 }
 0x116   : > { %1782 = vmatprep.mubr.f32.mxu0 %v15864_v24  ;;  %12731 = vmatpush1.bf16.msra.mxu0 %v12730_v23  ;;  %v596_v23 = vld [vmem:[%s15700_s26 + $0xf0] sm:$0xff] }
 0x117   : > { %12732 = vmatprep.subr.bf16.mxu0 %v18919_v0  ;;  %630 = vst.msk [vmem:[#allocation2 + $0x181] sm:$0xff] %vm599_vm0, %v596_v23  ;;  %v1561_v23 = vld [vmem:[#allocation5 + $0x200] sm:$0xff] }
 0x119   : > { %1783 = vmatmul.mubr.f32.gmra.mrb[28].mxu0 %v15869_v28 }
 0x11a   : > { %1787 = vmatprep.mubr.f32.mxu0 %v15871_v32  ;;  %12734 = vmatpush1.bf16.msra.mxu0 %v12733_v30  ;;  %v597_v30 = vld [vmem:[%s15700_s26 + $0xf8] sm:$0xff]  ;;  %s19205_s26 = sld [smem:[#allocation58_spill]] }
 0x11b   : > { %12735 = vmatprep.subr.bf16.mxu0 %v18919_v0  ;;  %631 = vst.msk [vmem:[#allocation2 + $0x189] sm:$0xff] %vm599_vm0, %v597_v30  ;;  %v760_v30 = vld [vmem:[#allocation2 + $0x2] sm:$0xff] }
 0x11d   : > { %1788 = vmatmul.mubr.f32.gmra.mrb[30].mxu0 %v15876_v36 }
 0x11e   : > { %1792 = vmatprep.mubr.f32.mxu0 %v15878_v39  ;;  %12737 = vmatpush1.bf16.msra.mxu0 %v12736_v37  ;;  %v15978_v37 = vld [vmem:[#allocation2 + $0x170] sm:$0xff] }
 0x11f   : > { %12738 = vmatprep.subr.bf16.mxu0 %v18919_v0  ;;  %v1562_v0 = vld [vmem:[#allocation5 + $0x208] sm:$0xff] }
 0x120   : > { %s18849_s25 = scalar_lea.hbm %s19205_s26, %s12001_s23 }
 0x121   : > { %1793 = vmatmul.mubr.f32.gmra.mrb[32].mxu0 %v15883_v42 }
 0x122   : > { %1797 = vmatprep.mubr.f32.mxu0 %v15885_v43 }
 0x125   : > { %1798 = vmatmul.mubr.f32.gmra.mrb[34].mxu0 %v15890_v45 }
 0x126   : > { %1802 = vmatprep.mubr.f32.mxu0 %v15892_v47 }
 0x129   : > { %1803 = vmatmul.mubr.f32.gmra.mrb[36].mxu0 %v15896_v48 }
 0x12a   : > { %1807 = vmatprep.mubr.f32.mxu0 %v15898_v50 }
 0x12d   : > { %1808 = vmatmul.mubr.f32.gmra.mrb[38].mxu0 %v15902_v52 }
 0x12e   : > { %1812 = vmatprep.mubr.f32.mxu0 %v15904_v53 }
 0x131   : > { %1813 = vmatmul.mubr.f32.gmra.mrb[40].mxu0 %v15908_v55 }
 0x132   : > { %1817 = vmatprep.mubr.f32.mxu0 %v15910_v57 }
 0x135   : > { %1818 = vmatmul.mubr.f32.gmra.mrb[42].mxu0 %v15914_v58 }
 0x136   : > { %1822 = vmatprep.mubr.f32.mxu0 %v15916_v60 }
 0x139   : > { %1823 = vmatmul.mubr.f32.gmra.mrb[44].mxu0 %v15920_v62 }
 0x13a   : > { %1827 = vmatprep.mubr.f32.mxu0 %v15922_v63  ;;  %v15985_v63 = vld [vmem:[#allocation2 + $0x1a] sm:$0xff] }
 0x13d   : > { %1828 = vmatmul.mubr.f32.gmra.mrb[46].mxu0 %v15926_v3 }
 0x13e   : > { %1832 = vmatprep.mubr.f32.mxu0 %v15928_v5  ;;  %v1566_v5 = vld [vmem:[#allocation5 + $0x228] sm:$0xff] }
 0x141   : > { %1833 = vmatmul.mubr.f32.gmra.mrb[48].mxu0 %v15932_v6 }
 0x142   : > { %1837 = vmatprep.mubr.f32.mxu0 %v15934_v8  ;;  %v19023_v8 = vmov 0.0|0.0  }
 0x145   : > { %1838 = vmatmul.mubr.f32.gmra.mrb[50].mxu0 %v15938_v10 }
 0x146   : > { %1842 = vmatprep.mubr.f32.mxu0 %v15940_v11 }
 0x149   : > { %1843 = vmatmul.mubr.f32.gmra.mrb[52].mxu0 %v15944_v13 }
 0x14a   : > { %1847 = vmatprep.mubr.f32.mxu0 %v15946_v15  ;;  %v761_v15 = vld [vmem:[#allocation2 + $0xa] sm:$0xff] }
 0x14d   : > { %1848 = vmatmul.mubr.f32.gmra.mrb[54].mxu0 %v15950_v16 }
 0x14e   : > { %1852 = vmatprep.mubr.f32.mxu0 %v15952_v18  ;;  %v1563_v18 = vld [vmem:[#allocation5 + $0x210] sm:$0xff] }
 0x151   : > { %1853 = vmatmul.mubr.f32.gmra.mrb[56].mxu0 %v15956_v20 }
 0x152   : > { %1857 = vmatprep.mubr.f32.mxu0 %v15958_v21  ;;  %v12739_v21 = vpack.c.bf16 %v1562_v0, %v1561_v23  ;;  %v1567_v0 = vld [vmem:[#allocation5 + $0x230] sm:$0xff]  ;;  %v1568_v23 = vld [vmem:[#allocation5 + $0x238] sm:$0xff] }
 0x155   : > { %1858 = vmatmul.mubr.f32.gmra.mrb[58].mxu0 %v15964_v25 }
 0x156   : > { %1862 = vmatprep.mubr.f32.mxu0 %v15966_v27  ;;  %v1564_v27 = vld [vmem:[#allocation5 + $0x218] sm:$0xff] }
 0x157   : > { %v12742_v11 = vpack.c.bf16 %v1564_v27, %v1563_v18  ;;  %v12748_v18 = vpack.c.bf16 %v1568_v23, %v1567_v0  ;;  %v1575_v0 = vld [vmem:[#allocation5 + $0x270] sm:$0xff] }
 0x158   : > { %v16008_v23 = vld [vmem:[#allocation2 + $0x52] sm:$0xff] }
 0x159   : > { %1863 = vmatmul.mubr.f32.gmra.mrb[60].mxu0 %v15972_v33 }
 0x15a   : > { %1867 = vmatprep.mubr.f32.mxu0 %v15974_v1  ;;  %v1565_v1 = vld [vmem:[#allocation5 + $0x220] sm:$0xff] }
 0x15d   : > { %1868 = vmatmul.mubr.f32.gmra.mrb[62].mxu0 %v15978_v37 }
 0x15e   : > { %1937 = vmatprep.mubr.f32.mxu0 %v15782_v29  ;;  %v12745_v29 = vpack.c.bf16 %v1566_v5, %v1565_v1  ;;  %v1573_v1 = vld [vmem:[#allocation5 + $0x260] sm:$0xff] }
 0x161   : > { %1938 = vmatmul.mubr.f32.vlgmr.msra.gmra.mrb[0].mxu0 %v760_v30  ;;  %v1574_v30 = vld [vmem:[#allocation5 + $0x268] sm:$0xff] }
 0x162   : > { %12740 = vmatpush1.bf16.msra.mxu0 %v12739_v21  ;;  %1942 = vmatprep.mubr.f32.mxu0 %v15789_v34  ;;  %v15990_v34 = vld [vmem:[#allocation2 + $0x22] sm:$0xff]  ;;  %v1572_v21 = vld [vmem:[#allocation5 + $0x258] sm:$0xff] }
 0x163   : > { %12741 = vmatprep.subr.bf16.mxu0 %v19023_v8 }
 0x165   : > { %1943 = vmatmul.mubr.f32.gmra.mrb[2].mxu0 %v761_v15  ;;  %v1569_v15 = vld [vmem:[#allocation5 + $0x240] sm:$0xff] }
 0x166   : > { %1947 = vmatprep.mubr.f32.mxu0 %v15796_v38  ;;  %12743 = vmatpush1.bf16.msra.mxu0 %v12742_v11  ;;  %v1570_v38 = vld [vmem:[#allocation5 + $0x248] sm:$0xff]  ;;  %v1571_v11 = vld [vmem:[#allocation5 + $0x250] sm:$0xff] }
 0x167   : > { %12744 = vmatprep.subr.bf16.mxu0 %v19023_v8  ;;  %v12751_v5 = vpack.c.bf16 %v1570_v38, %v1569_v15  ;;  %v12754_v27 = vpack.c.bf16 %v1572_v21, %v1571_v11  ;;  %v1577_v15 = vld [vmem:[#allocation5 + $0x280] sm:$0xff]  ;;  %v1579_v11 = vld [vmem:[#allocation5 + $0x290] sm:$0xff] }
 0x168   : > { %v16013_v38 = vld [vmem:[#allocation2 + $0x62] sm:$0xff]  ;;  %v16018_v21 = vld [vmem:[#allocation2 + $0x6a] sm:$0xff] }
 0x169   : > { %1948 = vmatmul.mubr.f32.gmra.mrb[4].mxu0 %v15985_v63 }
 0x16a   : > { %1952 = vmatprep.mubr.f32.mxu0 %v15806_v44  ;;  %12746 = vmatpush1.bf16.msra.mxu0 %v12745_v29  ;;  %v15998_v44 = vld [vmem:[#allocation2 + $0x3a] sm:$0xff]  ;;  %v12757_v29 = vpack.c.bf16 %v1574_v30, %v1573_v1 }
 0x16b   : > { %12747 = vmatprep.subr.bf16.mxu0 %v19023_v8  ;;  %v1581_v1 = vld [vmem:[#allocation5 + $0x2a0] sm:$0xff] }
 0x16c   : > { %v16023_v30 = vld [vmem:[#allocation2 + $0x7a] sm:$0xff] }
 0x16d   : > { %1953 = vmatmul.mubr.f32.gmra.mrb[6].mxu0 %v15990_v34 }
 0x16e   : > { %1957 = vmatprep.mubr.f32.mxu0 %v15813_v49  ;;  %12749 = vmatpush1.bf16.msra.mxu0 %v12748_v18  ;;  %v16003_v49 = vld [vmem:[#allocation2 + $0x4a] sm:$0xff] }
 0x16f   : > { %12750 = vmatprep.subr.bf16.mxu0 %v19023_v8 }
 0x171   : > { %1958 = vmatmul.mubr.f32.gmra.mrb[8].mxu0 %v15798_v40 }
 0x172   : > { %1962 = vmatprep.mubr.f32.mxu0 %v15820_v54  ;;  %12752 = vmatpush1.bf16.msra.mxu0 %v12751_v5  ;;  %v1576_v54 = vld [vmem:[#allocation5 + $0x278] sm:$0xff] }
 0x173   : > { %12753 = vmatprep.subr.bf16.mxu0 %v19023_v8  ;;  %v12760_v18 = vpack.c.bf16 %v1576_v54, %v1575_v0  ;;  %v1583_v0 = vld [vmem:[#allocation5 + $0x2b0] sm:$0xff]  ;;  %v16028_v54 = vld [vmem:[#allocation2 + $0x82] sm:$0xff] }
 0x175   : > { %1963 = vmatmul.mubr.f32.gmra.mrb[10].mxu0 %v15998_v44 }
 0x176   : > { %1967 = vmatprep.mubr.f32.mxu0 %v15827_v59  ;;  %12755 = vmatpush1.bf16.msra.mxu0 %v12754_v27  ;;  %v1578_v59 = vld [vmem:[#allocation5 + $0x288] sm:$0xff] }
 0x177   : > { %12756 = vmatprep.subr.bf16.mxu0 %v19023_v8  ;;  %v12763_v5 = vpack.c.bf16 %v1578_v59, %v1577_v15  ;;  %v1585_v15 = vld [vmem:[#allocation5 + $0x2c0] sm:$0xff]  ;;  %v16033_v59 = vld [vmem:[#allocation2 + $0x92] sm:$0xff] }
 0x179   : > { %1968 = vmatmul.mubr.f32.gmra.mrb[12].mxu0 %v16003_v49 }
 0x17a   : > { %1972 = vmatprep.mubr.f32.mxu0 %v15834_v2  ;;  %12758 = vmatpush1.bf16.msra.mxu0 %v12757_v29  ;;  %v1580_v2 = vld [vmem:[#allocation5 + $0x298] sm:$0xff] }
 0x17b   : > { %12759 = vmatprep.subr.bf16.mxu0 %v19023_v8  ;;  %v12766_v27 = vpack.c.bf16 %v1580_v2, %v1579_v11  ;;  %v1587_v11 = vld [vmem:[#allocation5 + $0x2d0] sm:$0xff]  ;;  %v16038_v2 = vld [vmem:[#allocation2 + $0x9a] sm:$0xff] }
 0x17d   : > { %1973 = vmatmul.mubr.f32.gmra.mrb[14].mxu0 %v16008_v23 }
 0x17e   : > { %1977 = vmatprep.mubr.f32.mxu0 %v15841_v7  ;;  %12761 = vmatpush1.bf16.msra.mxu0 %v12760_v18  ;;  %v1582_v7 = vld [vmem:[#allocation5 + $0x2a8] sm:$0xff] }
 0x17f   : > { %12762 = vmatprep.subr.bf16.mxu0 %v19023_v8  ;;  %v12769_v29 = vpack.c.bf16 %v1582_v7, %v1581_v1  ;;  %v1589_v1 = vld [vmem:[#allocation5 + $0x2e0] sm:$0xff]  ;;  %v16043_v7 = vld [vmem:[#allocation2 + $0xaa] sm:$0xff] }
 0x181   : > { %1978 = vmatmul.mubr.f32.gmra.mrb[16].mxu0 %v16013_v38 }
 0x182   : > { %1982 = vmatprep.mubr.f32.mxu0 %v15848_v12  ;;  %12764 = vmatpush1.bf16.msra.mxu0 %v12763_v5  ;;  %v1584_v12 = vld [vmem:[#allocation5 + $0x2b8] sm:$0xff] }
 0x183   : > { %12765 = vmatprep.subr.bf16.mxu0 %v19023_v8  ;;  %v12772_v18 = vpack.c.bf16 %v1584_v12, %v1583_v0  ;;  %v1591_v0 = vld [vmem:[#allocation5 + $0x2f0] sm:$0xff] }
 0x184   : > { %v16048_v12 = vld [vmem:[#allocation2 + $0xb2] sm:$0xff] }
 0x185   : > { %1983 = vmatmul.mubr.f32.gmra.mrb[18].mxu0 %v16018_v21 }
 0x186   : > { %1987 = vmatprep.mubr.f32.mxu0 %v15855_v17  ;;  %12767 = vmatpush1.bf16.msra.mxu0 %v12766_v27  ;;  %v1586_v17 = vld [vmem:[#allocation5 + $0x2c8] sm:$0xff] }
 0x187   : > { %12768 = vmatprep.subr.bf16.mxu0 %v19023_v8  ;;  %v12775_v5 = vpack.c.bf16 %v1586_v17, %v1585_v15  ;;  %v16062_v15 = vld [vmem:[#allocation2 + $0xda] sm:$0xff]  ;;  %v16070_v17 = vld [vmem:[#allocation2 + $0xf2] sm:$0xff] }
 0x189   : > { %1988 = vmatmul.mubr.f32.gmra.mrb[20].mxu0 %v16023_v30 }
 0x18a   : > { %1992 = vmatprep.mubr.f32.mxu0 %v15862_v22  ;;  %12770 = vmatpush1.bf16.msra.mxu0 %v12769_v29  ;;  %v1588_v22 = vld [vmem:[#allocation5 + $0x2d8] sm:$0xff] }
 0x18b   : > { %12771 = vmatprep.subr.bf16.mxu0 %v19023_v8  ;;  %v12778_v27 = vpack.c.bf16 %v1588_v22, %v1587_v11  ;;  %v1628_v22 = vld [vmem:[#allocation5 + $0x418] sm:$0xff] }
 0x18d   : > { %1993 = vmatmul.mubr.f32.gmra.mrb[22].mxu0 %v16028_v54 }
 0x18e   : > { %1997 = vmatprep.mubr.f32.mxu0 %v15869_v28  ;;  %12773 = vmatpush1.bf16.msra.mxu0 %v12772_v18  ;;  %v1590_v28 = vld [vmem:[#allocation5 + $0x2e8] sm:$0xff] }
 0x18f   : > { %12774 = vmatprep.subr.bf16.mxu0 %v19023_v8  ;;  %v12781_v29 = vpack.c.bf16 %v1590_v28, %v1589_v1  ;;  %v1629_v1 = vld [vmem:[#allocation5 + $0x420] sm:$0xff]  ;;  %v1630_v28 = vld [vmem:[#allocation5 + $0x428] sm:$0xff] }
 0x191   : > { %1998 = vmatmul.mubr.f32.gmra.mrb[24].mxu0 %v16033_v59 }
 0x192   : > { %2002 = vmatprep.mubr.f32.mxu0 %v15876_v36  ;;  %12776 = vmatpush1.bf16.msra.mxu0 %v12775_v5  ;;  %v1592_v36 = vld [vmem:[#allocation5 + $0x2f8] sm:$0xff]  ;;  %v1626_v5 = vld [vmem:[#allocation5 + $0x408] sm:$0xff] }
 0x193   : > { %12777 = vmatprep.subr.bf16.mxu0 %v19023_v8  ;;  %v12784_v18 = vpack.c.bf16 %v1592_v36, %v1591_v0  ;;  %v1631_v0 = vld [vmem:[#allocation5 + $0x430] sm:$0xff]  ;;  %v1632_v36 = vld [vmem:[#allocation5 + $0x438] sm:$0xff] }
 0x195   : > { %2003 = vmatmul.mubr.f32.gmra.mrb[26].mxu0 %v16038_v2 }
 0x196   : > { %2007 = vmatprep.mubr.f32.mxu0 %v15883_v42  ;;  %12779 = vmatpush1.bf16.msra.mxu0 %v12778_v27  ;;  %v16053_v42 = vld [vmem:[#allocation2 + $0xc2] sm:$0xff] }
 0x197   : > { %12780 = vmatprep.subr.bf16.mxu0 %v19023_v8 }
 0x199   : > { %2008 = vmatmul.mubr.f32.gmra.mrb[28].mxu0 %v16043_v7 }
 0x19a   : > { %2012 = vmatprep.mubr.f32.mxu0 %v15890_v45  ;;  %12782 = vmatpush1.bf16.msra.mxu0 %v12781_v29  ;;  %v16058_v45 = vld [vmem:[#allocation2 + $0xca] sm:$0xff]  ;;  %v12842_v29 = vpack.c.bf16 %v1630_v28, %v1629_v1  ;;  %v1637_v28 = vld [vmem:[#allocation5 + $0x460] sm:$0xff] }
 0x19b   : > { %12783 = vmatprep.subr.bf16.mxu0 %v19023_v8 }
 0x19d   : > { %2013 = vmatmul.mubr.f32.gmra.mrb[30].mxu0 %v16048_v12 }
 0x19e   : > { %2017 = vmatprep.mubr.f32.mxu0 %v15896_v48  ;;  %12785 = vmatpush1.bf16.msra.mxu0 %v12784_v18  ;;  %v16066_v48 = vld [vmem:[#allocation2 + $0xe2] sm:$0xff]  ;;  %v12846_v18 = vpack.c.bf16 %v1632_v36, %v1631_v0  ;;  %v16118_v36 = vld [vmem:[#allocation2 + $0x172] sm:$0xff] }
 0x19f   : > { %12786 = vmatprep.subr.bf16.mxu0 %v19023_v8  ;;  %v16114_v0 = vld [vmem:[#allocation2 + $0x188] sm:$0xff] }
 0x1a1   : > { %2018 = vmatmul.mubr.f32.gmra.mrb[32].mxu0 %v16053_v42 }
 0x1a2   : > { %2022 = vmatprep.mubr.f32.mxu0 %v15902_v52  ;;  %v16074_v52 = vld [vmem:[#allocation2 + $0xfa] sm:$0xff] }
 0x1a5   : > { %2023 = vmatmul.mubr.f32.gmra.mrb[34].mxu0 %v16058_v45 }
 0x1a6   : > { %2027 = vmatprep.mubr.f32.mxu0 %v15908_v55  ;;  %v16078_v55 = vld [vmem:[#allocation2 + $0x10a] sm:$0xff] }
 0x1a9   : > { %2028 = vmatmul.mubr.f32.gmra.mrb[36].mxu0 %v16062_v15 }
 0x1aa   : > { %2032 = vmatprep.mubr.f32.mxu0 %v15914_v58  ;;  %v16082_v58 = vld [vmem:[#allocation2 + $0x112] sm:$0xff] }
 0x1ad   : > { %2033 = vmatmul.mubr.f32.gmra.mrb[38].mxu0 %v16066_v48 }
 0x1ae   : > { %2037 = vmatprep.mubr.f32.mxu0 %v15920_v62  ;;  %v16086_v62 = vld [vmem:[#allocation2 + $0x122] sm:$0xff] }
 0x1b1   : > { %2038 = vmatmul.mubr.f32.gmra.mrb[40].mxu0 %v16070_v17 }
 0x1b2   : > { %2042 = vmatprep.mubr.f32.mxu0 %v15926_v3  ;;  %v1625_v3 = vld [vmem:[#allocation5 + $0x400] sm:$0xff] }
 0x1b3   : > { %v12834_v11 = vpack.c.bf16 %v1626_v5, %v1625_v3  ;;  %v1633_v3 = vld [vmem:[#allocation5 + $0x440] sm:$0xff]  ;;  %v1634_v5 = vld [vmem:[#allocation5 + $0x448] sm:$0xff] }
 0x1b5   : > { %2043 = vmatmul.mubr.f32.gmra.mrb[42].mxu0 %v16074_v52  ;;  %12835 = vmatprep.subr.bf16.mxu1 %v12834_v11 }
 0x1b6   : > { %2047 = vmatprep.mubr.f32.mxu0 %v15932_v6  ;;  %v16090_v6 = vld [vmem:[#allocation2 + $0x12a] sm:$0xff]  ;;  %12837 = vmatpush3.bf16.msra.mxu1 %v12834_v11  ;;  %v12850_v11 = vpack.c.bf16 %v1634_v5, %v1633_v3  ;;  %v1640_v3 = vld [vmem:[#allocation5 + $0x478] sm:$0xff]  ;;  %v1593_v5 = vld [vmem:[#allocation5 + $0x300] sm:$0xff] }
 0x1b9   : > { %2048 = vmatmul.mubr.f32.gmra.mrb[44].mxu0 %v16078_v55 }
 0x1ba   : > { %2052 = vmatprep.mubr.f32.mxu0 %v15938_v10  ;;  %v1627_v10 = vld [vmem:[#allocation5 + $0x410] sm:$0xff] }
 0x1bb   : > { %v12838_v27 = vpack.c.bf16 %v1628_v22, %v1627_v10  ;;  %v1635_v10 = vld [vmem:[#allocation5 + $0x450] sm:$0xff]  ;;  %v1636_v22 = vld [vmem:[#allocation5 + $0x458] sm:$0xff] }
 0x1bc   : > { %v12854_v1 = vpack.c.bf16 %v1636_v22, %v1635_v10 }
 0x1bd   : > { %2053 = vmatmul.mubr.f32.gmra.mrb[46].mxu0 %v16082_v58  ;;  %12839 = vmatprep.subr.bf16.mxu1 %v12838_v27 }
 0x1be   : > { %2057 = vmatprep.mubr.f32.mxu0 %v15944_v13  ;;  %v16094_v13 = vld [vmem:[#allocation2 + $0x13a] sm:$0xff]  ;;  %12841 = vmatpush3.bf16.msra.mxu1 %v12838_v27 }
 0x1bf   : > { %12843 = vmatprep.subr.bf16.mxu1 %v12842_v29  ;;  %v16108_v27 = vld [vmem:[#allocation2 + $0x180] sm:$0xff] }
 0x1c1   : > { %2058 = vmatmul.mubr.f32.gmra.mrb[48].mxu0 %v16086_v62 }
 0x1c2   : > { %2062 = vmatprep.mubr.f32.mxu0 %v15950_v16  ;;  %v16098_v16 = vld [vmem:[#allocation2 + $0x142] sm:$0xff]  ;;  %12845 = vmatpush3.bf16.msra.mxu1 %v12842_v29 }
 0x1c3   : > { %12847 = vmatprep.subr.bf16.mxu1 %v12846_v18  ;;  %v1638_v29 = vld [vmem:[#allocation5 + $0x468] sm:$0xff] }
 0x1c5   : > { %2063 = vmatmul.mubr.f32.gmra.mrb[50].mxu0 %v16090_v6 }
 0x1c6   : > { %2067 = vmatprep.mubr.f32.mxu0 %v15956_v20  ;;  %v16102_v20 = vld [vmem:[#allocation2 + $0x152] sm:$0xff]  ;;  %12849 = vmatpush3.bf16.msra.mxu1 %v12846_v18 }
 0x1c7   : > { %12851 = vmatprep.subr.bf16.mxu1 %v12850_v11  ;;  %v1639_v18 = vld [vmem:[#allocation5 + $0x470] sm:$0xff] }
 0x1c8   : > { %v12862_v10 = vpack.c.bf16 %v1640_v3, %v1639_v18  ;;  %v1598_v18 = vld [vmem:[#allocation5 + $0x328] sm:$0xff]  ;;  %v1600_v3 = vld [vmem:[#allocation5 + $0x338] sm:$0xff] }
 0x1c9   : > { %2068 = vmatmul.mubr.f32.gmra.mrb[52].mxu0 %v16094_v13 }
 0x1ca   : > { %2072 = vmatprep.mubr.f32.mxu0 %v15964_v25  ;;  %v16106_v25 = vld [vmem:[#allocation2 + $0x15a] sm:$0xff]  ;;  %12853 = vmatpush3.bf16.msra.mxu1 %v12850_v11  ;;  %v1594_v11 = vld [vmem:[#allocation5 + $0x308] sm:$0xff] }
 0x1cb   : > { %12855 = vmatprep.subr.bf16.mxu1 %v12854_v1  ;;  %v12787_v22 = vpack.c.bf16 %v1594_v11, %v1593_v5  ;;  %v1603_v5 = vld [vmem:[#allocation5 + $0x350] sm:$0xff]  ;;  %v1605_v11 = vld [vmem:[#allocation5 + $0x360] sm:$0xff] }
 0x1cd   : > { %2073 = vmatmul.mubr.f32.gmra.mrb[54].mxu0 %v16098_v16 }
 0x1ce   : > { %2077 = vmatprep.mubr.f32.mxu0 %v15972_v33  ;;  %v16112_v33 = vld [vmem:[#allocation2 + $0x16a] sm:$0xff]  ;;  %12857 = vmatpush3.bf16.msra.mxu1 %v12854_v1 }
 0x1cf   : > { %v1595_v1 = vld [vmem:[#allocation5 + $0x310] sm:$0xff] }
 0x1d1   : > { %2078 = vmatmul.mubr.f32.gmra.mrb[56].mxu0 %v16102_v20 }
 0x1d2   : > { %2082 = vmatprep.mubr.f32.mxu0 %v15978_v37  ;;  %v12858_v37 = vpack.c.bf16 %v1638_v29, %v1637_v28  ;;  %v1596_v28 = vld [vmem:[#allocation5 + $0x318] sm:$0xff] }
 0x1d3   : > { %v12790_v29 = vpack.c.bf16 %v1596_v28, %v1595_v1  ;;  %v1611_v1 = vld [vmem:[#allocation5 + $0x390] sm:$0xff]  ;;  %v1613_v28 = vld [vmem:[#allocation5 + $0x3a0] sm:$0xff] }
 0x1d4   : > { %12859 = vmatprep.subr.bf16.mxu1 %v12858_v37 }
 0x1d5   : > { %2083 = vmatmul.mubr.f32.gmra.mrb[58].mxu0 %v16106_v25  ;;  %12861 = vmatpush3.bf16.msra.mxu1 %v12858_v37  ;;  %v1597_v37 = vld [vmem:[#allocation5 + $0x320] sm:$0xff] }
 0x1d6   : > { %2087 = vmatprep.mubr.f32.mxu0 %v16108_v27  ;;  %12863 = vmatprep.subr.bf16.mxu1 %v12862_v10 }
 0x1d9   : > { %2088 = vmatmul.mubr.f32.gmra.mrb[60].mxu0 %v16112_v33  ;;  %12865 = vmatpush3.bf16.msra.mxu1 %v12862_v10  ;;  %v1607_v10 = vld [vmem:[#allocation5 + $0x370] sm:$0xff] }
 0x1da   : > { %2092 = vmatprep.mubr.f32.mxu0 %v16114_v0  ;;  %12914 = vmatprep.subr.bf16.mxu1 %v19023_v8 }
 0x1dc   : > { %12275 = vmatmul.mubr.f32.vlgmr.msra.gmra.mrb[0].mxu1 %v15998_v44 }
 0x1dd   : > { %2093 = vmatmul.mubr.f32.gmra.mrb[62].mxu0 %v16118_v36  ;;  %12277 = vmatprep.mubr.f32.mxu1 %v16003_v49 }
 0x1de   : > { %2162 = vmatprep.mubr.f32.mxu0 %v15985_v63  ;;  %v1599_v63 = vld [vmem:[#allocation5 + $0x330] sm:$0xff] }
 0x1e0   : > { %12278 = vmatmul.mubr.f32.gmra.mrb[2].mxu1 %v16008_v23 }
 0x1e1   : > { %2163 = vmatmul.mubr.f32.vlgmr.msra.gmra.mrb[0].mxu0 %v15777_v26  ;;  %v12793_v26 = vpack.c.bf16 %v1598_v18, %v1597_v37  ;;  %12280 = vmatprep.mubr.f32.mxu1 %v16013_v38  ;;  %v1617_v37 = vld [vmem:[#allocation5 + $0x3c0] sm:$0xff]  ;;  %v1619_v18 = vld [vmem:[#allocation5 + $0x3d0] sm:$0xff] }
 0x1e2   : > { %12788 = vmatpush1.bf16.msra.mxu0 %v12787_v22  ;;  %2167 = vmatprep.mubr.f32.mxu0 %v15990_v34  ;;  %v1601_v34 = vld [vmem:[#allocation5 + $0x340] sm:$0xff] }
 0x1e3   : > { %12789 = vmatprep.subr.bf16.mxu0 %v19023_v8  ;;  %v1609_v22 = vld [vmem:[#allocation5 + $0x380] sm:$0xff] }
 0x1e4   : > { %12281 = vmatmul.mubr.f32.gmra.mrb[4].mxu1 %v16018_v21 }
 0x1e5   : > { %2168 = vmatmul.mubr.f32.gmra.mrb[2].mxu0 %v15784_v31  ;;  %v12796_v31 = vpack.c.bf16 %v1600_v3, %v1599_v63  ;;  %12283 = vmatprep.mubr.f32.mxu1 %v16023_v30  ;;  %v982_v63 = vld [vmem:[#allocation2 + $0x182] sm:$0xff]  ;;  %v1624_v3 = vld [vmem:[#allocation5 + $0x3f8] sm:$0xff] }
 0x1e6   : > { %2172 = vmatprep.mubr.f32.mxu0 %v15798_v40  ;;  %12791 = vmatpush1.bf16.msra.mxu0 %v12790_v29  ;;  %v1602_v40 = vld [vmem:[#allocation5 + $0x348] sm:$0xff]  ;;  %v1615_v29 = vld [vmem:[#allocation5 + $0x3b0] sm:$0xff] }
 0x1e7   : > { %12792 = vmatprep.subr.bf16.mxu0 %v19023_v8 }
 0x1e8   : > { %12284 = vmatmul.mubr.f32.gmra.mrb[6].mxu1 %v16028_v54 }
 0x1e9   : > { %2173 = vmatmul.mubr.f32.gmra.mrb[4].mxu0 %v15791_v35  ;;  %v12799_v35 = vpack.c.bf16 %v1602_v40, %v1601_v34  ;;  %12286 = vmatprep.mubr.f32.mxu1 %v16033_v59  ;;  %v3737_v40 = vld [vmem:[#allocation8 + $0x110] sm:$0xff] }
 0x1ea   : > { %2177 = vmatprep.mubr.f32.mxu0 %v15998_v44  ;;  %12794 = vmatpush1.bf16.msra.mxu0 %v12793_v26  ;;  %v1604_v44 = vld [vmem:[#allocation5 + $0x358] sm:$0xff]  ;;  %v1621_v26 = vld [vmem:[#allocation5 + $0x3e0] sm:$0xff] }
 0x1eb   : > { %12795 = vmatprep.subr.bf16.mxu0 %v19023_v8 }
 0x1ec   : > { %12287 = vmatmul.mubr.f32.gmra.mrb[8].mxu1 %v16038_v2 }
 0x1ed   : > { %2178 = vmatmul.mubr.f32.gmra.mrb[6].mxu0 %v15800_v41  ;;  %v12802_v41 = vpack.c.bf16 %v1604_v44, %v1603_v5  ;;  %12289 = vmatprep.mubr.f32.mxu1 %v16043_v7  ;;  %v1018_v5 = vld [vmem:[#allocation2 + $0x38] sm:$0xff] }
 0x1ee   : > { %2182 = vmatprep.mubr.f32.mxu0 %v16003_v49  ;;  %12797 = vmatpush1.bf16.msra.mxu0 %v12796_v31  ;;  %v1606_v49 = vld [vmem:[#allocation5 + $0x368] sm:$0xff] }
 0x1ef   : > { %12798 = vmatprep.subr.bf16.mxu0 %v19023_v8  ;;  %v983_v31 = vld [vmem:[#allocation2 + $0x18a] sm:$0xff] }
 0x1f0   : > { %12290 = vmatmul.mubr.f32.gmra.mrb[10].mxu1 %v16048_v12 }
 0x1f1   : > { %2183 = vmatmul.mubr.f32.gmra.mrb[8].mxu0 %v15808_v46  ;;  %v12805_v46 = vpack.c.bf16 %v1606_v49, %v1605_v11  ;;  %12292 = vmatprep.mubr.f32.mxu1 %v16053_v42  ;;  %v3707_v11 = vld [vmem:[#allocation8 + $0x20] sm:$0xff]  ;;  %v3708_v49 = vld [vmem:[#allocation8 + $0x28] sm:$0xff] }
 0x1f2   : > { %2187 = vmatprep.mubr.f32.mxu0 %v16008_v23  ;;  %12800 = vmatpush1.bf16.msra.mxu0 %v12799_v35  ;;  %v1608_v23 = vld [vmem:[#allocation5 + $0x378] sm:$0xff] }
 0x1f3   : > { %12801 = vmatprep.subr.bf16.mxu0 %v19023_v8  ;;  %v3738_v35 = vld [vmem:[#allocation8 + $0x118] sm:$0xff] }
 0x1f4   : > { %12293 = vmatmul.mubr.f32.gmra.mrb[12].mxu1 %v16058_v45 }
 0x1f5   : > { %2188 = vmatmul.mubr.f32.gmra.mrb[10].mxu0 %v15815_v51  ;;  %v12808_v51 = vpack.c.bf16 %v1608_v23, %v1607_v10  ;;  %12295 = vmatprep.mubr.f32.mxu1 %v16062_v15  ;;  %v3739_v10 = vld [vmem:[#allocation8 + $0x120] sm:$0xff]  ;;  %v3740_v23 = vld [vmem:[#allocation8 + $0x128] sm:$0xff] }
 0x1f6   : > { %2192 = vmatprep.mubr.f32.mxu0 %v16013_v38  ;;  %12803 = vmatpush1.bf16.msra.mxu0 %v12802_v41  ;;  %v1610_v38 = vld [vmem:[#allocation5 + $0x388] sm:$0xff] }
 0x1f7   : > { %12804 = vmatprep.subr.bf16.mxu0 %v19023_v8  ;;  %v1083_v41 = vld [vmem:[#allocation2 + $0x49] sm:$0xff] }
 0x1f8   : > { %12296 = vmatmul.mubr.f32.gmra.mrb[14].mxu1 %v16066_v48 }
 0x1f9   : > { %2193 = vmatmul.mubr.f32.gmra.mrb[12].mxu0 %v15822_v56  ;;  %v12811_v56 = vpack.c.bf16 %v1610_v38, %v1609_v22  ;;  %12298 = vmatprep.mubr.f32.mxu1 %v16070_v17  ;;  %v12873_v22 = vpack.c.bf16 %v3708_v49, %v3707_v11  ;;  %v1084_v38 = vld [vmem:[#allocation2 + $0x51] sm:$0xff] }
 0x1fa   : > { %2197 = vmatprep.mubr.f32.mxu0 %v16018_v21  ;;  %12806 = vmatpush1.bf16.msra.mxu0 %v12805_v46  ;;  %v1612_v21 = vld [vmem:[#allocation5 + $0x398] sm:$0xff]  ;;  %v12918_v46 = vpack.c.bf16 %v3738_v35, %v3737_v40  ;;  %v3753_v11 = vld [vmem:[#allocation8 + $0x190] sm:$0xff] }
 0x1fb   : > { %12807 = vmatprep.subr.bf16.mxu0 %v19023_v8  ;;  %v1090_v35 = vld [vmem:[#allocation2 + $0x99] sm:$0xff] }
 0x1fc   : > { %12299 = vmatmul.mubr.f32.gmra.mrb[16].mxu1 %v16074_v52  ;;  %v3754_v49 = vld [vmem:[#allocation8 + $0x198] sm:$0xff] }
 0x1fd   : > { %2198 = vmatmul.mubr.f32.gmra.mrb[14].mxu0 %v15829_v61  ;;  %v12814_v61 = vpack.c.bf16 %v1612_v21, %v1611_v1  ;;  %12301 = vmatprep.mubr.f32.mxu1 %v16078_v55  ;;  %v3710_v1 = vld [vmem:[#allocation8 + $0x38] sm:$0xff]  ;;  %v12921_v21 = vpack.c.bf16 %v3740_v23, %v3739_v10  ;;  %v1091_v23 = vld [vmem:[#allocation2 + $0xa9] sm:$0xff] }
 0x1fe   : > { %2202 = vmatprep.mubr.f32.mxu0 %v16023_v30  ;;  %12809 = vmatpush1.bf16.msra.mxu0 %v12808_v51  ;;  %v1614_v30 = vld [vmem:[#allocation5 + $0x3a8] sm:$0xff] }
 0x1ff   : > { %12810 = vmatprep.subr.bf16.mxu0 %v19023_v8  ;;  %v1019_v51 = vld [vmem:[#allocation2 + $0x48] sm:$0xff] }
 0x200   : > { %12302 = vmatmul.mubr.f32.gmra.mrb[18].mxu1 %v16082_v58 }
 0x201   : > { %2203 = vmatmul.mubr.f32.gmra.mrb[16].mxu0 %v15836_v4  ;;  %v12817_v4 = vpack.c.bf16 %v1614_v30, %v1613_v28  ;;  %12304 = vmatprep.mubr.f32.mxu1 %v16086_v62  ;;  %v3742_v28 = vld [vmem:[#allocation8 + $0x138] sm:$0xff]  ;;  %v1020_v30 = vld [vmem:[#allocation2 + $0x50] sm:$0xff] }
 0x202   : > { %2207 = vmatprep.mubr.f32.mxu0 %v16028_v54  ;;  %12812 = vmatpush1.bf16.msra.mxu0 %v12811_v56  ;;  %v1616_v54 = vld [vmem:[#allocation5 + $0x3b8] sm:$0xff]  ;;  %v3709_v56 = vld [vmem:[#allocation8 + $0x30] sm:$0xff] }
 0x203   : > { %12813 = vmatprep.subr.bf16.mxu0 %v19023_v8 }
 0x204   : > { %12305 = vmatmul.mubr.f32.gmra.mrb[20].mxu1 %v16090_v6 }
 0x205   : > { %2208 = vmatmul.mubr.f32.gmra.mrb[18].mxu0 %v15843_v9  ;;  %v12820_v9 = vpack.c.bf16 %v1616_v54, %v1615_v29  ;;  %12307 = vmatprep.mubr.f32.mxu1 %v16094_v13  ;;  %v1085_v29 = vld [vmem:[#allocation2 + $0x61] sm:$0xff] }
 0x206   : > { %2212 = vmatprep.mubr.f32.mxu0 %v16033_v59  ;;  %12815 = vmatpush1.bf16.msra.mxu0 %v12814_v61  ;;  %v1618_v59 = vld [vmem:[#allocation5 + $0x3c8] sm:$0xff]  ;;  %v3741_v61 = vld [vmem:[#allocation8 + $0x130] sm:$0xff]  ;;  %v3711_v54 = vld [vmem:[#allocation8 + $0x40] sm:$0xff] }
 0x207   : > { %12816 = vmatprep.subr.bf16.mxu0 %v19023_v8 }
 0x208   : > { %12308 = vmatmul.mubr.f32.gmra.mrb[22].mxu1 %v16098_v16 }
 0x209   : > { %2213 = vmatmul.mubr.f32.gmra.mrb[20].mxu0 %v15850_v14  ;;  %v12823_v14 = vpack.c.bf16 %v1618_v59, %v1617_v37  ;;  %12310 = vmatprep.mubr.f32.mxu1 %v16102_v20  ;;  %v12924_v37 = vpack.c.bf16 %v3742_v28, %v3741_v61  ;;  %v3743_v59 = vld [vmem:[#allocation8 + $0x140] sm:$0xff]  ;;  %v1092_v28 = vld [vmem:[#allocation2 + $0xb1] sm:$0xff] }
 0x20a   : > { %2217 = vmatprep.mubr.f32.mxu0 %v16038_v2  ;;  %12818 = vmatpush1.bf16.msra.mxu0 %v12817_v4  ;;  %v1620_v2 = vld [vmem:[#allocation5 + $0x3d8] sm:$0xff]  ;;  %v12876_v4 = vpack.c.bf16 %v3710_v1, %v3709_v56  ;;  %v3755_v56 = vld [vmem:[#allocation8 + $0x1a0] sm:$0xff]  ;;  %v3756_v1 = vld [vmem:[#allocation8 + $0x1a8] sm:$0xff] }
 0x20b   : > { %12819 = vmatprep.subr.bf16.mxu0 %v19023_v8 }
 0x20c   : > { %12311 = vmatmul.mubr.f32.gmra.mrb[24].mxu1 %v16106_v25 }
 0x20d   : > { %2218 = vmatmul.mubr.f32.gmra.mrb[22].mxu0 %v15857_v19  ;;  %v12826_v19 = vpack.c.bf16 %v1620_v2, %v1619_v18  ;;  %12313 = vmatprep.mubr.f32.mxu1 %v16112_v33  ;;  %v1021_v18 = vld [vmem:[#allocation2 + $0x60] sm:$0xff] }
 0x20e   : > { %2222 = vmatprep.mubr.f32.mxu0 %v16043_v7  ;;  %12821 = vmatpush1.bf16.msra.mxu0 %v12820_v9  ;;  %v1622_v7 = vld [vmem:[#allocation5 + $0x3e8] sm:$0xff] }
 0x20f   : > { %12822 = vmatprep.subr.bf16.mxu0 %v19023_v8  ;;  %v3712_v9 = vld [vmem:[#allocation8 + $0x48] sm:$0xff] }
 0x210   : > { %12314 = vmatmul.mubr.f32.gmra.mrb[26].mxu1 %v16118_v36  ;;  %v12879_v2 = vpack.c.bf16 %v3712_v9, %v3711_v54  ;;  %v3757_v54 = vld [vmem:[#allocation8 + $0x1b0] sm:$0xff]  ;;  %v3758_v9 = vld [vmem:[#allocation8 + $0x1b8] sm:$0xff] }
 0x211   : > { %2223 = vmatmul.mubr.f32.gmra.mrb[24].mxu0 %v15864_v24  ;;  %v12829_v24 = vpack.c.bf16 %v1622_v7, %v1621_v26  ;;  %12316 = vmatprep.mubr.f32.mxu1 %v982_v63  ;;  %v3713_v26 = vld [vmem:[#allocation8 + $0x50] sm:$0xff]  ;;  %v3714_v7 = vld [vmem:[#allocation8 + $0x58] sm:$0xff] }
 0x212   : > { %2227 = vmatprep.mubr.f32.mxu0 %v16048_v12  ;;  %12824 = vmatpush1.bf16.msra.mxu0 %v12823_v14  ;;  %v1623_v12 = vld [vmem:[#allocation5 + $0x3f0] sm:$0xff]  ;;  %v3744_v14 = vld [vmem:[#allocation8 + $0x148] sm:$0xff] }
 0x213   : > { %12825 = vmatprep.subr.bf16.mxu0 %v19023_v8 }
 0x214   : > { %12317 = vmatmul.mubr.f32.gmra.mrb[28].mxu1 %v983_v31 }
 0x215   : > { %2228 = vmatmul.mubr.f32.gmra.mrb[26].mxu0 %v15871_v32  ;;  %v12832_v32 = vpack.c.bf16 %v1624_v3, %v1623_v12  ;;  %v3746_v12 = vld [vmem:[#allocation8 + $0x158] sm:$0xff]  ;;  %v1022_v3 = vld [vmem:[#allocation2 + $0x68] sm:$0xff] }
 0x216   : > { %2232 = vmatprep.mubr.f32.mxu0 %v16053_v42  ;;  %12827 = vmatpush1.bf16.msra.mxu0 %v12826_v19  ;;  %v19031_v42 = vld [vmem:[#allocation32_spill] sm:$0xff]  ;;  %v1086_v19 = vld [vmem:[#allocation2 + $0x69] sm:$0xff] }
 0x217   : > { %12828 = vmatprep.subr.bf16.mxu0 %v19023_v8 }
 0x219   : > { %2233 = vmatmul.mubr.f32.gmra.mrb[28].mxu0 %v15878_v39  ;;  %v19024_v39 = vld [vmem:[#allocation25_spill] sm:$0xff] }
 0x21a   : > { %2237 = vmatprep.mubr.f32.mxu0 %v16058_v45  ;;  %12830 = vmatpush1.bf16.msra.mxu0 %v12829_v24  ;;  %v19032_v45 = vld [vmem:[#allocation33_spill] sm:$0xff]  ;;  %v12927_v24 = vpack.c.bf16 %v3744_v14, %v3743_v59 }
 0x21b   : > { %12831 = vmatprep.subr.bf16.mxu0 %v19023_v8  ;;  %v1093_v14 = vld [vmem:[#allocation2 + $0xc1] sm:$0xff] }
 0x21d   : > { %2238 = vmatmul.mubr.f32.gmra.mrb[30].mxu0 %v15885_v43  ;;  %v19025_v43 = vld [vmem:[#allocation26_spill] sm:$0xff] }
 0x21e   : > { %2242 = vmatprep.mubr.f32.mxu0 %v16062_v15  ;;  %12833 = vmatpush1.bf16.msra.mxu0 %v12832_v32  ;;  %v16225_v15 = vld [vmem:[#allocation2 + $0x181] sm:$0xff]  ;;  %v1087_v32 = vld [vmem:[#allocation2 + $0x79] sm:$0xff] }
 0x21f   : > { %12866 = vmatprep.subr.bf16.mxu0 %v19023_v8 }
 0x221   : > { %2243 = vmatmul.mubr.f32.gmra.mrb[32].mxu0 %v15892_v47  ;;  %v19026_v47 = vld [vmem:[#allocation27_spill] sm:$0xff] }
 0x222   : > { %2247 = vmatprep.mubr.f32.mxu0 %v16066_v48  ;;  %v1175_v48 = vld [vmem:[#allocation2 + $0x19a] sm:$0xff] }
 0x223   : > { %12319 = vmatprep.mubr.f32.mxu1 %v1175_v48  ;;  %v3718_v48 = vld [vmem:[#allocation8 + $0x78] sm:$0xff] }
 0x225   : > { %2248 = vmatmul.mubr.f32.gmra.mrb[34].mxu0 %v15898_v50  ;;  %v19027_v50 = vld [vmem:[#allocation28_spill] sm:$0xff] }
 0x226   : > { %2252 = vmatprep.mubr.f32.mxu0 %v16070_v17  ;;  %v1176_v17 = vld [vmem:[#allocation2 + $0x1a2] sm:$0xff] }
 0x227   : > { %12320 = vmatmul.mubr.f32.gmra.mrb[30].mxu1 %v1176_v17 }
 0x229   : > { %2253 = vmatmul.mubr.f32.gmra.mrb[36].mxu0 %v15904_v53  ;;  %v19028_v53 = vld [vmem:[#allocation29_spill] sm:$0xff] }
 0x22a   : > { %2257 = vmatprep.mubr.f32.mxu0 %v16074_v52  ;;  %v16228_v52 = vld [vmem:[#allocation2 + $0x189] sm:$0xff] }
 0x22d   : > { %2258 = vmatmul.mubr.f32.gmra.mrb[38].mxu0 %v15910_v57  ;;  %v19029_v57 = vld [vmem:[#allocation30_spill] sm:$0xff] }
 0x22e   : > { %2262 = vmatprep.mubr.f32.mxu0 %v16078_v55  ;;  %v1081_v55 = vld [vmem:[#allocation2 + $0x31] sm:$0xff] }
 0x231   : > { %2263 = vmatmul.mubr.f32.gmra.mrb[40].mxu0 %v15916_v60  ;;  %v19030_v60 = vld [vmem:[#allocation31_spill] sm:$0xff] }
 0x232   : > { %2267 = vmatprep.mubr.f32.mxu0 %v16082_v58  ;;  %v3703_v58 = vld [vmem:[#allocation8] sm:$0xff] }
 0x235   : > { %2268 = vmatmul.mubr.f32.gmra.mrb[42].mxu0 %v19024_v39  ;;  %v3715_v39 = vld [vmem:[#allocation8 + $0x60] sm:$0xff] }
 0x236   : > { %2272 = vmatprep.mubr.f32.mxu0 %v16086_v62  ;;  %v3704_v62 = vld [vmem:[#allocation8 + $0x8] sm:$0xff] }
 0x239   : > { %2273 = vmatmul.mubr.f32.gmra.mrb[44].mxu0 %v19025_v43  ;;  %v3716_v43 = vld [vmem:[#allocation8 + $0x68] sm:$0xff] }
 0x23a   : > { %2277 = vmatprep.mubr.f32.mxu0 %v16090_v6  ;;  %v1017_v6 = vld [vmem:[#allocation2 + $0x30] sm:$0xff] }
 0x23d   : > { %2278 = vmatmul.mubr.f32.gmra.mrb[46].mxu0 %v19026_v47 }
 0x23e   : > { %2282 = vmatprep.mubr.f32.mxu0 %v16094_v13  ;;  %v1082_v13 = vld [vmem:[#allocation2 + $0x39] sm:$0xff] }
 0x241   : > { %2283 = vmatmul.mubr.f32.gmra.mrb[48].mxu0 %v19027_v50  ;;  %v3747_v50 = vld [vmem:[#allocation8 + $0x160] sm:$0xff] }
 0x242   : > { %2287 = vmatprep.mubr.f32.mxu0 %v16098_v16  ;;  %v12867_v16 = vpack.c.bf16 %v3704_v62, %v3703_v58  ;;  %v3750_v58 = vld [vmem:[#allocation8 + $0x178] sm:$0xff]  ;;  %v1024_v62 = vld [vmem:[#allocation2 + $0x80] sm:$0xff] }
 0x245   : > { %2288 = vmatmul.mubr.f32.gmra.mrb[50].mxu0 %v19028_v53  ;;  %v3748_v53 = vld [vmem:[#allocation8 + $0x168] sm:$0xff] }
 0x246   : > { %2292 = vmatprep.mubr.f32.mxu0 %v16102_v20  ;;  %v3705_v20 = vld [vmem:[#allocation8 + $0x10] sm:$0xff]  ;;  %v12933_v17 = vpack.c.bf16 %v3748_v53, %v3747_v50 }
 0x247   : > { %v1097_v50 = vld [vmem:[#allocation2 + $0xf1] sm:$0xff] }
 0x248   : > { %v1033_v53 = vld [vmem:[#allocation2 + $0xf0] sm:$0xff] }
 0x249   : > { %2293 = vmatmul.mubr.f32.gmra.mrb[52].mxu0 %v19029_v57  ;;  %v1023_v57 = vld [vmem:[#allocation2 + $0x78] sm:$0xff] }
 0x24a   : > { %2297 = vmatprep.mubr.f32.mxu0 %v16106_v25  ;;  %v3706_v25 = vld [vmem:[#allocation8 + $0x18] sm:$0xff] }
 0x24b   : > { %v12870_v44 = vpack.c.bf16 %v3706_v25, %v3705_v20  ;;  %v3720_v20 = vld [vmem:[#allocation8 + $0x88] sm:$0xff] }
 0x24d   : > { %2298 = vmatmul.mubr.f32.gmra.mrb[54].mxu0 %v19030_v60  ;;  %v12885_v60 = vpack.c.bf16 %v3716_v43, %v3715_v39  ;;  %v1031_v39 = vld [vmem:[#allocation2 + $0xd8] sm:$0xff]  ;;  %v1096_v43 = vld [vmem:[#allocation2 + $0xe1] sm:$0xff] }
 0x24e   : > { %2302 = vmatprep.mubr.f32.mxu0 %v16112_v33  ;;  %v3735_v33 = vld [vmem:[#allocation8 + $0x100] sm:$0xff] }
 0x251   : > { %2303 = vmatmul.mubr.f32.gmra.mrb[56].mxu0 %v19031_v42  ;;  %v1088_v42 = vld [vmem:[#allocation2 + $0x81] sm:$0xff] }
 0x252   : > { %2307 = vmatprep.mubr.f32.mxu0 %v16118_v36  ;;  %v3736_v36 = vld [vmem:[#allocation8 + $0x108] sm:$0xff] }
 0x253   : > { %v12915_v34 = vpack.c.bf16 %v3736_v36, %v3735_v33  ;;  %v3751_v33 = vld [vmem:[#allocation8 + $0x180] sm:$0xff]  ;;  %v3752_v36 = vld [vmem:[#allocation8 + $0x188] sm:$0xff] }
 0x255   : > { %2308 = vmatmul.mubr.f32.gmra.mrb[58].mxu0 %v19032_v45  ;;  %12916 = vmatpush1.bf16.msra.mxu1 %v12915_v34  ;;  %v3717_v45 = vld [vmem:[#allocation8 + $0x70] sm:$0xff] }
 0x256   : > { %2312 = vmatprep.mubr.f32.mxu0 %v982_v63  ;;  %12917 = vmatprep.subr.bf16.mxu1 %v19023_v8  ;;  %v3745_v63 = vld [vmem:[#allocation8 + $0x150] sm:$0xff] }
 0x257   : > { %v12930_v47 = vpack.c.bf16 %v3746_v12, %v3745_v63  ;;  %v1025_v34 = vld [vmem:[#allocation2 + $0x90] sm:$0xff]  ;;  %v3730_v12 = vld [vmem:[#allocation8 + $0xd8] sm:$0xff] }
 0x258   : > { %v3729_v63 = vld [vmem:[#allocation8 + $0xd0] sm:$0xff] }
 0x259   : > { %2313 = vmatmul.mubr.f32.gmra.mrb[60].mxu0 %v16225_v15  ;;  %12919 = vmatpush1.bf16.msra.mxu1 %v12918_v46  ;;  %v1026_v46 = vld [vmem:[#allocation2 + $0x98] sm:$0xff] }
 0x25a   : > { %2317 = vmatprep.mubr.f32.mxu0 %v983_v31  ;;  %12920 = vmatprep.subr.bf16.mxu1 %v19023_v8  ;;  %v12882_v31 = vpack.c.bf16 %v3714_v7, %v3713_v26  ;;  %v1029_v26 = vld [vmem:[#allocation2 + $0xc0] sm:$0xff] }
 0x25d   : > { %2318 = vmatmul.mubr.f32.gmra.mrb[62].mxu0 %v16228_v52  ;;  %12922 = vmatpush1.bf16.msra.mxu1 %v12921_v21  ;;  %v1027_v21 = vld [vmem:[#allocation2 + $0xa8] sm:$0xff] }
 0x25e   : > { %2387 = vmatprep.mubr.f32.mxu0 %v1081_v55  ;;  %12923 = vmatprep.subr.bf16.mxu1 %v19023_v8  ;;  %v3749_v55 = vld [vmem:[#allocation8 + $0x170] sm:$0xff] }
 0x25f   : > { %v12936_v25 = vpack.c.bf16 %v3750_v58, %v3749_v55  ;;  %v1101_v55 = vld [vmem:[#allocation2 + $0x121] sm:$0xff] }
 0x260   : > { %v3731_v58 = vld [vmem:[#allocation8 + $0xe0] sm:$0xff] }
 0x261   : > { %2388 = vmatmul.mubr.f32.vlgmr.msra.gmra.mrb[0].mxu0 %v1017_v6  ;;  %12925 = vmatpush1.bf16.msra.mxu1 %v12924_v37  ;;  %v12888_v6 = vpack.c.bf16 %v3718_v48, %v3717_v45  ;;  %v1028_v37 = vld [vmem:[#allocation2 + $0xb0] sm:$0xff]  ;;  %v1035_v45 = vld [vmem:[#allocation2 + $0x108] sm:$0xff] }
 0x262   : > { %2392 = vmatprep.mubr.f32.mxu0 %v1082_v13  ;;  %12868 = vmatpush1.bf16.msra.mxu0 %v12867_v16  ;;  %v1089_v13 = vld [vmem:[#allocation2 + $0x91] sm:$0xff]  ;;  %v3719_v16 = vld [vmem:[#allocation8 + $0x80] sm:$0xff] }
 0x263   : > { %12869 = vmatprep.subr.bf16.mxu0 %v19023_v8  ;;  %12926 = vmatprep.subr.bf16.mxu1 %v19023_v8  ;;  %v12891_v40 = vpack.c.bf16 %v3720_v20, %v3719_v16  ;;  %v1100_v48 = vld [vmem:[#allocation2 + $0x111] sm:$0xff]  ;;  %v1102_v16 = vld [vmem:[#allocation2 + $0x129] sm:$0xff] }
 0x264   : > { %v3733_v20 = vld [vmem:[#allocation8 + $0xf0] sm:$0xff] }
 0x265   : > { %2393 = vmatmul.mubr.f32.gmra.mrb[2].mxu0 %v1018_v5  ;;  %12928 = vmatpush1.bf16.msra.mxu1 %v12927_v24  ;;  %v3721_v5 = vld [vmem:[#allocation8 + $0x90] sm:$0xff] }
 0x266   : > { %2397 = vmatprep.mubr.f32.mxu0 %v1083_v41  ;;  %12871 = vmatpush1.bf16.msra.mxu0 %v12870_v44  ;;  %v3722_v44 = vld [vmem:[#allocation8 + $0x98] sm:$0xff]  ;;  %v12939_v41 = vpack.c.bf16 %v3752_v36, %v3751_v33  ;;  %v1094_v24 = vld [vmem:[#allocation2 + $0xc9] sm:$0xff] }
 0x267   : > { %12872 = vmatprep.subr.bf16.mxu0 %v19023_v8  ;;  %12929 = vmatprep.subr.bf16.mxu1 %v19023_v8  ;;  %v12894_v10 = vpack.c.bf16 %v3722_v44, %v3721_v5  ;;  %v1038_v36 = vld [vmem:[#allocation2 + $0x128] sm:$0xff] }
 0x269   : > { %2398 = vmatmul.mubr.f32.gmra.mrb[4].mxu0 %v1019_v51  ;;  %12931 = vmatpush1.bf16.msra.mxu1 %v12930_v47  ;;  %v3723_v51 = vld [vmem:[#allocation8 + $0xa0] sm:$0xff] }
 0x26a   : > { %2402 = vmatprep.mubr.f32.mxu0 %v1084_v38  ;;  %12874 = vmatpush1.bf16.msra.mxu0 %v12873_v22  ;;  %v3724_v22 = vld [vmem:[#allocation8 + $0xa8] sm:$0xff]  ;;  %v12942_v38 = vpack.c.bf16 %v3754_v49, %v3753_v11  ;;  %v1032_v47 = vld [vmem:[#allocation2 + $0xe0] sm:$0xff]  ;;  %v1039_v11 = vld [vmem:[#allocation2 + $0x138] sm:$0xff] }
 0x26b   : > { %12875 = vmatprep.subr.bf16.mxu0 %v19023_v8  ;;  %12932 = vmatprep.subr.bf16.mxu1 %v19023_v8  ;;  %v12897_v61 = vpack.c.bf16 %v3724_v22, %v3723_v51  ;;  %v3761_v49 = vld [vmem:[#allocation8 + $0x1d0] sm:$0xff]  ;;  %v1040_v51 = vld [vmem:[#allocation2 + $0x140] sm:$0xff] }
 0x26c   : > { %v3763_v22 = vld [vmem:[#allocation8 + $0x1e0] sm:$0xff] }
 0x26d   : > { %2403 = vmatmul.mubr.f32.gmra.mrb[6].mxu0 %v1020_v30  ;;  %12934 = vmatpush1.bf16.msra.mxu1 %v12933_v17  ;;  %v3725_v30 = vld [vmem:[#allocation8 + $0xb0] sm:$0xff] }
 0x26e   : > { %2407 = vmatprep.mubr.f32.mxu0 %v1085_v29  ;;  %12877 = vmatpush1.bf16.msra.mxu0 %v12876_v4  ;;  %v3726_v4 = vld [vmem:[#allocation8 + $0xb8] sm:$0xff]  ;;  %v12945_v29 = vpack.c.bf16 %v3756_v1, %v3755_v56  ;;  %v1036_v17 = vld [vmem:[#allocation2 + $0x110] sm:$0xff] }
 0x26f   : > { %12878 = vmatprep.subr.bf16.mxu0 %v19023_v8  ;;  %12935 = vmatprep.subr.bf16.mxu1 %v19023_v8  ;;  %v12900_v59 = vpack.c.bf16 %v3726_v4, %v3725_v30  ;;  %v1105_v56 = vld [vmem:[#allocation2 + $0x151] sm:$0xff] }
 0x270   : > { %v3765_v30 = vld [vmem:[#allocation8 + $0x1f0] sm:$0xff]  ;;  %v3766_v4 = vld [vmem:[#allocation8 + $0x1f8] sm:$0xff] }
 0x271   : > { %2408 = vmatmul.mubr.f32.gmra.mrb[8].mxu0 %v1021_v18  ;;  %12937 = vmatpush1.bf16.msra.mxu1 %v12936_v25  ;;  %v3727_v18 = vld [vmem:[#allocation8 + $0xc0] sm:$0xff]  ;;  %v3734_v25 = vld [vmem:[#allocation8 + $0xf8] sm:$0xff] }
 0x272   : > { %2412 = vmatprep.mubr.f32.mxu0 %v1086_v19  ;;  %12880 = vmatpush1.bf16.msra.mxu0 %v12879_v2  ;;  %v3728_v2 = vld [vmem:[#allocation8 + $0xc8] sm:$0xff]  ;;  %v12948_v19 = vpack.c.bf16 %v3758_v9, %v3757_v54  ;;  %v12912_v33 = vpack.c.bf16 %v3734_v25, %v3733_v20  ;;  %v12960_v54 = vpack.c.bf16 %v3766_v4, %v3765_v30  ;;  %v1042_v9 = vld [vmem:[#allocation2 + $0x158] sm:$0xff]  ;;  %v3833_v20 = vld [vmem:[#allocation8 + $0x410] sm:$0xff] }
 0x273   : > { %12881 = vmatprep.subr.bf16.mxu0 %v19023_v8  ;;  %12938 = vmatprep.subr.bf16.mxu1 %v19023_v8  ;;  %v12903_v7 = vpack.c.bf16 %v3728_v2, %v3727_v18  ;;  %v1043_v18 = vld [vmem:[#allocation2 + $0x168] sm:$0xff]  ;;  %v1108_v2 = vld [vmem:[#allocation2 + $0x171] sm:$0xff]  ;;  %v3843_v4 = vld [vmem:[#allocation8 + $0x460] sm:$0xff] }
 0x274   : > { %v3834_v25 = vld [vmem:[#allocation8 + $0x418] sm:$0xff] }
 0x275   : > { %2413 = vmatmul.mubr.f32.gmra.mrb[10].mxu0 %v1022_v3  ;;  %12940 = vmatpush1.bf16.msra.mxu1 %v12939_v41  ;;  %v1030_v3 = vld [vmem:[#allocation2 + $0xc8] sm:$0xff] }
 0x276   : > { %2417 = vmatprep.mubr.f32.mxu0 %v1087_v32  ;;  %12883 = vmatpush1.bf16.msra.mxu0 %v12882_v31  ;;  %v12906_v31 = vpack.c.bf16 %v3730_v12, %v3729_v63  ;;  %v1095_v32 = vld [vmem:[#allocation2 + $0xd9] sm:$0xff] }
 0x277   : > { %12884 = vmatprep.subr.bf16.mxu0 %v19023_v8  ;;  %12941 = vmatprep.subr.bf16.mxu1 %v19023_v8 }
 0x279   : > { %2418 = vmatmul.mubr.f32.gmra.mrb[12].mxu0 %v1023_v57  ;;  %12943 = vmatpush1.bf16.msra.mxu1 %v12942_v38  ;;  %v1098_v57 = vld [vmem:[#allocation2 + $0xf9] sm:$0xff]  ;;  %v3764_v38 = vld [vmem:[#allocation8 + $0x1e8] sm:$0xff] }
 0x27a   : > { %2422 = vmatprep.mubr.f32.mxu0 %v1088_v42  ;;  %12886 = vmatpush1.bf16.msra.mxu0 %v12885_v60  ;;  %v1034_v60 = vld [vmem:[#allocation2 + $0xf8] sm:$0xff]  ;;  %v1099_v42 = vld [vmem:[#allocation2 + $0x109] sm:$0xff]  ;;  %v12957_v1 = vpack.c.bf16 %v3764_v38, %v3763_v22 }
 0x27b   : > { %12887 = vmatprep.subr.bf16.mxu0 %v19023_v8  ;;  %12944 = vmatprep.subr.bf16.mxu1 %v19023_v8 }
 0x27d   : > { %2423 = vmatmul.mubr.f32.gmra.mrb[14].mxu0 %v1024_v62  ;;  %12946 = vmatpush1.bf16.msra.mxu1 %v12945_v29  ;;  %v3732_v62 = vld [vmem:[#allocation8 + $0xe8] sm:$0xff]  ;;  %v1106_v29 = vld [vmem:[#allocation2 + $0x159] sm:$0xff] }
 0x27e   : > { %2427 = vmatprep.mubr.f32.mxu0 %v1089_v13  ;;  %12889 = vmatpush1.bf16.msra.mxu0 %v12888_v6  ;;  %v12909_v6 = vpack.c.bf16 %v3732_v62, %v3731_v58  ;;  %v1037_v13 = vld [vmem:[#allocation2 + $0x120] sm:$0xff] }
 0x27f   : > { %12890 = vmatprep.subr.bf16.mxu0 %v19023_v8  ;;  %12947 = vmatprep.subr.bf16.mxu1 %v19023_v8  ;;  %v3831_v62 = vld [vmem:[#allocation8 + $0x400] sm:$0xff] }
 0x281   : > { %2428 = vmatmul.mubr.f32.gmra.mrb[16].mxu0 %v1025_v34  ;;  %12949 = vmatpush1.bf16.msra.mxu1 %v12948_v19  ;;  %v3759_v34 = vld [vmem:[#allocation8 + $0x1c0] sm:$0xff]  ;;  %v1044_v19 = vld [vmem:[#allocation2 + $0x170] sm:$0xff] }
 0x282   : > { %2432 = vmatprep.mubr.f32.mxu0 %v1090_v35  ;;  %12892 = vmatpush1.bf16.msra.mxu0 %v12891_v40  ;;  %v3760_v40 = vld [vmem:[#allocation8 + $0x1c8] sm:$0xff]  ;;  %v1103_v35 = vld [vmem:[#allocation2 + $0x139] sm:$0xff] }
 0x283   : > { %12893 = vmatprep.subr.bf16.mxu0 %v19023_v8  ;;  %12950 = vmatprep.subr.bf16.mxu1 %v19023_v8  ;;  %v12951_v5 = vpack.c.bf16 %v3760_v40, %v3759_v34  ;;  %v3835_v34 = vld [vmem:[#allocation8 + $0x420] sm:$0xff]  ;;  %v3836_v40 = vld [vmem:[#allocation8 + $0x428] sm:$0xff] }
 0x285   : > { %2433 = vmatmul.mubr.f32.gmra.mrb[18].mxu0 %v1026_v46  ;;  %12952 = vmatpush1.bf16.msra.mxu1 %v12951_v5  ;;  %v3762_v46 = vld [vmem:[#allocation8 + $0x1d8] sm:$0xff] }
 0x286   : > { %2437 = vmatprep.mubr.f32.mxu0 %v1091_v23  ;;  %12895 = vmatpush1.bf16.msra.mxu0 %v12894_v10  ;;  %v1104_v10 = vld [vmem:[#allocation2 + $0x141] sm:$0xff]  ;;  %v12954_v23 = vpack.c.bf16 %v3762_v46, %v3761_v49  ;;  %v3838_v49 = vld [vmem:[#allocation8 + $0x438] sm:$0xff] }
 0x287   : > { %12896 = vmatprep.subr.bf16.mxu0 %v19023_v8  ;;  %12953 = vmatprep.subr.bf16.mxu1 %v19023_v8 }
 0x289   : > { %2438 = vmatmul.mubr.f32.gmra.mrb[20].mxu0 %v1027_v21  ;;  %12955 = vmatpush1.bf16.msra.mxu1 %v12954_v23  ;;  %v3839_v23 = vld [vmem:[#allocation8 + $0x440] sm:$0xff] }
 0x28a   : > { %2442 = vmatprep.mubr.f32.mxu0 %v1092_v28  ;;  %12898 = vmatpush1.bf16.msra.mxu0 %v12897_v61  ;;  %v1041_v28 = vld [vmem:[#allocation2 + $0x150] sm:$0xff] }
 0x28b   : > { %12899 = vmatprep.subr.bf16.mxu0 %v19023_v8  ;;  %12956 = vmatprep.subr.bf16.mxu1 %v19023_v8 }
 0x28d   : > { %2443 = vmatmul.mubr.f32.gmra.mrb[22].mxu0 %v1028_v37  ;;  %12958 = vmatpush1.bf16.msra.mxu1 %v12957_v1  ;;  %v1107_v37 = vld [vmem:[#allocation2 + $0x169] sm:$0xff]  ;;  %v3842_v1 = vld [vmem:[#allocation8 + $0x458] sm:$0xff] }
 0x28e   : > { %2447 = vmatprep.mubr.f32.mxu0 %v1093_v14  ;;  %12901 = vmatpush1.bf16.msra.mxu0 %v12900_v59 }
 0x28f   : > { %12902 = vmatprep.subr.bf16.mxu0 %v19023_v8  ;;  %12959 = vmatprep.subr.bf16.mxu1 %v19023_v8 }
 0x291   : > { %2448 = vmatmul.mubr.f32.gmra.mrb[24].mxu0 %v1029_v26  ;;  %12961 = vmatpush1.bf16.msra.mxu1 %v12960_v54 }
 0x292   : > { %2452 = vmatprep.mubr.f32.mxu0 %v1094_v24  ;;  %12904 = vmatpush1.bf16.msra.mxu0 %v12903_v7  ;;  %v1111_v24 = vld [vmem:[#allocation2 + $0x199] sm:$0xff] }
 0x293   : > { %12905 = vmatprep.subr.bf16.mxu0 %v19023_v8  ;;  %12962 = vmatprep.subr.bf16.mxu1 %v19023_v8 }
 0x295   : > { %2453 = vmatmul.mubr.f32.gmra.mrb[26].mxu0 %v1030_v3  ;;  %v1112_v3 = vld [vmem:[#allocation2 + $0x1a1] sm:$0xff] }
 0x296   : > { %2457 = vmatprep.mubr.f32.mxu0 %v1095_v32  ;;  %12907 = vmatpush1.bf16.msra.mxu0 %v12906_v31  ;;  %v15086_v31 = vld [vmem:[#allocation2] sm:$0xff]  ;;  %v2902_v32 = vld [vmem:[#allocation3 + $0x1] sm:$0xff] }
 0x297   : > { %12908 = vmatprep.subr.bf16.mxu0 %v19023_v8 }
 0x299   : > { %2458 = vmatmul.mubr.f32.gmra.mrb[28].mxu0 %v1031_v39 }
 0x29a   : > { %2462 = vmatprep.mubr.f32.mxu0 %v1096_v43  ;;  %12910 = vmatpush1.bf16.msra.mxu0 %v12909_v6  ;;  %v3832_v6 = vld [vmem:[#allocation8 + $0x408] sm:$0xff] }
 0x29b   : > { %12911 = vmatprep.subr.bf16.mxu0 %v19023_v8 }
 0x29d   : > { %2463 = vmatmul.mubr.f32.gmra.mrb[30].mxu0 %v1032_v47 }
 0x29e   : > { %2467 = vmatprep.mubr.f32.mxu0 %v1097_v50  ;;  %12913 = vmatpush1.bf16.msra.mxu0 %v12912_v33 }
 0x2a1   : > { %2468 = vmatmul.mubr.f32.gmra.mrb[32].mxu0 %v1033_v53 }
 0x2a2   : > { %2472 = vmatprep.mubr.f32.mxu0 %v1098_v57 }
 0x2a5   : > { %2473 = vmatmul.mubr.f32.gmra.mrb[34].mxu0 %v1034_v60 }
 0x2a6   : > { %2477 = vmatprep.mubr.f32.mxu0 %v1099_v42 }
 0x2a9   : > { %2478 = vmatmul.mubr.f32.gmra.mrb[36].mxu0 %v1035_v45 }
 0x2aa   : > { %2482 = vmatprep.mubr.f32.mxu0 %v1100_v48 }
 0x2ad   : > { %2483 = vmatmul.mubr.f32.gmra.mrb[38].mxu0 %v1036_v17 }
 0x2ae   : > { %2487 = vmatprep.mubr.f32.mxu0 %v1101_v55 }
 0x2af   : > { %v16258_v44 = vpop.f32.mrb[0].mxu1 }
 0x2b0   : > { %v16260_v41 = vpop.f32.mrb[1].mxu1 }
 0x2b1   : > { %2488 = vmatmul.mubr.f32.gmra.mrb[40].mxu0 %v1037_v13  ;;  %v13058_v13 = vpack.c.bf16 %v3832_v6, %v3831_v62 }
 0x2b2   : > { %2492 = vmatprep.mubr.f32.mxu0 %v1102_v16 }
 0x2b3   : > { %v16264_v21 = vpop.f32.mrb[2].mxu1  ;;  %13059 = vmatprep.subr.bf16.mxu0 %v13058_v13 }
 0x2b4   : > { %v16266_v61 = vpop.f32.mrb[3].mxu1 }
 0x2b5   : > { %2493 = vmatmul.mubr.f32.gmra.mrb[42].mxu0 %v1038_v36  ;;  %v13062_v36 = vpack.c.bf16 %v3834_v25, %v3833_v20 }
 0x2b6   : > { %2497 = vmatprep.mubr.f32.mxu0 %v1103_v35  ;;  %v13066_v35 = vpack.c.bf16 %v3836_v40, %v3835_v34  ;;  %v3767_v40 = vld [vmem:[#allocation8 + $0x200] sm:$0xff] }
 0x2b7   : > { %v16270_v59 = vpop.f32.mrb[4].mxu1 }
 0x2b8   : > { %v16272_v14 = vpop.f32.mrb[5].mxu1 }
 0x2b9   : > { %2498 = vmatmul.mubr.f32.gmra.mrb[44].mxu0 %v1039_v11  ;;  %v3837_v11 = vld [vmem:[#allocation8 + $0x430] sm:$0xff] }
 0x2ba   : > { %2502 = vmatprep.mubr.f32.mxu0 %v1104_v10  ;;  %v13070_v10 = vpack.c.bf16 %v3838_v49, %v3837_v11 }
 0x2bb   : > { %v16274_v26 = vpop.f32.mrb[6].mxu1 }
 0x2bc   : > { %v16276_v7 = vpop.f32.mrb[7].mxu1 }
 0x2bd   : > { %2503 = vmatmul.mubr.f32.gmra.mrb[46].mxu0 %v1040_v51  ;;  %v3840_v51 = vld [vmem:[#allocation8 + $0x448] sm:$0xff] }
 0x2be   : > { %2507 = vmatprep.mubr.f32.mxu0 %v1105_v56  ;;  %v13074_v22 = vpack.c.bf16 %v3840_v51, %v3839_v23  ;;  %v3841_v56 = vld [vmem:[#allocation8 + $0x450] sm:$0xff] }
 0x2bf   : > { %v16281_v63 = vpop.f32.mrb[8].mxu1  ;;  %v13078_v30 = vpack.c.bf16 %v3842_v1, %v3841_v56  ;;  %v2966_v51 = vld [vmem:[#allocation3 + $0x2] sm:$0xff] }
 0x2c0   : > { %v16284_v12 = vpop.f32.mrb[9].mxu1  ;;  %v3770_v1 = vld [vmem:[#allocation8 + $0x218] sm:$0xff] }
 0x2c1   : > { %2508 = vmatmul.mubr.f32.gmra.mrb[48].mxu0 %v1041_v28 }
 0x2c2   : > { %2512 = vmatprep.mubr.f32.mxu0 %v1106_v29  ;;  %v3844_v29 = vld [vmem:[#allocation8 + $0x468] sm:$0xff] }
 0x2c3   : > { %v16286_v39 = vpop.f32.mrb[10].mxu1  ;;  %v13082_v54 = vpack.c.bf16 %v3844_v29, %v3843_v4 }
 0x2c5   : > { %2513 = vmatmul.mubr.f32.gmra.mrb[50].mxu0 %v1042_v9  ;;  %v16333_v9 = vld [vmem:[%s18899_s2] ss:$0 sm:$0xff] }
 0x2c6   : > { %2517 = vmatprep.mubr.f32.mxu0 %v1107_v37 }
 0x2c9   : > { %2518 = vmatmul.mubr.f32.gmra.mrb[52].mxu0 %v1043_v18  ;;  %v3845_v18 = vld [vmem:[#allocation8 + $0x470] sm:$0xff] }
 0x2ca   : > { %2522 = vmatprep.mubr.f32.mxu0 %v1108_v2  ;;  %v3846_v2 = vld [vmem:[#allocation8 + $0x478] sm:$0xff] }
 0x2cd   : > { %2523 = vmatmul.mubr.f32.gmra.mrb[54].mxu0 %v1044_v19 }
 0x2ce   : > { %2527 = vmatprep.mubr.f32.mxu0 %v16225_v15  ;;  %v16288_v15 = vpop.f32.mrb[11].mxu1 }
 0x2d1   : > { %2528 = vmatmul.mubr.f32.gmra.mrb[56].mxu0 %v16108_v27  ;;  %v2903_v27 = vld [vmem:[#allocation3 + $0x9] sm:$0xff] }
 0x2d2   : > { %2532 = vmatprep.mubr.f32.mxu0 %v16228_v52  ;;  %v16290_v52 = vpop.f32.mrb[12].mxu1 }
 0x2d5   : > { %2533 = vmatmul.mubr.f32.gmra.mrb[58].mxu0 %v16114_v0  ;;  %v16292_v0 = vpop.f32.mrb[13].mxu1 }
 0x2d6   : > { %2537 = vmatprep.mubr.f32.mxu0 %v1111_v24  ;;  %v16294_v43 = vpop.f32.mrb[14].mxu1 }
 0x2d7   : > { %v16296_v47 = vpop.f32.mrb[15].mxu1 }
 0x2d8   : > { %v16298_v50 = vpop.f32.mrb[16].mxu1 }
 0x2d9   : > { %2538 = vmatmul.mubr.f32.gmra.mrb[60].mxu0 %v15086_v31  ;;  %v16300_v53 = vpop.f32.mrb[17].mxu1 }
 0x2da   : > { %2542 = vmatprep.mubr.f32.mxu0 %v1112_v3  ;;  %v16302_v57 = vpop.f32.mrb[18].mxu1  ;;  %v13086_v3 = vpack.c.bf16 %v3846_v2, %v3845_v18 }
 0x2db   : > { %v16304_v60 = vpop.f32.mrb[19].mxu1 }
 0x2dc   : > { %v16306_v42 = vpop.f32.mrb[20].mxu1 }
 0x2dd   : > { %2543 = vmatmul.mubr.f32.gmra.mrb[62].mxu0 %v15086_v31  ;;  %v16308_v45 = vpop.f32.mrb[21].mxu1 }
 0x2de   : > { %3918 = vmatprep.mubr.f32.mxu0 %v2902_v32  ;;  %v16310_v48 = vpop.f32.mrb[22].mxu1 }
 0x2df   : > { %v16312_v17 = vpop.f32.mrb[23].mxu1 }
 0x2e0   : > { %v16314_v55 = vpop.f32.mrb[24].mxu1 }
 0x2e1   : > { %3919 = vmatmul.mubr.f32.vlgmr.msra.gmra.mrb[64].mxu0 %v15086_v31  ;;  %v16316_v58 = vpop.f32.mrb[25].mxu1 }
 0x2e2   : > { %3923 = vmatprep.mubr.f32.mxu0 %v2903_v27  ;;  %13061 = vmatpush3.bf16.msra.mxu0 %v13058_v13 }
 0x2e3   : > { %v16318_v16 = vpop.f32.mrb[26].mxu1  ;;  %13063 = vmatprep.subr.bf16.mxu0 %v13062_v36 }
 0x2e4   : > { %v16320_v33 = vpop.f32.mrb[27].mxu1 }
 0x2e5   : > { %3924 = vmatmul.mubr.f32.gmra.mrb[66].mxu0 %v15086_v31 }
 0x2e6   : > { %13065 = vmatpush3.bf16.msra.mxu0 %v13062_v36 }
 0x2e7   : > { %13067 = vmatprep.subr.bf16.mxu0 %v13066_v35  ;;  %v16322_v5 = vpop.f32.mrb[28].mxu1 }
 0x2e8   : > { %v16324_v46 = vpop.f32.mrb[29].mxu1 }
 0x2ea   : > { %13069 = vmatpush3.bf16.msra.mxu0 %v13066_v35 }
 0x2eb   : > { %13071 = vmatprep.subr.bf16.mxu0 %v13070_v10 }
 0x2ee   : > { %13073 = vmatpush3.bf16.msra.mxu0 %v13070_v10 }
 0x2ef   : > { %13075 = vmatprep.subr.bf16.mxu0 %v13074_v22 }
 0x2f2   : > { %13077 = vmatpush3.bf16.msra.mxu0 %v13074_v22 }
 0x2f3   : > { %13079 = vmatprep.subr.bf16.mxu0 %v13078_v30 }
 0x2f6   : > { %13081 = vmatpush3.bf16.msra.mxu0 %v13078_v30 }
 0x2f7   : > { %13083 = vmatprep.subr.bf16.mxu0 %v13082_v54 }
 0x2fa   : > { %v16326_v38 = vpop.f32.mrb[30].mxu1  ;;  %13085 = vmatpush3.bf16.msra.mxu0 %v13082_v54 }
 0x2fb   : > { %v16328_v28 = vpop.f32.mrb[31].mxu1  ;;  %13087 = vmatprep.subr.bf16.mxu0 %v13086_v3 }
 0x2fe   : > { %13089 = vmatpush3.bf16.msra.mxu0 %v13086_v3 }
 0x2ff   : > { %13234 = vmatprep.subr.bf16.mxu0 %v19023_v8 }
 0x334   : > { %v2389_v37 = vpop.f32.mrb[0].mxu0 }
 0x335   : > { %v2391_v19 = vpop.f32.mrb[1].mxu0  ;;  %v13794_v24 = vadd.f32 %v16333_v9, %v2389_v37  ;;  %v2967_v37 = vld [vmem:[#allocation3 + $0xa] sm:$0xff] }
 0x336   : > { %v3771_v19 = vld [vmem:[#allocation8 + $0x220] sm:$0xff] }
 0x337   : > { %v2615_v31 = vadd.f32 %v13794_v24, %v16260_v41  ;;  %v3768_v41 = vld [vmem:[#allocation8 + $0x208] sm:$0xff] }
 0x338   : > { %v2394_v32 = vpop.f32.mrb[2].mxu0  ;;  %v12963_v22 = vpack.c.bf16 %v3768_v41, %v3767_v40  ;;  %v3772_v24 = vld [vmem:[#allocation8 + $0x228] sm:$0xff] }
 0x339   : > { %v2773_v27 = vmax.f32 %v2615_v31, 0.0  ;;  %v13795_v62 = vadd.f32 %v16333_v9, %v2394_v32  ;;  %v2396_v6 = vpop.f32.mrb[3].mxu0 }
 0x33b   : > { %2806 = vst [vmem:[#allocation3 + $0x19] sm:$0xff] %v2773_v27  ;;  %v2620_v13 = vadd.f32 %v13795_v62, %v16258_v44  ;;  %3928 = vmatprep.mubr.f32.mxu0 %v2773_v27  ;;  %v3769_v44 = vld [vmem:[#allocation8 + $0x210] sm:$0xff]  ;;  %v12969_v62 = vpack.c.bf16 %v3772_v24, %v3771_v19 }
 0x33c   : > { %v2399_v20 = vpop.f32.mrb[4].mxu0  ;;  %v12966_v18 = vpack.c.bf16 %v3770_v1, %v3769_v44 }
 0x33d   : > { %v2774_v25 = vmax.f32 %v2620_v13, 0.0  ;;  %v2401_v36 = vpop.f32.mrb[5].mxu0  ;;  %v13796_v34 = vadd.f32 %v16333_v9, %v2399_v20  ;;  %v3773_v13 = vld [vmem:[#allocation8 + $0x230] sm:$0xff]  ;;  %v3774_v20 = vld [vmem:[#allocation8 + $0x238] sm:$0xff] }
 0x33f   : > { %2807 = vst [vmem:[#allocation3 + $0x21] sm:$0xff] %v2774_v25  ;;  %v2625_v35 = vadd.f32 %v13796_v34, %v16266_v61 }
 0x340   : > { %v2404_v11 = vpop.f32.mrb[6].mxu0 }
 0x341   : > { %v2775_v49 = vmax.f32 %v2625_v35, 0.0  ;;  %v13797_v10 = vadd.f32 %v16333_v9, %v2404_v11  ;;  %v2406_v23 = vpop.f32.mrb[7].mxu0  ;;  %v12972_v35 = vpack.c.bf16 %v3774_v20, %v3773_v13 }
 0x342   : > { %v3030_v56 = vld [vmem:[#allocation3 + $0x18] sm:$0xff] }
 0x343   : > { %2808 = vst [vmem:[#allocation3 + $0x31] sm:$0xff] %v2775_v49  ;;  %v2630_v30 = vadd.f32 %v13797_v10, %v16264_v21  ;;  %4143 = vmatprep.mubr.f32.mxu1 %v3030_v56  ;;  %3929 = vmatmul.mubr.f32.gmra.mrb[68].mxu0 %v3030_v56  ;;  %v3776_v10 = vld [vmem:[#allocation8 + $0x248] sm:$0xff] }
 0x344   : > { %v2409_v4 = vpop.f32.mrb[8].mxu0  ;;  %4144 = vmatmul.mubr.f32.vlgmr.msra.gmra.mrb[32].mxu1 %v2966_v51  ;;  %3933 = vmatprep.mubr.f32.mxu0 %v2774_v25 }
 0x345   : > { %v2776_v29 = vmax.f32 %v2630_v30, 0.0  ;;  %v2411_v61 = vpop.f32.mrb[9].mxu0  ;;  %12964 = vmatpush1.bf16.msra.mxu1 %v12963_v22  ;;  %v13798_v54 = vadd.f32 %v16333_v9, %v2409_v4  ;;  %v3777_v4 = vld [vmem:[#allocation8 + $0x250] sm:$0xff] }
 0x346   : > { %v3031_v2 = vld [vmem:[#allocation3 + $0x20] sm:$0xff]  ;;  %12965 = vmatprep.subr.bf16.mxu1 %v19023_v8 }
 0x347   : > { %2809 = vst [vmem:[#allocation3 + $0x39] sm:$0xff] %v2776_v29  ;;  %v2635_v21 = vadd.f32 %v13798_v54, %v16272_v14  ;;  %4148 = vmatprep.mubr.f32.mxu1 %v3031_v2  ;;  %3934 = vmatmul.mubr.f32.gmra.mrb[70].mxu0 %v3031_v2  ;;  %v2968_v14 = vld [vmem:[#allocation3 + $0x1a] sm:$0xff]  ;;  %v2969_v23 = vld [vmem:[#allocation3 + $0x22] sm:$0xff] }
 0x348   : > { %v2414_v3 = vpop.f32.mrb[10].mxu0  ;;  %4149 = vmatmul.mubr.f32.gmra.mrb[34].mxu1 %v2967_v37  ;;  %3938 = vmatprep.mubr.f32.mxu0 %v2775_v49  ;;  %v3775_v49 = vld [vmem:[#allocation8 + $0x240] sm:$0xff] }
 0x349   : > { %v2777_v31 = vmax.f32 %v2635_v21, 0.0  ;;  %v13799_v32 = vadd.f32 %v16333_v9, %v2414_v3  ;;  %v2416_v27 = vpop.f32.mrb[11].mxu0  ;;  %12967 = vmatpush1.bf16.msra.mxu1 %v12966_v18  ;;  %v12975_v1 = vpack.c.bf16 %v3776_v10, %v3775_v49  ;;  %v3779_v21 = vld [vmem:[#allocation8 + $0x260] sm:$0xff]  ;;  %v3780_v3 = vld [vmem:[#allocation8 + $0x268] sm:$0xff] }
 0x34a   : > { %v3032_v6 = vld [vmem:[#allocation3 + $0x30] sm:$0xff]  ;;  %12968 = vmatprep.subr.bf16.mxu1 %v19023_v8  ;;  %v12981_v13 = vpack.c.bf16 %v3780_v3, %v3779_v21  ;;  %v3788_v3 = vld [vmem:[#allocation8 + $0x2a8] sm:$0xff] }
 0x34b   : > { %2810 = vst [vmem:[#allocation3 + $0x49] sm:$0xff] %v2777_v31  ;;  %v2640_v25 = vadd.f32 %v13799_v32, %v16270_v59  ;;  %4153 = vmatprep.mubr.f32.mxu1 %v3032_v6  ;;  %3939 = vmatmul.mubr.f32.gmra.mrb[72].mxu0 %v3032_v6  ;;  %v3783_v10 = vld [vmem:[#allocation8 + $0x280] sm:$0xff] }
 0x34c   : > { %v2419_v36 = vpop.f32.mrb[12].mxu0  ;;  %4154 = vmatmul.mubr.f32.gmra.mrb[36].mxu1 %v2968_v14  ;;  %3943 = vmatprep.mubr.f32.mxu0 %v2776_v29  ;;  %v3778_v29 = vld [vmem:[#allocation8 + $0x258] sm:$0xff]  ;;  %v3787_v21 = vld [vmem:[#allocation8 + $0x2a0] sm:$0xff] }
 0x34d   : > { %v2778_v34 = vmax.f32 %v2640_v25, 0.0  ;;  %v2421_v40 = vpop.f32.mrb[13].mxu0  ;;  %v13800_v41 = vadd.f32 %v16333_v9, %v2419_v36  ;;  %12970 = vmatpush1.bf16.msra.mxu1 %v12969_v62  ;;  %v12978_v19 = vpack.c.bf16 %v3778_v29, %v3777_v4  ;;  %v3781_v25 = vld [vmem:[#allocation8 + $0x270] sm:$0xff]  ;;  %v3782_v14 = vld [vmem:[#allocation8 + $0x278] sm:$0xff] }
 0x34e   : > { %v3033_v11 = vld [vmem:[#allocation3 + $0x38] sm:$0xff]  ;;  %12971 = vmatprep.subr.bf16.mxu1 %v19023_v8  ;;  %v3785_v4 = vld [vmem:[#allocation8 + $0x290] sm:$0xff]  ;;  %v3786_v29 = vld [vmem:[#allocation8 + $0x298] sm:$0xff] }
 0x34f   : > { %2811 = vst [vmem:[#allocation3 + $0x51] sm:$0xff] %v2778_v34  ;;  %v2645_v59 = vadd.f32 %v13800_v41, %v16276_v7  ;;  %4158 = vmatprep.mubr.f32.mxu1 %v3033_v11  ;;  %3944 = vmatmul.mubr.f32.gmra.mrb[74].mxu0 %v3033_v11  ;;  %v16356_v61 = vld [vmem:[#allocation3 + $0x32] sm:$0xff]  ;;  %v12984_v11 = vpack.c.bf16 %v3782_v14, %v3781_v25  ;;  %v3789_v25 = vld [vmem:[#allocation8 + $0x2b0] sm:$0xff]  ;;  %v3790_v14 = vld [vmem:[#allocation8 + $0x2b8] sm:$0xff] }
 0x350   : > { %v2424_v51 = vpop.f32.mrb[14].mxu0  ;;  %4159 = vmatmul.mubr.f32.gmra.mrb[38].mxu1 %v2969_v23  ;;  %3948 = vmatprep.mubr.f32.mxu0 %v2777_v31  ;;  %v16362_v31 = vld [vmem:[#allocation3 + $0x3a] sm:$0xff] }
 0x351   : > { %v2779_v22 = vmax.f32 %v2645_v59, 0.0  ;;  %v13801_v56 = vadd.f32 %v16333_v9, %v2424_v51  ;;  %v2426_v44 = vpop.f32.mrb[15].mxu0  ;;  %12973 = vmatpush1.bf16.msra.mxu1 %v12972_v35  ;;  %v3784_v59 = vld [vmem:[#allocation8 + $0x288] sm:$0xff] }
 0x352   : > { %v3034_v30 = vld [vmem:[#allocation3 + $0x48] sm:$0xff]  ;;  %12974 = vmatprep.subr.bf16.mxu1 %v19023_v8 }
 0x353   : > { %2812 = vst [vmem:[#allocation3 + $0x61] sm:$0xff] %v2779_v22  ;;  %v2650_v7 = vadd.f32 %v13801_v56, %v16274_v26  ;;  %4163 = vmatprep.mubr.f32.mxu1 %v3034_v30  ;;  %3949 = vmatmul.mubr.f32.gmra.mrb[76].mxu0 %v3034_v30 }
 0x354   : > { %v2429_v54 = vpop.f32.mrb[16].mxu0  ;;  %4164 = vmatmul.mubr.f32.gmra.mrb[40].mxu1 %v16356_v61  ;;  %3953 = vmatprep.mubr.f32.mxu0 %v2778_v34 }
 0x355   : > { %v2780_v37 = vmax.f32 %v2650_v7, 0.0  ;;  %v2431_v18 = vpop.f32.mrb[17].mxu0  ;;  %v13802_v2 = vadd.f32 %v16333_v9, %v2429_v54  ;;  %12976 = vmatpush1.bf16.msra.mxu1 %v12975_v1  ;;  %v12987_v1 = vpack.c.bf16 %v3784_v59, %v3783_v10  ;;  %v3791_v10 = vld [vmem:[#allocation8 + $0x2c0] sm:$0xff]  ;;  %v3792_v59 = vld [vmem:[#allocation8 + $0x2c8] sm:$0xff] }
 0x356   : > { %v3035_v24 = vld [vmem:[#allocation3 + $0x50] sm:$0xff]  ;;  %12977 = vmatprep.subr.bf16.mxu1 %v19023_v8 }
 0x357   : > { %2813 = vst [vmem:[#allocation3 + $0x69] sm:$0xff] %v2780_v37  ;;  %v2655_v26 = vadd.f32 %v13802_v2, %v16284_v12  ;;  %4168 = vmatprep.mubr.f32.mxu1 %v3035_v24  ;;  %3954 = vmatmul.mubr.f32.gmra.mrb[78].mxu0 %v3035_v24  ;;  %v16368_v36 = vld [vmem:[#allocation3 + $0x4a] sm:$0xff]  ;;  %v16374_v23 = vld [vmem:[#allocation3 + $0x52] sm:$0xff] }
 0x358   : > { %v2434_v32 = vpop.f32.mrb[18].mxu0  ;;  %4169 = vmatmul.mubr.f32.gmra.mrb[42].mxu1 %v16362_v31  ;;  %3958 = vmatprep.mubr.f32.mxu0 %v2779_v22 }
 0x359   : > { %v2781_v27 = vmax.f32 %v2655_v26, 0.0  ;;  %v13803_v62 = vadd.f32 %v16333_v9, %v2434_v32  ;;  %v2436_v6 = vpop.f32.mrb[19].mxu0  ;;  %12979 = vmatpush1.bf16.msra.mxu1 %v12978_v19  ;;  %v12990_v19 = vpack.c.bf16 %v3786_v29, %v3785_v4  ;;  %v3793_v4 = vld [vmem:[#allocation8 + $0x2d0] sm:$0xff]  ;;  %v3794_v29 = vld [vmem:[#allocation8 + $0x2d8] sm:$0xff] }
 0x35a   : > { %v3036_v20 = vld [vmem:[#allocation3 + $0x60] sm:$0xff]  ;;  %12980 = vmatprep.subr.bf16.mxu1 %v19023_v8 }
 0x35b   : > { %2814 = vst [vmem:[#allocation3 + $0x79] sm:$0xff] %v2781_v27  ;;  %v2660_v12 = vadd.f32 %v13803_v62, %v16281_v63  ;;  %4173 = vmatprep.mubr.f32.mxu1 %v3036_v20  ;;  %3959 = vmatmul.mubr.f32.gmra.mrb[80].mxu0 %v3036_v20 }
 0x35c   : > { %v2439_v34 = vpop.f32.mrb[20].mxu0  ;;  %4174 = vmatmul.mubr.f32.gmra.mrb[44].mxu1 %v16368_v36  ;;  %3963 = vmatprep.mubr.f32.mxu0 %v2780_v37 }
 0x35d   : > { %v2782_v40 = vmax.f32 %v2660_v12, 0.0  ;;  %v2441_v41 = vpop.f32.mrb[21].mxu0  ;;  %v13804_v35 = vadd.f32 %v16333_v9, %v2439_v34  ;;  %12982 = vmatpush1.bf16.msra.mxu1 %v12981_v13  ;;  %v12993_v13 = vpack.c.bf16 %v3788_v3, %v3787_v21  ;;  %v3795_v21 = vld [vmem:[#allocation8 + $0x2e0] sm:$0xff]  ;;  %v3796_v3 = vld [vmem:[#allocation8 + $0x2e8] sm:$0xff] }
 0x35e   : > { %v3037_v49 = vld [vmem:[#allocation3 + $0x68] sm:$0xff]  ;;  %12983 = vmatprep.subr.bf16.mxu1 %v19023_v8 }
 0x35f   : > { %2815 = vst [vmem:[#allocation3 + $0x81] sm:$0xff] %v2782_v40  ;;  %v2665_v63 = vadd.f32 %v13804_v35, %v16288_v15  ;;  %4178 = vmatprep.mubr.f32.mxu1 %v3037_v49  ;;  %3964 = vmatmul.mubr.f32.gmra.mrb[82].mxu0 %v3037_v49  ;;  %v16380_v7 = vld [vmem:[#allocation3 + $0x62] sm:$0xff]  ;;  %v16386_v26 = vld [vmem:[#allocation3 + $0x6a] sm:$0xff] }
 0x360   : > { %v2444_v51 = vpop.f32.mrb[22].mxu0  ;;  %4179 = vmatmul.mubr.f32.gmra.mrb[46].mxu1 %v16374_v23  ;;  %3968 = vmatprep.mubr.f32.mxu0 %v2781_v27 }
 0x361   : > { %v2783_v22 = vmax.f32 %v2665_v63, 0.0  ;;  %v13805_v56 = vadd.f32 %v16333_v9, %v2444_v51  ;;  %v2446_v44 = vpop.f32.mrb[23].mxu0  ;;  %12985 = vmatpush1.bf16.msra.mxu1 %v12984_v11  ;;  %v12996_v11 = vpack.c.bf16 %v3790_v14, %v3789_v25  ;;  %v3797_v25 = vld [vmem:[#allocation8 + $0x2f0] sm:$0xff] }
 0x362   : > { %v3038_v30 = vld [vmem:[#allocation3 + $0x78] sm:$0xff]  ;;  %12986 = vmatprep.subr.bf16.mxu1 %v19023_v8 }
 0x363   : > { %2816 = vst [vmem:[#allocation3 + $0x91] sm:$0xff] %v2783_v22  ;;  %v2670_v15 = vadd.f32 %v13805_v56, %v16286_v39  ;;  %4183 = vmatprep.mubr.f32.mxu1 %v3038_v30  ;;  %3969 = vmatmul.mubr.f32.gmra.mrb[84].mxu0 %v3038_v30 }
 0x364   : > { %v2449_v54 = vpop.f32.mrb[24].mxu0  ;;  %4184 = vmatmul.mubr.f32.gmra.mrb[48].mxu1 %v16380_v7  ;;  %3973 = vmatprep.mubr.f32.mxu0 %v2782_v40 }
 0x365   : > { %v2784_v37 = vmax.f32 %v2670_v15, 0.0  ;;  %v2451_v18 = vpop.f32.mrb[25].mxu0  ;;  %v13806_v2 = vadd.f32 %v16333_v9, %v2449_v54  ;;  %12988 = vmatpush1.bf16.msra.mxu1 %v12987_v1  ;;  %v12999_v1 = vpack.c.bf16 %v3792_v59, %v3791_v10 }
 0x366   : > { %v3039_v24 = vld [vmem:[#allocation3 + $0x80] sm:$0xff]  ;;  %12989 = vmatprep.subr.bf16.mxu1 %v19023_v8 }
 0x367   : > { %2817 = vst [vmem:[#allocation3 + $0x99] sm:$0xff] %v2784_v37  ;;  %v2675_v39 = vadd.f32 %v13806_v2, %v16292_v0  ;;  %4188 = vmatprep.mubr.f32.mxu1 %v3039_v24  ;;  %3974 = vmatmul.mubr.f32.gmra.mrb[86].mxu0 %v3039_v24  ;;  %v16392_v12 = vld [vmem:[#allocation3 + $0x7a] sm:$0xff]  ;;  %v16398_v63 = vld [vmem:[#allocation3 + $0x82] sm:$0xff] }
 0x368   : > { %v2454_v32 = vpop.f32.mrb[26].mxu0  ;;  %4189 = vmatmul.mubr.f32.gmra.mrb[50].mxu1 %v16386_v26  ;;  %3978 = vmatprep.mubr.f32.mxu0 %v2783_v22 }
 0x369   : > { %v2785_v27 = vmax.f32 %v2675_v39, 0.0  ;;  %v13807_v62 = vadd.f32 %v16333_v9, %v2454_v32  ;;  %v2456_v6 = vpop.f32.mrb[27].mxu0  ;;  %12991 = vmatpush1.bf16.msra.mxu1 %v12990_v19  ;;  %v13002_v19 = vpack.c.bf16 %v3794_v29, %v3793_v4 }
 0x36a   : > { %v3040_v20 = vld [vmem:[#allocation3 + $0x90] sm:$0xff]  ;;  %12992 = vmatprep.subr.bf16.mxu1 %v19023_v8 }
 0x36b   : > { %2818 = vst [vmem:[#allocation3 + $0xa9] sm:$0xff] %v2785_v27  ;;  %v2680_v0 = vadd.f32 %v13807_v62, %v16290_v52  ;;  %4193 = vmatprep.mubr.f32.mxu1 %v3040_v20  ;;  %3979 = vmatmul.mubr.f32.gmra.mrb[88].mxu0 %v3040_v20 }
 0x36c   : > { %v2459_v34 = vpop.f32.mrb[28].mxu0  ;;  %4194 = vmatmul.mubr.f32.gmra.mrb[52].mxu1 %v16392_v12  ;;  %3983 = vmatprep.mubr.f32.mxu0 %v2784_v37 }
 0x36d   : > { %v2786_v40 = vmax.f32 %v2680_v0, 0.0  ;;  %v2461_v41 = vpop.f32.mrb[29].mxu0  ;;  %v13808_v35 = vadd.f32 %v16333_v9, %v2459_v34  ;;  %12994 = vmatpush1.bf16.msra.mxu1 %v12993_v13  ;;  %v13005_v13 = vpack.c.bf16 %v3796_v3, %v3795_v21 }
 0x36e   : > { %v3041_v49 = vld [vmem:[#allocation3 + $0x98] sm:$0xff]  ;;  %12995 = vmatprep.subr.bf16.mxu1 %v19023_v8 }
 0x36f   : > { %2819 = vst [vmem:[#allocation3 + $0xb1] sm:$0xff] %v2786_v40  ;;  %v2685_v52 = vadd.f32 %v13808_v35, %v16296_v47  ;;  %4198 = vmatprep.mubr.f32.mxu1 %v3041_v49  ;;  %3984 = vmatmul.mubr.f32.gmra.mrb[90].mxu0 %v3041_v49  ;;  %v16404_v15 = vld [vmem:[#allocation3 + $0x92] sm:$0xff]  ;;  %v16410_v39 = vld [vmem:[#allocation3 + $0x9a] sm:$0xff] }
 0x370   : > { %v2464_v51 = vpop.f32.mrb[30].mxu0  ;;  %4199 = vmatmul.mubr.f32.gmra.mrb[54].mxu1 %v16398_v63  ;;  %3988 = vmatprep.mubr.f32.mxu0 %v2785_v27 }
 0x371   : > { %v2787_v22 = vmax.f32 %v2685_v52, 0.0  ;;  %v13809_v56 = vadd.f32 %v16333_v9, %v2464_v51  ;;  %v2466_v44 = vpop.f32.mrb[31].mxu0  ;;  %12997 = vmatpush1.bf16.msra.mxu1 %v12996_v11 }
 0x372   : > { %v3042_v30 = vld [vmem:[#allocation3 + $0xa8] sm:$0xff]  ;;  %12998 = vmatprep.subr.bf16.mxu1 %v19023_v8 }
 0x373   : > { %2820 = vst [vmem:[#allocation3 + $0xc1] sm:$0xff] %v2787_v22  ;;  %v2690_v47 = vadd.f32 %v13809_v56, %v16294_v43  ;;  %4203 = vmatprep.mubr.f32.mxu1 %v3042_v30  ;;  %3989 = vmatmul.mubr.f32.gmra.mrb[92].mxu0 %v3042_v30 }
 0x374   : > { %v2469_v54 = vpop.f32.mrb[32].mxu0  ;;  %4204 = vmatmul.mubr.f32.gmra.mrb[56].mxu1 %v16404_v15  ;;  %3993 = vmatprep.mubr.f32.mxu0 %v2786_v40 }
 0x375   : > { %v2788_v37 = vmax.f32 %v2690_v47, 0.0  ;;  %v2471_v18 = vpop.f32.mrb[33].mxu0  ;;  %v13810_v2 = vadd.f32 %v16333_v9, %v2469_v54  ;;  %13000 = vmatpush1.bf16.msra.mxu1 %v12999_v1 }
 0x376   : > { %v3043_v24 = vld [vmem:[#allocation3 + $0xb0] sm:$0xff]  ;;  %13001 = vmatprep.subr.bf16.mxu1 %v19023_v8 }
 0x377   : > { %2821 = vst [vmem:[#allocation3 + $0xc9] sm:$0xff] %v2788_v37  ;;  %v2695_v43 = vadd.f32 %v13810_v2, %v16300_v53  ;;  %4208 = vmatprep.mubr.f32.mxu1 %v3043_v24  ;;  %3994 = vmatmul.mubr.f32.gmra.mrb[94].mxu0 %v3043_v24  ;;  %v3798_v53 = vld [vmem:[#allocation8 + $0x2f8] sm:$0xff]  ;;  %v16428_v10 = vld [vmem:[#allocation3 + $0xb2] sm:$0xff] }
 0x378   : > { %v2474_v32 = vpop.f32.mrb[34].mxu0  ;;  %4209 = vmatmul.mubr.f32.gmra.mrb[58].mxu1 %v16410_v39  ;;  %3998 = vmatprep.mubr.f32.mxu0 %v2787_v22  ;;  %v16419_v0 = vld [vmem:[#allocation3 + $0xaa] sm:$0xff]  ;;  %v13008_v11 = vpack.c.bf16 %v3798_v53, %v3797_v25 }
 0x379   : > { %v16413_v27 = vmax.f32 %v2695_v43, 0.0  ;;  %v13811_v62 = vadd.f32 %v16333_v9, %v2474_v32  ;;  %v2476_v6 = vpop.f32.mrb[35].mxu0  ;;  %13003 = vmatpush1.bf16.msra.mxu1 %v13002_v19 }
 0x37a   : > { %v3044_v20 = vld [vmem:[#allocation3 + $0xc0] sm:$0xff]  ;;  %13004 = vmatprep.subr.bf16.mxu1 %v19023_v8 }
 0x37b   : > { %2822 = vst [vmem:[#allocation3 + $0xd9] sm:$0xff] %v16413_v27  ;;  %v2700_v14 = vadd.f32 %v13811_v62, %v16298_v50  ;;  %4213 = vmatprep.mubr.f32.mxu1 %v3044_v20  ;;  %3999 = vmatmul.mubr.f32.gmra.mrb[96].mxu0 %v3044_v20 }
 0x37c   : > { %v2479_v34 = vpop.f32.mrb[36].mxu0  ;;  %4214 = vmatmul.mubr.f32.gmra.mrb[60].mxu1 %v16419_v0  ;;  %4003 = vmatprep.mubr.f32.mxu0 %v2788_v37 }
 0x37d   : > { %v16422_v40 = vmax.f32 %v2700_v14, 0.0  ;;  %v2481_v41 = vpop.f32.mrb[37].mxu0  ;;  %v13812_v35 = vadd.f32 %v16333_v9, %v2479_v34  ;;  %13006 = vmatpush1.bf16.msra.mxu1 %v13005_v13 }
 0x37e   : > { %v3045_v49 = vld [vmem:[#allocation3 + $0xc8] sm:$0xff]  ;;  %13007 = vmatprep.subr.bf16.mxu1 %v19023_v8 }
 0x37f   : > { %2823 = vst [vmem:[#allocation3 + $0xe1] sm:$0xff] %v16422_v40  ;;  %v2705_v50 = vadd.f32 %v13812_v35, %v16304_v60  ;;  %4218 = vmatprep.mubr.f32.mxu1 %v3045_v49  ;;  %4004 = vmatmul.mubr.f32.gmra.mrb[98].mxu0 %v3045_v49  ;;  %v16438_v44 = vld [vmem:[#allocation3 + $0xc2] sm:$0xff] }
 0x380   : > { %v2484_v59 = vpop.f32.mrb[38].mxu0  ;;  %4219 = vmatmul.mubr.f32.gmra.mrb[62].mxu1 %v16428_v10  ;;  %4008 = vmatprep.mubr.f32.mxu0 %v16413_v27 }
 0x381   : > { %v16432_v52 = vmax.f32 %v2705_v50, 0.0  ;;  %v13813_v51 = vadd.f32 %v16333_v9, %v2484_v59  ;;  %v2486_v22 = vpop.f32.mrb[39].mxu0  ;;  %13009 = vmatpush1.bf16.msra.mxu1 %v13008_v11 }
 0x382   : > { %v3046_v56 = vld [vmem:[#allocation3 + $0xd8] sm:$0xff]  ;;  %13010 = vmatprep.subr.bf16.mxu1 %v19023_v8 }
 0x383   : > { %2824 = vst [vmem:[#allocation3 + $0xf1] sm:$0xff] %v16432_v52  ;;  %v2710_v60 = vadd.f32 %v13813_v51, %v16302_v57  ;;  %4223 = vmatprep.mubr.f32.mxu1 %v3046_v56  ;;  %4009 = vmatmul.mubr.f32.gmra.mrb[100].mxu0 %v3046_v56  ;;  %v16447_v57 = vld [vmem:[#allocation3 + $0xca] sm:$0xff] }
 0x384   : > { %v2489_v1 = vpop.f32.mrb[40].mxu0  ;;  %4224 = vmatmul.mubr.f32.gmra.mrb[64].mxu1 %v16438_v44  ;;  %4013 = vmatprep.mubr.f32.mxu0 %v16422_v40 }
 0x385   : > { %v16442_v30 = vmax.f32 %v2710_v60, 0.0  ;;  %v2491_v4 = vpop.f32.mrb[41].mxu0  ;;  %v13814_v29 = vadd.f32 %v16333_v9, %v2489_v1 }
 0x386   : > { %v3047_v47 = vld [vmem:[#allocation3 + $0xe0] sm:$0xff] }
 0x387   : > { %2825 = vst [vmem:[#allocation3 + $0xf9] sm:$0xff] %v16442_v30  ;;  %v2715_v54 = vadd.f32 %v13814_v29, %v16308_v45  ;;  %4228 = vmatprep.mubr.f32.mxu1 %v3047_v47  ;;  %4014 = vmatmul.mubr.f32.gmra.mrb[102].mxu0 %v3047_v47  ;;  %v16456_v45 = vld [vmem:[#allocation3 + $0xda] sm:$0xff] }
 0x388   : > { %v2494_v37 = vpop.f32.mrb[42].mxu0  ;;  %4229 = vmatmul.mubr.f32.gmra.mrb[66].mxu1 %v16447_v57  ;;  %4018 = vmatprep.mubr.f32.mxu0 %v16432_v52 }
 0x389   : > { %v16451_v18 = vmax.f32 %v2715_v54, 0.0  ;;  %v13815_v2 = vadd.f32 %v16333_v9, %v2494_v37  ;;  %v2496_v19 = vpop.f32.mrb[43].mxu0 }
 0x38a   : > { %v3048_v24 = vld [vmem:[#allocation3 + $0xf0] sm:$0xff] }
 0x38b   : > { %2826 = vst [vmem:[#allocation3 + $0x109] sm:$0xff] %v16451_v18  ;;  %v2720_v21 = vadd.f32 %v13815_v2, %v16306_v42  ;;  %4233 = vmatprep.mubr.f32.mxu1 %v3048_v24  ;;  %4019 = vmatmul.mubr.f32.gmra.mrb[104].mxu0 %v3048_v24  ;;  %v16465_v42 = vld [vmem:[#allocation3 + $0xe2] sm:$0xff] }
 0x38c   : > { %v2499_v3 = vpop.f32.mrb[44].mxu0  ;;  %4234 = vmatmul.mubr.f32.gmra.mrb[68].mxu1 %v16456_v45  ;;  %4023 = vmatprep.mubr.f32.mxu0 %v16442_v30 }
 0x38d   : > { %v16460_v43 = vmax.f32 %v2720_v21, 0.0  ;;  %v2501_v32 = vpop.f32.mrb[45].mxu0  ;;  %v13816_v62 = vadd.f32 %v16333_v9, %v2499_v3 }
 0x38e   : > { %v3049_v6 = vld [vmem:[#allocation3 + $0xf8] sm:$0xff] }
 0x38f   : > { %2827 = vst [vmem:[#allocation3 + $0x111] sm:$0xff] %v16460_v43  ;;  %v2725_v13 = vadd.f32 %v13816_v62, %v16312_v17  ;;  %4238 = vmatprep.mubr.f32.mxu1 %v3049_v6  ;;  %4024 = vmatmul.mubr.f32.gmra.mrb[106].mxu0 %v3049_v6  ;;  %v16474_v17 = vld [vmem:[#allocation3 + $0xf2] sm:$0xff] }
 0x390   : > { %v2504_v20 = vpop.f32.mrb[46].mxu0  ;;  %4239 = vmatmul.mubr.f32.gmra.mrb[70].mxu1 %v16465_v42  ;;  %4028 = vmatprep.mubr.f32.mxu0 %v16451_v18 }
 0x391   : > { %v16469_v25 = vmax.f32 %v2725_v13, 0.0  ;;  %v13817_v53 = vadd.f32 %v16333_v9, %v2504_v20  ;;  %v2506_v14 = vpop.f32.mrb[47].mxu0 }
 0x392   : > { %v3050_v34 = vld [vmem:[#allocation3 + $0x108] sm:$0xff] }
 0x393   : > { %2828 = vst [vmem:[#allocation3 + $0x121] sm:$0xff] %v16469_v25  ;;  %v2730_v41 = vadd.f32 %v13817_v53, %v16310_v48  ;;  %4243 = vmatprep.mubr.f32.mxu1 %v3050_v34  ;;  %4029 = vmatmul.mubr.f32.gmra.mrb[108].mxu0 %v3050_v34  ;;  %v16483_v48 = vld [vmem:[#allocation3 + $0xfa] sm:$0xff] }
 0x394   : > { %v2509_v35 = vpop.f32.mrb[48].mxu0  ;;  %4244 = vmatmul.mubr.f32.gmra.mrb[72].mxu1 %v16474_v17  ;;  %4033 = vmatprep.mubr.f32.mxu0 %v16460_v43 }
 0x395   : > { %v16478_v11 = vmax.f32 %v2730_v41, 0.0  ;;  %v2511_v49 = vpop.f32.mrb[49].mxu0  ;;  %v13818_v50 = vadd.f32 %v16333_v9, %v2509_v35 }
 0x396   : > { %v3051_v59 = vld [vmem:[#allocation3 + $0x110] sm:$0xff] }
 0x397   : > { %2829 = vst [vmem:[#allocation3 + $0x129] sm:$0xff] %v16478_v11  ;;  %v2735_v51 = vadd.f32 %v13818_v50, %v16316_v58  ;;  %4248 = vmatprep.mubr.f32.mxu1 %v3051_v59  ;;  %4034 = vmatmul.mubr.f32.gmra.mrb[110].mxu0 %v3051_v59  ;;  %v16492_v58 = vld [vmem:[#allocation3 + $0x10a] sm:$0xff] }
 0x398   : > { %v2514_v22 = vpop.f32.mrb[50].mxu0  ;;  %4249 = vmatmul.mubr.f32.gmra.mrb[74].mxu1 %v16483_v48  ;;  %4038 = vmatprep.mubr.f32.mxu0 %v16469_v25 }
 0x399   : > { %v16487_v56 = vmax.f32 %v2735_v51, 0.0  ;;  %v13819_v60 = vadd.f32 %v16333_v9, %v2514_v22  ;;  %v2516_v1 = vpop.f32.mrb[51].mxu0 }
 0x39a   : > { %v3052_v4 = vld [vmem:[#allocation3 + $0x120] sm:$0xff] }
 0x39b   : > { %2830 = vst [vmem:[#allocation3 + $0x139] sm:$0xff] %v16487_v56  ;;  %v2740_v29 = vadd.f32 %v13819_v60, %v16314_v55  ;;  %4253 = vmatprep.mubr.f32.mxu1 %v3052_v4  ;;  %4039 = vmatmul.mubr.f32.gmra.mrb[112].mxu0 %v3052_v4  ;;  %v16501_v55 = vld [vmem:[#allocation3 + $0x112] sm:$0xff] }
 0x39c   : > { %v2519_v47 = vpop.f32.mrb[52].mxu0  ;;  %4254 = vmatmul.mubr.f32.gmra.mrb[76].mxu1 %v16492_v58  ;;  %4043 = vmatprep.mubr.f32.mxu0 %v16478_v11 }
 0x39d   : > { %v16496_v54 = vmax.f32 %v2740_v29, 0.0  ;;  %v2521_v37 = vpop.f32.mrb[53].mxu0  ;;  %v13820_v2 = vadd.f32 %v16333_v9, %v2519_v47 }
 0x39e   : > { %v3053_v19 = vld [vmem:[#allocation3 + $0x128] sm:$0xff] }
 0x39f   : > { %2831 = vst [vmem:[#allocation3 + $0x141] sm:$0xff] %v16496_v54  ;;  %v2745_v24 = vadd.f32 %v13820_v2, %v16320_v33  ;;  %4258 = vmatprep.mubr.f32.mxu1 %v3053_v19  ;;  %4044 = vmatmul.mubr.f32.gmra.mrb[114].mxu0 %v3053_v19  ;;  %v16510_v33 = vld [vmem:[#allocation3 + $0x122] sm:$0xff] }
 0x3a0   : > { %v2524_v21 = vpop.f32.mrb[54].mxu0  ;;  %4259 = vmatmul.mubr.f32.gmra.mrb[78].mxu1 %v16501_v55  ;;  %4048 = vmatprep.mubr.f32.mxu0 %v16487_v56 }
 0x3a1   : > { %v16505_v3 = vmax.f32 %v2745_v24, 0.0  ;;  %v13821_v32 = vadd.f32 %v16333_v9, %v2524_v21  ;;  %v2526_v62 = vpop.f32.mrb[55].mxu0 }
 0x3a2   : > { %v3054_v6 = vld [vmem:[#allocation3 + $0x138] sm:$0xff] }
 0x3a3   : > { %2832 = vst [vmem:[#allocation3 + $0x151] sm:$0xff] %v16505_v3  ;;  %v2750_v13 = vadd.f32 %v13821_v32, %v16318_v16  ;;  %4263 = vmatprep.mubr.f32.mxu1 %v3054_v6  ;;  %4049 = vmatmul.mubr.f32.gmra.mrb[116].mxu0 %v3054_v6  ;;  %v16519_v16 = vld [vmem:[#allocation3 + $0x12a] sm:$0xff] }
 0x3a4   : > { %v2529_v20 = vpop.f32.mrb[56].mxu0  ;;  %4264 = vmatmul.mubr.f32.gmra.mrb[80].mxu1 %v16510_v33  ;;  %4053 = vmatprep.mubr.f32.mxu0 %v16496_v54 }
 0x3a5   : > { %v16514_v53 = vmax.f32 %v2750_v13, 0.0  ;;  %v2531_v14 = vpop.f32.mrb[57].mxu0  ;;  %v13822_v34 = vadd.f32 %v16333_v9, %v2529_v20 }
 0x3a6   : > { %v3055_v41 = vld [vmem:[#allocation3 + $0x140] sm:$0xff] }
 0x3a7   : > { %2833 = vst [vmem:[#allocation3 + $0x159] sm:$0xff] %v16514_v53  ;;  %v2755_v35 = vadd.f32 %v13822_v34, %v16324_v46  ;;  %4268 = vmatprep.mubr.f32.mxu1 %v3055_v41  ;;  %4054 = vmatmul.mubr.f32.gmra.mrb[118].mxu0 %v3055_v41  ;;  %v16528_v46 = vld [vmem:[#allocation3 + $0x13a] sm:$0xff] }
 0x3a8   : > { %v2534_v49 = vpop.f32.mrb[58].mxu0  ;;  %4269 = vmatmul.mubr.f32.gmra.mrb[82].mxu1 %v16519_v16  ;;  %4058 = vmatprep.mubr.f32.mxu0 %v16505_v3 }
 0x3a9   : > { %v16523_v50 = vmax.f32 %v2755_v35, 0.0  ;;  %v13823_v59 = vadd.f32 %v16333_v9, %v2534_v49  ;;  %v2536_v51 = vpop.f32.mrb[59].mxu0 }
 0x3aa   : > { %v3056_v22 = vld [vmem:[#allocation3 + $0x150] sm:$0xff] }
 0x3ab   : > { %2834 = vst [vmem:[#allocation3 + $0x169] sm:$0xff] %v16523_v50  ;;  %v2760_v60 = vadd.f32 %v13823_v59, %v16322_v5  ;;  %4273 = vmatprep.mubr.f32.mxu1 %v3056_v22  ;;  %4059 = vmatmul.mubr.f32.gmra.mrb[120].mxu0 %v3056_v22  ;;  %v16539_v5 = vld [vmem:[#allocation3 + $0x142] sm:$0xff]  ;;  %v3799_v51 = vld [vmem:[#allocation8 + $0x300] sm:$0xff]  ;;  %v3800_v22 = vld [vmem:[#allocation8 + $0x308] sm:$0xff] }
 0x3ac   : > { %v2539_v1 = vpop.f32.mrb[60].mxu0  ;;  %4274 = vmatmul.mubr.f32.gmra.mrb[84].mxu1 %v16528_v46  ;;  %4063 = vmatprep.mubr.f32.mxu0 %v16514_v53 }
 0x3ad   : > { %v16532_v4 = vmax.f32 %v2760_v60, 0.0  ;;  %v2541_v29 = vpop.f32.mrb[61].mxu0  ;;  %v13824_v47 = vadd.f32 %v16333_v9, %v2539_v1  ;;  %v13011_v1 = vpack.c.bf16 %v3800_v22, %v3799_v51  ;;  %v16581_v51 = vld [vmem:[#allocation3 + $0x31] sm:$0xff] }
 0x3ae   : > { %v3057_v37 = vld [vmem:[#allocation3 + $0x158] sm:$0xff]  ;;  %v3801_v29 = vld [vmem:[#allocation8 + $0x310] sm:$0xff] }
 0x3af   : > { %2835 = vst [vmem:[#allocation3 + $0x171] sm:$0xff] %v16532_v4  ;;  %v16537_v2 = vadd.f32 %v13824_v47, %v16328_v28  ;;  %4278 = vmatprep.mubr.f32.mxu1 %v3057_v37  ;;  %4064 = vmatmul.mubr.f32.gmra.mrb[122].mxu0 %v3057_v37  ;;  %v16550_v6 = vld [vmem:[#allocation3 + $0x152] sm:$0xff]  ;;  %v3802_v47 = vld [vmem:[#allocation8 + $0x318] sm:$0xff] }
 0x3b0   : > { %v2544_v19 = vpop.f32.mrb[62].mxu0  ;;  %4279 = vmatmul.mubr.f32.gmra.mrb[86].mxu1 %v16539_v5  ;;  %4068 = vmatprep.mubr.f32.mxu0 %v16523_v50  ;;  %v3094_v37 = vld [vmem:[#allocation3 + $0x19] sm:$0xff] }
 0x3b1   : > { %v2803_v24 = vmax.f32 %v16537_v2, 0.0  ;;  %v13825_v21 = vadd.f32 %v16333_v9, %v2544_v19  ;;  %v2546_v32 = vpop.f32.mrb[63].mxu0  ;;  %v3159_v19 = vld [vmem:[#allocation3 + $0x22] sm:$0xff] }
 0x3b2   : > { %v3058_v62 = vld [vmem:[#allocation3 + $0x168] sm:$0xff]  ;;  %v3803_v32 = vld [vmem:[#allocation8 + $0x320] sm:$0xff]  ;;  %v5909_v2 = vld [vmem:[#allocation10 + $0x10] sm:$0xff] }
 0x3b3   : > { %2836 = vst [vmem:[#allocation3 + $0x181] sm:$0xff] %v2803_v24  ;;  %v16548_v28 = vadd.f32 %v13825_v21, %v16326_v38  ;;  %4283 = vmatprep.mubr.f32.mxu1 %v3058_v62  ;;  %4069 = vmatmul.mubr.f32.gmra.mrb[124].mxu0 %v3058_v62  ;;  %v16559_v38 = vld [vmem:[#allocation3 + $0x15a] sm:$0xff]  ;;  %v13014_v21 = vpack.c.bf16 %v3802_v47, %v3801_v29 }
 0x3b4   : > { %4284 = vmatmul.mubr.f32.gmra.mrb[88].mxu1 %v16550_v6  ;;  %4073 = vmatprep.mubr.f32.mxu0 %v16532_v4  ;;  %v16554_v13 = vpop.f32.mrb[64].mxu0  ;;  %v3804_v62 = vld [vmem:[#allocation8 + $0x328] sm:$0xff] }
 0x3b5   : > { %v2804_v9 = vmax.f32 %v16548_v28, 0.0  ;;  %v3922_v20 = vpop.f32.mrb[65].mxu0  ;;  %v16588_v29 = vld [vmem:[#allocation3 + $0x39] sm:$0xff]  ;;  %v5911_v28 = vld [vmem:[#allocation10 + $0x20] sm:$0xff] }
 0x3b6   : > { %v3059_v14 = vld [vmem:[#allocation3 + $0x170] sm:$0xff]  ;;  %v3095_v20 = vld [vmem:[#allocation3 + $0x21] sm:$0xff] }
 0x3b7   : > { %2837 = vst [vmem:[#allocation3 + $0x189] sm:$0xff] %v2804_v9  ;;  %4288 = vmatprep.mubr.f32.mxu1 %v3059_v14  ;;  %4074 = vmatmul.mubr.f32.gmra.mrb[126].mxu0 %v3059_v14  ;;  %v16565_v49 = vld [vmem:[#allocation3 + $0x16a] sm:$0xff]  ;;  %v16570_v60 = vld [vmem:[#allocation3 + $0x172] sm:$0xff] }
 0x3b8   : > { %4289 = vmatmul.mubr.f32.gmra.mrb[90].mxu1 %v16559_v38  ;;  %12354 = vmatprep.mubr.f32.mxu0 %v16356_v61  ;;  %v16563_v34 = vpop.f32.mrb[66].mxu0  ;;  %v3158_v61 = vld [vmem:[#allocation3 + $0x1a] sm:$0xff]  ;;  %v3160_v14 = vld [vmem:[#allocation3 + $0x32] sm:$0xff] }
 0x3b9   : > { %v3927_v41 = vpop.f32.mrb[67].mxu0 }
 0x3ba   : > { %v3060_v35 = vld [vmem:[#allocation3 + $0x180] sm:$0xff]  ;;  %v13017_v41 = vpack.c.bf16 %v3804_v62, %v3803_v32  ;;  %v3812_v32 = vld [vmem:[#allocation8 + $0x368] sm:$0xff] }
 0x3bb   : > { %4293 = vmatprep.mubr.f32.mxu1 %v3060_v35  ;;  %12355 = vmatmul.mubr.f32.vlgmr.msra.gmra.mrb[128].mxu0 %v16362_v31  ;;  %v3805_v35 = vld [vmem:[#allocation8 + $0x330] sm:$0xff]  ;;  %v16602_v62 = vld [vmem:[#allocation3 + $0x51] sm:$0xff] }
 0x3bc   : > { %4294 = vmatmul.mubr.f32.gmra.mrb[92].mxu1 %v16565_v49  ;;  %12357 = vmatprep.mubr.f32.mxu0 %v16368_v36 }
 0x3be   : > { %v3061_v59 = vld [vmem:[#allocation3 + $0x188] sm:$0xff] }
 0x3bf   : > { %4298 = vmatprep.mubr.f32.mxu1 %v3061_v59  ;;  %12358 = vmatmul.mubr.f32.gmra.mrb[130].mxu0 %v16374_v23  ;;  %v3806_v59 = vld [vmem:[#allocation8 + $0x338] sm:$0xff] }
 0x3c0   : > { %4299 = vmatmul.mubr.f32.gmra.mrb[94].mxu1 %v16570_v60  ;;  %12360 = vmatprep.mubr.f32.mxu0 %v16380_v7  ;;  %v13020_v22 = vpack.c.bf16 %v3806_v59, %v3805_v35  ;;  %v3816_v59 = vld [vmem:[#allocation8 + $0x388] sm:$0xff] }
 0x3c1   : > { %4368 = vmatprep.mubr.f32.mxu1 %v3158_v61  ;;  %v3807_v61 = vld [vmem:[#allocation8 + $0x340] sm:$0xff] }
 0x3c3   : > { %12361 = vmatmul.mubr.f32.gmra.mrb[132].mxu0 %v16386_v26 }
 0x3c4   : > { %4369 = vmatmul.mubr.f32.vlgmr.msra.gmra.mrb[32].mxu1 %v3094_v37  ;;  %12363 = vmatprep.mubr.f32.mxu0 %v16392_v12  ;;  %v3810_v37 = vld [vmem:[#allocation8 + $0x358] sm:$0xff] }
 0x3c5   : > { %4373 = vmatprep.mubr.f32.mxu1 %v3159_v19  ;;  %13012 = vmatpush1.bf16.msra.mxu1 %v13011_v1  ;;  %v3808_v1 = vld [vmem:[#allocation8 + $0x348] sm:$0xff]  ;;  %v16595_v19 = vld [vmem:[#allocation3 + $0x49] sm:$0xff] }
 0x3c6   : > { %13013 = vmatprep.subr.bf16.mxu1 %v19023_v8  ;;  %v13023_v47 = vpack.c.bf16 %v3808_v1, %v3807_v61  ;;  %v3818_v1 = vld [vmem:[#allocation8 + $0x398] sm:$0xff] }
 0x3c7   : > { %12364 = vmatmul.mubr.f32.gmra.mrb[134].mxu0 %v16398_v63 }
 0x3c8   : > { %4374 = vmatmul.mubr.f32.gmra.mrb[34].mxu1 %v3095_v20  ;;  %12366 = vmatprep.mubr.f32.mxu0 %v16404_v15 }
 0x3c9   : > { %4378 = vmatprep.mubr.f32.mxu1 %v3160_v14  ;;  %13015 = vmatpush1.bf16.msra.mxu1 %v13014_v21  ;;  %v3814_v14 = vld [vmem:[#allocation8 + $0x378] sm:$0xff] }
 0x3ca   : > { %13016 = vmatprep.subr.bf16.mxu1 %v19023_v8 }
 0x3cb   : > { %12367 = vmatmul.mubr.f32.gmra.mrb[136].mxu0 %v16410_v39 }
 0x3cc   : > { %4379 = vmatmul.mubr.f32.gmra.mrb[36].mxu1 %v16581_v51  ;;  %12369 = vmatprep.mubr.f32.mxu0 %v16419_v0 }
 0x3cd   : > { %4383 = vmatprep.mubr.f32.mxu1 %v16362_v31  ;;  %13018 = vmatpush1.bf16.msra.mxu1 %v13017_v41  ;;  %v3809_v31 = vld [vmem:[#allocation8 + $0x350] sm:$0xff] }
 0x3ce   : > { %13019 = vmatprep.subr.bf16.mxu1 %v19023_v8  ;;  %v13026_v21 = vpack.c.bf16 %v3810_v37, %v3809_v31  ;;  %v16609_v41 = vld [vmem:[#allocation3 + $0x61] sm:$0xff]  ;;  %v3820_v37 = vld [vmem:[#allocation8 + $0x3a8] sm:$0xff] }
 0x3cf   : > { %12370 = vmatmul.mubr.f32.gmra.mrb[138].mxu0 %v16428_v10 }
 0x3d0   : > { %4384 = vmatmul.mubr.f32.gmra.mrb[38].mxu1 %v16588_v29  ;;  %12372 = vmatprep.mubr.f32.mxu0 %v16438_v44 }
 0x3d1   : > { %4388 = vmatprep.mubr.f32.mxu1 %v16368_v36  ;;  %13021 = vmatpush1.bf16.msra.mxu1 %v13020_v22  ;;  %v3811_v36 = vld [vmem:[#allocation8 + $0x360] sm:$0xff] }
 0x3d2   : > { %13022 = vmatprep.subr.bf16.mxu1 %v19023_v8  ;;  %v13029_v20 = vpack.c.bf16 %v3812_v32, %v3811_v36  ;;  %v16616_v22 = vld [vmem:[#allocation3 + $0x69] sm:$0xff] }
 0x3d3   : > { %12373 = vmatmul.mubr.f32.gmra.mrb[140].mxu0 %v16447_v57  ;;  %v3822_v32 = vld [vmem:[#allocation8 + $0x3b8] sm:$0xff] }
 0x3d4   : > { %4389 = vmatmul.mubr.f32.gmra.mrb[40].mxu1 %v16595_v19  ;;  %12375 = vmatprep.mubr.f32.mxu0 %v16456_v45 }
 0x3d5   : > { %4393 = vmatprep.mubr.f32.mxu1 %v16374_v23  ;;  %13024 = vmatpush1.bf16.msra.mxu1 %v13023_v47  ;;  %v3813_v23 = vld [vmem:[#allocation8 + $0x370] sm:$0xff] }
 0x3d6   : > { %13025 = vmatprep.subr.bf16.mxu1 %v19023_v8  ;;  %v13032_v35 = vpack.c.bf16 %v3814_v14, %v3813_v23  ;;  %v16623_v47 = vld [vmem:[#allocation3 + $0x79] sm:$0xff] }
 0x3d7   : > { %12376 = vmatmul.mubr.f32.gmra.mrb[142].mxu0 %v16465_v42  ;;  %v3824_v14 = vld [vmem:[#allocation8 + $0x3c8] sm:$0xff] }
 0x3d8   : > { %4394 = vmatmul.mubr.f32.gmra.mrb[42].mxu1 %v16602_v62  ;;  %12378 = vmatprep.mubr.f32.mxu0 %v16474_v17 }
 0x3d9   : > { %4398 = vmatprep.mubr.f32.mxu1 %v16380_v7  ;;  %13027 = vmatpush1.bf16.msra.mxu1 %v13026_v21  ;;  %v3815_v7 = vld [vmem:[#allocation8 + $0x380] sm:$0xff]  ;;  %v16630_v21 = vld [vmem:[#allocation3 + $0x81] sm:$0xff] }
 0x3da   : > { %13028 = vmatprep.subr.bf16.mxu1 %v19023_v8  ;;  %v13035_v61 = vpack.c.bf16 %v3816_v59, %v3815_v7  ;;  %v16647_v7 = vld [vmem:[#allocation3 + $0x182] sm:$0xff]  ;;  %v16652_v59 = vld [vmem:[#allocation3 + $0x18a] sm:$0xff] }
 0x3db   : > { %12379 = vmatmul.mubr.f32.gmra.mrb[144].mxu0 %v16483_v48 }
 0x3dc   : > { %4399 = vmatmul.mubr.f32.gmra.mrb[44].mxu1 %v16609_v41  ;;  %12381 = vmatprep.mubr.f32.mxu0 %v16492_v58 }
 0x3dd   : > { %4403 = vmatprep.mubr.f32.mxu1 %v16386_v26  ;;  %13030 = vmatpush1.bf16.msra.mxu1 %v13029_v20  ;;  %v3817_v26 = vld [vmem:[#allocation8 + $0x390] sm:$0xff]  ;;  %v16637_v20 = vld [vmem:[#allocation3 + $0x91] sm:$0xff] }
 0x3de   : > { %13031 = vmatprep.subr.bf16.mxu1 %v19023_v8  ;;  %v13038_v31 = vpack.c.bf16 %v3818_v1, %v3817_v26  ;;  %v3826_v26 = vld [vmem:[#allocation8 + $0x3d8] sm:$0xff] }
 0x3df   : > { %12382 = vmatmul.mubr.f32.gmra.mrb[146].mxu0 %v16501_v55  ;;  %v16655_v1 = vld [vmem:[#allocation3 + $0xa9] sm:$0xff] }
 0x3e0   : > { %4404 = vmatmul.mubr.f32.gmra.mrb[46].mxu1 %v16616_v22  ;;  %12384 = vmatprep.mubr.f32.mxu0 %v16510_v33 }
 0x3e1   : > { %4408 = vmatprep.mubr.f32.mxu1 %v16392_v12  ;;  %13033 = vmatpush1.bf16.msra.mxu1 %v13032_v35  ;;  %v3819_v12 = vld [vmem:[#allocation8 + $0x3a0] sm:$0xff]  ;;  %v16644_v35 = vld [vmem:[#allocation3 + $0x99] sm:$0xff] }
 0x3e2   : > { %13034 = vmatprep.subr.bf16.mxu1 %v19023_v8  ;;  %v13041_v36 = vpack.c.bf16 %v3820_v37, %v3819_v12  ;;  %v3828_v12 = vld [vmem:[#allocation8 + $0x3e8] sm:$0xff] }
 0x3e3   : > { %12385 = vmatmul.mubr.f32.gmra.mrb[148].mxu0 %v16519_v16  ;;  %v16661_v37 = vld [vmem:[#allocation3 + $0xb1] sm:$0xff] }
 0x3e4   : > { %4409 = vmatmul.mubr.f32.gmra.mrb[48].mxu1 %v16623_v47  ;;  %12387 = vmatprep.mubr.f32.mxu0 %v16528_v46 }
 0x3e5   : > { %4413 = vmatprep.mubr.f32.mxu1 %v16398_v63  ;;  %13036 = vmatpush1.bf16.msra.mxu1 %v13035_v61  ;;  %v3821_v63 = vld [vmem:[#allocation8 + $0x3b0] sm:$0xff] }
 0x3e6   : > { %13037 = vmatprep.subr.bf16.mxu1 %v19023_v8  ;;  %v13044_v23 = vpack.c.bf16 %v3822_v32, %v3821_v63  ;;  %v3825_v61 = vld [vmem:[#allocation8 + $0x3d0] sm:$0xff]  ;;  %v3830_v32 = vld [vmem:[#allocation8 + $0x3f8] sm:$0xff] }
 0x3e7   : > { %12388 = vmatmul.mubr.f32.gmra.mrb[150].mxu0 %v16539_v5  ;;  %v3829_v63 = vld [vmem:[#allocation8 + $0x3f0] sm:$0xff] }
 0x3e8   : > { %4414 = vmatmul.mubr.f32.gmra.mrb[50].mxu1 %v16630_v21  ;;  %12390 = vmatprep.mubr.f32.mxu0 %v16550_v6 }
 0x3e9   : > { %4418 = vmatprep.mubr.f32.mxu1 %v16404_v15  ;;  %13039 = vmatpush1.bf16.msra.mxu1 %v13038_v31  ;;  %v3823_v15 = vld [vmem:[#allocation8 + $0x3c0] sm:$0xff]  ;;  %v13050_v31 = vpack.c.bf16 %v3826_v26, %v3825_v61  ;;  %v3225_v26 = vld [vmem:[#allocation3 + $0x48] sm:$0xff] }
 0x3ea   : > { %13040 = vmatprep.subr.bf16.mxu1 %v19023_v8 }
 0x3eb   : > { %12391 = vmatmul.mubr.f32.gmra.mrb[152].mxu0 %v16559_v38 }
 0x3ec   : > { %4419 = vmatmul.mubr.f32.gmra.mrb[52].mxu1 %v16637_v20  ;;  %12393 = vmatprep.mubr.f32.mxu0 %v16565_v49 }
 0x3ed   : > { %4423 = vmatprep.mubr.f32.mxu1 %v16410_v39  ;;  %13042 = vmatpush1.bf16.msra.mxu1 %v13041_v36  ;;  %v13047_v39 = vpack.c.bf16 %v3824_v14, %v3823_v15  ;;  %v16671_v15 = vld [vmem:[#allocation3 + $0xc9] sm:$0xff] }
 0x3ee   : > { %13043 = vmatprep.subr.bf16.mxu1 %v19023_v8 }
 0x3ef   : > { %12394 = vmatmul.mubr.f32.gmra.mrb[154].mxu0 %v16570_v60 }
 0x3f0   : > { %4424 = vmatmul.mubr.f32.gmra.mrb[54].mxu1 %v16644_v35  ;;  %12396 = vmatprep.mubr.f32.mxu0 %v16647_v7 }
 0x3f1   : > { %4428 = vmatprep.mubr.f32.mxu1 %v16419_v0  ;;  %13045 = vmatpush1.bf16.msra.mxu1 %v13044_v23  ;;  %v3827_v0 = vld [vmem:[#allocation8 + $0x3e0] sm:$0xff]  ;;  %v16666_v23 = vld [vmem:[#allocation3 + $0xc1] sm:$0xff] }
 0x3f2   : > { %13046 = vmatprep.subr.bf16.mxu1 %v19023_v8  ;;  %v13053_v36 = vpack.c.bf16 %v3828_v12, %v3827_v0  ;;  %v6003_v12 = vld [vmem:[#allocation10 + $0x300] sm:$0xff] }
 0x3f3   : > { %12397 = vmatmul.mubr.f32.gmra.mrb[156].mxu0 %v16652_v59 }
 0x3f4   : > { %4429 = vmatmul.mubr.f32.gmra.mrb[56].mxu1 %v16655_v1 }
 0x3f5   : > { %4433 = vmatprep.mubr.f32.mxu1 %v16428_v10  ;;  %13048 = vmatpush1.bf16.msra.mxu1 %v13047_v39  ;;  %v13056_v10 = vpack.c.bf16 %v3830_v32, %v3829_v63  ;;  %v6005_v63 = vld [vmem:[#allocation10 + $0x310] sm:$0xff] }
 0x3f6   : > { %13049 = vmatprep.subr.bf16.mxu1 %v19023_v8 }
 0x3f8   : > { %4434 = vmatmul.mubr.f32.gmra.mrb[58].mxu1 %v16661_v37 }
 0x3f9   : > { %4438 = vmatprep.mubr.f32.mxu1 %v16438_v44  ;;  %13051 = vmatpush1.bf16.msra.mxu1 %v13050_v31  ;;  %v5914_v31 = vld [vmem:[#allocation10 + $0x38] sm:$0xff] }
 0x3fa   : > { %13052 = vmatprep.subr.bf16.mxu1 %v19023_v8 }
 0x3fc   : > { %4439 = vmatmul.mubr.f32.gmra.mrb[60].mxu1 %v16666_v23 }
 0x3fd   : > { %4443 = vmatprep.mubr.f32.mxu1 %v16447_v57  ;;  %13054 = vmatpush1.bf16.msra.mxu1 %v13053_v36  ;;  %v6004_v36 = vld [vmem:[#allocation10 + $0x308] sm:$0xff] }
 0x3fe   : > { %13055 = vmatprep.subr.bf16.mxu1 %v19023_v8  ;;  %v16742_v32 = vpack.c.bf16 %v6004_v36, %v6003_v12  ;;  %v6013_v12 = vld [vmem:[#allocation10 + $0x350] sm:$0xff]  ;;  %v6014_v36 = vld [vmem:[#allocation10 + $0x358] sm:$0xff] }
 0x400   : > { %4444 = vmatmul.mubr.f32.gmra.mrb[62].mxu1 %v16671_v15  ;;  %19033 = vst [vmem:[#allocation25_spill] sm:$0xff] %v16742_v32  ;;  %13236 = vmatpush1.bf16.msra.mxu0 %v16742_v32 }
 0x401   : > { %4448 = vmatprep.mubr.f32.mxu1 %v16456_v45  ;;  %13057 = vmatpush1.bf16.msra.mxu1 %v13056_v10  ;;  %v6006_v10 = vld [vmem:[#allocation10 + $0x318] sm:$0xff] }
 0x402   : > { %13090 = vmatprep.subr.bf16.mxu1 %v19023_v8  ;;  %13237 = vmatprep.subr.bf16.mxu0 %v19023_v8 }
 0x404   : > { %4449 = vmatmul.mubr.f32.gmra.mrb[64].mxu1 %v16413_v27 }
 0x405   : > { %4453 = vmatprep.mubr.f32.mxu1 %v16465_v42 }
 0x408   : > { %4454 = vmatmul.mubr.f32.gmra.mrb[66].mxu1 %v16422_v40 }
 0x409   : > { %4458 = vmatprep.mubr.f32.mxu1 %v16474_v17 }
 0x40c   : > { %4459 = vmatmul.mubr.f32.gmra.mrb[68].mxu1 %v16432_v52 }
 0x40d   : > { %4463 = vmatprep.mubr.f32.mxu1 %v16483_v48 }
 0x410   : > { %4464 = vmatmul.mubr.f32.gmra.mrb[70].mxu1 %v16442_v30 }
 0x411   : > { %4468 = vmatprep.mubr.f32.mxu1 %v16492_v58 }
 0x414   : > { %4469 = vmatmul.mubr.f32.gmra.mrb[72].mxu1 %v16451_v18 }
 0x415   : > { %4473 = vmatprep.mubr.f32.mxu1 %v16501_v55 }
 0x416   : > { %v16686_v44 = vpop.f32.mrb[68].mxu0 }
 0x417   : > { %v3932_v27 = vpop.f32.mrb[69].mxu0 }
 0x418   : > { %4474 = vmatmul.mubr.f32.gmra.mrb[74].mxu1 %v16460_v43 }
 0x419   : > { %4478 = vmatprep.mubr.f32.mxu1 %v16510_v33 }
 0x41a   : > { %v16690_v40 = vpop.f32.mrb[70].mxu0 }
 0x41b   : > { %v3937_v52 = vpop.f32.mrb[71].mxu0 }
 0x41c   : > { %4479 = vmatmul.mubr.f32.gmra.mrb[76].mxu1 %v16469_v25  ;;  %v5915_v52 = vld [vmem:[#allocation10 + $0x40] sm:$0xff] }
 0x41d   : > { %4483 = vmatprep.mubr.f32.mxu1 %v16519_v16  ;;  %v3382_v16 = vld [vmem:[#allocation3 + $0x1a2] sm:$0xff] }
 0x41e   : > { %v16694_v30 = vpop.f32.mrb[72].mxu0 }
 0x41f   : > { %v3942_v57 = vpop.f32.mrb[73].mxu0 }
 0x420   : > { %4484 = vmatmul.mubr.f32.gmra.mrb[78].mxu1 %v16478_v11  ;;  %v5916_v57 = vld [vmem:[#allocation10 + $0x48] sm:$0xff] }
 0x421   : > { %4488 = vmatprep.mubr.f32.mxu1 %v16528_v46  ;;  %v5907_v46 = vld [vmem:[#allocation10] sm:$0xff] }
 0x422   : > { %v16698_v18 = vpop.f32.mrb[74].mxu0 }
 0x423   : > { %v3947_v45 = vpop.f32.mrb[75].mxu0 }
 0x424   : > { %4489 = vmatmul.mubr.f32.gmra.mrb[80].mxu1 %v16487_v56  ;;  %v16749_v45 = vpack.c.bf16 %v6006_v10, %v6005_v63  ;;  %v5923_v10 = vld [vmem:[#allocation10 + $0x80] sm:$0xff] }
 0x425   : > { %4493 = vmatprep.mubr.f32.mxu1 %v16539_v5  ;;  %v5908_v5 = vld [vmem:[#allocation10 + $0x8] sm:$0xff] }
 0x426   : > { %v16702_v43 = vpop.f32.mrb[76].mxu0  ;;  %19034 = vst [vmem:[#allocation26_spill] sm:$0xff] %v16749_v45  ;;  %13239 = vmatpush1.bf16.msra.mxu0 %v16749_v45  ;;  %v15087_v45 = vld [vmem:[#allocation2] sm:$0xff] }
 0x427   : > { %v3952_v42 = vpop.f32.mrb[77].mxu0  ;;  %13240 = vmatprep.subr.bf16.mxu0 %v19023_v8 }
 0x428   : > { %4494 = vmatmul.mubr.f32.gmra.mrb[82].mxu1 %v16496_v54 }
 0x429   : > { %4498 = vmatprep.mubr.f32.mxu1 %v16550_v6 }
 0x42a   : > { %v16706_v25 = vpop.f32.mrb[78].mxu0 }
 0x42b   : > { %v3957_v17 = vpop.f32.mrb[79].mxu0 }
 0x42c   : > { %4499 = vmatmul.mubr.f32.gmra.mrb[84].mxu1 %v16505_v3  ;;  %v3226_v17 = vld [vmem:[#allocation3 + $0x50] sm:$0xff] }
 0x42d   : > { %4503 = vmatprep.mubr.f32.mxu1 %v16559_v38 }
 0x42e   : > { %v16710_v11 = vpop.f32.mrb[80].mxu0 }
 0x42f   : > { %v3962_v48 = vpop.f32.mrb[81].mxu0 }
 0x430   : > { %4504 = vmatmul.mubr.f32.gmra.mrb[86].mxu1 %v16514_v53  ;;  %v3381_v53 = vld [vmem:[#allocation3 + $0x19a] sm:$0xff]  ;;  %v6007_v48 = vld [vmem:[#allocation10 + $0x320] sm:$0xff] }
 0x431   : > { %4508 = vmatprep.mubr.f32.mxu1 %v16565_v49  ;;  %12399 = vmatprep.mubr.f32.mxu0 %v3381_v53  ;;  %v5918_v53 = vld [vmem:[#allocation10 + $0x58] sm:$0xff] }
 0x432   : > { %v16714_v56 = vpop.f32.mrb[82].mxu0  ;;  %12400 = vmatmul.mubr.f32.gmra.mrb[158].mxu0 %v3382_v16 }
 0x433   : > { %v3967_v58 = vpop.f32.mrb[83].mxu0 }
 0x434   : > { %4509 = vmatmul.mubr.f32.gmra.mrb[88].mxu1 %v16523_v50  ;;  %v6008_v58 = vld [vmem:[#allocation10 + $0x328] sm:$0xff] }
 0x435   : > { %4513 = vmatprep.mubr.f32.mxu1 %v16570_v60  ;;  %v3223_v60 = vld [vmem:[#allocation3 + $0x30] sm:$0xff]  ;;  %v16757_v16 = vpack.c.bf16 %v6008_v58, %v6007_v48  ;;  %v6016_v48 = vld [vmem:[#allocation10 + $0x368] sm:$0xff] }
 0x436   : > { %v16718_v54 = vpop.f32.mrb[84].mxu0 }
 0x437   : > { %v3972_v55 = vpop.f32.mrb[85].mxu0  ;;  %19035 = vst [vmem:[#allocation27_spill] sm:$0xff] %v16757_v16  ;;  %13242 = vmatpush1.bf16.msra.mxu0 %v16757_v16 }
 0x438   : > { %4514 = vmatmul.mubr.f32.gmra.mrb[90].mxu1 %v16532_v4  ;;  %v13091_v4 = vpack.c.bf16 %v5908_v5, %v5907_v46  ;;  %v3227_v5 = vld [vmem:[#allocation3 + $0x60] sm:$0xff]  ;;  %13243 = vmatprep.subr.bf16.mxu0 %v19023_v8 }
 0x439   : > { %4518 = vmatprep.mubr.f32.mxu1 %v16647_v7 }
 0x43a   : > { %v16722_v3 = vpop.f32.mrb[86].mxu0 }
 0x43b   : > { %v3977_v33 = vpop.f32.mrb[87].mxu0 }
 0x43c   : > { %4519 = vmatmul.mubr.f32.gmra.mrb[92].mxu1 %v2803_v24  ;;  %v5910_v24 = vld [vmem:[#allocation10 + $0x18] sm:$0xff]  ;;  %v5917_v33 = vld [vmem:[#allocation10 + $0x50] sm:$0xff] }
 0x43d   : > { %4523 = vmatprep.mubr.f32.mxu1 %v16652_v59  ;;  %v13094_v14 = vpack.c.bf16 %v5910_v24, %v5909_v2  ;;  %v5919_v24 = vld [vmem:[#allocation10 + $0x60] sm:$0xff] }
 0x43e   : > { %v16727_v50 = vpop.f32.mrb[88].mxu0 }
 0x43f   : > { %v3982_v6 = vpop.f32.mrb[89].mxu0 }
 0x440   : > { %4524 = vmatmul.mubr.f32.gmra.mrb[94].mxu1 %v2804_v9  ;;  %v5912_v9 = vld [vmem:[#allocation10 + $0x28] sm:$0xff]  ;;  %v6009_v6 = vld [vmem:[#allocation10 + $0x330] sm:$0xff] }
 0x441   : > { %4593 = vmatprep.mubr.f32.mxu1 %v16581_v51  ;;  %v3224_v51 = vld [vmem:[#allocation3 + $0x38] sm:$0xff]  ;;  %v13097_v59 = vpack.c.bf16 %v5912_v9, %v5911_v28  ;;  %v3228_v28 = vld [vmem:[#allocation3 + $0x68] sm:$0xff]  ;;  %v6011_v9 = vld [vmem:[#allocation10 + $0x340] sm:$0xff] }
 0x442   : > { %v16732_v38 = vpop.f32.mrb[90].mxu0 }
 0x443   : > { %v3987_v49 = vpop.f32.mrb[91].mxu0 }
 0x444   : > { %4594 = vmatmul.mubr.f32.vlgmr.msra.gmra.mrb[32].mxu1 %v3223_v60  ;;  %v5920_v49 = vld [vmem:[#allocation10 + $0x68] sm:$0xff] }
 0x445   : > { %4598 = vmatprep.mubr.f32.mxu1 %v16588_v29  ;;  %13092 = vmatpush1.bf16.msra.mxu1 %v13091_v4  ;;  %v5913_v29 = vld [vmem:[#allocation10 + $0x30] sm:$0xff]  ;;  %v6010_v4 = vld [vmem:[#allocation10 + $0x338] sm:$0xff] }
 0x446   : > { %v16735_v7 = vpop.f32.mrb[92].mxu0  ;;  %13093 = vmatprep.subr.bf16.mxu1 %v19023_v8  ;;  %v16765_v60 = vpack.c.bf16 %v6010_v4, %v6009_v6  ;;  %v6017_v6 = vld [vmem:[#allocation10 + $0x370] sm:$0xff]  ;;  %v6018_v4 = vld [vmem:[#allocation10 + $0x378] sm:$0xff] }
 0x447   : > { %v3992_v39 = vpop.f32.mrb[93].mxu0 }
 0x448   : > { %4599 = vmatmul.mubr.f32.gmra.mrb[34].mxu1 %v3224_v51  ;;  %19036 = vst [vmem:[#allocation28_spill] sm:$0xff] %v16765_v60  ;;  %v6012_v39 = vld [vmem:[#allocation10 + $0x348] sm:$0xff]  ;;  %13245 = vmatpush1.bf16.msra.mxu0 %v16765_v60 }
 0x449   : > { %4603 = vmatprep.mubr.f32.mxu1 %v16595_v19  ;;  %13095 = vmatpush1.bf16.msra.mxu1 %v13094_v14  ;;  %v13100_v19 = vpack.c.bf16 %v5914_v31, %v5913_v29  ;;  %v16773_v29 = vpack.c.bf16 %v6012_v39, %v6011_v9  ;;  %v3232_v9 = vld [vmem:[#allocation3 + $0x98] sm:$0xff]  ;;  %v6019_v39 = vld [vmem:[#allocation10 + $0x380] sm:$0xff] }
 0x44a   : > { %v16739_v61 = vpop.f32.mrb[94].mxu0  ;;  %13096 = vmatprep.subr.bf16.mxu1 %v19023_v8  ;;  %13246 = vmatprep.subr.bf16.mxu0 %v19023_v8 }
 0x44b   : > { %v3997_v0 = vpop.f32.mrb[95].mxu0  ;;  %19037 = vst [vmem:[#allocation29_spill] sm:$0xff] %v16773_v29 }
 0x44c   : > { %4604 = vmatmul.mubr.f32.gmra.mrb[36].mxu1 %v3225_v26  ;;  %v5922_v26 = vld [vmem:[#allocation10 + $0x78] sm:$0xff]  ;;  %v3229_v0 = vld [vmem:[#allocation3 + $0x78] sm:$0xff]  ;;  %13248 = vmatpush1.bf16.msra.mxu0 %v16773_v29 }
 0x44d   : > { %4608 = vmatprep.mubr.f32.mxu1 %v16602_v62  ;;  %13098 = vmatpush1.bf16.msra.mxu1 %v13097_v59  ;;  %v13103_v62 = vpack.c.bf16 %v5916_v57, %v5915_v52  ;;  %v5921_v59 = vld [vmem:[#allocation10 + $0x70] sm:$0xff]  ;;  %v16781_v52 = vpack.c.bf16 %v6014_v36, %v6013_v12  ;;  %v3233_v36 = vld [vmem:[#allocation3 + $0xa8] sm:$0xff] }
 0x44e   : > { %v16745_v27 = vpop.f32.mrb[96].mxu0  ;;  %13099 = vmatprep.subr.bf16.mxu1 %v19023_v8  ;;  %13249 = vmatprep.subr.bf16.mxu0 %v19023_v8  ;;  %v3316_v29 = vld [vmem:[#allocation3 + $0x189] sm:$0xff] }
 0x44f   : > { %v4002_v42 = vpop.f32.mrb[97].mxu0  ;;  %19038 = vst [vmem:[#allocation30_spill] sm:$0xff] %v16781_v52 }
 0x450   : > { %4609 = vmatmul.mubr.f32.gmra.mrb[38].mxu1 %v3226_v17  ;;  %v3230_v42 = vld [vmem:[#allocation3 + $0x80] sm:$0xff]  ;;  %v6015_v17 = vld [vmem:[#allocation10 + $0x360] sm:$0xff]  ;;  %13251 = vmatpush1.bf16.msra.mxu0 %v16781_v52 }
 0x451   : > { %4613 = vmatprep.mubr.f32.mxu1 %v16609_v41  ;;  %13101 = vmatpush1.bf16.msra.mxu1 %v13100_v19  ;;  %v13106_v41 = vpack.c.bf16 %v5918_v53, %v5917_v33  ;;  %v5924_v19 = vld [vmem:[#allocation10 + $0x88] sm:$0xff]  ;;  %v5926_v33 = vld [vmem:[#allocation10 + $0x98] sm:$0xff]  ;;  %v16789_v53 = vpack.c.bf16 %v6016_v48, %v6015_v17 }
 0x452   : > { %v16753_v55 = vpop.f32.mrb[98].mxu0  ;;  %13102 = vmatprep.subr.bf16.mxu1 %v19023_v8  ;;  %13252 = vmatprep.subr.bf16.mxu0 %v19023_v8 }
 0x453   : > { %v4007_v46 = vpop.f32.mrb[99].mxu0  ;;  %19039 = vst [vmem:[#allocation31_spill] sm:$0xff] %v16789_v53 }
 0x454   : > { %4614 = vmatmul.mubr.f32.gmra.mrb[40].mxu1 %v3227_v5  ;;  %v3231_v5 = vld [vmem:[#allocation3 + $0x90] sm:$0xff]  ;;  %13254 = vmatpush1.bf16.msra.mxu0 %v16789_v53 }
 0x455   : > { %4618 = vmatprep.mubr.f32.mxu1 %v16616_v22  ;;  %13104 = vmatpush1.bf16.msra.mxu1 %v13103_v62  ;;  %v13109_v22 = vpack.c.bf16 %v5920_v49, %v5919_v24  ;;  %v5925_v62 = vld [vmem:[#allocation10 + $0x90] sm:$0xff]  ;;  %v5927_v24 = vld [vmem:[#allocation10 + $0xa0] sm:$0xff]  ;;  %v5928_v49 = vld [vmem:[#allocation10 + $0xa8] sm:$0xff] }
 0x456   : > { %v16761_v2 = vpop.f32.mrb[100].mxu0  ;;  %13105 = vmatprep.subr.bf16.mxu1 %v19023_v8  ;;  %13255 = vmatprep.subr.bf16.mxu0 %v19023_v8 }
 0x457   : > { %v4012_v14 = vpop.f32.mrb[101].mxu0 }
 0x458   : > { %4619 = vmatmul.mubr.f32.gmra.mrb[42].mxu1 %v3228_v28  ;;  %v16797_v14 = vpack.c.bf16 %v6018_v4, %v6017_v6  ;;  %v3235_v6 = vld [vmem:[#allocation3 + $0xc0] sm:$0xff] }
 0x459   : > { %4623 = vmatprep.mubr.f32.mxu1 %v16623_v47  ;;  %13107 = vmatpush1.bf16.msra.mxu1 %v13106_v41  ;;  %v13112_v47 = vpack.c.bf16 %v5922_v26, %v5921_v59  ;;  %v5929_v26 = vld [vmem:[#allocation10 + $0xb0] sm:$0xff] }
 0x45a   : > { %v16769_v51 = vpop.f32.mrb[102].mxu0  ;;  %13108 = vmatprep.subr.bf16.mxu1 %v19023_v8  ;;  %19040 = vst [vmem:[#allocation32_spill] sm:$0xff] %v16797_v14  ;;  %13257 = vmatpush1.bf16.msra.mxu0 %v16797_v14  ;;  %v3249_v14 = vld [vmem:[#allocation3 + $0x168] sm:$0xff] }
 0x45b   : > { %v4017_v31 = vpop.f32.mrb[103].mxu0  ;;  %13258 = vmatprep.subr.bf16.mxu0 %v19023_v8 }
 0x45c   : > { %4624 = vmatmul.mubr.f32.gmra.mrb[44].mxu1 %v3229_v0  ;;  %v5930_v31 = vld [vmem:[#allocation10 + $0xb8] sm:$0xff] }
 0x45d   : > { %4628 = vmatprep.mubr.f32.mxu1 %v16630_v21  ;;  %13110 = vmatpush1.bf16.msra.mxu1 %v13109_v22  ;;  %v13115_v21 = vpack.c.bf16 %v5924_v19, %v5923_v10  ;;  %v6020_v22 = vld [vmem:[#allocation10 + $0x388] sm:$0xff]  ;;  %v6022_v10 = vld [vmem:[#allocation10 + $0x398] sm:$0xff] }
 0x45e   : > { %v16777_v63 = vpop.f32.mrb[104].mxu0  ;;  %13111 = vmatprep.subr.bf16.mxu1 %v19023_v8  ;;  %v16805_v0 = vpack.c.bf16 %v6020_v22, %v6019_v39 }
 0x45f   : > { %v4022_v57 = vpop.f32.mrb[105].mxu0 }
 0x460   : > { %4629 = vmatmul.mubr.f32.gmra.mrb[46].mxu1 %v3230_v42  ;;  %19041 = vst [vmem:[#allocation33_spill] sm:$0xff] %v16805_v0  ;;  %v5931_v57 = vld [vmem:[#allocation10 + $0xc0] sm:$0xff]  ;;  %v5932_v42 = vld [vmem:[#allocation10 + $0xc8] sm:$0xff]  ;;  %13260 = vmatpush1.bf16.msra.mxu0 %v16805_v0 }
 0x461   : > { %4633 = vmatprep.mubr.f32.mxu1 %v16637_v20  ;;  %13113 = vmatpush1.bf16.msra.mxu1 %v13112_v47  ;;  %v13118_v20 = vpack.c.bf16 %v5926_v33, %v5925_v62  ;;  %v6021_v47 = vld [vmem:[#allocation10 + $0x390] sm:$0xff] }
 0x462   : > { %v16785_v58 = vpop.f32.mrb[106].mxu0  ;;  %13114 = vmatprep.subr.bf16.mxu1 %v19023_v8  ;;  %v16813_v17 = vpack.c.bf16 %v6022_v10, %v6021_v47  ;;  %13261 = vmatprep.subr.bf16.mxu0 %v19023_v8  ;;  %v5933_v33 = vld [vmem:[#allocation10 + $0xd0] sm:$0xff]  ;;  %v3303_v47 = vld [vmem:[#allocation3 + $0xf1] sm:$0xff] }
 0x463   : > { %v4027_v46 = vpop.f32.mrb[107].mxu0 }
 0x464   : > { %4634 = vmatmul.mubr.f32.gmra.mrb[48].mxu1 %v3231_v5  ;;  %19042 = vst [vmem:[#allocation34_spill] sm:$0xff] %v16813_v17  ;;  %v5934_v46 = vld [vmem:[#allocation10 + $0xd8] sm:$0xff]  ;;  %13263 = vmatpush1.bf16.msra.mxu0 %v16813_v17  ;;  %v3248_v17 = vld [vmem:[#allocation3 + $0x158] sm:$0xff] }
 0x465   : > { %4638 = vmatprep.mubr.f32.mxu1 %v16644_v35  ;;  %13116 = vmatpush1.bf16.msra.mxu1 %v13115_v21  ;;  %v13121_v35 = vpack.c.bf16 %v5928_v49, %v5927_v24  ;;  %v3234_v21 = vld [vmem:[#allocation3 + $0xb0] sm:$0xff]  ;;  %v13130_v4 = vpack.c.bf16 %v5934_v46, %v5933_v33  ;;  %v5936_v24 = vld [vmem:[#allocation10 + $0xe8] sm:$0xff] }
 0x466   : > { %v16793_v41 = vpop.f32.mrb[108].mxu0  ;;  %13117 = vmatprep.subr.bf16.mxu1 %v19023_v8  ;;  %13264 = vmatprep.subr.bf16.mxu0 %v19023_v8  ;;  %v3305_v33 = vld [vmem:[#allocation3 + $0x109] sm:$0xff] }
 0x467   : > { %v4032_v28 = vpop.f32.mrb[109].mxu0 }
 0x468   : > { %4639 = vmatmul.mubr.f32.gmra.mrb[50].mxu1 %v3232_v9  ;;  %v3236_v28 = vld [vmem:[#allocation3 + $0xc8] sm:$0xff]  ;;  %v3301_v9 = vld [vmem:[#allocation3 + $0xd9] sm:$0xff] }
 0x469   : > { %4643 = vmatprep.mubr.f32.mxu1 %v16655_v1  ;;  %13119 = vmatpush1.bf16.msra.mxu1 %v13118_v20  ;;  %v13124_v1 = vpack.c.bf16 %v5930_v31, %v5929_v26  ;;  %v5935_v20 = vld [vmem:[#allocation10 + $0xe0] sm:$0xff]  ;;  %v3302_v26 = vld [vmem:[#allocation3 + $0xe1] sm:$0xff] }
 0x46a   : > { %v16801_v59 = vpop.f32.mrb[110].mxu0  ;;  %13120 = vmatprep.subr.bf16.mxu1 %v19023_v8  ;;  %v13133_v39 = vpack.c.bf16 %v5936_v24, %v5935_v20  ;;  %v3242_v24 = vld [vmem:[#allocation3 + $0x110] sm:$0xff] }
 0x46b   : > { %v4037_v12 = vpop.f32.mrb[111].mxu0 }
 0x46c   : > { %4644 = vmatmul.mubr.f32.gmra.mrb[52].mxu1 %v3233_v36  ;;  %v3238_v36 = vld [vmem:[#allocation3 + $0xe0] sm:$0xff] }
 0x46d   : > { %4648 = vmatprep.mubr.f32.mxu1 %v16661_v37  ;;  %13122 = vmatpush1.bf16.msra.mxu1 %v13121_v35  ;;  %v13127_v37 = vpack.c.bf16 %v5932_v42, %v5931_v57  ;;  %v3237_v35 = vld [vmem:[#allocation3 + $0xd8] sm:$0xff]  ;;  %v3239_v57 = vld [vmem:[#allocation3 + $0xf0] sm:$0xff] }
 0x46e   : > { %v16809_v19 = vpop.f32.mrb[112].mxu0  ;;  %13123 = vmatprep.subr.bf16.mxu1 %v19023_v8  ;;  %v3304_v42 = vld [vmem:[#allocation3 + $0xf9] sm:$0xff] }
 0x46f   : > { %v4042_v48 = vpop.f32.mrb[113].mxu0 }
 0x470   : > { %4649 = vmatmul.mubr.f32.gmra.mrb[54].mxu1 %v3234_v21 }
 0x471   : > { %4653 = vmatprep.mubr.f32.mxu1 %v16666_v23  ;;  %13125 = vmatpush1.bf16.msra.mxu1 %v13124_v1 }
 0x472   : > { %v16817_v62 = vpop.f32.mrb[114].mxu0  ;;  %13126 = vmatprep.subr.bf16.mxu1 %v19023_v8 }
 0x473   : > { %19043 = vst [vmem:[#allocation35_spill] sm:$0xff] %v16817_v62  ;;  %v4047_v5 = vpop.f32.mrb[115].mxu0  ;;  %v5943_v62 = vld [vmem:[#allocation10 + $0x120] sm:$0xff] }
 0x474   : > { %4654 = vmatmul.mubr.f32.gmra.mrb[56].mxu1 %v3235_v6  ;;  %v3241_v6 = vld [vmem:[#allocation3 + $0x108] sm:$0xff] }
 0x475   : > { %4658 = vmatprep.mubr.f32.mxu1 %v16671_v15  ;;  %13128 = vmatpush1.bf16.msra.mxu1 %v13127_v37  ;;  %v3240_v37 = vld [vmem:[#allocation3 + $0xf8] sm:$0xff] }
 0x476   : > { %v16823_v23 = vpop.f32.mrb[116].mxu0  ;;  %13129 = vmatprep.subr.bf16.mxu1 %v19023_v8 }
 0x477   : > { %19044 = vst [vmem:[#allocation36_spill] sm:$0xff] %v16823_v23  ;;  %v4052_v49 = vpop.f32.mrb[117].mxu0 }
 0x478   : > { %4659 = vmatmul.mubr.f32.gmra.mrb[58].mxu1 %v3236_v28  ;;  %v3307_v28 = vld [vmem:[#allocation3 + $0x121] sm:$0xff] }
 0x479   : > { %4663 = vmatprep.mubr.f32.mxu1 %v3301_v9  ;;  %13131 = vmatpush1.bf16.msra.mxu1 %v13130_v4  ;;  %v3306_v4 = vld [vmem:[#allocation3 + $0x111] sm:$0xff] }
 0x47a   : > { %v16826_v22 = vpop.f32.mrb[118].mxu0  ;;  %13132 = vmatprep.subr.bf16.mxu1 %v19023_v8 }
 0x47b   : > { %19045 = vst [vmem:[#allocation37_spill] sm:$0xff] %v16826_v22  ;;  %v4057_v15 = vpop.f32.mrb[119].mxu0  ;;  %v5942_v22 = vld [vmem:[#allocation10 + $0x118] sm:$0xff] }
 0x47c   : > { %4664 = vmatmul.mubr.f32.gmra.mrb[60].mxu1 %v3237_v35  ;;  %v3308_v35 = vld [vmem:[#allocation3 + $0x129] sm:$0xff] }
 0x47d   : > { %4668 = vmatprep.mubr.f32.mxu1 %v3302_v26  ;;  %13134 = vmatpush1.bf16.msra.mxu1 %v13133_v39  ;;  %v3243_v39 = vld [vmem:[#allocation3 + $0x120] sm:$0xff] }
 0x47e   : > { %v16829_v31 = vpop.f32.mrb[120].mxu0  ;;  %13135 = vmatprep.subr.bf16.mxu1 %v19023_v8  ;;  %v5937_v26 = vld [vmem:[#allocation10 + $0xf0] sm:$0xff] }
 0x47f   : > { %19046 = vst [vmem:[#allocation38_spill] sm:$0xff] %v16829_v31  ;;  %v4062_v12 = vpop.f32.mrb[121].mxu0  ;;  %v5941_v31 = vld [vmem:[#allocation10 + $0x110] sm:$0xff] }
 0x480   : > { %4669 = vmatmul.mubr.f32.gmra.mrb[62].mxu1 %v3238_v36  ;;  %v5938_v12 = vld [vmem:[#allocation10 + $0xf8] sm:$0xff] }
 0x481   : > { %4673 = vmatprep.mubr.f32.mxu1 %v3303_v47  ;;  %v13136_v36 = vpack.c.bf16 %v5938_v12, %v5937_v26  ;;  %v6023_v47 = vld [vmem:[#allocation10 + $0x3a0] sm:$0xff]  ;;  %v6028_v12 = vld [vmem:[#allocation10 + $0x3c8] sm:$0xff] }
 0x482   : > { %v16832_v10 = vpop.f32.mrb[122].mxu0  ;;  %v6027_v26 = vld [vmem:[#allocation10 + $0x3c0] sm:$0xff] }
 0x483   : > { %19047 = vst [vmem:[#allocation39_spill] sm:$0xff] %v16832_v10  ;;  %v4067_v1 = vpop.f32.mrb[123].mxu0  ;;  %13137 = vmatpush1.bf16.msra.mxu1 %v13136_v36 }
 0x484   : > { %4674 = vmatmul.mubr.f32.gmra.mrb[64].mxu1 %v3239_v57  ;;  %v6024_v1 = vld [vmem:[#allocation10 + $0x3a8] sm:$0xff]  ;;  %13138 = vmatprep.subr.bf16.mxu1 %v19023_v8 }
 0x485   : > { %4678 = vmatprep.mubr.f32.mxu1 %v3304_v42  ;;  %v16848_v42 = vpack.c.bf16 %v6024_v1, %v6023_v47  ;;  %v16865_v47 = vpack.c.bf16 %v6028_v12, %v6027_v26  ;;  %v3246_v1 = vld [vmem:[#allocation3 + $0x140] sm:$0xff]  ;;  %v6031_v12 = vld [vmem:[#allocation10 + $0x3e0] sm:$0xff] }
 0x486   : > { %v16834_v48 = vpop.f32.mrb[124].mxu0  ;;  %v3312_v26 = vld [vmem:[#allocation3 + $0x159] sm:$0xff] }
 0x487   : > { %19048 = vst [vmem:[#allocation40_spill] sm:$0xff] %v16834_v48  ;;  %v4072_v21 = vpop.f32.mrb[125].mxu0  ;;  %19050 = vst [vmem:[#allocation42_spill] sm:$0xff] %v16848_v42  ;;  %13266 = vmatpush1.bf16.msra.mxu0 %v16848_v42 }
 0x488   : > { %4679 = vmatmul.mubr.f32.gmra.mrb[66].mxu1 %v3240_v37  ;;  %v3244_v21 = vld [vmem:[#allocation3 + $0x128] sm:$0xff]  ;;  %13267 = vmatprep.subr.bf16.mxu0 %v19023_v8  ;;  %19052 = vst [vmem:[#allocation44_spill] sm:$0xff] %v16865_v47 }
 0x489   : > { %4683 = vmatprep.mubr.f32.mxu1 %v3305_v33  ;;  %v3309_v33 = vld [vmem:[#allocation3 + $0x139] sm:$0xff] }
 0x48a   : > { %v16836_v46 = vpop.f32.mrb[126].mxu0 }
 0x48b   : > { %19049 = vst [vmem:[#allocation41_spill] sm:$0xff] %v16836_v46  ;;  %v4077_v5 = vpop.f32.mrb[127].mxu0  ;;  %v5940_v46 = vld [vmem:[#allocation10 + $0x108] sm:$0xff] }
 0x48c   : > { %4684 = vmatmul.mubr.f32.gmra.mrb[68].mxu1 %v3241_v6  ;;  %v6025_v5 = vld [vmem:[#allocation10 + $0x3b0] sm:$0xff]  ;;  %v6026_v6 = vld [vmem:[#allocation10 + $0x3b8] sm:$0xff] }
 0x48d   : > { %4688 = vmatprep.mubr.f32.mxu1 %v3306_v4 }
 0x48e   : > { %v16838_v20 = vpop.f32.mrb[128].mxu0 }
 0x48f   : > { %v16840_v49 = vpop.f32.mrb[129].mxu0 }
 0x490   : > { %4689 = vmatmul.mubr.f32.gmra.mrb[70].mxu1 %v3242_v24  ;;  %v16856_v24 = vpack.c.bf16 %v6026_v6, %v6025_v5  ;;  %v6029_v5 = vld [vmem:[#allocation10 + $0x3d0] sm:$0xff]  ;;  %v6030_v6 = vld [vmem:[#allocation10 + $0x3d8] sm:$0xff] }
 0x491   : > { %4693 = vmatprep.mubr.f32.mxu1 %v3307_v28  ;;  %v3245_v28 = vld [vmem:[#allocation3 + $0x138] sm:$0xff] }
 0x492   : > { %v16842_v9 = vpop.f32.mrb[130].mxu0  ;;  %19051 = vst [vmem:[#allocation43_spill] sm:$0xff] %v16856_v24  ;;  %13269 = vmatpush1.bf16.msra.mxu0 %v16856_v24  ;;  %v3247_v24 = vld [vmem:[#allocation3 + $0x150] sm:$0xff] }
 0x493   : > { %v16844_v15 = vpop.f32.mrb[131].mxu0  ;;  %13270 = vmatprep.subr.bf16.mxu0 %v19023_v8 }
 0x494   : > { %4694 = vmatmul.mubr.f32.gmra.mrb[72].mxu1 %v3243_v39 }
 0x495   : > { %4698 = vmatprep.mubr.f32.mxu1 %v3308_v35  ;;  %v3310_v35 = vld [vmem:[#allocation3 + $0x141] sm:$0xff] }
 0x496   : > { %v16846_v57 = vpop.f32.mrb[132].mxu0  ;;  %13272 = vmatpush1.bf16.msra.mxu0 %v16865_v47 }
 0x497   : > { %v16850_v37 = vpop.f32.mrb[133].mxu0  ;;  %13273 = vmatprep.subr.bf16.mxu0 %v19023_v8 }
 0x498   : > { %4699 = vmatmul.mubr.f32.gmra.mrb[74].mxu1 %v3244_v21 }
 0x499   : > { %4703 = vmatprep.mubr.f32.mxu1 %v3309_v33  ;;  %v3311_v33 = vld [vmem:[#allocation3 + $0x151] sm:$0xff] }
 0x49a   : > { %v16854_v4 = vpop.f32.mrb[134].mxu0 }
 0x49b   : > { %v16859_v39 = vpop.f32.mrb[135].mxu0 }
 0x49c   : > { %4704 = vmatmul.mubr.f32.gmra.mrb[76].mxu1 %v3245_v28 }
 0x49d   : > { %4708 = vmatprep.mubr.f32.mxu1 %v3310_v35  ;;  %v16873_v35 = vpack.c.bf16 %v6030_v6, %v6029_v5  ;;  %v3313_v5 = vld [vmem:[#allocation3 + $0x169] sm:$0xff] }
 0x49e   : > { %v16863_v36 = vpop.f32.mrb[136].mxu0  ;;  %v6034_v6 = vld [vmem:[#allocation10 + $0x3f8] sm:$0xff] }
 0x49f   : > { %v16867_v21 = vpop.f32.mrb[137].mxu0  ;;  %19053 = vst [vmem:[#allocation45_spill] sm:$0xff] %v16873_v35  ;;  %13275 = vmatpush1.bf16.msra.mxu0 %v16873_v35 }
 0x4a0   : > { %4709 = vmatmul.mubr.f32.gmra.mrb[78].mxu1 %v3246_v1  ;;  %13276 = vmatprep.subr.bf16.mxu0 %v19023_v8  ;;  %v6032_v1 = vld [vmem:[#allocation10 + $0x3e8] sm:$0xff] }
 0x4a1   : > { %4713 = vmatprep.mubr.f32.mxu1 %v3311_v33  ;;  %v16881_v47 = vpack.c.bf16 %v6032_v1, %v6031_v12  ;;  %v3314_v12 = vld [vmem:[#allocation3 + $0x171] sm:$0xff] }
 0x4a2   : > { %v16871_v28 = vpop.f32.mrb[138].mxu0  ;;  %v3250_v1 = vld [vmem:[#allocation3 + $0x170] sm:$0xff] }
 0x4a3   : > { %v16875_v42 = vpop.f32.mrb[139].mxu0  ;;  %19054 = vst [vmem:[#allocation46_spill] sm:$0xff] %v16881_v47  ;;  %13278 = vmatpush1.bf16.msra.mxu0 %v16881_v47  ;;  %v3315_v47 = vld [vmem:[#allocation3 + $0x181] sm:$0xff] }
 0x4a4   : > { %4714 = vmatmul.mubr.f32.gmra.mrb[80].mxu1 %v3247_v24  ;;  %13279 = vmatprep.subr.bf16.mxu0 %v19023_v8  ;;  %v6033_v24 = vld [vmem:[#allocation10 + $0x3f0] sm:$0xff] }
 0x4a5   : > { %4718 = vmatprep.mubr.f32.mxu1 %v3312_v26  ;;  %v16889_v35 = vpack.c.bf16 %v6034_v6, %v6033_v24  ;;  %v3251_v24 = vld [vmem:[#allocation3 + $0x180] sm:$0xff] }
 0x4a6   : > { %v16879_v33 = vpop.f32.mrb[140].mxu0 }
 0x4a7   : > { %v16883_v0 = vpop.f32.mrb[141].mxu0  ;;  %19055 = vst [vmem:[#allocation47_spill] sm:$0xff] %v16889_v35  ;;  %13281 = vmatpush1.bf16.msra.mxu0 %v16889_v35  ;;  %v3317_v35 = vld [vmem:[#allocation3 + $0x199] sm:$0xff] }
 0x4a8   : > { %4719 = vmatmul.mubr.f32.gmra.mrb[82].mxu1 %v3248_v17 }
 0x4a9   : > { %4723 = vmatprep.mubr.f32.mxu1 %v3313_v5 }
 0x4aa   : > { %v16887_v26 = vpop.f32.mrb[142].mxu0 }
 0x4ab   : > { %v16891_v53 = vpop.f32.mrb[143].mxu0 }
 0x4ac   : > { %4724 = vmatmul.mubr.f32.gmra.mrb[84].mxu1 %v3249_v14 }
 0x4ad   : > { %4728 = vmatprep.mubr.f32.mxu1 %v3314_v12  ;;  %v3252_v12 = vld [vmem:[#allocation3 + $0x188] sm:$0xff] }
 0x4ae   : > { %v16894_v17 = vpop.f32.mrb[144].mxu0 }
 0x4af   : > { %v16896_v5 = vpop.f32.mrb[145].mxu0 }
 0x4b0   : > { %4729 = vmatmul.mubr.f32.gmra.mrb[86].mxu1 %v3250_v1  ;;  %v3318_v1 = vld [vmem:[#allocation3 + $0x1a1] sm:$0xff] }
 0x4b1   : > { %4733 = vmatprep.mubr.f32.mxu1 %v3315_v47 }
 0x4b2   : > { %v16898_v52 = vpop.f32.mrb[146].mxu0 }
 0x4b3   : > { %v16900_v6 = vpop.f32.mrb[147].mxu0 }
 0x4b4   : > { %4734 = vmatmul.mubr.f32.gmra.mrb[88].mxu1 %v3251_v24  ;;  %v5107_v24 = vld [vmem:[#allocation2 + $0x1] sm:$0xff] }
 0x4b5   : > { %4738 = vmatprep.mubr.f32.mxu1 %v3316_v29  ;;  %v5939_v29 = vld [vmem:[#allocation10 + $0x100] sm:$0xff] }
 0x4b6   : > { %v16902_v14 = vpop.f32.mrb[148].mxu0  ;;  %v13139_v10 = vpack.c.bf16 %v5940_v46, %v5939_v29  ;;  %v5946_v29 = vld [vmem:[#allocation10 + $0x138] sm:$0xff] }
 0x4b7   : > { %v16904_v60 = vpop.f32.mrb[149].mxu0 }
 0x4b8   : > { %4739 = vmatmul.mubr.f32.gmra.mrb[90].mxu1 %v3252_v12 }
 0x4b9   : > { %4743 = vmatprep.mubr.f32.mxu1 %v3317_v35  ;;  %v5108_v35 = vld [vmem:[#allocation2 + $0x9] sm:$0xff] }
 0x4ba   : > { %v16906_v16 = vpop.f32.mrb[150].mxu0 }
 0x4bb   : > { %19056 = vst [vmem:[#allocation48_spill] sm:$0xff] %v16906_v16  ;;  %v16908_v47 = vpop.f32.mrb[151].mxu0 }
 0x4bc   : > { %4744 = vmatmul.mubr.f32.gmra.mrb[92].mxu1 %v15087_v45 }
 0x4bd   : > { %4748 = vmatprep.mubr.f32.mxu1 %v3318_v1  ;;  %v13142_v1 = vpack.c.bf16 %v5942_v22, %v5941_v31  ;;  %v5947_v22 = vld [vmem:[#allocation10 + $0x140] sm:$0xff]  ;;  %v5948_v31 = vld [vmem:[#allocation10 + $0x148] sm:$0xff] }
 0x4be   : > { %v16910_v32 = vpop.f32.mrb[152].mxu0 }
 0x4bf   : > { %19057 = vst [vmem:[#allocation49_spill] sm:$0xff] %v16910_v32  ;;  %v16912_v48 = vpop.f32.mrb[153].mxu0 }
 0x4c0   : > { %19058 = vst [vmem:[#allocation50_spill] sm:$0xff] %v16912_v48  ;;  %4749 = vmatmul.mubr.f32.gmra.mrb[94].mxu1 %v15087_v45  ;;  %v5944_v48 = vld [vmem:[#allocation10 + $0x128] sm:$0xff] }
 0x4c1   : > { %6122 = vmatprep.mubr.f32.mxu1 %v5107_v24  ;;  %v13145_v46 = vpack.c.bf16 %v5944_v48, %v5943_v62  ;;  %v5945_v24 = vld [vmem:[#allocation10 + $0x130] sm:$0xff]  ;;  %v5951_v62 = vld [vmem:[#allocation10 + $0x160] sm:$0xff]  ;;  %v5952_v48 = vld [vmem:[#allocation10 + $0x168] sm:$0xff] }
 0x4c2   : > { %v16914_v12 = vpop.f32.mrb[154].mxu0 }
 0x4c3   : > { %19059 = vst [vmem:[#allocation51_spill] sm:$0xff] %v16914_v12  ;;  %v16916_v23 = vpop.f32.mrb[155].mxu0  ;;  %v13148_v12 = vpack.c.bf16 %v5946_v29, %v5945_v24  ;;  %v6036_v24 = vld [vmem:[#allocation10 + $0x408] sm:$0xff] }
 0x4c4   : > { %19060 = vst [vmem:[#allocation52_spill] sm:$0xff] %v16916_v23  ;;  %6123 = vmatmul.mubr.f32.vlgmr.msra.gmra.mrb[96].mxu1 %v15087_v45 }
 0x4c5   : > { %13140 = vmatpush1.bf16.msra.mxu1 %v13139_v10  ;;  %6127 = vmatprep.mubr.f32.mxu1 %v5108_v35  ;;  %v13151_v10 = vpack.c.bf16 %v5948_v31, %v5947_v22  ;;  %v5949_v35 = vld [vmem:[#allocation10 + $0x150] sm:$0xff]  ;;  %v5954_v22 = vld [vmem:[#allocation10 + $0x178] sm:$0xff] }
 0x4c6   : > { %v16918_v32 = vpop.f32.mrb[156].mxu0  ;;  %13141 = vmatprep.subr.bf16.mxu1 %v19023_v8 }
 0x4c7   : > { %19061 = vst [vmem:[#allocation53_spill] sm:$0xff] %v16918_v32  ;;  %v16921_v16 = vpop.f32.mrb[157].mxu0  ;;  %v5950_v32 = vld [vmem:[#allocation10 + $0x158] sm:$0xff] }
 0x4c8   : > { %19062 = vst [vmem:[#allocation54_spill] sm:$0xff] %v16921_v16  ;;  %6128 = vmatmul.mubr.f32.gmra.mrb[98].mxu1 %v15087_v45  ;;  %v13154_v45 = vpack.c.bf16 %v5950_v32, %v5949_v35  ;;  %v5955_v32 = vld [vmem:[#allocation10 + $0x180] sm:$0xff] }
 0x4c9   : > { %13143 = vmatpush1.bf16.msra.mxu1 %v13142_v1  ;;  %v13157_v1 = vpack.c.bf16 %v5952_v48, %v5951_v62  ;;  %v5958_v62 = vld [vmem:[#allocation10 + $0x198] sm:$0xff] }
 0x4ca   : > { %13144 = vmatprep.subr.bf16.mxu1 %v19023_v8 }
 0x4cd   : > { %13146 = vmatpush1.bf16.msra.mxu1 %v13145_v46  ;;  %v6035_v46 = vld [vmem:[#allocation10 + $0x400] sm:$0xff] }
 0x4ce   : > { %13147 = vmatprep.subr.bf16.mxu1 %v19023_v8  ;;  %v16928_v29 = vpack.c.bf16 %v6036_v24, %v6035_v46  ;;  %v5960_v46 = vld [vmem:[#allocation10 + $0x1a8] sm:$0xff] }
 0x4d0   : > { %13283 = vmatprep.subr.bf16.mxu0 %v16928_v29 }
 0x4d1   : > { %13149 = vmatpush1.bf16.msra.mxu1 %v13148_v12  ;;  %v5953_v12 = vld [vmem:[#allocation10 + $0x170] sm:$0xff] }
 0x4d2   : > { %13150 = vmatprep.subr.bf16.mxu1 %v19023_v8  ;;  %v13160_v31 = vpack.c.bf16 %v5954_v22, %v5953_v12  ;;  %v5961_v12 = vld [vmem:[#allocation10 + $0x1b0] sm:$0xff]  ;;  %v5962_v22 = vld [vmem:[#allocation10 + $0x1b8] sm:$0xff] }
 0x4d5   : > { %13152 = vmatpush1.bf16.msra.mxu1 %v13151_v10  ;;  %v5956_v10 = vld [vmem:[#allocation10 + $0x188] sm:$0xff] }
 0x4d6   : > { %13153 = vmatprep.subr.bf16.mxu1 %v19023_v8  ;;  %v13163_v35 = vpack.c.bf16 %v5956_v10, %v5955_v32  ;;  %v5963_v32 = vld [vmem:[#allocation10 + $0x1c0] sm:$0xff]  ;;  %v5964_v10 = vld [vmem:[#allocation10 + $0x1c8] sm:$0xff] }
 0x4d9   : > { %13155 = vmatpush1.bf16.msra.mxu1 %v13154_v45  ;;  %v5957_v45 = vld [vmem:[#allocation10 + $0x190] sm:$0xff] }
 0x4da   : > { %13156 = vmatprep.subr.bf16.mxu1 %v19023_v8  ;;  %v13166_v48 = vpack.c.bf16 %v5958_v62, %v5957_v45  ;;  %v5965_v45 = vld [vmem:[#allocation10 + $0x1d0] sm:$0xff]  ;;  %v5966_v62 = vld [vmem:[#allocation10 + $0x1d8] sm:$0xff] }
 0x4dd   : > { %13158 = vmatpush1.bf16.msra.mxu1 %v13157_v1  ;;  %v5959_v1 = vld [vmem:[#allocation10 + $0x1a0] sm:$0xff] }
 0x4de   : > { %13159 = vmatprep.subr.bf16.mxu1 %v19023_v8  ;;  %v13169_v24 = vpack.c.bf16 %v5960_v46, %v5959_v1  ;;  %v5967_v46 = vld [vmem:[#allocation10 + $0x1e0] sm:$0xff] }
 0x4e1   : > { %13161 = vmatpush1.bf16.msra.mxu1 %v13160_v31  ;;  %v13172_v31 = vpack.c.bf16 %v5962_v22, %v5961_v12 }
 0x4e2   : > { %13162 = vmatprep.subr.bf16.mxu1 %v19023_v8 }
 0x4e5   : > { %13164 = vmatpush1.bf16.msra.mxu1 %v13163_v35  ;;  %v13175_v35 = vpack.c.bf16 %v5964_v10, %v5963_v32 }
 0x4e6   : > { %13165 = vmatprep.subr.bf16.mxu1 %v19023_v8 }
 0x4e9   : > { %13167 = vmatpush1.bf16.msra.mxu1 %v13166_v48  ;;  %v13178_v48 = vpack.c.bf16 %v5966_v62, %v5965_v45  ;;  %v5969_v62 = vld [vmem:[#allocation10 + $0x1f0] sm:$0xff] }
 0x4ea   : > { %13168 = vmatprep.subr.bf16.mxu1 %v19023_v8 }
 0x4ed   : > { %13170 = vmatpush1.bf16.msra.mxu1 %v13169_v24  ;;  %v5968_v24 = vld [vmem:[#allocation10 + $0x1e8] sm:$0xff] }
 0x4ee   : > { %13171 = vmatprep.subr.bf16.mxu1 %v19023_v8  ;;  %v13181_v22 = vpack.c.bf16 %v5968_v24, %v5967_v46 }
 0x4f1   : > { %13173 = vmatpush1.bf16.msra.mxu1 %v13172_v31  ;;  %v16946_v31 = vld [vmem:[%s18901_s4] ss:$0 sm:$0xff] }
 0x4f2   : > { %13174 = vmatprep.subr.bf16.mxu1 %v19023_v8  ;;  %v3921_v32 = vadd.f32 %v16946_v31, %v16554_v13  ;;  %v3926_v46 = vadd.f32 %v16946_v31, %v16563_v34 }
 0x4f5   : > { %13176 = vmatpush1.bf16.msra.mxu1 %v13175_v35 }
 0x4f6   : > { %13177 = vmatprep.subr.bf16.mxu1 %v19023_v8 }
 0x4f9   : > { %13179 = vmatpush1.bf16.msra.mxu1 %v13178_v48  ;;  %v5970_v48 = vld [vmem:[#allocation10 + $0x1f8] sm:$0xff] }
 0x4fa   : > { %13180 = vmatprep.subr.bf16.mxu1 %v19023_v8  ;;  %v13184_v24 = vpack.c.bf16 %v5970_v48, %v5969_v62 }
 0x4fd   : > { %13182 = vmatpush1.bf16.msra.mxu1 %v13181_v22 }
 0x4fe   : > { %13183 = vmatprep.subr.bf16.mxu1 %v19023_v8 }
 0x501   : > { %13185 = vmatpush1.bf16.msra.mxu1 %v13184_v24 }
 0x502   : > { %13186 = vmatprep.subr.bf16.mxu1 %v19023_v8 }
 0x505   : > { %v16938_v1 = vpop.f32.mrb[158].mxu0 }
 0x506   : > { %19063 = vst [vmem:[#allocation55_spill] sm:$0xff] %v16938_v1  ;;  %v16941_v12 = vpop.f32.mrb[159].mxu0 }
 0x507   : > { %19064 = vst [vmem:[#allocation56_spill] sm:$0xff] %v16941_v12 }
 0x517   : > { %v4595_v10 = vpop.f32.mrb[32].mxu1 }
 0x518   : > { %v13827_v35 = vadd.f32 %v4595_v10, %v3921_v32  ;;  %v4597_v45 = vpop.f32.mrb[33].mxu1  ;;  %v3931_v32 = vadd.f32 %v16946_v31, %v16686_v44 }
 0x51a   : > { %v4821_v1 = vadd.f32 %v13827_v35, %v16840_v49 }
 0x51b   : > { %v4600_v12 = vpop.f32.mrb[34].mxu1 }
 0x51c   : > { %v4979_v16 = vmax.f32 %v4821_v1, 0.0  ;;  %v13829_v23 = vadd.f32 %v4600_v12, %v3926_v46  ;;  %v4602_v22 = vpop.f32.mrb[35].mxu1  ;;  %v3936_v1 = vadd.f32 %v16946_v31, %v16690_v40  ;;  %v3946_v40 = vadd.f32 %v16946_v31, %v16698_v18 }
 0x51e   : > { %5011 = vst [vmem:[#allocation2 + $0x19] sm:$0xff] %v4979_v16  ;;  %v4826_v13 = vadd.f32 %v13829_v23, %v16838_v20  ;;  %6132 = vmatprep.mubr.f32.mxu1 %v4979_v16  ;;  %v3941_v23 = vadd.f32 %v16946_v31, %v16694_v30  ;;  %v6037_v30 = vld [vmem:[#allocation10 + $0x410] sm:$0xff] }
 0x51f   : > { %v4605_v10 = vpop.f32.mrb[36].mxu1 }
 0x520   : > { %v4980_v49 = vmax.f32 %v4826_v13, 0.0  ;;  %v13831_v35 = vadd.f32 %v4605_v10, %v3931_v32  ;;  %v4607_v45 = vpop.f32.mrb[37].mxu1  ;;  %v6038_v10 = vld [vmem:[#allocation10 + $0x418] sm:$0xff] }
 0x522   : > { %5012 = vst [vmem:[#allocation2 + $0x21] sm:$0xff] %v4980_v49  ;;  %v4831_v34 = vadd.f32 %v13831_v35, %v16844_v15 }
 0x523   : > { %v4610_v12 = vpop.f32.mrb[38].mxu1 }
 0x524   : > { %v4981_v62 = vmax.f32 %v4831_v34, 0.0  ;;  %v13833_v48 = vadd.f32 %v4610_v12, %v3936_v1  ;;  %v4612_v46 = vpop.f32.mrb[39].mxu1  ;;  %v13286_v1 = vpack.c.bf16 %v6038_v10, %v6037_v30  ;;  %v3951_v12 = vadd.f32 %v16946_v31, %v16702_v43 }
 0x525   : > { %v5045_v24 = vld [vmem:[#allocation2 + $0x18] sm:$0xff] }
 0x526   : > { %5013 = vst [vmem:[#allocation2 + $0x31] sm:$0xff] %v4981_v62  ;;  %v4836_v44 = vadd.f32 %v13833_v48, %v16842_v9  ;;  %6133 = vmatmul.mubr.f32.gmra.mrb[100].mxu1 %v5045_v24  ;;  %6797 = vmatprep.mubr.f32.mxu0 %v4981_v62  ;;  %v6040_v48 = vld [vmem:[#allocation10 + $0x428] sm:$0xff] }
 0x527   : > { %v4615_v16 = vpop.f32.mrb[40].mxu1  ;;  %6137 = vmatprep.mubr.f32.mxu1 %v4980_v49 }
 0x528   : > { %v4982_v20 = vmax.f32 %v4836_v44, 0.0  ;;  %v13835_v15 = vadd.f32 %v4615_v16, %v3941_v23  ;;  %v4617_v22 = vpop.f32.mrb[41].mxu1 }
 0x529   : > { %v16964_v13 = vld [vmem:[#allocation2 + $0x20] sm:$0xff] }
 0x52a   : > { %5014 = vst [vmem:[#allocation2 + $0x39] sm:$0xff] %v4982_v20  ;;  %v4841_v32 = vadd.f32 %v13835_v15, %v16850_v37  ;;  %6138 = vmatmul.mubr.f32.gmra.mrb[102].mxu1 %v16964_v13  ;;  %v6039_v37 = vld [vmem:[#allocation10 + $0x420] sm:$0xff]  ;;  %v6042_v15 = vld [vmem:[#allocation10 + $0x438] sm:$0xff] }
 0x52b   : > { %v4620_v9 = vpop.f32.mrb[42].mxu1  ;;  %6142 = vmatprep.mubr.f32.mxu1 %v4981_v62  ;;  %v13290_v43 = vpack.c.bf16 %v6040_v48, %v6039_v37  ;;  %v6045_v48 = vld [vmem:[#allocation10 + $0x450] sm:$0xff] }
 0x52c   : > { %v4983_v35 = vmax.f32 %v4841_v32, 0.0  ;;  %v13837_v45 = vadd.f32 %v4620_v9, %v3946_v40  ;;  %v4622_v49 = vpop.f32.mrb[43].mxu1  ;;  %v6043_v9 = vld [vmem:[#allocation10 + $0x440] sm:$0xff] }
 0x52d   : > { %v16970_v34 = vld [vmem:[#allocation2 + $0x30] sm:$0xff] }
 0x52e   : > { %5015 = vst [vmem:[#allocation2 + $0x49] sm:$0xff] %v4983_v35  ;;  %v4846_v18 = vadd.f32 %v13837_v45, %v16846_v57  ;;  %6143 = vmatmul.mubr.f32.gmra.mrb[104].mxu1 %v16970_v34  ;;  %6798 = vmatmul.mubr.f32.vlgmr.msra.gmra.mrb[160].mxu0 %v16970_v34  ;;  %v3956_v57 = vadd.f32 %v16946_v31, %v16706_v25 }
 0x52f   : > { %v4625_v46 = vpop.f32.mrb[44].mxu1  ;;  %6147 = vmatprep.mubr.f32.mxu1 %v4982_v20  ;;  %6802 = vmatprep.mubr.f32.mxu0 %v4982_v20  ;;  %v6041_v20 = vld [vmem:[#allocation10 + $0x430] sm:$0xff] }
 0x530   : > { %v4984_v62 = vmax.f32 %v4846_v18, 0.0  ;;  %v13839_v24 = vadd.f32 %v4625_v46, %v3951_v12  ;;  %v4627_v23 = vpop.f32.mrb[45].mxu1  ;;  %13285 = vmatpush3.bf16.msra.mxu0 %v16928_v29  ;;  %v13294_v25 = vpack.c.bf16 %v6042_v15, %v6041_v20  ;;  %v6046_v46 = vld [vmem:[#allocation10 + $0x458] sm:$0xff]  ;;  %v6047_v20 = vld [vmem:[#allocation10 + $0x460] sm:$0xff]  ;;  %v6048_v15 = vld [vmem:[#allocation10 + $0x468] sm:$0xff] }
 0x531   : > { %v16978_v44 = vld [vmem:[#allocation2 + $0x38] sm:$0xff]  ;;  %13287 = vmatprep.subr.bf16.mxu0 %v13286_v1 }
 0x532   : > { %5016 = vst [vmem:[#allocation2 + $0x51] sm:$0xff] %v4984_v62  ;;  %v4851_v16 = vadd.f32 %v13839_v24, %v16859_v39  ;;  %6148 = vmatmul.mubr.f32.gmra.mrb[106].mxu1 %v16978_v44  ;;  %6803 = vmatmul.mubr.f32.gmra.mrb[162].mxu0 %v16978_v44  ;;  %v3961_v39 = vadd.f32 %v16946_v31, %v16710_v11 }
 0x533   : > { %v4630_v22 = vpop.f32.mrb[46].mxu1  ;;  %6152 = vmatprep.mubr.f32.mxu1 %v4983_v35  ;;  %6807 = vmatprep.mubr.f32.mxu0 %v4983_v35  ;;  %v6044_v35 = vld [vmem:[#allocation10 + $0x448] sm:$0xff] }
 0x534   : > { %v4985_v29 = vmax.f32 %v4851_v16, 0.0  ;;  %v13841_v40 = vadd.f32 %v4630_v22, %v3956_v57  ;;  %v4632_v32 = vpop.f32.mrb[47].mxu1  ;;  %13289 = vmatpush3.bf16.msra.mxu0 %v13286_v1  ;;  %v13298_v11 = vpack.c.bf16 %v6044_v35, %v6043_v9  ;;  %v6050_v9 = vld [vmem:[#allocation10 + $0x478] sm:$0xff] }
 0x535   : > { %v16985_v30 = vld [vmem:[#allocation2 + $0x48] sm:$0xff]  ;;  %13291 = vmatprep.subr.bf16.mxu0 %v13290_v43 }
 0x536   : > { %5017 = vst [vmem:[#allocation2 + $0x61] sm:$0xff] %v4985_v29  ;;  %v4856_v10 = vadd.f32 %v13841_v40, %v16854_v4  ;;  %6153 = vmatmul.mubr.f32.gmra.mrb[108].mxu1 %v16985_v30  ;;  %6808 = vmatmul.mubr.f32.gmra.mrb[164].mxu0 %v16985_v30  ;;  %v3966_v4 = vadd.f32 %v16946_v31, %v16714_v56 }
 0x537   : > { %v4635_v45 = vpop.f32.mrb[48].mxu1  ;;  %6157 = vmatprep.mubr.f32.mxu1 %v4984_v62  ;;  %6812 = vmatprep.mubr.f32.mxu0 %v4984_v62  ;;  %v13302_v56 = vpack.c.bf16 %v6046_v46, %v6045_v48 }
 0x538   : > { %v4986_v49 = vmax.f32 %v4856_v10, 0.0  ;;  %v13843_v1 = vadd.f32 %v4635_v45, %v3961_v39  ;;  %v4637_v12 = vpop.f32.mrb[49].mxu1  ;;  %13293 = vmatpush3.bf16.msra.mxu0 %v13290_v43  ;;  %v6049_v10 = vld [vmem:[#allocation10 + $0x470] sm:$0xff] }
 0x539   : > { %v16992_v18 = vld [vmem:[#allocation2 + $0x50] sm:$0xff]  ;;  %13295 = vmatprep.subr.bf16.mxu0 %v13294_v25 }
 0x53a   : > { %5018 = vst [vmem:[#allocation2 + $0x69] sm:$0xff] %v4986_v49  ;;  %v4861_v37 = vadd.f32 %v13843_v1, %v16867_v21  ;;  %6158 = vmatmul.mubr.f32.gmra.mrb[110].mxu1 %v16992_v18  ;;  %6813 = vmatmul.mubr.f32.gmra.mrb[166].mxu0 %v16992_v18  ;;  %v3971_v21 = vadd.f32 %v16946_v31, %v16718_v54 }
 0x53b   : > { %v4640_v62 = vpop.f32.mrb[50].mxu1  ;;  %6162 = vmatprep.mubr.f32.mxu1 %v4985_v29  ;;  %6817 = vmatprep.mubr.f32.mxu0 %v4985_v29  ;;  %v13306_v54 = vpack.c.bf16 %v6048_v15, %v6047_v20 }
 0x53c   : > { %v4987_v24 = vmax.f32 %v4861_v37, 0.0  ;;  %v13845_v23 = vadd.f32 %v4640_v62, %v3966_v4  ;;  %v4642_v43 = vpop.f32.mrb[51].mxu1  ;;  %13297 = vmatpush3.bf16.msra.mxu0 %v13294_v25 }
 0x53d   : > { %v16999_v57 = vld [vmem:[#allocation2 + $0x60] sm:$0xff]  ;;  %13299 = vmatprep.subr.bf16.mxu0 %v13298_v11 }
 0x53e   : > { %5019 = vst [vmem:[#allocation2 + $0x79] sm:$0xff] %v4987_v24  ;;  %v4866_v16 = vadd.f32 %v13845_v23, %v16863_v36  ;;  %6163 = vmatmul.mubr.f32.gmra.mrb[112].mxu1 %v16999_v57  ;;  %6818 = vmatmul.mubr.f32.gmra.mrb[168].mxu0 %v16999_v57  ;;  %v3976_v36 = vadd.f32 %v16946_v31, %v16722_v3 }
 0x53f   : > { %v4645_v22 = vpop.f32.mrb[52].mxu1  ;;  %6167 = vmatprep.mubr.f32.mxu1 %v4986_v49  ;;  %6822 = vmatprep.mubr.f32.mxu0 %v4986_v49  ;;  %v13310_v3 = vpack.c.bf16 %v6050_v9, %v6049_v10  ;;  %v4001_v10 = vadd.f32 %v16946_v31, %v16745_v27 }
 0x540   : > { %v4988_v29 = vmax.f32 %v4866_v16, 0.0  ;;  %v13847_v40 = vadd.f32 %v4645_v22, %v3971_v21  ;;  %v4647_v32 = vpop.f32.mrb[53].mxu1  ;;  %13301 = vmatpush3.bf16.msra.mxu0 %v13298_v11 }
 0x541   : > { %v17006_v25 = vld [vmem:[#allocation2 + $0x68] sm:$0xff]  ;;  %13303 = vmatprep.subr.bf16.mxu0 %v13302_v56 }
 0x542   : > { %5020 = vst [vmem:[#allocation2 + $0x81] sm:$0xff] %v4988_v29  ;;  %v4871_v39 = vadd.f32 %v13847_v40, %v16875_v42  ;;  %6168 = vmatmul.mubr.f32.gmra.mrb[114].mxu1 %v17006_v25  ;;  %6823 = vmatmul.mubr.f32.gmra.mrb[170].mxu0 %v17006_v25  ;;  %v3981_v42 = vadd.f32 %v16946_v31, %v16727_v50 }
 0x543   : > { %v4650_v35 = vpop.f32.mrb[54].mxu1  ;;  %6172 = vmatprep.mubr.f32.mxu1 %v4987_v24  ;;  %6827 = vmatprep.mubr.f32.mxu0 %v4987_v24  ;;  %v3986_v50 = vadd.f32 %v16946_v31, %v16732_v38  ;;  %v3991_v38 = vadd.f32 %v16946_v31, %v16735_v7  ;;  %v3996_v40 = vadd.f32 %v16946_v31, %v16739_v61 }
 0x544   : > { %v4989_v45 = vmax.f32 %v4871_v39, 0.0  ;;  %v13849_v49 = vadd.f32 %v4650_v35, %v3976_v36  ;;  %v4652_v1 = vpop.f32.mrb[55].mxu1  ;;  %13305 = vmatpush3.bf16.msra.mxu0 %v13302_v56 }
 0x545   : > { %v17013_v12 = vld [vmem:[#allocation2 + $0x78] sm:$0xff]  ;;  %13307 = vmatprep.subr.bf16.mxu0 %v13306_v54  ;;  %v4006_v1 = vadd.f32 %v16946_v31, %v16753_v55 }
 0x546   : > { %5021 = vst [vmem:[#allocation2 + $0x91] sm:$0xff] %v4989_v45  ;;  %v4876_v11 = vadd.f32 %v13849_v49, %v16871_v28  ;;  %6173 = vmatmul.mubr.f32.gmra.mrb[116].mxu1 %v17013_v12  ;;  %6828 = vmatmul.mubr.f32.gmra.mrb[172].mxu0 %v17013_v12 }
 0x547   : > { %v4655_v4 = vpop.f32.mrb[56].mxu1  ;;  %6177 = vmatprep.mubr.f32.mxu1 %v4988_v29  ;;  %6832 = vmatprep.mubr.f32.mxu0 %v4988_v29 }
 0x548   : > { %v4990_v37 = vmax.f32 %v4876_v11, 0.0  ;;  %v13851_v48 = vadd.f32 %v4655_v4, %v3981_v42  ;;  %v4657_v46 = vpop.f32.mrb[57].mxu1  ;;  %13309 = vmatpush3.bf16.msra.mxu0 %v13306_v54 }
 0x549   : > { %v17020_v62 = vld [vmem:[#allocation2 + $0x80] sm:$0xff]  ;;  %13311 = vmatprep.subr.bf16.mxu0 %v13310_v3 }
 0x54a   : > { %5022 = vst [vmem:[#allocation2 + $0x99] sm:$0xff] %v4990_v37  ;;  %v4881_v28 = vadd.f32 %v13851_v48, %v16883_v0  ;;  %6178 = vmatmul.mubr.f32.gmra.mrb[118].mxu1 %v17020_v62  ;;  %6833 = vmatmul.mubr.f32.gmra.mrb[174].mxu0 %v17020_v62 }
 0x54b   : > { %v4660_v24 = vpop.f32.mrb[58].mxu1  ;;  %6182 = vmatprep.mubr.f32.mxu1 %v4989_v45  ;;  %6837 = vmatprep.mubr.f32.mxu0 %v4989_v45 }
 0x54c   : > { %v4991_v23 = vmax.f32 %v4881_v28, 0.0  ;;  %v13853_v43 = vadd.f32 %v4660_v24, %v3986_v50  ;;  %v4662_v56 = vpop.f32.mrb[59].mxu1  ;;  %13313 = vmatpush3.bf16.msra.mxu0 %v13310_v3  ;;  %v4016_v24 = vadd.f32 %v16946_v31, %v16769_v51 }
 0x54d   : > { %v17027_v21 = vld [vmem:[#allocation2 + $0x90] sm:$0xff]  ;;  %13314 = vmatprep.subr.bf16.mxu0 %v19023_v8 }
 0x54e   : > { %5023 = vst [vmem:[#allocation2 + $0xa9] sm:$0xff] %v4991_v23  ;;  %v4886_v0 = vadd.f32 %v13853_v43, %v16879_v33  ;;  %6183 = vmatmul.mubr.f32.gmra.mrb[120].mxu1 %v17027_v21  ;;  %6838 = vmatmul.mubr.f32.gmra.mrb[176].mxu0 %v17027_v21 }
 0x54f   : > { %v4665_v16 = vpop.f32.mrb[60].mxu1  ;;  %6187 = vmatprep.mubr.f32.mxu1 %v4990_v37  ;;  %6842 = vmatprep.mubr.f32.mxu0 %v4990_v37  ;;  %v4011_v37 = vadd.f32 %v16946_v31, %v16761_v2 }
 0x550   : > { %v4992_v20 = vmax.f32 %v4886_v0, 0.0  ;;  %v13855_v15 = vadd.f32 %v4665_v16, %v3991_v38  ;;  %v4667_v22 = vpop.f32.mrb[61].mxu1  ;;  %v4021_v0 = vadd.f32 %v16946_v31, %v16777_v63 }
 0x551   : > { %v17035_v29 = vld [vmem:[#allocation2 + $0x98] sm:$0xff] }
 0x552   : > { %5024 = vst [vmem:[#allocation2 + $0xb1] sm:$0xff] %v4992_v20  ;;  %v4891_v7 = vadd.f32 %v13855_v15, %v16891_v53  ;;  %6188 = vmatmul.mubr.f32.gmra.mrb[122].mxu1 %v17035_v29  ;;  %6843 = vmatmul.mubr.f32.gmra.mrb[178].mxu0 %v17035_v29 }
 0x553   : > { %v4670_v33 = vpop.f32.mrb[62].mxu1  ;;  %6192 = vmatprep.mubr.f32.mxu1 %v4991_v23  ;;  %6847 = vmatprep.mubr.f32.mxu0 %v4991_v23 }
 0x554   : > { %v4993_v32 = vmax.f32 %v4891_v7, 0.0  ;;  %v13857_v54 = vadd.f32 %v4670_v33, %v3996_v40  ;;  %v4672_v36 = vpop.f32.mrb[63].mxu1  ;;  %v4026_v40 = vadd.f32 %v16946_v31, %v16785_v58 }
 0x555   : > { %v17042_v39 = vld [vmem:[#allocation2 + $0xa8] sm:$0xff]  ;;  %v4031_v36 = vadd.f32 %v16946_v31, %v16793_v41 }
 0x556   : > { %5025 = vst [vmem:[#allocation2 + $0xc1] sm:$0xff] %v4993_v32  ;;  %v4896_v61 = vadd.f32 %v13857_v54, %v16887_v26  ;;  %6193 = vmatmul.mubr.f32.gmra.mrb[124].mxu1 %v17042_v39  ;;  %6848 = vmatmul.mubr.f32.gmra.mrb[180].mxu0 %v17042_v39 }
 0x557   : > { %v4675_v53 = vpop.f32.mrb[64].mxu1  ;;  %6197 = vmatprep.mubr.f32.mxu1 %v4992_v20  ;;  %6852 = vmatprep.mubr.f32.mxu0 %v4992_v20 }
 0x558   : > { %v4994_v9 = vmax.f32 %v4896_v61, 0.0  ;;  %v13859_v35 = vadd.f32 %v4675_v53, %v4001_v10  ;;  %v4677_v45 = vpop.f32.mrb[65].mxu1 }
 0x559   : > { %v17049_v49 = vld [vmem:[#allocation2 + $0xb0] sm:$0xff] }
 0x55a   : > { %5026 = vst [vmem:[#allocation2 + $0xc9] sm:$0xff] %v4994_v9  ;;  %v4901_v27 = vadd.f32 %v13859_v35, %v16896_v5  ;;  %6198 = vmatmul.mubr.f32.gmra.mrb[126].mxu1 %v17049_v49  ;;  %6853 = vmatmul.mubr.f32.gmra.mrb[182].mxu0 %v17049_v49  ;;  %v4036_v35 = vadd.f32 %v16946_v31, %v16801_v59  ;;  %v19065_v59 = vld [vmem:[#allocation48_spill] sm:$0xff] }
 0x55b   : > { %v4680_v26 = vpop.f32.mrb[66].mxu1  ;;  %6202 = vmatprep.mubr.f32.mxu1 %v4993_v32  ;;  %6857 = vmatprep.mubr.f32.mxu0 %v4993_v32 }
 0x55c   : > { %v4995_v3 = vmax.f32 %v4901_v27, 0.0  ;;  %v13861_v42 = vadd.f32 %v4680_v26, %v4006_v1  ;;  %v4682_v11 = vpop.f32.mrb[67].mxu1 }
 0x55d   : > { %v17056_v4 = vld [vmem:[#allocation2 + $0xc0] sm:$0xff] }
 0x55e   : > { %5027 = vst [vmem:[#allocation2 + $0xd9] sm:$0xff] %v4995_v3  ;;  %v4906_v55 = vadd.f32 %v13861_v42, %v16894_v17  ;;  %6203 = vmatmul.mubr.f32.gmra.mrb[128].mxu1 %v17056_v4  ;;  %6858 = vmatmul.mubr.f32.gmra.mrb[184].mxu0 %v17056_v4 }
 0x55f   : > { %v4685_v5 = vpop.f32.mrb[68].mxu1  ;;  %6207 = vmatprep.mubr.f32.mxu1 %v4994_v9  ;;  %6862 = vmatprep.mubr.f32.mxu0 %v4994_v9 }
 0x560   : > { %v4996_v48 = vmax.f32 %v4906_v55, 0.0  ;;  %v13863_v46 = vadd.f32 %v4685_v5, %v4011_v37  ;;  %v4687_v50 = vpop.f32.mrb[69].mxu1 }
 0x561   : > { %v17063_v28 = vld [vmem:[#allocation2 + $0xc8] sm:$0xff] }
 0x562   : > { %5028 = vst [vmem:[#allocation2 + $0xe1] sm:$0xff] %v4996_v48  ;;  %v4911_v2 = vadd.f32 %v13863_v46, %v16900_v6  ;;  %6208 = vmatmul.mubr.f32.gmra.mrb[130].mxu1 %v17063_v28  ;;  %6863 = vmatmul.mubr.f32.gmra.mrb[186].mxu0 %v17063_v28 }
 0x563   : > { %v4690_v17 = vpop.f32.mrb[70].mxu1  ;;  %6212 = vmatprep.mubr.f32.mxu1 %v4995_v3  ;;  %6867 = vmatprep.mubr.f32.mxu0 %v4995_v3  ;;  %v4041_v3 = vadd.f32 %v16946_v31, %v16809_v19  ;;  %v19067_v19 = vld [vmem:[#allocation50_spill] sm:$0xff] }
 0x564   : > { %v4997_v23 = vmax.f32 %v4911_v2, 0.0  ;;  %v13865_v43 = vadd.f32 %v4690_v17, %v4016_v24  ;;  %v4692_v56 = vpop.f32.mrb[71].mxu1  ;;  %v17112_v24 = vld [vmem:[#allocation2 + $0x32] sm:$0xff] }
 0x565   : > { %v17070_v38 = vld [vmem:[#allocation2 + $0xd8] sm:$0xff] }
 0x566   : > { %5029 = vst [vmem:[#allocation2 + $0xf1] sm:$0xff] %v4997_v23  ;;  %v4916_v51 = vadd.f32 %v13865_v43, %v16898_v52  ;;  %6213 = vmatmul.mubr.f32.gmra.mrb[132].mxu1 %v17070_v38  ;;  %6868 = vmatmul.mubr.f32.gmra.mrb[188].mxu0 %v17070_v38 }
 0x567   : > { %v4695_v6 = vpop.f32.mrb[72].mxu1  ;;  %6217 = vmatprep.mubr.f32.mxu1 %v4996_v48  ;;  %6872 = vmatprep.mubr.f32.mxu0 %v4996_v48  ;;  %v19066_v48 = vld [vmem:[#allocation35_spill] sm:$0xff] }
 0x568   : > { %v4998_v16 = vmax.f32 %v4916_v51, 0.0  ;;  %v13867_v20 = vadd.f32 %v4695_v6, %v4021_v0  ;;  %v4697_v15 = vpop.f32.mrb[73].mxu1  ;;  %v4046_v46 = vadd.f32 %v16946_v31, %v19066_v48  ;;  %v17117_v0 = vld [vmem:[#allocation2 + $0x3a] sm:$0xff] }
 0x569   : > { %v17077_v22 = vld [vmem:[#allocation2 + $0xe0] sm:$0xff]  ;;  %v19068_v51 = vld [vmem:[#allocation36_spill] sm:$0xff]  ;;  %v17124_v15 = vld [vmem:[#allocation2 + $0x4a] sm:$0xff] }
 0x56a   : > { %5030 = vst [vmem:[#allocation2 + $0xf9] sm:$0xff] %v4998_v16  ;;  %v4921_v63 = vadd.f32 %v13867_v20, %v16904_v60  ;;  %6218 = vmatmul.mubr.f32.gmra.mrb[134].mxu1 %v17077_v22  ;;  %6873 = vmatmul.mubr.f32.gmra.mrb[190].mxu0 %v17077_v22  ;;  %v4051_v6 = vadd.f32 %v16946_v31, %v19068_v51 }
 0x56b   : > { %v4700_v52 = vpop.f32.mrb[74].mxu1  ;;  %6222 = vmatprep.mubr.f32.mxu1 %v4997_v23  ;;  %6877 = vmatprep.mubr.f32.mxu0 %v4997_v23 }
 0x56c   : > { %v4999_v7 = vmax.f32 %v4921_v63, 0.0  ;;  %v13869_v33 = vadd.f32 %v4700_v52, %v4026_v40  ;;  %v4702_v32 = vpop.f32.mrb[75].mxu1 }
 0x56d   : > { %v17084_v54 = vld [vmem:[#allocation2 + $0xf0] sm:$0xff] }
 0x56e   : > { %5031 = vst [vmem:[#allocation2 + $0x109] sm:$0xff] %v4999_v7  ;;  %v4926_v58 = vadd.f32 %v13869_v33, %v16902_v14  ;;  %6223 = vmatmul.mubr.f32.gmra.mrb[136].mxu1 %v17084_v54  ;;  %6878 = vmatmul.mubr.f32.gmra.mrb[192].mxu0 %v17084_v54  ;;  %v17129_v32 = vld [vmem:[#allocation2 + $0x52] sm:$0xff] }
 0x56f   : > { %v4705_v60 = vpop.f32.mrb[76].mxu1  ;;  %6227 = vmatprep.mubr.f32.mxu1 %v4998_v16  ;;  %6882 = vmatprep.mubr.f32.mxu0 %v4998_v16  ;;  %v19069_v16 = vld [vmem:[#allocation49_spill] sm:$0xff] }
 0x570   : > { %v5000_v10 = vmax.f32 %v4926_v58, 0.0  ;;  %v13871_v61 = vadd.f32 %v4705_v60, %v4031_v36  ;;  %v4707_v53 = vpop.f32.mrb[77].mxu1  ;;  %v19070_v36 = vld [vmem:[#allocation37_spill] sm:$0xff]  ;;  %v19071_v60 = vld [vmem:[#allocation52_spill] sm:$0xff] }
 0x571   : > { %v17091_v9 = vld [vmem:[#allocation2 + $0xf8] sm:$0xff]  ;;  %v4056_v58 = vadd.f32 %v16946_v31, %v19070_v36  ;;  %v19077_v36 = vld [vmem:[#allocation53_spill] sm:$0xff] }
 0x572   : > { %5032 = vst [vmem:[#allocation2 + $0x111] sm:$0xff] %v5000_v10  ;;  %v4931_v41 = vadd.f32 %v13871_v61, %v16908_v47  ;;  %6228 = vmatmul.mubr.f32.gmra.mrb[138].mxu1 %v17091_v9  ;;  %6883 = vmatmul.mubr.f32.gmra.mrb[194].mxu0 %v17091_v9  ;;  %v17136_v61 = vld [vmem:[#allocation2 + $0x62] sm:$0xff] }
 0x573   : > { %v4710_v14 = vpop.f32.mrb[78].mxu1  ;;  %6232 = vmatprep.mubr.f32.mxu1 %v4999_v7  ;;  %6887 = vmatprep.mubr.f32.mxu0 %v4999_v7 }
 0x574   : > { %v5001_v45 = vmax.f32 %v4931_v41, 0.0  ;;  %v13873_v1 = vadd.f32 %v4710_v14, %v4036_v35  ;;  %v4712_v27 = vpop.f32.mrb[79].mxu1 }
 0x575   : > { %v17098_v26 = vld [vmem:[#allocation2 + $0x108] sm:$0xff] }
 0x576   : > { %5033 = vst [vmem:[#allocation2 + $0x121] sm:$0xff] %v5001_v45  ;;  %v4936_v42 = vadd.f32 %v13873_v1, %v19065_v59  ;;  %6233 = vmatmul.mubr.f32.gmra.mrb[140].mxu1 %v17098_v26  ;;  %6888 = vmatmul.mubr.f32.gmra.mrb[196].mxu0 %v17098_v26  ;;  %v17141_v1 = vld [vmem:[#allocation2 + $0x6a] sm:$0xff] }
 0x577   : > { %v4715_v47 = vpop.f32.mrb[80].mxu1  ;;  %6237 = vmatprep.mubr.f32.mxu1 %v5000_v10  ;;  %6892 = vmatprep.mubr.f32.mxu0 %v5000_v10  ;;  %v19072_v27 = vld [vmem:[#allocation38_spill] sm:$0xff]  ;;  %v19073_v59 = vld [vmem:[#allocation51_spill] sm:$0xff] }
 0x578   : > { %v5002_v11 = vmax.f32 %v4936_v42, 0.0  ;;  %v13875_v37 = vadd.f32 %v4715_v47, %v4041_v3  ;;  %v4717_v55 = vpop.f32.mrb[81].mxu1  ;;  %v4061_v3 = vadd.f32 %v16946_v31, %v19072_v27  ;;  %v17148_v47 = vld [vmem:[#allocation2 + $0x7a] sm:$0xff]  ;;  %v17177_v27 = vld [vmem:[#allocation2 + $0xb2] sm:$0xff] }
 0x579   : > { %v17105_v5 = vld [vmem:[#allocation2 + $0x110] sm:$0xff] }
 0x57a   : > { %5034 = vst [vmem:[#allocation2 + $0x129] sm:$0xff] %v5002_v11  ;;  %v4941_v50 = vadd.f32 %v13875_v37, %v19067_v19  ;;  %6238 = vmatmul.mubr.f32.gmra.mrb[142].mxu1 %v17105_v5  ;;  %6893 = vmatmul.mubr.f32.gmra.mrb[198].mxu0 %v17105_v5  ;;  %v17153_v19 = vld [vmem:[#allocation2 + $0x82] sm:$0xff] }
 0x57b   : > { %v4720_v2 = vpop.f32.mrb[82].mxu1  ;;  %12434 = vmatprep.mubr.f32.mxu0 %v17112_v24  ;;  %6242 = vmatprep.mubr.f32.mxu1 %v5001_v45 }
 0x57c   : > { %v5003_v17 = vmax.f32 %v4941_v50, 0.0  ;;  %v13877_v23 = vadd.f32 %v4720_v2, %v4046_v46  ;;  %v4722_v43 = vpop.f32.mrb[83].mxu1  ;;  %v19074_v50 = vld [vmem:[#allocation39_spill] sm:$0xff] }
 0x57d   : > { %v17115_v56 = vld [vmem:[#allocation2 + $0x120] sm:$0xff]  ;;  %v4066_v2 = vadd.f32 %v16946_v31, %v19074_v50  ;;  %v17160_v43 = vld [vmem:[#allocation2 + $0x92] sm:$0xff] }
 0x57e   : > { %5035 = vst [vmem:[#allocation2 + $0x139] sm:$0xff] %v5003_v17  ;;  %v4946_v20 = vadd.f32 %v13877_v23, %v19069_v16  ;;  %6243 = vmatmul.mubr.f32.gmra.mrb[144].mxu1 %v17115_v56  ;;  %12435 = vmatmul.mubr.f32.vlgmr.msra.gmra.mrb[200].mxu0 %v17117_v0 }
 0x57f   : > { %v4725_v40 = vpop.f32.mrb[84].mxu1  ;;  %12437 = vmatprep.mubr.f32.mxu0 %v17124_v15  ;;  %6247 = vmatprep.mubr.f32.mxu1 %v5002_v11 }
 0x580   : > { %v5004_v63 = vmax.f32 %v4946_v20, 0.0  ;;  %v13879_v52 = vadd.f32 %v4725_v40, %v4051_v6  ;;  %v4727_v7 = vpop.f32.mrb[85].mxu1 }
 0x581   : > { %v17127_v33 = vld [vmem:[#allocation2 + $0x128] sm:$0xff] }
 0x582   : > { %5036 = vst [vmem:[#allocation2 + $0x141] sm:$0xff] %v5004_v63  ;;  %v4951_v10 = vadd.f32 %v13879_v52, %v19071_v60  ;;  %6248 = vmatmul.mubr.f32.gmra.mrb[146].mxu1 %v17127_v33  ;;  %12438 = vmatmul.mubr.f32.gmra.mrb[202].mxu0 %v17129_v32  ;;  %v19076_v52 = vld [vmem:[#allocation40_spill] sm:$0xff]  ;;  %v17172_v60 = vld [vmem:[#allocation2 + $0xaa] sm:$0xff] }
 0x583   : > { %v4730_v53 = vpop.f32.mrb[86].mxu1  ;;  %12440 = vmatprep.mubr.f32.mxu0 %v17136_v61  ;;  %6252 = vmatprep.mubr.f32.mxu1 %v5003_v17  ;;  %v19075_v17 = vld [vmem:[#allocation54_spill] sm:$0xff]  ;;  %v4071_v7 = vadd.f32 %v16946_v31, %v19076_v52 }
 0x584   : > { %v5005_v35 = vmax.f32 %v4951_v10, 0.0  ;;  %v13881_v41 = vadd.f32 %v4730_v53, %v4056_v58  ;;  %v4732_v14 = vpop.f32.mrb[87].mxu1  ;;  %v5972_v52 = vld [vmem:[#allocation10 + $0x208] sm:$0xff] }
 0x585   : > { %v17139_v45 = vld [vmem:[#allocation2 + $0x138] sm:$0xff] }
 0x586   : > { %5037 = vst [vmem:[#allocation2 + $0x151] sm:$0xff] %v5005_v35  ;;  %v4956_v42 = vadd.f32 %v13881_v41, %v19073_v59  ;;  %6253 = vmatmul.mubr.f32.gmra.mrb[148].mxu1 %v17139_v45  ;;  %12441 = vmatmul.mubr.f32.gmra.mrb[204].mxu0 %v17141_v1 }
 0x587   : > { %v4735_v11 = vpop.f32.mrb[88].mxu1  ;;  %12443 = vmatprep.mubr.f32.mxu0 %v17148_v47  ;;  %6257 = vmatprep.mubr.f32.mxu1 %v5004_v63  ;;  %v17165_v63 = vld [vmem:[#allocation2 + $0x9a] sm:$0xff] }
 0x588   : > { %v5006_v37 = vmax.f32 %v4956_v42, 0.0  ;;  %v13883_v55 = vadd.f32 %v4735_v11, %v4061_v3  ;;  %v4737_v48 = vpop.f32.mrb[89].mxu1  ;;  %v19078_v3 = vld [vmem:[#allocation41_spill] sm:$0xff]  ;;  %v19079_v42 = vld [vmem:[#allocation56_spill] sm:$0xff] }
 0x589   : > { %v17151_v46 = vld [vmem:[#allocation2 + $0x140] sm:$0xff]  ;;  %v4076_v59 = vadd.f32 %v16946_v31, %v19078_v3  ;;  %v17192_v31 = vld [vmem:[#allocation2 + $0xca] sm:$0xff] }
 0x58a   : > { %5038 = vst [vmem:[#allocation2 + $0x159] sm:$0xff] %v5006_v37  ;;  %v4961_v23 = vadd.f32 %v13883_v55, %v19075_v17  ;;  %6258 = vmatmul.mubr.f32.gmra.mrb[150].mxu1 %v17151_v46  ;;  %12444 = vmatmul.mubr.f32.gmra.mrb[206].mxu0 %v17153_v19  ;;  %v17186_v55 = vld [vmem:[#allocation2 + $0xc2] sm:$0xff]  ;;  %v5973_v3 = vld [vmem:[#allocation10 + $0x210] sm:$0xff] }
 0x58b   : > { %v4740_v51 = vpop.f32.mrb[90].mxu1  ;;  %12446 = vmatprep.mubr.f32.mxu0 %v17160_v43  ;;  %6262 = vmatprep.mubr.f32.mxu1 %v5005_v35 }
 0x58c   : > { %v5007_v6 = vmax.f32 %v4961_v23, 0.0  ;;  %v13885_v16 = vadd.f32 %v4740_v51, %v4066_v2  ;;  %v4742_v20 = vpop.f32.mrb[91].mxu1  ;;  %v19081_v23 = vld [vmem:[#allocation55_spill] sm:$0xff] }
 0x58d   : > { %v17163_v40 = vld [vmem:[#allocation2 + $0x150] sm:$0xff]  ;;  %v5971_v20 = vld [vmem:[#allocation10 + $0x200] sm:$0xff] }
 0x58e   : > { %5039 = vst [vmem:[#allocation2 + $0x169] sm:$0xff] %v5007_v6  ;;  %v4966_v58 = vadd.f32 %v13885_v16, %v19077_v36  ;;  %6263 = vmatmul.mubr.f32.gmra.mrb[152].mxu1 %v17163_v40  ;;  %12447 = vmatmul.mubr.f32.gmra.mrb[208].mxu0 %v17165_v63  ;;  %v17201_v16 = vld [vmem:[#allocation2 + $0xda] sm:$0xff]  ;;  %v17207_v36 = vld [vmem:[#allocation2 + $0xe2] sm:$0xff] }
 0x58f   : > { %v4745_v10 = vpop.f32.mrb[92].mxu1  ;;  %12449 = vmatprep.mubr.f32.mxu0 %v17172_v60  ;;  %6267 = vmatprep.mubr.f32.mxu1 %v5006_v37 }
 0x590   : > { %v5008_v53 = vmax.f32 %v4966_v58, 0.0  ;;  %v13887_v35 = vadd.f32 %v4745_v10, %v4071_v7  ;;  %v4747_v41 = vpop.f32.mrb[93].mxu1  ;;  %v5235_v58 = vld [vmem:[#allocation2 + $0x18] sm:$0xff] }
 0x591   : > { %v17175_v14 = vld [vmem:[#allocation2 + $0x158] sm:$0xff] }
 0x592   : > { %5040 = vst [vmem:[#allocation2 + $0x171] sm:$0xff] %v5008_v53  ;;  %v17182_v11 = vadd.f32 %v13887_v35, %v19079_v42  ;;  %6268 = vmatmul.mubr.f32.gmra.mrb[154].mxu1 %v17175_v14  ;;  %12450 = vmatmul.mubr.f32.gmra.mrb[210].mxu0 %v17177_v27  ;;  %v17213_v10 = vld [vmem:[#allocation2 + $0xf2] sm:$0xff]  ;;  %v13187_v35 = vpack.c.bf16 %v5972_v52, %v5971_v20  ;;  %v17216_v41 = vld [vmem:[#allocation2 + $0xfa] sm:$0xff]  ;;  %v17220_v42 = vld [vmem:[#allocation2 + $0x10a] sm:$0xff] }
 0x593   : > { %v4750_v37 = vpop.f32.mrb[94].mxu1  ;;  %12452 = vmatprep.mubr.f32.mxu0 %v17186_v55  ;;  %6272 = vmatprep.mubr.f32.mxu1 %v5007_v6  ;;  %v5976_v20 = vld [vmem:[#allocation10 + $0x228] sm:$0xff] }
 0x594   : > { %19080 = vst [vmem:[#allocation48_spill] sm:$0xff] %v17182_v11  ;;  %v18947_v48 = vmax.f32 %v17182_v11, 0.0  ;;  %v13889_v50 = vadd.f32 %v4750_v37, %v4076_v59  ;;  %v4752_v2 = vpop.f32.mrb[95].mxu1  ;;  %v5974_v59 = vld [vmem:[#allocation10 + $0x218] sm:$0xff]  ;;  %v5172_v37 = vld [vmem:[#allocation2 + $0xa] sm:$0xff]  ;;  %v17227_v52 = vld [vmem:[#allocation2 + $0x122] sm:$0xff] }
 0x595   : > { %v17190_v17 = vld [vmem:[#allocation2 + $0x168] sm:$0xff]  ;;  %v17224_v2 = vld [vmem:[#allocation2 + $0x112] sm:$0xff] }
 0x596   : > { %5041 = vst [vmem:[#allocation2 + $0x181] sm:$0xff] %v18947_v48  ;;  %v17197_v51 = vadd.f32 %v13889_v50, %v19081_v23  ;;  %6273 = vmatmul.mubr.f32.gmra.mrb[156].mxu1 %v17190_v17  ;;  %12453 = vmatmul.mubr.f32.gmra.mrb[212].mxu0 %v17192_v31  ;;  %v13190_v50 = vpack.c.bf16 %v5974_v59, %v5973_v3  ;;  %v5975_v23 = vld [vmem:[#allocation10 + $0x220] sm:$0xff]  ;;  %v5978_v3 = vld [vmem:[#allocation10 + $0x238] sm:$0xff] }
 0x597   : > { %12455 = vmatprep.mubr.f32.mxu0 %v17201_v16  ;;  %6277 = vmatprep.mubr.f32.mxu1 %v5008_v53  ;;  %v5171_v53 = vld [vmem:[#allocation2 + $0x2] sm:$0xff]  ;;  %v17238_v59 = vld [vmem:[#allocation2 + $0x13a] sm:$0xff] }
 0x598   : > { %19082 = vst [vmem:[#allocation35_spill] sm:$0xff] %v17197_v51  ;;  %v18946_v6 = vmax.f32 %v17197_v51, 0.0 }
 0x599   : > { %v17205_v7 = vld [vmem:[#allocation2 + $0x170] sm:$0xff] }
 0x59a   : > { %5042 = vst [vmem:[#allocation2 + $0x189] sm:$0xff] %v18946_v6  ;;  %6278 = vmatmul.mubr.f32.gmra.mrb[158].mxu1 %v17205_v7  ;;  %12456 = vmatmul.mubr.f32.gmra.mrb[214].mxu0 %v17207_v36  ;;  %v17249_v6 = vld [vmem:[#allocation2 + $0x152] sm:$0xff]  ;;  %v17258_v48 = vld [vmem:[#allocation2 + $0x16a] sm:$0xff] }
 0x59b   : > { %6347 = vmatprep.mubr.f32.mxu1 %v5235_v58  ;;  %12458 = vmatprep.mubr.f32.mxu0 %v17213_v10  ;;  %v13193_v58 = vpack.c.bf16 %v5976_v20, %v5975_v23  ;;  %v5979_v23 = vld [vmem:[#allocation10 + $0x240] sm:$0xff]  ;;  %v5980_v20 = vld [vmem:[#allocation10 + $0x248] sm:$0xff] }
 0x59e   : > { %6348 = vmatmul.mubr.f32.vlgmr.msra.gmra.mrb[96].mxu1 %v5171_v53  ;;  %12459 = vmatmul.mubr.f32.gmra.mrb[216].mxu0 %v17216_v41  ;;  %v17233_v53 = vld [vmem:[#allocation2 + $0x12a] sm:$0xff] }
 0x59f   : > { %6352 = vmatprep.mubr.f32.mxu1 %v16964_v13  ;;  %13188 = vmatpush1.bf16.msra.mxu1 %v13187_v35  ;;  %v17231_v13 = vld [vmem:[#allocation2 + $0x1a] sm:$0xff]  ;;  %v5977_v35 = vld [vmem:[#allocation10 + $0x230] sm:$0xff] }
 0x5a0   : > { %12461 = vmatprep.mubr.f32.mxu0 %v17220_v42  ;;  %13189 = vmatprep.subr.bf16.mxu1 %v19023_v8 }
 0x5a1   : > { %v17267_v51 = vld [vmem:[#allocation2 + $0x182] sm:$0xff] }
 0x5a2   : > { %6353 = vmatmul.mubr.f32.gmra.mrb[98].mxu1 %v5172_v37  ;;  %12462 = vmatmul.mubr.f32.gmra.mrb[218].mxu0 %v17224_v2  ;;  %v13196_v37 = vpack.c.bf16 %v5978_v3, %v5977_v35  ;;  %v5981_v35 = vld [vmem:[#allocation10 + $0x250] sm:$0xff]  ;;  %v5982_v3 = vld [vmem:[#allocation10 + $0x258] sm:$0xff]  ;;  %19083 = vst [vmem:[#allocation50_spill] sm:$0xff] %v17267_v51 }
 0x5a3   : > { %6357 = vmatprep.mubr.f32.mxu1 %v16970_v34  ;;  %12464 = vmatprep.mubr.f32.mxu0 %v17227_v52  ;;  %v17242_v34 = vld [vmem:[#allocation2 + $0x22] sm:$0xff] }
 0x5a4   : > { %13191 = vmatpush1.bf16.msra.mxu1 %v13190_v50  ;;  %v17244_v50 = vld [vmem:[#allocation2 + $0x142] sm:$0xff] }
 0x5a5   : > { %13192 = vmatprep.subr.bf16.mxu1 %v19023_v8 }
 0x5a6   : > { %6358 = vmatmul.mubr.f32.gmra.mrb[100].mxu1 %v17231_v13  ;;  %12465 = vmatmul.mubr.f32.gmra.mrb[220].mxu0 %v17233_v53 }
 0x5a7   : > { %6362 = vmatprep.mubr.f32.mxu1 %v16978_v44  ;;  %12467 = vmatprep.mubr.f32.mxu0 %v17238_v59  ;;  %v13199_v44 = vpack.c.bf16 %v5980_v20, %v5979_v23  ;;  %v5983_v23 = vld [vmem:[#allocation10 + $0x260] sm:$0xff]  ;;  %v5984_v20 = vld [vmem:[#allocation10 + $0x268] sm:$0xff] }
 0x5a8   : > { %13194 = vmatpush1.bf16.msra.mxu1 %v13193_v58  ;;  %v17253_v58 = vld [vmem:[#allocation2 + $0x15a] sm:$0xff] }
 0x5a9   : > { %13195 = vmatprep.subr.bf16.mxu1 %v19023_v8 }
 0x5aa   : > { %6363 = vmatmul.mubr.f32.gmra.mrb[102].mxu1 %v17242_v34  ;;  %12468 = vmatmul.mubr.f32.gmra.mrb[222].mxu0 %v17244_v50 }
 0x5ab   : > { %6367 = vmatprep.mubr.f32.mxu1 %v16985_v30  ;;  %12470 = vmatprep.mubr.f32.mxu0 %v17249_v6  ;;  %v13202_v30 = vpack.c.bf16 %v5982_v3, %v5981_v35  ;;  %v5985_v35 = vld [vmem:[#allocation10 + $0x270] sm:$0xff]  ;;  %v5986_v3 = vld [vmem:[#allocation10 + $0x278] sm:$0xff] }
 0x5ac   : > { %13197 = vmatpush1.bf16.msra.mxu1 %v13196_v37  ;;  %v17262_v37 = vld [vmem:[#allocation2 + $0x172] sm:$0xff]  ;;  %v13208_v11 = vpack.c.bf16 %v5986_v3, %v5985_v35  ;;  %v5992_v35 = vld [vmem:[#allocation10 + $0x2a8] sm:$0xff]  ;;  %v5995_v3 = vld [vmem:[#allocation10 + $0x2c0] sm:$0xff] }
 0x5ad   : > { %13198 = vmatprep.subr.bf16.mxu1 %v19023_v8 }
 0x5ae   : > { %6368 = vmatmul.mubr.f32.gmra.mrb[104].mxu1 %v17112_v24  ;;  %12471 = vmatmul.mubr.f32.gmra.mrb[224].mxu0 %v17253_v58 }
 0x5af   : > { %6372 = vmatprep.mubr.f32.mxu1 %v16992_v18  ;;  %12473 = vmatprep.mubr.f32.mxu0 %v17258_v48  ;;  %v13205_v18 = vpack.c.bf16 %v5984_v20, %v5983_v23  ;;  %v5989_v23 = vld [vmem:[#allocation10 + $0x290] sm:$0xff]  ;;  %v5990_v20 = vld [vmem:[#allocation10 + $0x298] sm:$0xff] }
 0x5b0   : > { %13200 = vmatpush1.bf16.msra.mxu1 %v13199_v44  ;;  %v17271_v44 = vld [vmem:[#allocation2 + $0x18a] sm:$0xff] }
 0x5b1   : > { %13201 = vmatprep.subr.bf16.mxu1 %v19023_v8 }
 0x5b2   : > { %6373 = vmatmul.mubr.f32.gmra.mrb[106].mxu1 %v17117_v0  ;;  %12474 = vmatmul.mubr.f32.gmra.mrb[226].mxu0 %v17262_v37 }
 0x5b3   : > { %6377 = vmatprep.mubr.f32.mxu1 %v16999_v57  ;;  %12476 = vmatprep.mubr.f32.mxu0 %v17267_v51  ;;  %v5987_v57 = vld [vmem:[#allocation10 + $0x280] sm:$0xff]  ;;  %v5988_v51 = vld [vmem:[#allocation10 + $0x288] sm:$0xff] }
 0x5b4   : > { %13203 = vmatpush1.bf16.msra.mxu1 %v13202_v30  ;;  %v13211_v30 = vpack.c.bf16 %v5988_v51, %v5987_v57  ;;  %v5994_v51 = vld [vmem:[#allocation10 + $0x2b8] sm:$0xff]  ;;  %v5996_v57 = vld [vmem:[#allocation10 + $0x2c8] sm:$0xff] }
 0x5b5   : > { %13204 = vmatprep.subr.bf16.mxu1 %v19023_v8 }
 0x5b6   : > { %6378 = vmatmul.mubr.f32.gmra.mrb[108].mxu1 %v17124_v15  ;;  %12477 = vmatmul.mubr.f32.gmra.mrb[228].mxu0 %v17271_v44 }
 0x5b7   : > { %6382 = vmatprep.mubr.f32.mxu1 %v17006_v25  ;;  %v13214_v25 = vpack.c.bf16 %v5990_v20, %v5989_v23  ;;  %v5998_v23 = vld [vmem:[#allocation10 + $0x2d8] sm:$0xff]  ;;  %v5999_v20 = vld [vmem:[#allocation10 + $0x2e0] sm:$0xff] }
 0x5b8   : > { %13206 = vmatpush1.bf16.msra.mxu1 %v13205_v18  ;;  %v5991_v18 = vld [vmem:[#allocation10 + $0x2a0] sm:$0xff] }
 0x5b9   : > { %13207 = vmatprep.subr.bf16.mxu1 %v19023_v8 }
 0x5ba   : > { %6383 = vmatmul.mubr.f32.gmra.mrb[110].mxu1 %v17129_v32 }
 0x5bb   : > { %6387 = vmatprep.mubr.f32.mxu1 %v17013_v12  ;;  %v13217_v12 = vpack.c.bf16 %v5992_v35, %v5991_v18  ;;  %v6001_v18 = vld [vmem:[#allocation10 + $0x2f0] sm:$0xff]  ;;  %v6002_v35 = vld [vmem:[#allocation10 + $0x2f8] sm:$0xff] }
 0x5bc   : > { %13209 = vmatpush1.bf16.msra.mxu1 %v13208_v11  ;;  %v5993_v11 = vld [vmem:[#allocation10 + $0x2b0] sm:$0xff] }
 0x5bd   : > { %13210 = vmatprep.subr.bf16.mxu1 %v19023_v8 }
 0x5be   : > { %6388 = vmatmul.mubr.f32.gmra.mrb[112].mxu1 %v17136_v61 }
 0x5bf   : > { %6392 = vmatprep.mubr.f32.mxu1 %v17020_v62  ;;  %v13220_v62 = vpack.c.bf16 %v5994_v51, %v5993_v11  ;;  %v5299_v11 = vld [vmem:[#allocation2 + $0x19] sm:$0xff] }
 0x5c0   : > { %13212 = vmatpush1.bf16.msra.mxu1 %v13211_v30  ;;  %v5997_v30 = vld [vmem:[#allocation10 + $0x2d0] sm:$0xff] }
 0x5c1   : > { %13213 = vmatprep.subr.bf16.mxu1 %v19023_v8 }
 0x5c2   : > { %6393 = vmatmul.mubr.f32.gmra.mrb[114].mxu1 %v17141_v1 }
 0x5c3   : > { %6397 = vmatprep.mubr.f32.mxu1 %v17027_v21  ;;  %v13223_v21 = vpack.c.bf16 %v5996_v57, %v5995_v3  ;;  %v5300_v57 = vld [vmem:[#allocation2 + $0x21] sm:$0xff] }
 0x5c4   : > { %13215 = vmatpush1.bf16.msra.mxu1 %v13214_v25  ;;  %v6000_v25 = vld [vmem:[#allocation10 + $0x2e8] sm:$0xff] }
 0x5c5   : > { %13216 = vmatprep.subr.bf16.mxu1 %v19023_v8 }
 0x5c6   : > { %6398 = vmatmul.mubr.f32.gmra.mrb[116].mxu1 %v17148_v47 }
 0x5c7   : > { %6402 = vmatprep.mubr.f32.mxu1 %v17035_v29  ;;  %v13226_v29 = vpack.c.bf16 %v5998_v23, %v5997_v30  ;;  %v19085_v30 = vld [vmem:[#allocation26_spill] sm:$0xff]  ;;  %v5301_v23 = vld [vmem:[#allocation2 + $0x31] sm:$0xff] }
 0x5c8   : > { %13218 = vmatpush1.bf16.msra.mxu1 %v13217_v12 }
 0x5c9   : > { %13219 = vmatprep.subr.bf16.mxu1 %v19023_v8 }
 0x5ca   : > { %6403 = vmatmul.mubr.f32.gmra.mrb[118].mxu1 %v17153_v19 }
 0x5cb   : > { %6407 = vmatprep.mubr.f32.mxu1 %v17042_v39  ;;  %v13229_v39 = vpack.c.bf16 %v6000_v25, %v5999_v20  ;;  %v5302_v25 = vld [vmem:[#allocation2 + $0x39] sm:$0xff] }
 0x5cc   : > { %13221 = vmatpush1.bf16.msra.mxu1 %v13220_v62  ;;  %v19084_v62 = vld [vmem:[#allocation25_spill] sm:$0xff] }
 0x5cd   : > { %13222 = vmatprep.subr.bf16.mxu1 %v19023_v8 }
 0x5ce   : > { %6408 = vmatmul.mubr.f32.gmra.mrb[120].mxu1 %v17160_v43 }
 0x5cf   : > { %6412 = vmatprep.mubr.f32.mxu1 %v17049_v49  ;;  %v13232_v49 = vpack.c.bf16 %v6002_v35, %v6001_v18  ;;  %v5303_v35 = vld [vmem:[#allocation2 + $0x49] sm:$0xff] }
 0x5d0   : > { %13224 = vmatpush1.bf16.msra.mxu1 %v13223_v21 }
 0x5d1   : > { %13225 = vmatprep.subr.bf16.mxu1 %v19023_v8 }
 0x5d2   : > { %6413 = vmatmul.mubr.f32.gmra.mrb[122].mxu1 %v17165_v63 }
 0x5d3   : > { %6417 = vmatprep.mubr.f32.mxu1 %v17056_v4 }
 0x5d4   : > { %13227 = vmatpush1.bf16.msra.mxu1 %v13226_v29  ;;  %v19086_v29 = vld [vmem:[#allocation27_spill] sm:$0xff] }
 0x5d5   : > { %13228 = vmatprep.subr.bf16.mxu1 %v19023_v8 }
 0x5d6   : > { %6418 = vmatmul.mubr.f32.gmra.mrb[124].mxu1 %v17172_v60 }
 0x5d7   : > { %6422 = vmatprep.mubr.f32.mxu1 %v17063_v28 }
 0x5d8   : > { %13230 = vmatpush1.bf16.msra.mxu1 %v13229_v39  ;;  %v19087_v39 = vld [vmem:[#allocation28_spill] sm:$0xff] }
 0x5d9   : > { %13231 = vmatprep.subr.bf16.mxu1 %v19023_v8 }
 0x5da   : > { %6423 = vmatmul.mubr.f32.gmra.mrb[126].mxu1 %v17177_v27 }
 0x5db   : > { %6427 = vmatprep.mubr.f32.mxu1 %v17070_v38 }
 0x5dc   : > { %13233 = vmatpush1.bf16.msra.mxu1 %v13232_v49  ;;  %v19088_v49 = vld [vmem:[#allocation29_spill] sm:$0xff] }
 0x5dd   : > { %13762 = vmatprep.subr.bf16.mxu1 %v19023_v8 }
 0x5de   : > { %6428 = vmatmul.mubr.f32.gmra.mrb[128].mxu1 %v17186_v55 }
 0x5df   : > { %6432 = vmatprep.mubr.f32.mxu1 %v17077_v22 }
 0x5e2   : > { %6433 = vmatmul.mubr.f32.gmra.mrb[130].mxu1 %v17192_v31 }
 0x5e3   : > { %6437 = vmatprep.mubr.f32.mxu1 %v17084_v54 }
 0x5e6   : > { %6438 = vmatmul.mubr.f32.gmra.mrb[132].mxu1 %v17201_v16 }
 0x5e7   : > { %6442 = vmatprep.mubr.f32.mxu1 %v17091_v9 }
 0x5ea   : > { %6443 = vmatmul.mubr.f32.gmra.mrb[134].mxu1 %v17207_v36 }
 0x5eb   : > { %6447 = vmatprep.mubr.f32.mxu1 %v17098_v26 }
 0x5ee   : > { %6448 = vmatmul.mubr.f32.gmra.mrb[136].mxu1 %v17213_v10 }
 0x5ef   : > { %6452 = vmatprep.mubr.f32.mxu1 %v17105_v5 }
 0x5f2   : > { %6453 = vmatmul.mubr.f32.gmra.mrb[138].mxu1 %v17216_v41 }
 0x5f3   : > { %6457 = vmatprep.mubr.f32.mxu1 %v17115_v56 }
 0x5f6   : > { %6458 = vmatmul.mubr.f32.gmra.mrb[140].mxu1 %v17220_v42 }
 0x5f7   : > { %6462 = vmatprep.mubr.f32.mxu1 %v17127_v33 }
 0x5fa   : > { %6463 = vmatmul.mubr.f32.gmra.mrb[142].mxu1 %v17224_v2 }
 0x5fb   : > { %6467 = vmatprep.mubr.f32.mxu1 %v17139_v45  ;;  %v17342_v45 = vld [vmem:[#allocation2 + $0x180] sm:$0xff] }
 0x5fe   : > { %6468 = vmatmul.mubr.f32.gmra.mrb[144].mxu1 %v17227_v52 }
 0x5ff   : > { %6472 = vmatprep.mubr.f32.mxu1 %v17151_v46 }
 0x601   : > { %v17323_v4 = vpop.f32.mrb[160].mxu0 }
 0x602   : > { %6473 = vmatmul.mubr.f32.gmra.mrb[146].mxu1 %v17233_v53  ;;  %v6801_v28 = vpop.f32.mrb[161].mxu0 }
 0x603   : > { %6477 = vmatprep.mubr.f32.mxu1 %v17163_v40 }
 0x605   : > { %v17327_v38 = vpop.f32.mrb[162].mxu0 }
 0x606   : > { %6478 = vmatmul.mubr.f32.gmra.mrb[148].mxu1 %v17238_v59  ;;  %v6806_v22 = vpop.f32.mrb[163].mxu0 }
 0x607   : > { %6482 = vmatprep.mubr.f32.mxu1 %v17175_v14  ;;  %v17348_v14 = vld [vmem:[#allocation2 + $0x188] sm:$0xff]  ;;  %v5304_v22 = vld [vmem:[#allocation2 + $0x51] sm:$0xff] }
 0x609   : > { %v17331_v54 = vpop.f32.mrb[164].mxu0 }
 0x60a   : > { %6483 = vmatmul.mubr.f32.gmra.mrb[150].mxu1 %v17244_v50  ;;  %v6811_v9 = vpop.f32.mrb[165].mxu0 }
 0x60b   : > { %6487 = vmatprep.mubr.f32.mxu1 %v17190_v17  ;;  %v19089_v9 = vld [vmem:[#allocation30_spill] sm:$0xff] }
 0x60d   : > { %v17335_v26 = vpop.f32.mrb[166].mxu0 }
 0x60e   : > { %6488 = vmatmul.mubr.f32.gmra.mrb[152].mxu1 %v17249_v6  ;;  %v6816_v5 = vpop.f32.mrb[167].mxu0 }
 0x60f   : > { %6492 = vmatprep.mubr.f32.mxu1 %v17205_v7  ;;  %v8111_v5 = vld [vmem:[#allocation11] sm:$0xff] }
 0x611   : > { %v17339_v56 = vpop.f32.mrb[168].mxu0 }
 0x612   : > { %6493 = vmatmul.mubr.f32.gmra.mrb[154].mxu1 %v17253_v58  ;;  %v6821_v33 = vpop.f32.mrb[169].mxu0 }
 0x613   : > { %6497 = vmatprep.mubr.f32.mxu1 %v17342_v45  ;;  %v8112_v33 = vld [vmem:[#allocation11 + $0x8] sm:$0xff] }
 0x615   : > { %v17345_v46 = vpop.f32.mrb[170].mxu0 }
 0x616   : > { %6498 = vmatmul.mubr.f32.gmra.mrb[156].mxu1 %v17258_v48  ;;  %v6826_v40 = vpop.f32.mrb[171].mxu0 }
 0x617   : > { %6502 = vmatprep.mubr.f32.mxu1 %v17348_v14 }
 0x619   : > { %v17351_v17 = vpop.f32.mrb[172].mxu0 }
 0x61a   : > { %6503 = vmatmul.mubr.f32.gmra.mrb[158].mxu1 %v17262_v37  ;;  %v6831_v7 = vpop.f32.mrb[173].mxu0 }
 0x61b   : > { %6572 = vmatprep.mubr.f32.mxu1 %v17231_v13  ;;  %v13315_v7 = vpack.c.bf16 %v8112_v33, %v8111_v5  ;;  %v19093_v33 = vld [vmem:[#allocation34_spill] sm:$0xff] }
 0x61d   : > { %v17355_v12 = vpop.f32.mrb[174].mxu0  ;;  %13316 = vmatpush1.bf16.msra.mxu0 %v13315_v7 }
 0x61e   : > { %6573 = vmatmul.mubr.f32.vlgmr.msra.gmra.mrb[96].mxu1 %v5299_v11  ;;  %v6836_v51 = vpop.f32.mrb[175].mxu0  ;;  %13317 = vmatprep.subr.bf16.mxu0 %v19023_v8 }
 0x61f   : > { %6577 = vmatprep.mubr.f32.mxu1 %v17242_v34  ;;  %13778 = vmatpush1.bf16.msra.mxu1 %v19084_v62  ;;  %v19090_v51 = vld [vmem:[#allocation31_spill] sm:$0xff]  ;;  %v8114_v62 = vld [vmem:[#allocation11 + $0x18] sm:$0xff] }
 0x620   : > { %13763 = vmatprep.subr.bf16.mxu1 %v19023_v8 }
 0x621   : > { %v17360_v3 = vpop.f32.mrb[176].mxu0 }
 0x622   : > { %6578 = vmatmul.mubr.f32.gmra.mrb[98].mxu1 %v5300_v57  ;;  %v6841_v21 = vpop.f32.mrb[177].mxu0 }
 0x623   : > { %6582 = vmatprep.mubr.f32.mxu1 %v17112_v24  ;;  %13779 = vmatpush1.bf16.msra.mxu1 %v19085_v30  ;;  %v5306_v21 = vld [vmem:[#allocation2 + $0x69] sm:$0xff] }
 0x624   : > { %13764 = vmatprep.subr.bf16.mxu1 %v19023_v8 }
 0x625   : > { %v17365_v13 = vpop.f32.mrb[178].mxu0 }
 0x626   : > { %6583 = vmatmul.mubr.f32.gmra.mrb[100].mxu1 %v5301_v23  ;;  %v6846_v34 = vpop.f32.mrb[179].mxu0 }
 0x627   : > { %6587 = vmatprep.mubr.f32.mxu1 %v17117_v0  ;;  %13780 = vmatpush1.bf16.msra.mxu1 %v19086_v29  ;;  %v19091_v34 = vld [vmem:[#allocation32_spill] sm:$0xff]  ;;  %v8116_v29 = vld [vmem:[#allocation11 + $0x28] sm:$0xff] }
 0x628   : > { %13765 = vmatprep.subr.bf16.mxu1 %v19023_v8 }
 0x629   : > { %v17370_v20 = vpop.f32.mrb[180].mxu0 }
 0x62a   : > { %6588 = vmatmul.mubr.f32.gmra.mrb[102].mxu1 %v5302_v25  ;;  %v6851_v24 = vpop.f32.mrb[181].mxu0 }
 0x62b   : > { %6592 = vmatprep.mubr.f32.mxu1 %v17124_v15  ;;  %13781 = vmatpush1.bf16.msra.mxu1 %v19087_v39  ;;  %v5307_v24 = vld [vmem:[#allocation2 + $0x79] sm:$0xff] }
 0x62c   : > { %13766 = vmatprep.subr.bf16.mxu1 %v19023_v8 }
 0x62d   : > { %v17375_v18 = vpop.f32.mrb[182].mxu0 }
 0x62e   : > { %6593 = vmatmul.mubr.f32.gmra.mrb[104].mxu1 %v5303_v35  ;;  %v6856_v0 = vpop.f32.mrb[183].mxu0 }
 0x62f   : > { %6597 = vmatprep.mubr.f32.mxu1 %v17129_v32  ;;  %13782 = vmatpush1.bf16.msra.mxu1 %v19088_v49  ;;  %v5305_v32 = vld [vmem:[#allocation2 + $0x61] sm:$0xff]  ;;  %v8118_v49 = vld [vmem:[#allocation11 + $0x38] sm:$0xff] }
 0x630   : > { %13767 = vmatprep.subr.bf16.mxu1 %v19023_v8  ;;  %v19092_v0 = vld [vmem:[#allocation33_spill] sm:$0xff] }
 0x631   : > { %v17380_v28 = vpop.f32.mrb[184].mxu0 }
 0x632   : > { %6598 = vmatmul.mubr.f32.gmra.mrb[106].mxu1 %v5304_v22  ;;  %v6861_v15 = vpop.f32.mrb[185].mxu0 }
 0x633   : > { %6602 = vmatprep.mubr.f32.mxu1 %v17136_v61  ;;  %13783 = vmatpush1.bf16.msra.mxu1 %v19089_v9  ;;  %v8113_v61 = vld [vmem:[#allocation11 + $0x10] sm:$0xff]  ;;  %v5308_v15 = vld [vmem:[#allocation2 + $0x81] sm:$0xff] }
 0x634   : > { %13768 = vmatprep.subr.bf16.mxu1 %v19023_v8  ;;  %v13318_v30 = vpack.c.bf16 %v8114_v62, %v8113_v61  ;;  %v5585_v61 = vld [vmem:[#allocation2 + $0x19a] sm:$0xff]  ;;  %v5586_v62 = vld [vmem:[#allocation2 + $0x1a2] sm:$0xff] }
 0x635   : > { %v17385_v40 = vpop.f32.mrb[186].mxu0  ;;  %12479 = vmatprep.mubr.f32.mxu0 %v5585_v61  ;;  %v8128_v61 = vld [vmem:[#allocation11 + $0x88] sm:$0xff] }
 0x636   : > { %6603 = vmatmul.mubr.f32.gmra.mrb[108].mxu1 %v5305_v32  ;;  %v6866_v11 = vpop.f32.mrb[187].mxu0  ;;  %13319 = vmatpush1.bf16.msra.mxu0 %v13318_v30  ;;  %v8120_v32 = vld [vmem:[#allocation11 + $0x48] sm:$0xff]  ;;  %v8121_v30 = vld [vmem:[#allocation11 + $0x50] sm:$0xff] }
 0x637   : > { %6607 = vmatprep.mubr.f32.mxu1 %v17141_v1  ;;  %13784 = vmatpush1.bf16.msra.mxu1 %v19090_v51  ;;  %v8115_v1 = vld [vmem:[#allocation11 + $0x20] sm:$0xff]  ;;  %v5309_v11 = vld [vmem:[#allocation2 + $0x91] sm:$0xff] }
 0x638   : > { %13769 = vmatprep.subr.bf16.mxu1 %v19023_v8  ;;  %13320 = vmatprep.subr.bf16.mxu0 %v19023_v8  ;;  %v13321_v39 = vpack.c.bf16 %v8116_v29, %v8115_v1  ;;  %v5310_v1 = vld [vmem:[#allocation2 + $0x99] sm:$0xff] }
 0x639   : > { %v17390_v57 = vpop.f32.mrb[188].mxu0  ;;  %12480 = vmatmul.mubr.f32.gmra.mrb[230].mxu0 %v5586_v62 }
 0x63a   : > { %6608 = vmatmul.mubr.f32.gmra.mrb[110].mxu1 %v5306_v21  ;;  %v6871_v23 = vpop.f32.mrb[189].mxu0  ;;  %13322 = vmatpush1.bf16.msra.mxu0 %v13321_v39  ;;  %v19095_v39 = vld [vmem:[#allocation43_spill] sm:$0xff] }
 0x63b   : > { %6612 = vmatprep.mubr.f32.mxu1 %v17148_v47  ;;  %13785 = vmatpush1.bf16.msra.mxu1 %v19091_v34  ;;  %v8117_v47 = vld [vmem:[#allocation11 + $0x30] sm:$0xff]  ;;  %v8122_v23 = vld [vmem:[#allocation11 + $0x58] sm:$0xff] }
 0x63c   : > { %13770 = vmatprep.subr.bf16.mxu1 %v19023_v8  ;;  %13323 = vmatprep.subr.bf16.mxu0 %v19023_v8  ;;  %v13324_v9 = vpack.c.bf16 %v8118_v49, %v8117_v47  ;;  %v5311_v47 = vld [vmem:[#allocation2 + $0xa9] sm:$0xff] }
 0x63d   : > { %v17396_v25 = vpop.f32.mrb[190].mxu0 }
 0x63e   : > { %6613 = vmatmul.mubr.f32.gmra.mrb[112].mxu1 %v5307_v24  ;;  %v6876_v35 = vpop.f32.mrb[191].mxu0  ;;  %13325 = vmatpush1.bf16.msra.mxu0 %v13324_v9  ;;  %v13330_v24 = vpack.c.bf16 %v8122_v23, %v8121_v30  ;;  %v19097_v9 = vld [vmem:[#allocation44_spill] sm:$0xff]  ;;  %v8240_v30 = vld [vmem:[#allocation11 + $0x408] sm:$0xff] }
 0x63f   : > { %6617 = vmatprep.mubr.f32.mxu1 %v17153_v19  ;;  %13786 = vmatpush1.bf16.msra.mxu1 %v19092_v0  ;;  %v8119_v19 = vld [vmem:[#allocation11 + $0x40] sm:$0xff]  ;;  %v8124_v35 = vld [vmem:[#allocation11 + $0x68] sm:$0xff] }
 0x640   : > { %13771 = vmatprep.subr.bf16.mxu1 %v19023_v8  ;;  %13326 = vmatprep.subr.bf16.mxu0 %v19023_v8  ;;  %v13327_v21 = vpack.c.bf16 %v8120_v32, %v8119_v19  ;;  %v5312_v19 = vld [vmem:[#allocation2 + $0xb1] sm:$0xff] }
 0x641   : > { %v17402_v22 = vpop.f32.mrb[192].mxu0 }
 0x642   : > { %6618 = vmatmul.mubr.f32.gmra.mrb[114].mxu1 %v5308_v15  ;;  %v6881_v5 = vpop.f32.mrb[193].mxu0  ;;  %13328 = vmatpush1.bf16.msra.mxu0 %v13327_v21  ;;  %v5313_v21 = vld [vmem:[#allocation2 + $0xc1] sm:$0xff] }
 0x643   : > { %6622 = vmatprep.mubr.f32.mxu1 %v17160_v43  ;;  %13787 = vmatpush1.bf16.msra.mxu1 %v19093_v33  ;;  %v19094_v43 = vld [vmem:[#allocation42_spill] sm:$0xff]  ;;  %v8126_v5 = vld [vmem:[#allocation11 + $0x78] sm:$0xff] }
 0x644   : > { %13772 = vmatprep.subr.bf16.mxu1 %v19023_v8  ;;  %13329 = vmatprep.subr.bf16.mxu0 %v19023_v8 }
 0x645   : > { %v17408_v7 = vpop.f32.mrb[194].mxu0 }
 0x646   : > { %6623 = vmatmul.mubr.f32.gmra.mrb[116].mxu1 %v5309_v11  ;;  %v6886_v51 = vpop.f32.mrb[195].mxu0  ;;  %13331 = vmatpush1.bf16.msra.mxu0 %v13330_v24  ;;  %v8130_v24 = vld [vmem:[#allocation11 + $0x98] sm:$0xff] }
 0x647   : > { %6627 = vmatprep.mubr.f32.mxu1 %v17165_v63  ;;  %13788 = vmatpush1.bf16.msra.mxu1 %v19094_v43  ;;  %v8123_v63 = vld [vmem:[#allocation11 + $0x60] sm:$0xff] }
 0x648   : > { %13773 = vmatprep.subr.bf16.mxu1 %v19023_v8  ;;  %v13333_v15 = vpack.c.bf16 %v8124_v35, %v8123_v63  ;;  %13332 = vmatprep.subr.bf16.mxu0 %v19023_v8  ;;  %v19098_v51 = vld [vmem:[#allocation45_spill] sm:$0xff]  ;;  %v5314_v35 = vld [vmem:[#allocation2 + $0xc9] sm:$0xff] }
 0x649   : > { %v17414_v34 = vpop.f32.mrb[196].mxu0  ;;  %v8239_v43 = vld [vmem:[#allocation11 + $0x400] sm:$0xff] }
 0x64a   : > { %6628 = vmatmul.mubr.f32.gmra.mrb[118].mxu1 %v5310_v1  ;;  %v6891_v29 = vpop.f32.mrb[197].mxu0  ;;  %13334 = vmatpush1.bf16.msra.mxu0 %v13333_v15  ;;  %v8131_v15 = vld [vmem:[#allocation11 + $0xa0] sm:$0xff] }
 0x64b   : > { %6632 = vmatprep.mubr.f32.mxu1 %v17172_v60  ;;  %13789 = vmatpush1.bf16.msra.mxu1 %v19095_v39  ;;  %v8125_v60 = vld [vmem:[#allocation11 + $0x70] sm:$0xff]  ;;  %v17442_v39 = vpack.c.bf16 %v8240_v30, %v8239_v43  ;;  %v8135_v30 = vld [vmem:[#allocation11 + $0xc0] sm:$0xff] }
 0x64c   : > { %13774 = vmatprep.subr.bf16.mxu1 %v19023_v8  ;;  %v13336_v11 = vpack.c.bf16 %v8126_v5, %v8125_v60  ;;  %13335 = vmatprep.subr.bf16.mxu0 %v19023_v8  ;;  %v8129_v29 = vld [vmem:[#allocation11 + $0x90] sm:$0xff]  ;;  %v5315_v5 = vld [vmem:[#allocation2 + $0xd9] sm:$0xff] }
 0x64d   : > { %v17420_v0 = vpop.f32.mrb[198].mxu0 }
 0x64e   : > { %19096 = vst [vmem:[#allocation36_spill] sm:$0xff] %v17420_v0  ;;  %6633 = vmatmul.mubr.f32.gmra.mrb[120].mxu1 %v5311_v47  ;;  %v6896_v49 = vpop.f32.mrb[199].mxu0  ;;  %13337 = vmatpush1.bf16.msra.mxu0 %v13336_v11  ;;  %v8246_v0 = vld [vmem:[#allocation11 + $0x438] sm:$0xff] }
 0x64f   : > { %6637 = vmatprep.mubr.f32.mxu1 %v17177_v27  ;;  %13790 = vmatpush1.bf16.msra.mxu1 %v19097_v9  ;;  %v8127_v27 = vld [vmem:[#allocation11 + $0x80] sm:$0xff]  ;;  %v13342_v49 = vpack.c.bf16 %v8130_v24, %v8129_v29  ;;  %v8132_v9 = vld [vmem:[#allocation11 + $0xa8] sm:$0xff] }
 0x650   : > { %13775 = vmatprep.subr.bf16.mxu1 %v19023_v8  ;;  %v13339_v1 = vpack.c.bf16 %v8128_v61, %v8127_v27  ;;  %13338 = vmatprep.subr.bf16.mxu0 %v19023_v8  ;;  %v13345_v11 = vpack.c.bf16 %v8132_v9, %v8131_v15  ;;  %v5316_v61 = vld [vmem:[#allocation2 + $0xe1] sm:$0xff] }
 0x651   : > { %v17426_v33 = vpop.f32.mrb[200].mxu0 }
 0x652   : > { %6638 = vmatmul.mubr.f32.gmra.mrb[122].mxu1 %v5312_v19  ;;  %v17428_v32 = vpop.f32.mrb[201].mxu0  ;;  %13340 = vmatpush1.bf16.msra.mxu0 %v13339_v1  ;;  %v8136_v1 = vld [vmem:[#allocation11 + $0xc8] sm:$0xff] }
 0x653   : > { %6642 = vmatprep.mubr.f32.mxu1 %v17186_v55  ;;  %13791 = vmatpush1.bf16.msra.mxu1 %v19098_v51  ;;  %v19099_v55 = vld [vmem:[#allocation46_spill] sm:$0xff]  ;;  %v8134_v51 = vld [vmem:[#allocation11 + $0xb8] sm:$0xff]  ;;  %v13351_v24 = vpack.c.bf16 %v8136_v1, %v8135_v30 }
 0x654   : > { %13776 = vmatprep.subr.bf16.mxu1 %v19023_v8  ;;  %13341 = vmatprep.subr.bf16.mxu0 %v19023_v8  ;;  %v8142_v30 = vld [vmem:[#allocation11 + $0xf8] sm:$0xff] }
 0x655   : > { %v17434_v62 = vpop.f32.mrb[202].mxu0 }
 0x656   : > { %6643 = vmatmul.mubr.f32.gmra.mrb[124].mxu1 %v5313_v21  ;;  %v17436_v23 = vpop.f32.mrb[203].mxu0  ;;  %13343 = vmatpush1.bf16.msra.mxu0 %v13342_v49  ;;  %v8138_v49 = vld [vmem:[#allocation11 + $0xd8] sm:$0xff] }
 0x657   : > { %6647 = vmatprep.mubr.f32.mxu1 %v17192_v31  ;;  %13792 = vmatpush1.bf16.msra.mxu1 %v19099_v55  ;;  %v19100_v31 = vld [vmem:[#allocation47_spill] sm:$0xff] }
 0x658   : > { %13777 = vmatprep.subr.bf16.mxu1 %v19023_v8  ;;  %13344 = vmatprep.subr.bf16.mxu0 %v19023_v8 }
 0x659   : > { %v17444_v63 = vpop.f32.mrb[204].mxu0 }
 0x65a   : > { %6648 = vmatmul.mubr.f32.gmra.mrb[126].mxu1 %v5314_v35  ;;  %v17446_v47 = vpop.f32.mrb[205].mxu0  ;;  %13346 = vmatpush1.bf16.msra.mxu0 %v13345_v11  ;;  %v8137_v35 = vld [vmem:[#allocation11 + $0xd0] sm:$0xff]  ;;  %v8140_v11 = vld [vmem:[#allocation11 + $0xe8] sm:$0xff] }
 0x65b   : > { %6652 = vmatprep.mubr.f32.mxu1 %v17201_v16  ;;  %13793 = vmatpush1.bf16.msra.mxu1 %v19100_v31  ;;  %v8133_v16 = vld [vmem:[#allocation11 + $0xb0] sm:$0xff]  ;;  %v13354_v9 = vpack.c.bf16 %v8138_v49, %v8137_v35 }
 0x65c   : > { %13507 = vmatprep.subr.bf16.mxu1 %v17442_v39  ;;  %v13348_v43 = vpack.c.bf16 %v8134_v51, %v8133_v16  ;;  %13347 = vmatprep.subr.bf16.mxu0 %v19023_v8  ;;  %v7311_v35 = vld [vmem:[#allocation3 + $0x1] sm:$0xff] }
 0x65d   : > { %v17452_v60 = vpop.f32.mrb[206].mxu0  ;;  %8326 = vmatprep.mubr.f32.mxu0 %v7311_v35 }
 0x65e   : > { %6653 = vmatmul.mubr.f32.gmra.mrb[128].mxu1 %v5315_v5  ;;  %v17454_v19 = vpop.f32.mrb[207].mxu0  ;;  %13349 = vmatpush1.bf16.msra.mxu0 %v13348_v43  ;;  %v8139_v5 = vld [vmem:[#allocation11 + $0xe0] sm:$0xff]  ;;  %v8141_v43 = vld [vmem:[#allocation11 + $0xf0] sm:$0xff] }
 0x65f   : > { %6657 = vmatprep.mubr.f32.mxu1 %v17207_v36  ;;  %v5317_v36 = vld [vmem:[#allocation2 + $0xf1] sm:$0xff]  ;;  %13350 = vmatprep.subr.bf16.mxu0 %v19023_v8 }
 0x661   : > { %v17458_v27 = vpop.f32.mrb[208].mxu0 }
 0x662   : > { %6658 = vmatmul.mubr.f32.gmra.mrb[130].mxu1 %v5316_v61  ;;  %v17460_v21 = vpop.f32.mrb[209].mxu0  ;;  %13352 = vmatpush1.bf16.msra.mxu0 %v13351_v24  ;;  %v13357_v61 = vpack.c.bf16 %v8140_v11, %v8139_v5  ;;  %v13360_v24 = vpack.c.bf16 %v8142_v30, %v8141_v43  ;;  %v5322_v11 = vld [vmem:[#allocation2 + $0x129] sm:$0xff]  ;;  %v5323_v43 = vld [vmem:[#allocation2 + $0x139] sm:$0xff] }
 0x663   : > { %6662 = vmatprep.mubr.f32.mxu1 %v17213_v10  ;;  %v5318_v10 = vld [vmem:[#allocation2 + $0xf9] sm:$0xff]  ;;  %13353 = vmatprep.subr.bf16.mxu0 %v19023_v8 }
 0x665   : > { %v17464_v55 = vpop.f32.mrb[210].mxu0 }
 0x666   : > { %6663 = vmatmul.mubr.f32.gmra.mrb[132].mxu1 %v5317_v36  ;;  %v17466_v29 = vpop.f32.mrb[211].mxu0  ;;  %13355 = vmatpush1.bf16.msra.mxu0 %v13354_v9  ;;  %v7312_v9 = vld [vmem:[#allocation3 + $0x9] sm:$0xff] }
 0x667   : > { %6667 = vmatprep.mubr.f32.mxu1 %v17216_v41  ;;  %v5319_v41 = vld [vmem:[#allocation2 + $0x109] sm:$0xff]  ;;  %13356 = vmatprep.subr.bf16.mxu0 %v19023_v8 }
 0x669   : > { %v17470_v31 = vpop.f32.mrb[212].mxu0 }
 0x66a   : > { %6668 = vmatmul.mubr.f32.gmra.mrb[134].mxu1 %v5318_v10  ;;  %v17472_v15 = vpop.f32.mrb[213].mxu0  ;;  %13358 = vmatpush1.bf16.msra.mxu0 %v13357_v61 }
 0x66b   : > { %6672 = vmatprep.mubr.f32.mxu1 %v17220_v42  ;;  %v5320_v42 = vld [vmem:[#allocation2 + $0x111] sm:$0xff]  ;;  %13359 = vmatprep.subr.bf16.mxu0 %v19023_v8 }
 0x66d   : > { %v17476_v16 = vpop.f32.mrb[214].mxu0 }
 0x66e   : > { %6673 = vmatmul.mubr.f32.gmra.mrb[136].mxu1 %v5319_v41  ;;  %v17478_v51 = vpop.f32.mrb[215].mxu0  ;;  %13361 = vmatpush1.bf16.msra.mxu0 %v13360_v24 }
 0x66f   : > { %6677 = vmatprep.mubr.f32.mxu1 %v17224_v2  ;;  %v5321_v2 = vld [vmem:[#allocation2 + $0x121] sm:$0xff]  ;;  %13362 = vmatprep.subr.bf16.mxu0 %v19023_v8 }
 0x671   : > { %v17482_v1 = vpop.f32.mrb[216].mxu0 }
 0x672   : > { %6678 = vmatmul.mubr.f32.gmra.mrb[138].mxu1 %v5320_v42  ;;  %v17484_v36 = vpop.f32.mrb[217].mxu0  ;;  %v5324_v42 = vld [vmem:[#allocation2 + $0x141] sm:$0xff] }
 0x673   : > { %6682 = vmatprep.mubr.f32.mxu1 %v17227_v52  ;;  %v17496_v52 = vld [vmem:[#allocation2] sm:$0xff] }
 0x674   : > { %8327 = vmatmul.mubr.f32.vlgmr.msra.gmra.mrb[232].mxu0 %v17496_v52 }
 0x675   : > { %v17488_v49 = vpop.f32.mrb[218].mxu0  ;;  %8331 = vmatprep.mubr.f32.mxu0 %v7312_v9 }
 0x676   : > { %19101 = vst [vmem:[#allocation49_spill] sm:$0xff] %v17488_v49  ;;  %6683 = vmatmul.mubr.f32.gmra.mrb[140].mxu1 %v5321_v2  ;;  %v17490_v10 = vpop.f32.mrb[219].mxu0  ;;  %v8244_v49 = vld [vmem:[#allocation11 + $0x428] sm:$0xff] }
 0x677   : > { %6687 = vmatprep.mubr.f32.mxu1 %v17233_v53 }
 0x678   : > { %8332 = vmatmul.mubr.f32.gmra.mrb[234].mxu0 %v17496_v52 }
 0x679   : > { %v17494_v5 = vpop.f32.mrb[220].mxu0 }
 0x67a   : > { %19102 = vst [vmem:[#allocation37_spill] sm:$0xff] %v17494_v5  ;;  %6688 = vmatmul.mubr.f32.gmra.mrb[142].mxu1 %v5322_v11  ;;  %v17499_v41 = vpop.f32.mrb[221].mxu0 }
 0x67b   : > { %19103 = vst [vmem:[#allocation52_spill] sm:$0xff] %v17499_v41  ;;  %6692 = vmatprep.mubr.f32.mxu1 %v17238_v59  ;;  %v5325_v59 = vld [vmem:[#allocation2 + $0x151] sm:$0xff]  ;;  %v5447_v41 = vld [vmem:[#allocation2 + $0x120] sm:$0xff] }
 0x67d   : > { %v17502_v61 = vpop.f32.mrb[222].mxu0 }
 0x67e   : > { %19104 = vst [vmem:[#allocation38_spill] sm:$0xff] %v17502_v61  ;;  %6693 = vmatmul.mubr.f32.gmra.mrb[144].mxu1 %v5323_v43  ;;  %v17505_v53 = vpop.f32.mrb[223].mxu0 }
 0x67f   : > { %19105 = vst [vmem:[#allocation51_spill] sm:$0xff] %v17505_v53  ;;  %6697 = vmatprep.mubr.f32.mxu1 %v17244_v50  ;;  %v5326_v53 = vld [vmem:[#allocation2 + $0x159] sm:$0xff] }
 0x681   : > { %v17508_v30 = vpop.f32.mrb[224].mxu0 }
 0x682   : > { %19106 = vst [vmem:[#allocation39_spill] sm:$0xff] %v17508_v30  ;;  %6698 = vmatmul.mubr.f32.gmra.mrb[146].mxu1 %v5324_v42  ;;  %v17510_v24 = vpop.f32.mrb[225].mxu0  ;;  %v5327_v30 = vld [vmem:[#allocation2 + $0x169] sm:$0xff] }
 0x683   : > { %19107 = vst [vmem:[#allocation54_spill] sm:$0xff] %v17510_v24  ;;  %6702 = vmatprep.mubr.f32.mxu1 %v17249_v6  ;;  %v17524_v6 = vld [vmem:[#allocation2 + $0x171] sm:$0xff] }
 0x684   : > { %v8242_v24 = vld [vmem:[#allocation11 + $0x418] sm:$0xff] }
 0x685   : > { %v17513_v35 = vpop.f32.mrb[226].mxu0 }
 0x686   : > { %19108 = vst [vmem:[#allocation40_spill] sm:$0xff] %v17513_v35  ;;  %6703 = vmatmul.mubr.f32.gmra.mrb[148].mxu1 %v5325_v59  ;;  %v17515_v9 = vpop.f32.mrb[227].mxu0  ;;  %v19112_v35 = vld [vmem:[#allocation50_spill] sm:$0xff] }
 0x687   : > { %19109 = vst [vmem:[#allocation53_spill] sm:$0xff] %v17515_v9  ;;  %6707 = vmatprep.mubr.f32.mxu1 %v17253_v58  ;;  %v19113_v9 = vld [vmem:[#allocation48_spill] sm:$0xff] }
 0x688   : > { %v19114_v58 = vmax.f32 %v19113_v9, 0.0  ;;  %v5448_v9 = vld [vmem:[#allocation2 + $0x128] sm:$0xff] }
 0x689   : > { %v17518_v61 = vpop.f32.mrb[228].mxu0 }
 0x68a   : > { %19110 = vst [vmem:[#allocation41_spill] sm:$0xff] %v17518_v61  ;;  %6708 = vmatmul.mubr.f32.gmra.mrb[150].mxu1 %v5326_v53  ;;  %v17520_v50 = vpop.f32.mrb[229].mxu0  ;;  %v8241_v61 = vld [vmem:[#allocation11 + $0x410] sm:$0xff] }
 0x68b   : > { %19111 = vst [vmem:[#allocation56_spill] sm:$0xff] %v17520_v50  ;;  %6712 = vmatprep.mubr.f32.mxu1 %v17258_v48  ;;  %v19115_v50 = vld [vmem:[#allocation35_spill] sm:$0xff]  ;;  %v13510_v48 = vpack.c.bf16 %v8242_v24, %v8241_v61  ;;  %v8248_v61 = vld [vmem:[#allocation11 + $0x448] sm:$0xff]  ;;  %v8250_v24 = vld [vmem:[#allocation11 + $0x458] sm:$0xff] }
 0x68c   : > { %v19116_v5 = vmax.f32 %v19115_v50, 0.0  ;;  %v8251_v50 = vld [vmem:[#allocation11 + $0x460] sm:$0xff] }
 0x68e   : > { %6713 = vmatmul.mubr.f32.gmra.mrb[152].mxu1 %v5327_v30 }
 0x68f   : > { %6717 = vmatprep.mubr.f32.mxu1 %v17262_v37  ;;  %v8243_v37 = vld [vmem:[#allocation11 + $0x420] sm:$0xff] }
 0x692   : > { %6718 = vmatmul.mubr.f32.gmra.mrb[154].mxu1 %v17524_v6 }
 0x693   : > { %6722 = vmatprep.mubr.f32.mxu1 %v19112_v35  ;;  %v13514_v35 = vpack.c.bf16 %v8244_v49, %v8243_v37  ;;  %v8253_v37 = vld [vmem:[#allocation11 + $0x470] sm:$0xff] }
 0x696   : > { %6723 = vmatmul.mubr.f32.gmra.mrb[156].mxu1 %v19114_v58  ;;  %v8245_v58 = vld [vmem:[#allocation11 + $0x430] sm:$0xff] }
 0x697   : > { %6727 = vmatprep.mubr.f32.mxu1 %v17271_v44  ;;  %v13518_v44 = vpack.c.bf16 %v8246_v0, %v8245_v58  ;;  %v8144_v58 = vld [vmem:[#allocation11 + $0x108] sm:$0xff] }
 0x69a   : > { %6728 = vmatmul.mubr.f32.gmra.mrb[158].mxu1 %v19116_v5  ;;  %v5449_v5 = vld [vmem:[#allocation2 + $0x138] sm:$0xff] }
 0x69b   : > { %6897 = vmatprep.mubr.f32.mxu1 %v5321_v2  ;;  %v8247_v2 = vld [vmem:[#allocation11 + $0x440] sm:$0xff] }
 0x69e   : > { %6898 = vmatmul.mubr.f32.vlgmr.msra.gmra.mrb[136].mxu1 %v5447_v41  ;;  %v5450_v41 = vld [vmem:[#allocation2 + $0x140] sm:$0xff] }
 0x69f   : > { %6902 = vmatprep.mubr.f32.mxu1 %v5322_v11  ;;  %13509 = vmatpush3.bf16.msra.mxu1 %v17442_v39  ;;  %v13522_v11 = vpack.c.bf16 %v8248_v61, %v8247_v2  ;;  %v8249_v39 = vld [vmem:[#allocation11 + $0x450] sm:$0xff]  ;;  %v5519_v2 = vld [vmem:[#allocation2 + $0x181] sm:$0xff] }
 0x6a0   : > { %13511 = vmatprep.subr.bf16.mxu1 %v13510_v48  ;;  %v13526_v49 = vpack.c.bf16 %v8250_v24, %v8249_v39  ;;  %v8145_v61 = vld [vmem:[#allocation11 + $0x110] sm:$0xff]  ;;  %v8147_v39 = vld [vmem:[#allocation11 + $0x120] sm:$0xff]  ;;  %v8148_v24 = vld [vmem:[#allocation11 + $0x128] sm:$0xff] }
 0x6a2   : > { %6903 = vmatmul.mubr.f32.gmra.mrb[138].mxu1 %v5448_v9  ;;  %v8143_v9 = vld [vmem:[#allocation11 + $0x100] sm:$0xff] }
 0x6a3   : > { %6907 = vmatprep.mubr.f32.mxu1 %v5323_v43  ;;  %13513 = vmatpush3.bf16.msra.mxu1 %v13510_v48  ;;  %v5451_v43 = vld [vmem:[#allocation2 + $0x150] sm:$0xff]  ;;  %v8252_v48 = vld [vmem:[#allocation11 + $0x468] sm:$0xff] }
 0x6a4   : > { %13515 = vmatprep.subr.bf16.mxu1 %v13514_v35  ;;  %v13530_v0 = vpack.c.bf16 %v8252_v48, %v8251_v50  ;;  %v8149_v50 = vld [vmem:[#allocation11 + $0x130] sm:$0xff]  ;;  %v8150_v48 = vld [vmem:[#allocation11 + $0x138] sm:$0xff] }
 0x6a6   : > { %6908 = vmatmul.mubr.f32.gmra.mrb[140].mxu1 %v5449_v5  ;;  %v15089_v5 = vld [vmem:[#allocation2 + $0x168] sm:$0xff] }
 0x6a7   : > { %6912 = vmatprep.mubr.f32.mxu1 %v5324_v42  ;;  %13517 = vmatpush3.bf16.msra.mxu1 %v13514_v35  ;;  %v5452_v42 = vld [vmem:[#allocation2 + $0x158] sm:$0xff] }
 0x6a8   : > { %13519 = vmatprep.subr.bf16.mxu1 %v13518_v44  ;;  %v8254_v35 = vld [vmem:[#allocation11 + $0x478] sm:$0xff] }
 0x6aa   : > { %6913 = vmatmul.mubr.f32.gmra.mrb[142].mxu1 %v5450_v41  ;;  %v5520_v41 = vld [vmem:[#allocation2 + $0x189] sm:$0xff] }
 0x6ab   : > { %6917 = vmatprep.mubr.f32.mxu1 %v5325_v59  ;;  %13521 = vmatpush3.bf16.msra.mxu1 %v13518_v44  ;;  %v13363_v59 = vpack.c.bf16 %v8144_v58, %v8143_v9  ;;  %v13534_v44 = vpack.c.bf16 %v8254_v35, %v8253_v37  ;;  %v8154_v35 = vld [vmem:[#allocation11 + $0x158] sm:$0xff]  ;;  %v8155_v9 = vld [vmem:[#allocation11 + $0x160] sm:$0xff] }
 0x6ac   : > { %13523 = vmatprep.subr.bf16.mxu1 %v13522_v11 }
 0x6ad   : > { %13364 = vmatpush1.bf16.msra.mxu0 %v13363_v59  ;;  %v8156_v59 = vld [vmem:[#allocation11 + $0x168] sm:$0xff] }
 0x6ae   : > { %6918 = vmatmul.mubr.f32.gmra.mrb[144].mxu1 %v5451_v43  ;;  %13365 = vmatprep.subr.bf16.mxu0 %v19023_v8  ;;  %v5522_v43 = vld [vmem:[#allocation2 + $0x1a1] sm:$0xff] }
 0x6af   : > { %6922 = vmatprep.mubr.f32.mxu1 %v5326_v53  ;;  %13525 = vmatpush3.bf16.msra.mxu1 %v13522_v11  ;;  %v15090_v53 = vld [vmem:[#allocation2 + $0x170] sm:$0xff]  ;;  %v8146_v11 = vld [vmem:[#allocation11 + $0x118] sm:$0xff] }
 0x6b0   : > { %13527 = vmatprep.subr.bf16.mxu1 %v13526_v49 }
 0x6b2   : > { %6923 = vmatmul.mubr.f32.gmra.mrb[146].mxu1 %v5452_v42  ;;  %v8152_v42 = vld [vmem:[#allocation11 + $0x148] sm:$0xff] }
 0x6b3   : > { %6927 = vmatprep.mubr.f32.mxu1 %v5327_v30  ;;  %13529 = vmatpush3.bf16.msra.mxu1 %v13526_v49  ;;  %v13366_v30 = vpack.c.bf16 %v8146_v11, %v8145_v61  ;;  %v13369_v49 = vpack.c.bf16 %v8148_v24, %v8147_v39  ;;  %v8160_v61 = vld [vmem:[#allocation11 + $0x188] sm:$0xff] }
 0x6b4   : > { %13531 = vmatprep.subr.bf16.mxu1 %v13530_v0 }
 0x6b5   : > { %13367 = vmatpush1.bf16.msra.mxu0 %v13366_v30  ;;  %v17552_v30 = vld [vmem:[%s18903_s6] ss:$0 sm:$0xff] }
 0x6b6   : > { %6928 = vmatmul.mubr.f32.gmra.mrb[148].mxu1 %v15089_v5  ;;  %13368 = vmatprep.subr.bf16.mxu0 %v19023_v8  ;;  %v8157_v5 = vld [vmem:[#allocation11 + $0x170] sm:$0xff] }
 0x6b7   : > { %6932 = vmatprep.mubr.f32.mxu1 %v17524_v6  ;;  %13533 = vmatpush3.bf16.msra.mxu1 %v13530_v0  ;;  %v5521_v6 = vld [vmem:[#allocation2 + $0x199] sm:$0xff] }
 0x6b8   : > { %13535 = vmatprep.subr.bf16.mxu1 %v13534_v44  ;;  %v8151_v0 = vld [vmem:[#allocation11 + $0x140] sm:$0xff] }
 0x6b9   : > { %13370 = vmatpush1.bf16.msra.mxu0 %v13369_v49  ;;  %v13375_v37 = vpack.c.bf16 %v8152_v42, %v8151_v0  ;;  %v8161_v42 = vld [vmem:[#allocation11 + $0x190] sm:$0xff] }
 0x6ba   : > { %6933 = vmatmul.mubr.f32.gmra.mrb[150].mxu1 %v15090_v53  ;;  %13371 = vmatprep.subr.bf16.mxu0 %v19023_v8  ;;  %v8158_v53 = vld [vmem:[#allocation11 + $0x178] sm:$0xff] }
 0x6bb   : > { %6937 = vmatprep.mubr.f32.mxu1 %v5519_v2  ;;  %13537 = vmatpush3.bf16.msra.mxu1 %v13534_v44  ;;  %v13381_v44 = vpack.c.bf16 %v8156_v59, %v8155_v9  ;;  %v13384_v2 = vpack.c.bf16 %v8158_v53, %v8157_v5 }
 0x6bc   : > { %13538 = vmatprep.subr.bf16.mxu1 %v19023_v8 }
 0x6be   : > { %6938 = vmatmul.mubr.f32.gmra.mrb[152].mxu1 %v17342_v45  ;;  %v13372_v45 = vpack.c.bf16 %v8150_v48, %v8149_v50 }
 0x6bf   : > { %6942 = vmatprep.mubr.f32.mxu1 %v5520_v41 }
 0x6c0   : > { %13373 = vmatpush1.bf16.msra.mxu0 %v13372_v45 }
 0x6c1   : > { %13374 = vmatprep.subr.bf16.mxu0 %v19023_v8 }
 0x6c2   : > { %6943 = vmatmul.mubr.f32.gmra.mrb[154].mxu1 %v17348_v14  ;;  %v8153_v14 = vld [vmem:[#allocation11 + $0x150] sm:$0xff] }
 0x6c3   : > { %6947 = vmatprep.mubr.f32.mxu1 %v5521_v6  ;;  %v13378_v58 = vpack.c.bf16 %v8154_v35, %v8153_v14 }
 0x6c4   : > { %13376 = vmatpush1.bf16.msra.mxu0 %v13375_v37  ;;  %v8162_v37 = vld [vmem:[#allocation11 + $0x198] sm:$0xff] }
 0x6c5   : > { %13377 = vmatprep.subr.bf16.mxu0 %v19023_v8  ;;  %v13390_v35 = vpack.c.bf16 %v8162_v37, %v8161_v42  ;;  %v8165_v42 = vld [vmem:[#allocation11 + $0x1b0] sm:$0xff]  ;;  %v8166_v37 = vld [vmem:[#allocation11 + $0x1b8] sm:$0xff] }
 0x6c6   : > { %6948 = vmatmul.mubr.f32.gmra.mrb[156].mxu1 %v17496_v52 }
 0x6c7   : > { %6952 = vmatprep.mubr.f32.mxu1 %v5522_v43 }
 0x6c8   : > { %13379 = vmatpush1.bf16.msra.mxu0 %v13378_v58 }
 0x6c9   : > { %13380 = vmatprep.subr.bf16.mxu0 %v19023_v8 }
 0x6ca   : > { %6953 = vmatmul.mubr.f32.gmra.mrb[158].mxu1 %v17496_v52  ;;  %v8159_v52 = vld [vmem:[#allocation11 + $0x180] sm:$0xff] }
 0x6cb   : > { %v13387_v11 = vpack.c.bf16 %v8160_v61, %v8159_v52  ;;  %v8163_v52 = vld [vmem:[#allocation11 + $0x1a0] sm:$0xff]  ;;  %v8164_v61 = vld [vmem:[#allocation11 + $0x1a8] sm:$0xff] }
 0x6cc   : > { %13382 = vmatpush1.bf16.msra.mxu0 %v13381_v44 }
 0x6cd   : > { %13383 = vmatprep.subr.bf16.mxu0 %v19023_v8 }
 0x6d0   : > { %13385 = vmatpush1.bf16.msra.mxu0 %v13384_v2 }
 0x6d1   : > { %13386 = vmatprep.subr.bf16.mxu0 %v19023_v8 }
 0x6d4   : > { %13388 = vmatpush1.bf16.msra.mxu0 %v13387_v11 }
 0x6d5   : > { %13389 = vmatprep.subr.bf16.mxu0 %v19023_v8 }
 0x6d8   : > { %13391 = vmatpush1.bf16.msra.mxu0 %v13390_v35  ;;  %v13396_v35 = vpack.c.bf16 %v8166_v37, %v8165_v42  ;;  %v8170_v42 = vld [vmem:[#allocation11 + $0x1d8] sm:$0xff] }
 0x6d9   : > { %13392 = vmatprep.subr.bf16.mxu0 %v19023_v8 }
 0x6f1   : > { %v6574_v41 = vpop.f32.mrb[96].mxu1 }
 0x6f2   : > { %v13890_v6 = vadd.f32 %v17552_v30, %v6574_v41  ;;  %v6576_v39 = vpop.f32.mrb[97].mxu1 }
 0x6f4   : > { %v13891_v24 = vadd.f32 %v13890_v6, %v17323_v4  ;;  %v13393_v6 = vpack.c.bf16 %v8164_v61, %v8163_v52  ;;  %v8168_v52 = vld [vmem:[#allocation11 + $0x1c8] sm:$0xff] }
 0x6f5   : > { %v6579_v49 = vpop.f32.mrb[98].mxu1 }
 0x6f6   : > { %v7025_v43 = vadd.f32 %v13891_v24, %v17428_v32  ;;  %v13892_v50 = vadd.f32 %v17552_v30, %v6579_v49  ;;  %v6581_v48 = vpop.f32.mrb[99].mxu1  ;;  %13394 = vmatpush1.bf16.msra.mxu0 %v13393_v6 }
 0x6f7   : > { %13395 = vmatprep.subr.bf16.mxu0 %v19023_v8 }
 0x6f8   : > { %v7183_v45 = vmax.f32 %v7025_v43, 0.0  ;;  %v13893_v0 = vadd.f32 %v13892_v50, %v17327_v38 }
 0x6f9   : > { %v6584_v14 = vpop.f32.mrb[100].mxu1 }
 0x6fa   : > { %7215 = vst [vmem:[#allocation3 + $0x19] sm:$0xff] %v7183_v45  ;;  %v7030_v9 = vadd.f32 %v13893_v0, %v17426_v33  ;;  %v13894_v58 = vadd.f32 %v17552_v30, %v6584_v14  ;;  %v6586_v59 = vpop.f32.mrb[101].mxu1  ;;  %8336 = vmatprep.mubr.f32.mxu0 %v7183_v45  ;;  %13397 = vmatpush1.bf16.msra.mxu0 %v13396_v35 }
 0x6fb   : > { %13398 = vmatprep.subr.bf16.mxu0 %v19023_v8 }
 0x6fc   : > { %v7184_v4 = vmax.f32 %v7030_v9, 0.0  ;;  %v13895_v32 = vadd.f32 %v13894_v58, %v17331_v54 }
 0x6fd   : > { %v6589_v44 = vpop.f32.mrb[102].mxu1 }
 0x6fe   : > { %7216 = vst [vmem:[#allocation3 + $0x21] sm:$0xff] %v7184_v4  ;;  %v7035_v38 = vadd.f32 %v13895_v32, %v17436_v23  ;;  %v13896_v5 = vadd.f32 %v17552_v30, %v6589_v44  ;;  %v6591_v53 = vpop.f32.mrb[103].mxu1 }
 0x700   : > { %v7185_v2 = vmax.f32 %v7035_v38, 0.0  ;;  %v13897_v33 = vadd.f32 %v13896_v5, %v17335_v26 }
 0x701   : > { %v6594_v11 = vpop.f32.mrb[104].mxu1  ;;  %v17566_v41 = vld [vmem:[#allocation3 + $0x18] sm:$0xff] }
 0x702   : > { %7217 = vst [vmem:[#allocation3 + $0x31] sm:$0xff] %v7185_v2  ;;  %v7040_v54 = vadd.f32 %v13897_v33, %v17434_v62  ;;  %v13898_v39 = vadd.f32 %v17552_v30, %v6594_v11  ;;  %v6596_v24 = vpop.f32.mrb[105].mxu1  ;;  %8337 = vmatmul.mubr.f32.gmra.mrb[236].mxu0 %v17566_v41  ;;  %v8167_v33 = vld [vmem:[#allocation11 + $0x1c0] sm:$0xff] }
 0x703   : > { %8341 = vmatprep.mubr.f32.mxu0 %v7184_v4  ;;  %v13399_v6 = vpack.c.bf16 %v8168_v52, %v8167_v33 }
 0x704   : > { %v7186_v23 = vmax.f32 %v7040_v54, 0.0  ;;  %v13899_v49 = vadd.f32 %v13898_v39, %v17339_v56 }
 0x705   : > { %v6599_v26 = vpop.f32.mrb[106].mxu1  ;;  %v17573_v43 = vld [vmem:[#allocation3 + $0x20] sm:$0xff]  ;;  %13400 = vmatpush1.bf16.msra.mxu0 %v13399_v6 }
 0x706   : > { %7218 = vst [vmem:[#allocation3 + $0x39] sm:$0xff] %v7186_v23  ;;  %v7045_v50 = vadd.f32 %v13899_v49, %v17446_v47  ;;  %v13900_v62 = vadd.f32 %v17552_v30, %v6599_v26  ;;  %v6601_v48 = vpop.f32.mrb[107].mxu1  ;;  %8342 = vmatmul.mubr.f32.gmra.mrb[238].mxu0 %v17573_v43  ;;  %13401 = vmatprep.subr.bf16.mxu0 %v19023_v8 }
 0x707   : > { %8346 = vmatprep.mubr.f32.mxu0 %v7185_v2 }
 0x708   : > { %v7187_v45 = vmax.f32 %v7045_v50, 0.0  ;;  %v13901_v0 = vadd.f32 %v13900_v62, %v17345_v46 }
 0x709   : > { %v6604_v56 = vpop.f32.mrb[108].mxu1  ;;  %v17579_v14 = vld [vmem:[#allocation3 + $0x30] sm:$0xff] }
 0x70a   : > { %7219 = vst [vmem:[#allocation3 + $0x49] sm:$0xff] %v7187_v45  ;;  %v7050_v9 = vadd.f32 %v13901_v0, %v17444_v63  ;;  %v13902_v47 = vadd.f32 %v17552_v30, %v6604_v56  ;;  %v6606_v58 = vpop.f32.mrb[109].mxu1  ;;  %8347 = vmatmul.mubr.f32.gmra.mrb[240].mxu0 %v17579_v14  ;;  %v8169_v0 = vld [vmem:[#allocation11 + $0x1d0] sm:$0xff] }
 0x70b   : > { %8351 = vmatprep.mubr.f32.mxu0 %v7186_v23  ;;  %v13402_v35 = vpack.c.bf16 %v8170_v42, %v8169_v0 }
 0x70c   : > { %v7188_v59 = vmax.f32 %v7050_v9, 0.0  ;;  %v13903_v4 = vadd.f32 %v13902_v47, %v17351_v17 }
 0x70d   : > { %v6609_v46 = vpop.f32.mrb[110].mxu1  ;;  %v17586_v32 = vld [vmem:[#allocation3 + $0x32] sm:$0xff]  ;;  %v17590_v38 = vld [vmem:[#allocation3 + $0x3a] sm:$0xff]  ;;  %13403 = vmatpush1.bf16.msra.mxu0 %v13402_v35 }
 0x70e   : > { %v17588_v44 = vld [vmem:[#allocation3 + $0x38] sm:$0xff]  ;;  %7220 = vst [vmem:[#allocation3 + $0x51] sm:$0xff] %v7188_v59  ;;  %v7055_v63 = vadd.f32 %v13903_v4, %v17454_v19  ;;  %v13904_v5 = vadd.f32 %v17552_v30, %v6609_v46  ;;  %v6611_v53 = vpop.f32.mrb[111].mxu1  ;;  %12514 = vmatprep.mubr.f32.mxu1 %v17586_v32  ;;  %13404 = vmatprep.subr.bf16.mxu0 %v19023_v8  ;;  %v8171_v4 = vld [vmem:[#allocation11 + $0x1e0] sm:$0xff] }
 0x70f   : > { %8352 = vmatmul.mubr.f32.gmra.mrb[242].mxu0 %v17588_v44  ;;  %12515 = vmatmul.mubr.f32.vlgmr.msra.gmra.mrb[160].mxu1 %v17590_v38  ;;  %v8172_v46 = vld [vmem:[#allocation11 + $0x1e8] sm:$0xff] }
 0x710   : > { %8356 = vmatprep.mubr.f32.mxu0 %v7187_v45  ;;  %v7189_v17 = vmax.f32 %v7055_v63, 0.0  ;;  %v13905_v2 = vadd.f32 %v13904_v5, %v17355_v12 }
 0x711   : > { %v6614_v61 = vpop.f32.mrb[112].mxu1  ;;  %v17598_v11 = vld [vmem:[#allocation3 + $0x48] sm:$0xff] }
 0x712   : > { %7221 = vst [vmem:[#allocation3 + $0x61] sm:$0xff] %v7189_v17  ;;  %v7060_v19 = vadd.f32 %v13905_v2, %v17452_v60  ;;  %v13906_v54 = vadd.f32 %v17552_v30, %v6614_v61  ;;  %v6616_v39 = vpop.f32.mrb[113].mxu1 }
 0x713   : > { %8357 = vmatmul.mubr.f32.gmra.mrb[244].mxu0 %v17598_v11 }
 0x714   : > { %8361 = vmatprep.mubr.f32.mxu0 %v7188_v59  ;;  %v7190_v24 = vmax.f32 %v7060_v19, 0.0  ;;  %v13907_v23 = vadd.f32 %v13906_v54, %v17360_v3 }
 0x715   : > { %v6619_v12 = vpop.f32.mrb[114].mxu1  ;;  %v17605_v49 = vld [vmem:[#allocation3 + $0x4a] sm:$0xff]  ;;  %v17609_v50 = vld [vmem:[#allocation3 + $0x52] sm:$0xff] }
 0x716   : > { %v17607_v26 = vld [vmem:[#allocation3 + $0x50] sm:$0xff]  ;;  %7222 = vst [vmem:[#allocation3 + $0x69] sm:$0xff] %v7190_v24  ;;  %v7065_v60 = vadd.f32 %v13907_v23, %v17460_v21  ;;  %v13908_v62 = vadd.f32 %v17552_v30, %v6619_v12  ;;  %v6621_v48 = vpop.f32.mrb[115].mxu1  ;;  %12517 = vmatprep.mubr.f32.mxu1 %v17605_v49  ;;  %v8173_v23 = vld [vmem:[#allocation11 + $0x1f0] sm:$0xff]  ;;  %v8174_v12 = vld [vmem:[#allocation11 + $0x1f8] sm:$0xff] }
 0x717   : > { %8362 = vmatmul.mubr.f32.gmra.mrb[246].mxu0 %v17607_v26  ;;  %12518 = vmatmul.mubr.f32.gmra.mrb[162].mxu1 %v17609_v50 }
 0x718   : > { %8366 = vmatprep.mubr.f32.mxu0 %v7189_v17  ;;  %v7191_v3 = vmax.f32 %v7065_v60, 0.0  ;;  %v13909_v45 = vadd.f32 %v13908_v62, %v17365_v13  ;;  %v17624_v13 = vpop.f32.mrb[230].mxu0  ;;  %v13405_v17 = vpack.c.bf16 %v8172_v46, %v8171_v4  ;;  %v13408_v62 = vpack.c.bf16 %v8174_v12, %v8173_v23 }
 0x719   : > { %v6624_v37 = vpop.f32.mrb[116].mxu1  ;;  %v17617_v56 = vld [vmem:[#allocation3 + $0x60] sm:$0xff]  ;;  %v17632_v2 = vpop.f32.mrb[231].mxu0 }
 0x71a   : > { %7223 = vst [vmem:[#allocation3 + $0x79] sm:$0xff] %v7191_v3  ;;  %v7070_v21 = vadd.f32 %v13909_v45, %v17458_v27  ;;  %v13910_v9 = vadd.f32 %v17552_v30, %v6624_v37  ;;  %v6626_v47 = vpop.f32.mrb[117].mxu1  ;;  %13406 = vmatpush1.bf16.msra.mxu0 %v13405_v17 }
 0x71b   : > { %8367 = vmatmul.mubr.f32.gmra.mrb[248].mxu0 %v17617_v56  ;;  %13407 = vmatprep.subr.bf16.mxu0 %v19023_v8 }
 0x71c   : > { %8371 = vmatprep.mubr.f32.mxu0 %v7190_v24  ;;  %v7192_v58 = vmax.f32 %v7070_v21, 0.0  ;;  %v13911_v59 = vadd.f32 %v13910_v9, %v17370_v20 }
 0x71d   : > { %v6629_v63 = vpop.f32.mrb[118].mxu1  ;;  %v17626_v5 = vld [vmem:[#allocation3 + $0x62] sm:$0xff]  ;;  %v17630_v53 = vld [vmem:[#allocation3 + $0x6a] sm:$0xff] }
 0x71e   : > { %v17628_v27 = vld [vmem:[#allocation3 + $0x68] sm:$0xff]  ;;  %7224 = vst [vmem:[#allocation3 + $0x81] sm:$0xff] %v7192_v58  ;;  %v7075_v33 = vadd.f32 %v13911_v59, %v17466_v29  ;;  %v13912_v20 = vadd.f32 %v17552_v30, %v6629_v63  ;;  %v6631_v52 = vpop.f32.mrb[119].mxu1  ;;  %12520 = vmatprep.mubr.f32.mxu1 %v17626_v5  ;;  %13409 = vmatpush1.bf16.msra.mxu0 %v13408_v62 }
 0x71f   : > { %8372 = vmatmul.mubr.f32.gmra.mrb[250].mxu0 %v17628_v27  ;;  %12521 = vmatmul.mubr.f32.gmra.mrb[164].mxu1 %v17630_v53 }
 0x720   : > { %8376 = vmatprep.mubr.f32.mxu0 %v7191_v3  ;;  %v7193_v61 = vmax.f32 %v7075_v33, 0.0  ;;  %v13913_v6 = vadd.f32 %v13912_v20, %v17375_v18  ;;  %13410 = vmatprep.subr.bf16.mxu0 %v19023_v8 }
 0x721   : > { %v6634_v19 = vpop.f32.mrb[120].mxu1  ;;  %v17640_v54 = vld [vmem:[#allocation3 + $0x78] sm:$0xff] }
 0x722   : > { %7225 = vst [vmem:[#allocation3 + $0x91] sm:$0xff] %v7193_v61  ;;  %v7080_v29 = vadd.f32 %v13913_v6, %v17464_v55  ;;  %v13914_v39 = vadd.f32 %v17552_v30, %v6634_v19  ;;  %v6636_v24 = vpop.f32.mrb[121].mxu1 }
 0x723   : > { %8377 = vmatmul.mubr.f32.gmra.mrb[252].mxu0 %v17640_v54 }
 0x724   : > { %8381 = vmatprep.mubr.f32.mxu0 %v7192_v58  ;;  %v7194_v60 = vmax.f32 %v7080_v29, 0.0  ;;  %v13915_v18 = vadd.f32 %v13914_v39, %v17380_v28 }
 0x725   : > { %v6639_v48 = vpop.f32.mrb[122].mxu1  ;;  %v17647_v3 = vld [vmem:[#allocation3 + $0x7a] sm:$0xff]  ;;  %v17651_v0 = vld [vmem:[#allocation3 + $0x82] sm:$0xff] }
 0x726   : > { %v17649_v45 = vld [vmem:[#allocation3 + $0x80] sm:$0xff]  ;;  %7226 = vst [vmem:[#allocation3 + $0x99] sm:$0xff] %v7194_v60  ;;  %v7085_v55 = vadd.f32 %v13915_v18, %v17472_v15  ;;  %v13916_v42 = vadd.f32 %v17552_v30, %v6639_v48  ;;  %v6641_v37 = vpop.f32.mrb[123].mxu1  ;;  %12523 = vmatprep.mubr.f32.mxu1 %v17647_v3 }
 0x727   : > { %8382 = vmatmul.mubr.f32.gmra.mrb[254].mxu0 %v17649_v45  ;;  %12524 = vmatmul.mubr.f32.gmra.mrb[166].mxu1 %v17651_v0 }
 0x728   : > { %8386 = vmatprep.mubr.f32.mxu0 %v7193_v61  ;;  %v7195_v28 = vmax.f32 %v7085_v55, 0.0  ;;  %v13917_v35 = vadd.f32 %v13916_v42, %v17385_v40 }
 0x729   : > { %v6644_v21 = vpop.f32.mrb[124].mxu1  ;;  %v17659_v9 = vld [vmem:[#allocation3 + $0x90] sm:$0xff] }
 0x72a   : > { %7227 = vst [vmem:[#allocation3 + $0xa9] sm:$0xff] %v7195_v28  ;;  %v7090_v15 = vadd.f32 %v13917_v35, %v17470_v31  ;;  %v13918_v47 = vadd.f32 %v17552_v30, %v6644_v21  ;;  %v6646_v58 = vpop.f32.mrb[125].mxu1 }
 0x72b   : > { %8387 = vmatmul.mubr.f32.gmra.mrb[0].mxu0 %v17659_v9 }
 0x72c   : > { %8391 = vmatprep.mubr.f32.mxu0 %v7194_v60  ;;  %v7196_v59 = vmax.f32 %v7090_v15, 0.0  ;;  %v13919_v4 = vadd.f32 %v13918_v47, %v17390_v57 }
 0x72d   : > { %v6649_v46 = vpop.f32.mrb[126].mxu1  ;;  %v17666_v40 = vld [vmem:[#allocation3 + $0x92] sm:$0xff]  ;;  %v17670_v17 = vld [vmem:[#allocation3 + $0x9a] sm:$0xff] }
 0x72e   : > { %v17668_v63 = vld [vmem:[#allocation3 + $0x98] sm:$0xff]  ;;  %7228 = vst [vmem:[#allocation3 + $0xb1] sm:$0xff] %v7196_v59  ;;  %v7095_v33 = vadd.f32 %v13919_v4, %v17478_v51  ;;  %v13920_v31 = vadd.f32 %v17552_v30, %v6649_v46  ;;  %v6651_v20 = vpop.f32.mrb[127].mxu1  ;;  %12526 = vmatprep.mubr.f32.mxu1 %v17666_v40  ;;  %v19117_v46 = vld [vmem:[#allocation36_spill] sm:$0xff] }
 0x72f   : > { %8392 = vmatmul.mubr.f32.gmra.mrb[2].mxu0 %v17668_v63  ;;  %12527 = vmatmul.mubr.f32.gmra.mrb[168].mxu1 %v17670_v17  ;;  %v19118_v20 = vld [vmem:[#allocation49_spill] sm:$0xff] }
 0x730   : > { %8396 = vmatprep.mubr.f32.mxu0 %v7195_v28  ;;  %v7197_v57 = vmax.f32 %v7095_v33, 0.0  ;;  %v13921_v52 = vadd.f32 %v13920_v31, %v17396_v25 }
 0x731   : > { %v6654_v61 = vpop.f32.mrb[128].mxu1  ;;  %v17678_v6 = vld [vmem:[#allocation3 + $0xa8] sm:$0xff] }
 0x732   : > { %7229 = vst [vmem:[#allocation3 + $0xc1] sm:$0xff] %v7197_v57  ;;  %v7100_v19 = vadd.f32 %v13921_v52, %v17476_v16  ;;  %v13922_v51 = vadd.f32 %v17552_v30, %v6654_v61  ;;  %v6656_v29 = vpop.f32.mrb[129].mxu1 }
 0x733   : > { %8397 = vmatmul.mubr.f32.gmra.mrb[4].mxu0 %v17678_v6 }
 0x734   : > { %8401 = vmatprep.mubr.f32.mxu0 %v7196_v59  ;;  %v7198_v39 = vmax.f32 %v7100_v19, 0.0  ;;  %v13923_v24 = vadd.f32 %v13922_v51, %v17402_v22 }
 0x735   : > { %v6659_v23 = vpop.f32.mrb[130].mxu1  ;;  %v17684_v12 = vld [vmem:[#allocation3 + $0xaa] sm:$0xff]  ;;  %v17688_v25 = vld [vmem:[#allocation3 + $0xb2] sm:$0xff] }
 0x736   : > { %v17686_v60 = vld [vmem:[#allocation3 + $0xb0] sm:$0xff]  ;;  %7230 = vst [vmem:[#allocation3 + $0xc9] sm:$0xff] %v7198_v39  ;;  %v7105_v18 = vadd.f32 %v13923_v24, %v17484_v36  ;;  %v13924_v16 = vadd.f32 %v17552_v30, %v6659_v23  ;;  %v6661_v62 = vpop.f32.mrb[131].mxu1  ;;  %12529 = vmatprep.mubr.f32.mxu1 %v17684_v12 }
 0x737   : > { %8402 = vmatmul.mubr.f32.gmra.mrb[6].mxu0 %v17686_v60  ;;  %12530 = vmatmul.mubr.f32.gmra.mrb[170].mxu1 %v17688_v25  ;;  %v19119_v62 = vld [vmem:[#allocation52_spill] sm:$0xff] }
 0x738   : > { %8406 = vmatprep.mubr.f32.mxu0 %v7197_v57  ;;  %v7199_v22 = vmax.f32 %v7105_v18, 0.0  ;;  %v13925_v48 = vadd.f32 %v13924_v16, %v17408_v7 }
 0x739   : > { %v6664_v55 = vpop.f32.mrb[132].mxu1  ;;  %v17696_v42 = vld [vmem:[#allocation3 + $0xc0] sm:$0xff] }
 0x73a   : > { %7231 = vst [vmem:[#allocation3 + $0xd9] sm:$0xff] %v7199_v22  ;;  %v7110_v37 = vadd.f32 %v13925_v48, %v17482_v1  ;;  %v13926_v36 = vadd.f32 %v17552_v30, %v6664_v55  ;;  %v6666_v28 = vpop.f32.mrb[133].mxu1 }
 0x73b   : > { %8407 = vmatmul.mubr.f32.gmra.mrb[8].mxu0 %v17696_v42  ;;  %v19120_v28 = vld [vmem:[#allocation37_spill] sm:$0xff] }
 0x73c   : > { %8411 = vmatprep.mubr.f32.mxu0 %v7198_v39  ;;  %v7200_v35 = vmax.f32 %v7110_v37, 0.0  ;;  %v13927_v21 = vadd.f32 %v13926_v36, %v17414_v34 }
 0x73d   : > { %v6669_v15 = vpop.f32.mrb[134].mxu1  ;;  %v17702_v47 = vld [vmem:[#allocation3 + $0xc2] sm:$0xff]  ;;  %v17706_v7 = vld [vmem:[#allocation3 + $0xca] sm:$0xff] }
 0x73e   : > { %v17704_v58 = vld [vmem:[#allocation3 + $0xc8] sm:$0xff]  ;;  %7232 = vst [vmem:[#allocation3 + $0xe1] sm:$0xff] %v7200_v35  ;;  %v7115_v59 = vadd.f32 %v13927_v21, %v17490_v10  ;;  %v13928_v1 = vadd.f32 %v17552_v30, %v6669_v15  ;;  %v6671_v4 = vpop.f32.mrb[135].mxu1  ;;  %12532 = vmatprep.mubr.f32.mxu1 %v17702_v47 }
 0x73f   : > { %8412 = vmatmul.mubr.f32.gmra.mrb[10].mxu0 %v17704_v58  ;;  %12533 = vmatmul.mubr.f32.gmra.mrb[172].mxu1 %v17706_v7  ;;  %v19121_v4 = vld [vmem:[#allocation51_spill] sm:$0xff] }
 0x740   : > { %8416 = vmatprep.mubr.f32.mxu0 %v7199_v22  ;;  %v7201_v34 = vmax.f32 %v7115_v59, 0.0  ;;  %v13929_v33 = vadd.f32 %v13928_v1, %v19117_v46 }
 0x741   : > { %v17714_v31 = vld [vmem:[#allocation3 + $0xd8] sm:$0xff] }
 0x742   : > { %7233 = vst [vmem:[#allocation3 + $0xf1] sm:$0xff] %v7201_v34  ;;  %v7120_v57 = vadd.f32 %v13929_v33, %v19118_v20 }
 0x743   : > { %8417 = vmatmul.mubr.f32.gmra.mrb[12].mxu0 %v17714_v31 }
 0x744   : > { %8421 = vmatprep.mubr.f32.mxu0 %v7200_v35  ;;  %v7202_v10 = vmax.f32 %v7120_v57, 0.0 }
 0x745   : > { %v17718_v52 = vld [vmem:[#allocation3 + $0xda] sm:$0xff]  ;;  %v17722_v19 = vld [vmem:[#allocation3 + $0xe2] sm:$0xff] }
 0x746   : > { %v17720_v61 = vld [vmem:[#allocation3 + $0xe0] sm:$0xff]  ;;  %7234 = vst [vmem:[#allocation3 + $0xf9] sm:$0xff] %v7202_v10  ;;  %12535 = vmatprep.mubr.f32.mxu1 %v17718_v52 }
 0x747   : > { %8422 = vmatmul.mubr.f32.gmra.mrb[14].mxu0 %v17720_v61  ;;  %12536 = vmatmul.mubr.f32.gmra.mrb[174].mxu1 %v17722_v19 }
 0x748   : > { %8426 = vmatprep.mubr.f32.mxu0 %v7201_v34 }
 0x749   : > { %v17727_v51 = vld [vmem:[#allocation3 + $0xf0] sm:$0xff] }
 0x74b   : > { %8427 = vmatmul.mubr.f32.gmra.mrb[16].mxu0 %v17727_v51 }
 0x74c   : > { %8431 = vmatprep.mubr.f32.mxu0 %v7202_v10 }
 0x74d   : > { %v17730_v29 = vld [vmem:[#allocation3 + $0xf2] sm:$0xff]  ;;  %v17734_v24 = vld [vmem:[#allocation3 + $0xfa] sm:$0xff] }
 0x74e   : > { %v17732_v39 = vld [vmem:[#allocation3 + $0xf8] sm:$0xff]  ;;  %12538 = vmatprep.mubr.f32.mxu1 %v17730_v29 }
 0x74f   : > { %8432 = vmatmul.mubr.f32.gmra.mrb[18].mxu0 %v17732_v39  ;;  %12539 = vmatmul.mubr.f32.gmra.mrb[176].mxu1 %v17734_v24 }
 0x771   : > { %v6899_v23 = vpop.f32.mrb[136].mxu1 }
 0x772   : > { %v13930_v18 = vadd.f32 %v17552_v30, %v6899_v23  ;;  %v6901_v16 = vpop.f32.mrb[137].mxu1  ;;  %v19122_v23 = vld [vmem:[#allocation38_spill] sm:$0xff] }
 0x774   : > { %v7125_v22 = vadd.f32 %v13930_v18, %v19119_v62 }
 0x775   : > { %v6904_v48 = vpop.f32.mrb[138].mxu1 }
 0x776   : > { %v7203_v55 = vmax.f32 %v7125_v22, 0.0  ;;  %v13931_v37 = vadd.f32 %v17552_v30, %v6904_v48  ;;  %v6906_v36 = vpop.f32.mrb[139].mxu1 }
 0x778   : > { %7235 = vst [vmem:[#allocation3 + $0x109] sm:$0xff] %v7203_v55  ;;  %v7130_v35 = vadd.f32 %v13931_v37, %v19120_v28  ;;  %8436 = vmatprep.mubr.f32.mxu0 %v7203_v55  ;;  %v19123_v28 = vld [vmem:[#allocation54_spill] sm:$0xff] }
 0x779   : > { %v6909_v21 = vpop.f32.mrb[140].mxu1 }
 0x77a   : > { %v7204_v15 = vmax.f32 %v7130_v35, 0.0  ;;  %v13932_v59 = vadd.f32 %v17552_v30, %v6909_v21  ;;  %v6911_v1 = vpop.f32.mrb[141].mxu1 }
 0x77c   : > { %7236 = vst [vmem:[#allocation3 + $0x111] sm:$0xff] %v7204_v15  ;;  %v7135_v34 = vadd.f32 %v13932_v59, %v19121_v4 }
 0x77d   : > { %v6914_v46 = vpop.f32.mrb[142].mxu1 }
 0x77e   : > { %v7205_v33 = vmax.f32 %v7135_v34, 0.0  ;;  %v13933_v20 = vadd.f32 %v17552_v30, %v6914_v46  ;;  %v6916_v57 = vpop.f32.mrb[143].mxu1  ;;  %v19124_v34 = vld [vmem:[#allocation39_spill] sm:$0xff] }
 0x77f   : > { %v17746_v10 = vld [vmem:[#allocation3 + $0x108] sm:$0xff] }
 0x780   : > { %7237 = vst [vmem:[#allocation3 + $0x121] sm:$0xff] %v7205_v33  ;;  %v7140_v18 = vadd.f32 %v13933_v20, %v19122_v23  ;;  %8437 = vmatmul.mubr.f32.gmra.mrb[20].mxu0 %v17746_v10 }
 0x781   : > { %v6919_v16 = vpop.f32.mrb[144].mxu1  ;;  %8441 = vmatprep.mubr.f32.mxu0 %v7204_v15 }
 0x782   : > { %v7206_v62 = vmax.f32 %v7140_v18, 0.0  ;;  %v13934_v22 = vadd.f32 %v17552_v30, %v6919_v16  ;;  %v6921_v48 = vpop.f32.mrb[145].mxu1 }
 0x783   : > { %v17751_v55 = vld [vmem:[#allocation3 + $0x10a] sm:$0xff]  ;;  %v17755_v36 = vld [vmem:[#allocation3 + $0x112] sm:$0xff] }
 0x784   : > { %v17753_v37 = vld [vmem:[#allocation3 + $0x110] sm:$0xff]  ;;  %7238 = vst [vmem:[#allocation3 + $0x129] sm:$0xff] %v7206_v62  ;;  %v7145_v35 = vadd.f32 %v13934_v22, %v19123_v28  ;;  %12541 = vmatprep.mubr.f32.mxu1 %v17751_v55 }
 0x785   : > { %8442 = vmatmul.mubr.f32.gmra.mrb[22].mxu0 %v17753_v37  ;;  %v6924_v21 = vpop.f32.mrb[146].mxu1  ;;  %12542 = vmatmul.mubr.f32.gmra.mrb[178].mxu1 %v17755_v36  ;;  %v19127_v48 = vld [vmem:[#allocation53_spill] sm:$0xff] }
 0x786   : > { %8446 = vmatprep.mubr.f32.mxu0 %v7205_v33  ;;  %v7207_v15 = vmax.f32 %v7145_v35, 0.0  ;;  %v13935_v59 = vadd.f32 %v17552_v30, %v6924_v21  ;;  %v6926_v1 = vpop.f32.mrb[147].mxu1 }
 0x787   : > { %v17762_v4 = vld [vmem:[#allocation3 + $0x120] sm:$0xff] }
 0x788   : > { %7239 = vst [vmem:[#allocation3 + $0x139] sm:$0xff] %v7207_v15  ;;  %v7150_v46 = vadd.f32 %v13935_v59, %v19124_v34  ;;  %v19128_v34 = vld [vmem:[#allocation40_spill] sm:$0xff] }
 0x789   : > { %8447 = vmatmul.mubr.f32.gmra.mrb[24].mxu0 %v17762_v4  ;;  %v6929_v20 = vpop.f32.mrb[148].mxu1 }
 0x78a   : > { %8451 = vmatprep.mubr.f32.mxu0 %v7206_v62  ;;  %v7208_v57 = vmax.f32 %v7150_v46, 0.0  ;;  %v13936_v23 = vadd.f32 %v17552_v30, %v6929_v20  ;;  %v6931_v18 = vpop.f32.mrb[149].mxu1 }
 0x78b   : > { %v17767_v16 = vld [vmem:[#allocation3 + $0x122] sm:$0xff]  ;;  %v17771_v22 = vld [vmem:[#allocation3 + $0x12a] sm:$0xff] }
 0x78c   : > { %19125 = vst [vmem:[#allocation55_spill] sm:$0xff] %v17767_v16  ;;  %v17769_v33 = vld [vmem:[#allocation3 + $0x128] sm:$0xff]  ;;  %19126 = vst [vmem:[#allocation25_spill] sm:$0xff] %v17771_v22  ;;  %v7155_v28 = vadd.f32 %v13936_v23, %v19127_v48  ;;  %12544 = vmatprep.mubr.f32.mxu1 %v17767_v16 }
 0x78d   : > { %7240 = vst [vmem:[#allocation3 + $0x141] sm:$0xff] %v7208_v57  ;;  %8452 = vmatmul.mubr.f32.gmra.mrb[26].mxu0 %v17769_v33  ;;  %v6934_v35 = vpop.f32.mrb[150].mxu1  ;;  %12545 = vmatmul.mubr.f32.gmra.mrb[180].mxu1 %v17771_v22 }
 0x78e   : > { %8456 = vmatprep.mubr.f32.mxu0 %v7207_v15  ;;  %v7209_v62 = vmax.f32 %v7155_v28, 0.0  ;;  %v13937_v21 = vadd.f32 %v17552_v30, %v6934_v35  ;;  %v6936_v59 = vpop.f32.mrb[151].mxu1  ;;  %v19131_v35 = vld [vmem:[#allocation56_spill] sm:$0xff] }
 0x78f   : > { %v17778_v1 = vld [vmem:[#allocation3 + $0x138] sm:$0xff] }
 0x790   : > { %7241 = vst [vmem:[#allocation3 + $0x151] sm:$0xff] %v7209_v62  ;;  %v7160_v46 = vadd.f32 %v13937_v21, %v19128_v34 }
 0x791   : > { %8457 = vmatmul.mubr.f32.gmra.mrb[28].mxu0 %v17778_v1  ;;  %v6939_v20 = vpop.f32.mrb[152].mxu1 }
 0x792   : > { %8461 = vmatprep.mubr.f32.mxu0 %v7208_v57  ;;  %v17782_v23 = vmax.f32 %v7160_v46, 0.0  ;;  %v13938_v18 = vadd.f32 %v17552_v30, %v6939_v20  ;;  %v6941_v48 = vpop.f32.mrb[153].mxu1 }
 0x793   : > { %v19133_v48 = vld [vmem:[#allocation41_spill] sm:$0xff] }
 0x794   : > { %19129 = vst [vmem:[#allocation26_spill] sm:$0xff] %v17782_v23  ;;  %v17785_v22 = vld [vmem:[#allocation3 + $0x13a] sm:$0xff]  ;;  %v17789_v28 = vld [vmem:[#allocation3 + $0x142] sm:$0xff]  ;;  %7242 = vst [vmem:[#allocation3 + $0x159] sm:$0xff] %v17782_v23  ;;  %v7165_v59 = vadd.f32 %v13938_v18, %v19131_v35 }
 0x795   : > { %v17787_v15 = vld [vmem:[#allocation3 + $0x140] sm:$0xff]  ;;  %19130 = vst [vmem:[#allocation27_spill] sm:$0xff] %v17789_v28  ;;  %12547 = vmatprep.mubr.f32.mxu1 %v17785_v22  ;;  %v6944_v57 = vpop.f32.mrb[154].mxu1 }
 0x796   : > { %8462 = vmatmul.mubr.f32.gmra.mrb[30].mxu0 %v17787_v15  ;;  %12548 = vmatmul.mubr.f32.gmra.mrb[182].mxu1 %v17789_v28  ;;  %v17796_v21 = vmax.f32 %v7165_v59, 0.0  ;;  %v13939_v34 = vadd.f32 %v17552_v30, %v6944_v57  ;;  %v6946_v46 = vpop.f32.mrb[155].mxu1 }
 0x797   : > { %8466 = vmatprep.mubr.f32.mxu0 %v7209_v62  ;;  %v17799_v20 = vld [vmem:[#allocation3 + $0x150] sm:$0xff] }
 0x798   : > { %19132 = vst [vmem:[#allocation28_spill] sm:$0xff] %v17796_v21  ;;  %7243 = vst [vmem:[#allocation3 + $0x169] sm:$0xff] %v17796_v21  ;;  %v7170_v16 = vadd.f32 %v13939_v34, %v19133_v48 }
 0x799   : > { %v6949_v18 = vpop.f32.mrb[156].mxu1 }
 0x79a   : > { %8467 = vmatmul.mubr.f32.gmra.mrb[32].mxu0 %v17799_v20  ;;  %v17805_v35 = vmax.f32 %v7170_v16, 0.0  ;;  %v13940_v62 = vadd.f32 %v17552_v30, %v6949_v18  ;;  %v6951_v59 = vpop.f32.mrb[157].mxu1 }
 0x79b   : > { %8471 = vmatprep.mubr.f32.mxu0 %v17782_v23  ;;  %v17808_v28 = vld [vmem:[#allocation3 + $0x152] sm:$0xff]  ;;  %v17812_v46 = vld [vmem:[#allocation3 + $0x15a] sm:$0xff] }
 0x79c   : > { %19134 = vst [vmem:[#allocation29_spill] sm:$0xff] %v17805_v35  ;;  %19135 = vst [vmem:[#allocation30_spill] sm:$0xff] %v17808_v28  ;;  %v17810_v57 = vld [vmem:[#allocation3 + $0x158] sm:$0xff]  ;;  %v17816_v34 = vadd.f32 %v13940_v62, %v17632_v2  ;;  %12550 = vmatprep.mubr.f32.mxu1 %v17808_v28 }
 0x79d   : > { %19136 = vst [vmem:[#allocation31_spill] sm:$0xff] %v17812_v46  ;;  %7244 = vst [vmem:[#allocation3 + $0x171] sm:$0xff] %v17805_v35  ;;  %v6954_v16 = vpop.f32.mrb[158].mxu1  ;;  %12551 = vmatmul.mubr.f32.gmra.mrb[184].mxu1 %v17812_v46  ;;  %v8176_v46 = vld [vmem:[#allocation11 + $0x208] sm:$0xff] }
 0x79e   : > { %19137 = vst [vmem:[#allocation32_spill] sm:$0xff] %v17816_v34  ;;  %8472 = vmatmul.mubr.f32.gmra.mrb[34].mxu0 %v17810_v57  ;;  %v18963_v48 = vmax.f32 %v17816_v34, 0.0  ;;  %v13941_v18 = vadd.f32 %v17552_v30, %v6954_v16  ;;  %v6956_v59 = vpop.f32.mrb[159].mxu1  ;;  %v7376_v34 = vld [vmem:[#allocation3 + $0xa] sm:$0xff] }
 0x79f   : > { %8476 = vmatprep.mubr.f32.mxu0 %v17796_v21  ;;  %v17824_v23 = vld [vmem:[#allocation3 + $0x168] sm:$0xff]  ;;  %v8175_v21 = vld [vmem:[#allocation11 + $0x200] sm:$0xff]  ;;  %v8177_v59 = vld [vmem:[#allocation11 + $0x210] sm:$0xff] }
 0x7a0   : > { %7245 = vst [vmem:[#allocation3 + $0x181] sm:$0xff] %v18963_v48  ;;  %v17829_v2 = vadd.f32 %v13941_v18, %v17624_v13  ;;  %v7375_v13 = vld [vmem:[#allocation3 + $0x2] sm:$0xff]  ;;  %v13411_v18 = vpack.c.bf16 %v8176_v46, %v8175_v21 }
 0x7a1   : > { %v8178_v48 = vld [vmem:[#allocation11 + $0x218] sm:$0xff]  ;;  %v8181_v21 = vld [vmem:[#allocation11 + $0x230] sm:$0xff] }
 0x7a2   : > { %19138 = vst [vmem:[#allocation33_spill] sm:$0xff] %v17829_v2  ;;  %8477 = vmatmul.mubr.f32.gmra.mrb[36].mxu0 %v17824_v23  ;;  %v18965_v62 = vmax.f32 %v17829_v2, 0.0  ;;  %v8179_v2 = vld [vmem:[#allocation11 + $0x220] sm:$0xff]  ;;  %v8182_v46 = vld [vmem:[#allocation11 + $0x238] sm:$0xff] }
 0x7a3   : > { %8481 = vmatprep.mubr.f32.mxu0 %v17805_v35 }
 0x7a4   : > { %v17834_v28 = vld [vmem:[#allocation3 + $0x16a] sm:$0xff]  ;;  %v17838_v16 = vld [vmem:[#allocation3 + $0x172] sm:$0xff]  ;;  %7246 = vst [vmem:[#allocation3 + $0x189] sm:$0xff] %v18965_v62  ;;  %v13414_v62 = vpack.c.bf16 %v8178_v48, %v8177_v59  ;;  %v13420_v48 = vpack.c.bf16 %v8182_v46, %v8181_v21 }
 0x7a5   : > { %19139 = vst [vmem:[#allocation34_spill] sm:$0xff] %v17834_v28  ;;  %v17836_v30 = vld [vmem:[#allocation3 + $0x170] sm:$0xff]  ;;  %19140 = vst [vmem:[#allocation42_spill] sm:$0xff] %v17838_v16  ;;  %12553 = vmatprep.mubr.f32.mxu1 %v17834_v28  ;;  %v8188_v59 = vld [vmem:[#allocation11 + $0x268] sm:$0xff] }
 0x7a6   : > { %8482 = vmatmul.mubr.f32.gmra.mrb[38].mxu0 %v17836_v30  ;;  %12554 = vmatmul.mubr.f32.gmra.mrb[186].mxu1 %v17838_v16  ;;  %v8180_v16 = vld [vmem:[#allocation11 + $0x228] sm:$0xff]  ;;  %v8190_v21 = vld [vmem:[#allocation11 + $0x278] sm:$0xff] }
 0x7a7   : > { %8551 = vmatprep.mubr.f32.mxu0 %v17566_v41  ;;  %v13417_v41 = vpack.c.bf16 %v8180_v16, %v8179_v2  ;;  %v8186_v16 = vld [vmem:[#allocation11 + $0x258] sm:$0xff]  ;;  %v8192_v46 = vld [vmem:[#allocation11 + $0x288] sm:$0xff] }
 0x7aa   : > { %8552 = vmatmul.mubr.f32.vlgmr.msra.gmra.mrb[232].mxu0 %v7375_v13  ;;  %v17860_v13 = vld [vmem:[#allocation3 + $0x22] sm:$0xff] }
 0x7ab   : > { %8556 = vmatprep.mubr.f32.mxu0 %v17573_v43  ;;  %13412 = vmatpush1.bf16.msra.mxu0 %v13411_v18  ;;  %v17848_v35 = vld [vmem:[#allocation3 + $0x182] sm:$0xff]  ;;  %v17850_v28 = vld [vmem:[#allocation3 + $0x18a] sm:$0xff]  ;;  %v17855_v43 = vld [vmem:[#allocation3 + $0x1a] sm:$0xff] }
 0x7ac   : > { %13413 = vmatprep.subr.bf16.mxu0 %v19023_v8  ;;  %12556 = vmatprep.mubr.f32.mxu1 %v17848_v35  ;;  %v8187_v18 = vld [vmem:[#allocation11 + $0x260] sm:$0xff] }
 0x7ad   : > { %12557 = vmatmul.mubr.f32.gmra.mrb[188].mxu1 %v17850_v28 }
 0x7ae   : > { %8557 = vmatmul.mubr.f32.gmra.mrb[234].mxu0 %v7376_v34  ;;  %v8183_v34 = vld [vmem:[#allocation11 + $0x240] sm:$0xff] }
 0x7af   : > { %8561 = vmatprep.mubr.f32.mxu0 %v17579_v14  ;;  %13415 = vmatpush1.bf16.msra.mxu0 %v13414_v62  ;;  %v8184_v14 = vld [vmem:[#allocation11 + $0x248] sm:$0xff]  ;;  %v8185_v62 = vld [vmem:[#allocation11 + $0x250] sm:$0xff] }
 0x7b0   : > { %13416 = vmatprep.subr.bf16.mxu0 %v19023_v8  ;;  %v13423_v2 = vpack.c.bf16 %v8184_v14, %v8183_v34  ;;  %v8196_v34 = vld [vmem:[#allocation11 + $0x2a8] sm:$0xff]  ;;  %v8198_v14 = vld [vmem:[#allocation11 + $0x2b8] sm:$0xff] }
 0x7b2   : > { %8562 = vmatmul.mubr.f32.gmra.mrb[236].mxu0 %v17855_v43 }
 0x7b3   : > { %8566 = vmatprep.mubr.f32.mxu0 %v17588_v44  ;;  %13418 = vmatpush1.bf16.msra.mxu0 %v13417_v41  ;;  %v13426_v44 = vpack.c.bf16 %v8186_v16, %v8185_v62  ;;  %v8189_v41 = vld [vmem:[#allocation11 + $0x270] sm:$0xff]  ;;  %v8202_v62 = vld [vmem:[#allocation11 + $0x2d8] sm:$0xff]  ;;  %v8204_v16 = vld [vmem:[#allocation11 + $0x2e8] sm:$0xff] }
 0x7b4   : > { %13419 = vmatprep.subr.bf16.mxu0 %v19023_v8 }
 0x7b6   : > { %8567 = vmatmul.mubr.f32.gmra.mrb[238].mxu0 %v17860_v13 }
 0x7b7   : > { %8571 = vmatprep.mubr.f32.mxu0 %v17598_v11  ;;  %13421 = vmatpush1.bf16.msra.mxu0 %v13420_v48  ;;  %v13429_v11 = vpack.c.bf16 %v8188_v59, %v8187_v18  ;;  %v8194_v48 = vld [vmem:[#allocation11 + $0x298] sm:$0xff] }
 0x7b8   : > { %13422 = vmatprep.subr.bf16.mxu0 %v19023_v8 }
 0x7ba   : > { %8572 = vmatmul.mubr.f32.gmra.mrb[240].mxu0 %v17586_v32  ;;  %v13432_v32 = vpack.c.bf16 %v8190_v21, %v8189_v41  ;;  %v8209_v21 = vld [vmem:[#allocation11 + $0x310] sm:$0xff] }
 0x7bb   : > { %8576 = vmatprep.mubr.f32.mxu0 %v17607_v26  ;;  %13424 = vmatpush1.bf16.msra.mxu0 %v13423_v2  ;;  %v8191_v26 = vld [vmem:[#allocation11 + $0x280] sm:$0xff]  ;;  %v8200_v2 = vld [vmem:[#allocation11 + $0x2c8] sm:$0xff] }
 0x7bc   : > { %13425 = vmatprep.subr.bf16.mxu0 %v19023_v8 }
 0x7be   : > { %8577 = vmatmul.mubr.f32.gmra.mrb[242].mxu0 %v17590_v38  ;;  %v13435_v38 = vpack.c.bf16 %v8192_v46, %v8191_v26  ;;  %v7503_v26 = vld [vmem:[#allocation3 + $0x19] sm:$0xff] }
 0x7bf   : > { %8581 = vmatprep.mubr.f32.mxu0 %v17617_v56  ;;  %13427 = vmatpush1.bf16.msra.mxu0 %v13426_v44  ;;  %v8193_v56 = vld [vmem:[#allocation11 + $0x290] sm:$0xff]  ;;  %v8206_v44 = vld [vmem:[#allocation11 + $0x2f8] sm:$0xff] }
 0x7c0   : > { %13428 = vmatprep.subr.bf16.mxu0 %v19023_v8 }
 0x7c2   : > { %8582 = vmatmul.mubr.f32.gmra.mrb[244].mxu0 %v17605_v49  ;;  %v13438_v49 = vpack.c.bf16 %v8194_v48, %v8193_v56  ;;  %v8212_v56 = vld [vmem:[#allocation11 + $0x328] sm:$0xff]  ;;  %v7504_v48 = vld [vmem:[#allocation3 + $0x21] sm:$0xff] }
 0x7c3   : > { %8586 = vmatprep.mubr.f32.mxu0 %v17628_v27  ;;  %13430 = vmatpush1.bf16.msra.mxu0 %v13429_v11  ;;  %v8195_v27 = vld [vmem:[#allocation11 + $0x2a0] sm:$0xff]  ;;  %v19147_v11 = vld [vmem:[#allocation42_spill] sm:$0xff] }
 0x7c4   : > { %13431 = vmatprep.subr.bf16.mxu0 %v19023_v8 }
 0x7c6   : > { %8587 = vmatmul.mubr.f32.gmra.mrb[246].mxu0 %v17609_v50  ;;  %v13441_v50 = vpack.c.bf16 %v8196_v34, %v8195_v27  ;;  %v8214_v34 = vld [vmem:[#allocation11 + $0x338] sm:$0xff] }
 0x7c7   : > { %8591 = vmatprep.mubr.f32.mxu0 %v17640_v54  ;;  %13433 = vmatpush1.bf16.msra.mxu0 %v13432_v32  ;;  %v8197_v54 = vld [vmem:[#allocation11 + $0x2b0] sm:$0xff]  ;;  %v8210_v32 = vld [vmem:[#allocation11 + $0x318] sm:$0xff] }
 0x7c8   : > { %13434 = vmatprep.subr.bf16.mxu0 %v19023_v8  ;;  %v13462_v46 = vpack.c.bf16 %v8210_v32, %v8209_v21  ;;  %v17993_v21 = vld [vmem:[#allocation3 + $0x61] sm:$0xff]  ;;  %v7574_v32 = vld [vmem:[#allocation3 + $0x6a] sm:$0xff] }
 0x7ca   : > { %8592 = vmatmul.mubr.f32.gmra.mrb[248].mxu0 %v17626_v5  ;;  %v13444_v5 = vpack.c.bf16 %v8198_v14, %v8197_v54  ;;  %v8215_v14 = vld [vmem:[#allocation11 + $0x340] sm:$0xff] }
 0x7cb   : > { %8596 = vmatprep.mubr.f32.mxu0 %v17649_v45  ;;  %13436 = vmatpush1.bf16.msra.mxu0 %v13435_v38  ;;  %v8199_v45 = vld [vmem:[#allocation11 + $0x2c0] sm:$0xff] }
 0x7cc   : > { %13437 = vmatprep.subr.bf16.mxu0 %v19023_v8  ;;  %v8211_v38 = vld [vmem:[#allocation11 + $0x320] sm:$0xff] }
 0x7cd   : > { %v13465_v27 = vpack.c.bf16 %v8212_v56, %v8211_v38  ;;  %v8224_v38 = vld [vmem:[#allocation11 + $0x388] sm:$0xff]  ;;  %v17997_v56 = vld [vmem:[#allocation3 + $0x69] sm:$0xff] }
 0x7ce   : > { %8597 = vmatmul.mubr.f32.gmra.mrb[250].mxu0 %v17630_v53  ;;  %v13447_v53 = vpack.c.bf16 %v8200_v2, %v8199_v45  ;;  %v17981_v45 = vld [vmem:[#allocation3 + $0x39] sm:$0xff]  ;;  %v7571_v2 = vld [vmem:[#allocation3 + $0x4a] sm:$0xff] }
 0x7cf   : > { %8601 = vmatprep.mubr.f32.mxu0 %v17659_v9  ;;  %13439 = vmatpush1.bf16.msra.mxu0 %v13438_v49  ;;  %v8201_v9 = vld [vmem:[#allocation11 + $0x2d0] sm:$0xff]  ;;  %v7569_v49 = vld [vmem:[#allocation3 + $0x32] sm:$0xff] }
 0x7d0   : > { %13440 = vmatprep.subr.bf16.mxu0 %v19023_v8 }
 0x7d2   : > { %8602 = vmatmul.mubr.f32.gmra.mrb[252].mxu0 %v17647_v3  ;;  %v13450_v3 = vpack.c.bf16 %v8202_v62, %v8201_v9  ;;  %v8217_v9 = vld [vmem:[#allocation11 + $0x350] sm:$0xff]  ;;  %v8218_v62 = vld [vmem:[#allocation11 + $0x358] sm:$0xff] }
 0x7d3   : > { %8606 = vmatprep.mubr.f32.mxu0 %v17668_v63  ;;  %13442 = vmatpush1.bf16.msra.mxu0 %v13441_v50  ;;  %v8203_v63 = vld [vmem:[#allocation11 + $0x2e0] sm:$0xff] }
 0x7d4   : > { %13443 = vmatprep.subr.bf16.mxu0 %v19023_v8  ;;  %v17977_v50 = vld [vmem:[#allocation3 + $0x31] sm:$0xff] }
 0x7d6   : > { %8607 = vmatmul.mubr.f32.gmra.mrb[254].mxu0 %v17651_v0  ;;  %v13453_v0 = vpack.c.bf16 %v8204_v16, %v8203_v63  ;;  %v7572_v63 = vld [vmem:[#allocation3 + $0x52] sm:$0xff]  ;;  %v13474_v16 = vpack.c.bf16 %v8218_v62, %v8217_v9  ;;  %v8229_v62 = vld [vmem:[#allocation11 + $0x3b0] sm:$0xff] }
 0x7d7   : > { %8611 = vmatprep.mubr.f32.mxu0 %v17678_v6  ;;  %13445 = vmatpush1.bf16.msra.mxu0 %v13444_v5  ;;  %v8205_v6 = vld [vmem:[#allocation11 + $0x2f0] sm:$0xff]  ;;  %v8216_v5 = vld [vmem:[#allocation11 + $0x348] sm:$0xff] }
 0x7d8   : > { %13446 = vmatprep.subr.bf16.mxu0 %v19023_v8 }
 0x7da   : > { %8612 = vmatmul.mubr.f32.gmra.mrb[0].mxu0 %v17666_v40 }
 0x7db   : > { %8616 = vmatprep.mubr.f32.mxu0 %v17686_v60  ;;  %13448 = vmatpush1.bf16.msra.mxu0 %v13447_v53  ;;  %v13456_v60 = vpack.c.bf16 %v8206_v44, %v8205_v6  ;;  %v13471_v53 = vpack.c.bf16 %v8216_v5, %v8215_v14  ;;  %v8220_v6 = vld [vmem:[#allocation11 + $0x368] sm:$0xff]  ;;  %v8227_v14 = vld [vmem:[#allocation11 + $0x3a0] sm:$0xff] }
 0x7dc   : > { %13449 = vmatprep.subr.bf16.mxu0 %v19023_v8  ;;  %v17989_v44 = vld [vmem:[#allocation3 + $0x51] sm:$0xff] }
 0x7dd   : > { %v8228_v5 = vld [vmem:[#allocation11 + $0x3a8] sm:$0xff] }
 0x7de   : > { %8617 = vmatmul.mubr.f32.gmra.mrb[2].mxu0 %v17670_v17  ;;  %v13489_v9 = vpack.c.bf16 %v8228_v5, %v8227_v14  ;;  %v18025_v14 = vld [vmem:[#allocation3 + $0xb1] sm:$0xff]  ;;  %v7581_v5 = vld [vmem:[#allocation3 + $0xc2] sm:$0xff] }
 0x7df   : > { %8621 = vmatprep.mubr.f32.mxu0 %v17696_v42  ;;  %13451 = vmatpush1.bf16.msra.mxu0 %v13450_v3  ;;  %v17985_v3 = vld [vmem:[#allocation3 + $0x49] sm:$0xff] }
 0x7e0   : > { %13452 = vmatprep.subr.bf16.mxu0 %v19023_v8 }
 0x7e2   : > { %8622 = vmatmul.mubr.f32.gmra.mrb[4].mxu0 %v17684_v12  ;;  %v17898_v40 = vpop.f32.mrb[160].mxu1 }
 0x7e3   : > { %8626 = vmatprep.mubr.f32.mxu0 %v17704_v58  ;;  %13454 = vmatpush1.bf16.msra.mxu0 %v13453_v0  ;;  %v17900_v18 = vpop.f32.mrb[161].mxu1  ;;  %v8219_v0 = vld [vmem:[#allocation11 + $0x360] sm:$0xff] }
 0x7e4   : > { %13455 = vmatprep.subr.bf16.mxu0 %v19023_v8 }
 0x7e6   : > { %8627 = vmatmul.mubr.f32.gmra.mrb[6].mxu0 %v17688_v25 }
 0x7e7   : > { %8631 = vmatprep.mubr.f32.mxu0 %v17714_v31  ;;  %13457 = vmatpush1.bf16.msra.mxu0 %v13456_v60  ;;  %v7573_v60 = vld [vmem:[#allocation3 + $0x62] sm:$0xff] }
 0x7e8   : > { %13458 = vmatprep.subr.bf16.mxu0 %v19023_v8 }
 0x7ea   : > { %8632 = vmatmul.mubr.f32.gmra.mrb[8].mxu0 %v17702_v47  ;;  %v17908_v17 = vpop.f32.mrb[162].mxu1 }
 0x7eb   : > { %8636 = vmatprep.mubr.f32.mxu0 %v17720_v61  ;;  %v17910_v12 = vpop.f32.mrb[163].mxu1 }
 0x7ee   : > { %8637 = vmatmul.mubr.f32.gmra.mrb[10].mxu0 %v17706_v7 }
 0x7ef   : > { %8641 = vmatprep.mubr.f32.mxu0 %v17727_v51  ;;  %v19142_v51 = vld [vmem:[#allocation25_spill] sm:$0xff] }
 0x7f2   : > { %8642 = vmatmul.mubr.f32.gmra.mrb[12].mxu0 %v17718_v52  ;;  %v17916_v25 = vpop.f32.mrb[164].mxu1  ;;  %v19141_v52 = vld [vmem:[#allocation55_spill] sm:$0xff] }
 0x7f3   : > { %8646 = vmatprep.mubr.f32.mxu0 %v17732_v39  ;;  %v17918_v42 = vpop.f32.mrb[165].mxu1 }
 0x7f6   : > { %8647 = vmatmul.mubr.f32.gmra.mrb[14].mxu0 %v17722_v19 }
 0x7f7   : > { %8651 = vmatprep.mubr.f32.mxu0 %v17746_v10  ;;  %v19144_v10 = vld [vmem:[#allocation30_spill] sm:$0xff] }
 0x7fa   : > { %8652 = vmatmul.mubr.f32.gmra.mrb[16].mxu0 %v17730_v29  ;;  %v17924_v47 = vpop.f32.mrb[166].mxu1 }
 0x7fb   : > { %8656 = vmatprep.mubr.f32.mxu0 %v17753_v37  ;;  %v17926_v58 = vpop.f32.mrb[167].mxu1 }
 0x7fe   : > { %8657 = vmatmul.mubr.f32.gmra.mrb[18].mxu0 %v17734_v24  ;;  %v19143_v24 = vld [vmem:[#allocation27_spill] sm:$0xff] }
 0x7ff   : > { %8661 = vmatprep.mubr.f32.mxu0 %v17762_v4 }
 0x802   : > { %8662 = vmatmul.mubr.f32.gmra.mrb[20].mxu0 %v17751_v55  ;;  %v17932_v7 = vpop.f32.mrb[168].mxu1 }
 0x803   : > { %8666 = vmatprep.mubr.f32.mxu0 %v17769_v33  ;;  %v17934_v31 = vpop.f32.mrb[169].mxu1  ;;  %v19145_v33 = vld [vmem:[#allocation31_spill] sm:$0xff] }
 0x806   : > { %8667 = vmatmul.mubr.f32.gmra.mrb[22].mxu0 %v17755_v36 }
 0x807   : > { %8671 = vmatprep.mubr.f32.mxu0 %v17778_v1  ;;  %v17961_v1 = vld [vmem:[#allocation3 + $0x180] sm:$0xff] }
 0x80a   : > { %8672 = vmatmul.mubr.f32.gmra.mrb[24].mxu0 %v19141_v52  ;;  %v17940_v61 = vpop.f32.mrb[170].mxu1 }
 0x80b   : > { %8676 = vmatprep.mubr.f32.mxu0 %v17787_v15  ;;  %v17942_v19 = vpop.f32.mrb[171].mxu1  ;;  %v19146_v15 = vld [vmem:[#allocation34_spill] sm:$0xff] }
 0x80e   : > { %8677 = vmatmul.mubr.f32.gmra.mrb[26].mxu0 %v19142_v51 }
 0x80f   : > { %8681 = vmatprep.mubr.f32.mxu0 %v17799_v20  ;;  %v17965_v20 = vld [vmem:[#allocation3 + $0x188] sm:$0xff] }
 0x812   : > { %8682 = vmatmul.mubr.f32.gmra.mrb[28].mxu0 %v17785_v22  ;;  %v17948_v29 = vpop.f32.mrb[172].mxu1 }
 0x813   : > { %8686 = vmatprep.mubr.f32.mxu0 %v17810_v57  ;;  %v17950_v39 = vpop.f32.mrb[173].mxu1  ;;  %v8207_v57 = vld [vmem:[#allocation11 + $0x300] sm:$0xff] }
 0x816   : > { %8687 = vmatmul.mubr.f32.gmra.mrb[30].mxu0 %v19143_v24 }
 0x817   : > { %8691 = vmatprep.mubr.f32.mxu0 %v17824_v23 }
 0x81a   : > { %8692 = vmatmul.mubr.f32.gmra.mrb[32].mxu0 %v19144_v10  ;;  %v17956_v37 = vpop.f32.mrb[174].mxu1 }
 0x81b   : > { %8696 = vmatprep.mubr.f32.mxu0 %v17836_v30  ;;  %v17958_v4 = vpop.f32.mrb[175].mxu1  ;;  %v8208_v30 = vld [vmem:[#allocation11 + $0x308] sm:$0xff] }
 0x81c   : > { %v13459_v41 = vpack.c.bf16 %v8208_v30, %v8207_v57  ;;  %v13477_v57 = vpack.c.bf16 %v8220_v6, %v8219_v0  ;;  %v8221_v30 = vld [vmem:[#allocation11 + $0x370] sm:$0xff] }
 0x81d   : > { %v7578_v0 = vld [vmem:[#allocation3 + $0x9a] sm:$0xff] }
 0x81e   : > { %8697 = vmatmul.mubr.f32.gmra.mrb[34].mxu0 %v19145_v33 }
 0x81f   : > { %8701 = vmatprep.mubr.f32.mxu0 %v17961_v1 }
 0x822   : > { %8702 = vmatmul.mubr.f32.gmra.mrb[36].mxu0 %v19146_v15  ;;  %v17968_v23 = vpop.f32.mrb[176].mxu1 }
 0x823   : > { %8706 = vmatprep.mubr.f32.mxu0 %v17965_v20  ;;  %v17970_v59 = vpop.f32.mrb[177].mxu1 }
 0x826   : > { %8707 = vmatmul.mubr.f32.gmra.mrb[38].mxu0 %v19147_v11 }
 0x827   : > { %8776 = vmatprep.mubr.f32.mxu0 %v17855_v43  ;;  %v8213_v43 = vld [vmem:[#allocation11 + $0x330] sm:$0xff] }
 0x828   : > { %v13468_v54 = vpack.c.bf16 %v8214_v34, %v8213_v43  ;;  %v8226_v43 = vld [vmem:[#allocation11 + $0x398] sm:$0xff]  ;;  %v18001_v34 = vld [vmem:[#allocation3 + $0x79] sm:$0xff] }
 0x82a   : > { %8777 = vmatmul.mubr.f32.vlgmr.msra.gmra.mrb[232].mxu0 %v7503_v26 }
 0x82b   : > { %8781 = vmatprep.mubr.f32.mxu0 %v17860_v13  ;;  %13460 = vmatpush1.bf16.msra.mxu0 %v13459_v41  ;;  %v7570_v13 = vld [vmem:[#allocation3 + $0x3a] sm:$0xff]  ;;  %v8222_v41 = vld [vmem:[#allocation11 + $0x378] sm:$0xff] }
 0x82c   : > { %13461 = vmatprep.subr.bf16.mxu0 %v19023_v8  ;;  %v13480_v26 = vpack.c.bf16 %v8222_v41, %v8221_v30  ;;  %v18013_v30 = vld [vmem:[#allocation3 + $0x99] sm:$0xff]  ;;  %v7579_v41 = vld [vmem:[#allocation3 + $0xaa] sm:$0xff] }
 0x82e   : > { %8782 = vmatmul.mubr.f32.gmra.mrb[234].mxu0 %v7504_v48  ;;  %v7575_v48 = vld [vmem:[#allocation3 + $0x7a] sm:$0xff] }
 0x82f   : > { %8786 = vmatprep.mubr.f32.mxu0 %v7569_v49  ;;  %13463 = vmatpush1.bf16.msra.mxu0 %v13462_v46  ;;  %v8223_v46 = vld [vmem:[#allocation11 + $0x380] sm:$0xff] }
 0x830   : > { %13464 = vmatprep.subr.bf16.mxu0 %v19023_v8  ;;  %v13483_v49 = vpack.c.bf16 %v8224_v38, %v8223_v46  ;;  %v8234_v46 = vld [vmem:[#allocation11 + $0x3d8] sm:$0xff] }
 0x831   : > { %v18017_v38 = vld [vmem:[#allocation3 + $0xa9] sm:$0xff] }
 0x832   : > { %8787 = vmatmul.mubr.f32.gmra.mrb[236].mxu0 %v17977_v50 }
 0x833   : > { %8791 = vmatprep.mubr.f32.mxu0 %v7570_v13  ;;  %13466 = vmatpush1.bf16.msra.mxu0 %v13465_v27  ;;  %v8225_v27 = vld [vmem:[#allocation11 + $0x390] sm:$0xff] }
 0x834   : > { %13467 = vmatprep.subr.bf16.mxu0 %v19023_v8  ;;  %v7576_v13 = vld [vmem:[#allocation3 + $0x82] sm:$0xff] }
 0x836   : > { %8792 = vmatmul.mubr.f32.gmra.mrb[238].mxu0 %v17981_v45 }
 0x837   : > { %8796 = vmatprep.mubr.f32.mxu0 %v7571_v2  ;;  %13469 = vmatpush1.bf16.msra.mxu0 %v13468_v54  ;;  %v13486_v54 = vpack.c.bf16 %v8226_v43, %v8225_v27  ;;  %v18005_v2 = vld [vmem:[#allocation3 + $0x81] sm:$0xff] }
 0x838   : > { %13470 = vmatprep.subr.bf16.mxu0 %v19023_v8 }
 0x83a   : > { %8797 = vmatmul.mubr.f32.gmra.mrb[240].mxu0 %v17985_v3 }
 0x83b   : > { %8801 = vmatprep.mubr.f32.mxu0 %v7572_v63  ;;  %13472 = vmatpush1.bf16.msra.mxu0 %v13471_v53  ;;  %v7577_v53 = vld [vmem:[#allocation3 + $0x92] sm:$0xff]  ;;  %v8230_v63 = vld [vmem:[#allocation11 + $0x3b8] sm:$0xff] }
 0x83c   : > { %13473 = vmatprep.subr.bf16.mxu0 %v19023_v8  ;;  %v13492_v6 = vpack.c.bf16 %v8230_v63, %v8229_v62  ;;  %v8238_v62 = vld [vmem:[#allocation11 + $0x3f8] sm:$0xff] }
 0x83d   : > { %v18029_v63 = vld [vmem:[#allocation3 + $0xc1] sm:$0xff] }
 0x83e   : > { %8802 = vmatmul.mubr.f32.gmra.mrb[242].mxu0 %v17989_v44 }
 0x83f   : > { %8806 = vmatprep.mubr.f32.mxu0 %v7573_v60  ;;  %13475 = vmatpush1.bf16.msra.mxu0 %v13474_v16  ;;  %v18009_v16 = vld [vmem:[#allocation3 + $0x91] sm:$0xff] }
 0x840   : > { %13476 = vmatprep.subr.bf16.mxu0 %v19023_v8  ;;  %v8231_v60 = vld [vmem:[#allocation11 + $0x3c0] sm:$0xff] }
 0x842   : > { %8807 = vmatmul.mubr.f32.gmra.mrb[244].mxu0 %v17993_v21 }
 0x843   : > { %8811 = vmatprep.mubr.f32.mxu0 %v7574_v32  ;;  %13478 = vmatpush1.bf16.msra.mxu0 %v13477_v57  ;;  %v8232_v57 = vld [vmem:[#allocation11 + $0x3c8] sm:$0xff] }
 0x844   : > { %13479 = vmatprep.subr.bf16.mxu0 %v19023_v8  ;;  %v13495_v32 = vpack.c.bf16 %v8232_v57, %v8231_v60 }
 0x846   : > { %8812 = vmatmul.mubr.f32.gmra.mrb[246].mxu0 %v17997_v56 }
 0x847   : > { %8816 = vmatprep.mubr.f32.mxu0 %v7575_v48  ;;  %13481 = vmatpush1.bf16.msra.mxu0 %v13480_v26  ;;  %v8233_v26 = vld [vmem:[#allocation11 + $0x3d0] sm:$0xff] }
 0x848   : > { %13482 = vmatprep.subr.bf16.mxu0 %v19023_v8  ;;  %v13498_v43 = vpack.c.bf16 %v8234_v46, %v8233_v26  ;;  %v18040_v26 = vld [vmem:[#allocation3 + $0xd9] sm:$0xff] }
 0x84a   : > { %8817 = vmatmul.mubr.f32.gmra.mrb[248].mxu0 %v18001_v34 }
 0x84b   : > { %8821 = vmatprep.mubr.f32.mxu0 %v7576_v13  ;;  %13484 = vmatpush1.bf16.msra.mxu0 %v13483_v49  ;;  %v7580_v49 = vld [vmem:[#allocation3 + $0xb2] sm:$0xff] }
 0x84c   : > { %13485 = vmatprep.subr.bf16.mxu0 %v19023_v8  ;;  %v8235_v13 = vld [vmem:[#allocation11 + $0x3e0] sm:$0xff] }
 0x84e   : > { %8822 = vmatmul.mubr.f32.gmra.mrb[250].mxu0 %v18005_v2 }
 0x84f   : > { %8826 = vmatprep.mubr.f32.mxu0 %v7577_v53  ;;  %13487 = vmatpush1.bf16.msra.mxu0 %v13486_v54  ;;  %v8236_v54 = vld [vmem:[#allocation11 + $0x3e8] sm:$0xff] }
 0x850   : > { %13488 = vmatprep.subr.bf16.mxu0 %v19023_v8  ;;  %v13501_v53 = vpack.c.bf16 %v8236_v54, %v8235_v13  ;;  %v18047_v13 = vld [vmem:[#allocation3 + $0xe1] sm:$0xff]  ;;  %v7585_v54 = vld [vmem:[#allocation3 + $0xf2] sm:$0xff] }
 0x852   : > { %8827 = vmatmul.mubr.f32.gmra.mrb[252].mxu0 %v18009_v16 }
 0x853   : > { %8831 = vmatprep.mubr.f32.mxu0 %v7578_v0  ;;  %13490 = vmatpush1.bf16.msra.mxu0 %v13489_v9  ;;  %v8237_v9 = vld [vmem:[#allocation11 + $0x3f0] sm:$0xff] }
 0x854   : > { %13491 = vmatprep.subr.bf16.mxu0 %v19023_v8  ;;  %v13504_v57 = vpack.c.bf16 %v8238_v62, %v8237_v9  ;;  %v7586_v9 = vld [vmem:[#allocation3 + $0xfa] sm:$0xff] }
 0x856   : > { %8832 = vmatmul.mubr.f32.gmra.mrb[254].mxu0 %v18013_v30 }
 0x857   : > { %8836 = vmatprep.mubr.f32.mxu0 %v7579_v41  ;;  %13493 = vmatpush1.bf16.msra.mxu0 %v13492_v6  ;;  %v7582_v6 = vld [vmem:[#allocation3 + $0xca] sm:$0xff] }
 0x858   : > { %13494 = vmatprep.subr.bf16.mxu0 %v19023_v8  ;;  %v18019_v48 = vpop.f32.mrb[178].mxu1  ;;  %v18037_v41 = vld [vmem:[#allocation3 + $0xc9] sm:$0xff] }
 0x859   : > { %v18022_v27 = vpop.f32.mrb[179].mxu1 }
 0x85a   : > { %8837 = vmatmul.mubr.f32.gmra.mrb[0].mxu0 %v18017_v38 }
 0x85b   : > { %8841 = vmatprep.mubr.f32.mxu0 %v7580_v49  ;;  %13496 = vmatpush1.bf16.msra.mxu0 %v13495_v32  ;;  %v7583_v32 = vld [vmem:[#allocation3 + $0xda] sm:$0xff]  ;;  %v7584_v49 = vld [vmem:[#allocation3 + $0xe2] sm:$0xff] }
 0x85c   : > { %13497 = vmatprep.subr.bf16.mxu0 %v19023_v8 }
 0x85e   : > { %8842 = vmatmul.mubr.f32.gmra.mrb[2].mxu0 %v18025_v14 }
 0x85f   : > { %8846 = vmatprep.mubr.f32.mxu0 %v7581_v5  ;;  %13499 = vmatpush1.bf16.msra.mxu0 %v13498_v43  ;;  %v18050_v5 = vld [vmem:[#allocation3 + $0xf1] sm:$0xff] }
 0x860   : > { %13500 = vmatprep.subr.bf16.mxu0 %v19023_v8  ;;  %v18031_v0 = vpop.f32.mrb[180].mxu1 }
 0x861   : > { %v18034_v60 = vpop.f32.mrb[181].mxu1 }
 0x862   : > { %8847 = vmatmul.mubr.f32.gmra.mrb[4].mxu0 %v18029_v63 }
 0x863   : > { %8851 = vmatprep.mubr.f32.mxu0 %v7582_v6  ;;  %13502 = vmatpush1.bf16.msra.mxu0 %v13501_v53  ;;  %v18057_v6 = vld [vmem:[#allocation3 + $0xf9] sm:$0xff] }
 0x864   : > { %13503 = vmatprep.subr.bf16.mxu0 %v19023_v8 }
 0x866   : > { %8852 = vmatmul.mubr.f32.gmra.mrb[6].mxu0 %v18037_v41 }
 0x867   : > { %8856 = vmatprep.mubr.f32.mxu0 %v7583_v32  ;;  %13505 = vmatpush1.bf16.msra.mxu0 %v13504_v57  ;;  %v18061_v57 = vld [vmem:[#allocation3 + $0x109] sm:$0xff] }
 0x869   : > { %v18042_v46 = vpop.f32.mrb[182].mxu1 }
 0x86a   : > { %19148 = vst [vmem:[#allocation43_spill] sm:$0xff] %v18042_v46  ;;  %8857 = vmatmul.mubr.f32.gmra.mrb[8].mxu0 %v18040_v26  ;;  %v18045_v43 = vpop.f32.mrb[183].mxu1  ;;  %v10317_v46 = vld [vmem:[#allocation13 + $0x10] sm:$0xff] }
 0x86b   : > { %8861 = vmatprep.mubr.f32.mxu0 %v7584_v49 }
 0x86e   : > { %8862 = vmatmul.mubr.f32.gmra.mrb[10].mxu0 %v18047_v13 }
 0x86f   : > { %8866 = vmatprep.mubr.f32.mxu0 %v7585_v54  ;;  %v18069_v54 = vld [vmem:[#allocation3 + $0x111] sm:$0xff] }
 0x870   : > { %v18052_v53 = vpop.f32.mrb[184].mxu1 }
 0x871   : > { %19149 = vst [vmem:[#allocation44_spill] sm:$0xff] %v18052_v53  ;;  %v18055_v62 = vpop.f32.mrb[185].mxu1 }
 0x872   : > { %8867 = vmatmul.mubr.f32.gmra.mrb[12].mxu0 %v18050_v5  ;;  %19150 = vst [vmem:[#allocation45_spill] sm:$0xff] %v18055_v62  ;;  %v7790_v62 = vld [vmem:[#allocation3 + $0x1a2] sm:$0xff] }
 0x873   : > { %8871 = vmatprep.mubr.f32.mxu0 %v7586_v9  ;;  %v18073_v9 = vld [vmem:[#allocation3 + $0x121] sm:$0xff] }
 0x876   : > { %8872 = vmatmul.mubr.f32.gmra.mrb[14].mxu0 %v18057_v6 }
 0x877   : > { %8876 = vmatprep.mubr.f32.mxu0 %v17751_v55 }
 0x879   : > { %v18063_v32 = vpop.f32.mrb[186].mxu1 }
 0x87a   : > { %19151 = vst [vmem:[#allocation46_spill] sm:$0xff] %v18063_v32  ;;  %8877 = vmatmul.mubr.f32.gmra.mrb[16].mxu0 %v18061_v57  ;;  %v18066_v49 = vpop.f32.mrb[187].mxu1  ;;  %v18081_v32 = vld [vmem:[#allocation3 + $0x129] sm:$0xff] }
 0x87b   : > { %19152 = vst [vmem:[#allocation47_spill] sm:$0xff] %v18066_v49  ;;  %8881 = vmatprep.mubr.f32.mxu0 %v17755_v36  ;;  %v18085_v36 = vld [vmem:[#allocation3 + $0x139] sm:$0xff] }
 0x87c   : > { %v7789_v49 = vld [vmem:[#allocation3 + $0x19a] sm:$0xff] }
 0x87d   : > { %12559 = vmatprep.mubr.f32.mxu1 %v7789_v49 }
 0x87e   : > { %8882 = vmatmul.mubr.f32.gmra.mrb[18].mxu0 %v18069_v54  ;;  %12560 = vmatmul.mubr.f32.gmra.mrb[190].mxu1 %v7790_v62  ;;  %v7632_v62 = vld [vmem:[#allocation3 + $0x38] sm:$0xff] }
 0x87f   : > { %8886 = vmatprep.mubr.f32.mxu0 %v19141_v52  ;;  %v18089_v52 = vld [vmem:[#allocation3 + $0x141] sm:$0xff] }
 0x880   : > { %v18075_v53 = vpop.f32.mrb[188].mxu1 }
 0x881   : > { %19153 = vst [vmem:[#allocation50_spill] sm:$0xff] %v18075_v53  ;;  %v18078_v55 = vpop.f32.mrb[189].mxu1  ;;  %v18093_v53 = vld [vmem:[#allocation3 + $0x151] sm:$0xff] }
 0x882   : > { %8887 = vmatmul.mubr.f32.gmra.mrb[20].mxu0 %v18073_v9  ;;  %19154 = vst [vmem:[#allocation48_spill] sm:$0xff] %v18078_v55  ;;  %v19158_v55 = vld [vmem:[#allocation32_spill] sm:$0xff] }
 0x883   : > { %8891 = vmatprep.mubr.f32.mxu0 %v19142_v51  ;;  %v19155_v51 = vld [vmem:[#allocation26_spill] sm:$0xff] }
 0x886   : > { %8892 = vmatmul.mubr.f32.gmra.mrb[22].mxu0 %v18081_v32 }
 0x887   : > { %8896 = vmatprep.mubr.f32.mxu0 %v17785_v22  ;;  %v19156_v22 = vld [vmem:[#allocation28_spill] sm:$0xff] }
 0x88a   : > { %8897 = vmatmul.mubr.f32.gmra.mrb[24].mxu0 %v18085_v36 }
 0x88b   : > { %8901 = vmatprep.mubr.f32.mxu0 %v19143_v24  ;;  %v19157_v24 = vld [vmem:[#allocation29_spill] sm:$0xff] }
 0x88e   : > { %8902 = vmatmul.mubr.f32.gmra.mrb[26].mxu0 %v18089_v52 }
 0x88f   : > { %8906 = vmatprep.mubr.f32.mxu0 %v19144_v10  ;;  %v19159_v10 = vmax.f32 %v19158_v55, 0.0 }
 0x892   : > { %8907 = vmatmul.mubr.f32.gmra.mrb[28].mxu0 %v18093_v53 }
 0x893   : > { %8911 = vmatprep.mubr.f32.mxu0 %v19145_v33  ;;  %v19160_v33 = vld [vmem:[#allocation33_spill] sm:$0xff] }
 0x896   : > { %8912 = vmatmul.mubr.f32.gmra.mrb[30].mxu0 %v19155_v51  ;;  %v19161_v51 = vmax.f32 %v19160_v33, 0.0  ;;  %v10321_v33 = vld [vmem:[#allocation13 + $0x30] sm:$0xff] }
 0x897   : > { %8916 = vmatprep.mubr.f32.mxu0 %v19146_v15  ;;  %v10315_v15 = vld [vmem:[#allocation13] sm:$0xff] }
 0x89a   : > { %8917 = vmatmul.mubr.f32.gmra.mrb[32].mxu0 %v19156_v22  ;;  %v10316_v22 = vld [vmem:[#allocation13 + $0x8] sm:$0xff] }
 0x89b   : > { %8921 = vmatprep.mubr.f32.mxu0 %v19147_v11  ;;  %v13539_v11 = vpack.c.bf16 %v10316_v22, %v10315_v15  ;;  %v10444_v15 = vld [vmem:[#allocation13 + $0x408] sm:$0xff]  ;;  %v7633_v22 = vld [vmem:[#allocation3 + $0x48] sm:$0xff] }
 0x89d   : > { %13540 = vmatpush1.bf16.msra.mxu1 %v13539_v11 }
 0x89e   : > { %8922 = vmatmul.mubr.f32.gmra.mrb[34].mxu0 %v19157_v24  ;;  %v10318_v24 = vld [vmem:[#allocation13 + $0x18] sm:$0xff]  ;;  %13541 = vmatprep.subr.bf16.mxu1 %v19023_v8 }
 0x89f   : > { %8926 = vmatprep.mubr.f32.mxu0 %v17848_v35  ;;  %v7631_v35 = vld [vmem:[#allocation3 + $0x30] sm:$0xff]  ;;  %v13542_v55 = vpack.c.bf16 %v10318_v24, %v10317_v46  ;;  %v10324_v24 = vld [vmem:[#allocation13 + $0x48] sm:$0xff] }
 0x8a1   : > { %13543 = vmatpush1.bf16.msra.mxu1 %v13542_v55 }
 0x8a2   : > { %8927 = vmatmul.mubr.f32.gmra.mrb[36].mxu0 %v19159_v10  ;;  %v10319_v10 = vld [vmem:[#allocation13 + $0x20] sm:$0xff]  ;;  %13544 = vmatprep.subr.bf16.mxu1 %v19023_v8 }
 0x8a3   : > { %8931 = vmatprep.mubr.f32.mxu0 %v17850_v28  ;;  %v10320_v28 = vld [vmem:[#allocation13 + $0x28] sm:$0xff] }
 0x8a4   : > { %v13545_v49 = vpack.c.bf16 %v10320_v28, %v10319_v10  ;;  %v10326_v10 = vld [vmem:[#allocation13 + $0x58] sm:$0xff]  ;;  %v7635_v28 = vld [vmem:[#allocation3 + $0x60] sm:$0xff] }
 0x8a6   : > { %8932 = vmatmul.mubr.f32.gmra.mrb[38].mxu0 %v19161_v51  ;;  %v10443_v51 = vld [vmem:[#allocation13 + $0x400] sm:$0xff]  ;;  %13546 = vmatpush1.bf16.msra.mxu1 %v13545_v49 }
 0x8a7   : > { %9001 = vmatprep.mubr.f32.mxu0 %v17977_v50  ;;  %v10322_v50 = vld [vmem:[#allocation13 + $0x38] sm:$0xff]  ;;  %v13730_v46 = vpack.c.bf16 %v10444_v15, %v10443_v51  ;;  %13547 = vmatprep.subr.bf16.mxu1 %v19023_v8  ;;  %v10327_v49 = vld [vmem:[#allocation13 + $0x60] sm:$0xff]  ;;  %v10329_v51 = vld [vmem:[#allocation13 + $0x70] sm:$0xff] }
 0x8a8   : > { %v13548_v11 = vpack.c.bf16 %v10322_v50, %v10321_v33  ;;  %v7636_v33 = vld [vmem:[#allocation3 + $0x68] sm:$0xff] }
 0x8a9   : > { %13731 = vmatprep.subr.bf16.mxu0 %v13730_v46  ;;  %v10330_v15 = vld [vmem:[#allocation13 + $0x78] sm:$0xff] }
 0x8aa   : > { %9002 = vmatmul.mubr.f32.vlgmr.msra.gmra.mrb[232].mxu0 %v7631_v35  ;;  %v7634_v35 = vld [vmem:[#allocation3 + $0x50] sm:$0xff]  ;;  %13549 = vmatpush1.bf16.msra.mxu1 %v13548_v11  ;;  %v10332_v11 = vld [vmem:[#allocation13 + $0x88] sm:$0xff] }
 0x8ab   : > { %9006 = vmatprep.mubr.f32.mxu0 %v17981_v45  ;;  %v10323_v45 = vld [vmem:[#allocation13 + $0x40] sm:$0xff]  ;;  %13733 = vmatpush3.bf16.msra.mxu0 %v13730_v46  ;;  %v13560_v46 = vpack.c.bf16 %v10330_v15, %v10329_v51  ;;  %v10341_v15 = vld [vmem:[#allocation13 + $0xd0] sm:$0xff] }
 0x8ac   : > { %v13551_v55 = vpack.c.bf16 %v10324_v24, %v10323_v45  ;;  %13550 = vmatprep.subr.bf16.mxu1 %v19023_v8  ;;  %v10333_v24 = vld [vmem:[#allocation13 + $0x90] sm:$0xff] }
 0x8ae   : > { %9007 = vmatmul.mubr.f32.gmra.mrb[234].mxu0 %v7632_v62  ;;  %13552 = vmatpush1.bf16.msra.mxu1 %v13551_v55 }
 0x8af   : > { %9011 = vmatprep.mubr.f32.mxu0 %v17985_v3  ;;  %v10325_v3 = vld [vmem:[#allocation13 + $0x50] sm:$0xff]  ;;  %13553 = vmatprep.subr.bf16.mxu1 %v19023_v8 }
 0x8b0   : > { %v13554_v62 = vpack.c.bf16 %v10326_v10, %v10325_v3  ;;  %v10335_v3 = vld [vmem:[#allocation13 + $0xa0] sm:$0xff]  ;;  %v10336_v10 = vld [vmem:[#allocation13 + $0xa8] sm:$0xff] }
 0x8b2   : > { %9012 = vmatmul.mubr.f32.gmra.mrb[236].mxu0 %v7633_v22  ;;  %13555 = vmatpush1.bf16.msra.mxu1 %v13554_v62  ;;  %v10331_v22 = vld [vmem:[#allocation13 + $0x80] sm:$0xff]  ;;  %v10337_v62 = vld [vmem:[#allocation13 + $0xb0] sm:$0xff] }
 0x8b3   : > { %9016 = vmatprep.mubr.f32.mxu0 %v17989_v44  ;;  %v10328_v44 = vld [vmem:[#allocation13 + $0x68] sm:$0xff]  ;;  %13556 = vmatprep.subr.bf16.mxu1 %v19023_v8  ;;  %v13563_v45 = vpack.c.bf16 %v10332_v11, %v10331_v22  ;;  %v7644_v22 = vld [vmem:[#allocation3 + $0xc8] sm:$0xff]  ;;  %v7647_v11 = vld [vmem:[#allocation3 + $0xf0] sm:$0xff] }
 0x8b4   : > { %v13557_v50 = vpack.c.bf16 %v10328_v44, %v10327_v49  ;;  %v10338_v49 = vld [vmem:[#allocation13 + $0xb8] sm:$0xff] }
 0x8b5   : > { %v13572_v44 = vpack.c.bf16 %v10338_v49, %v10337_v62  ;;  %v18146_v62 = vld [vmem:[#allocation2] sm:$0xff]  ;;  %v9516_v49 = vld [vmem:[#allocation2 + $0x9] sm:$0xff] }
 0x8b6   : > { %9017 = vmatmul.mubr.f32.gmra.mrb[238].mxu0 %v7634_v35  ;;  %13558 = vmatpush1.bf16.msra.mxu1 %v13557_v50  ;;  %v10334_v35 = vld [vmem:[#allocation13 + $0x98] sm:$0xff]  ;;  %v10340_v50 = vld [vmem:[#allocation13 + $0xc8] sm:$0xff] }
 0x8b7   : > { %9021 = vmatprep.mubr.f32.mxu0 %v17993_v21  ;;  %v7637_v21 = vld [vmem:[#allocation3 + $0x78] sm:$0xff]  ;;  %13559 = vmatprep.subr.bf16.mxu1 %v19023_v8  ;;  %v13566_v55 = vpack.c.bf16 %v10334_v35, %v10333_v24  ;;  %v10445_v35 = vld [vmem:[#allocation13 + $0x410] sm:$0xff] }
 0x8ba   : > { %9022 = vmatmul.mubr.f32.gmra.mrb[240].mxu0 %v7635_v28  ;;  %13561 = vmatpush1.bf16.msra.mxu1 %v13560_v46  ;;  %v13569_v28 = vpack.c.bf16 %v10336_v10, %v10335_v3  ;;  %v10447_v10 = vld [vmem:[#allocation13 + $0x420] sm:$0xff] }
 0x8bb   : > { %9026 = vmatprep.mubr.f32.mxu0 %v17997_v56  ;;  %v7638_v56 = vld [vmem:[#allocation3 + $0x80] sm:$0xff]  ;;  %13562 = vmatprep.subr.bf16.mxu1 %v19023_v8 }
 0x8be   : > { %9027 = vmatmul.mubr.f32.gmra.mrb[242].mxu0 %v7636_v33  ;;  %13564 = vmatpush1.bf16.msra.mxu1 %v13563_v45  ;;  %v10339_v33 = vld [vmem:[#allocation13 + $0xc0] sm:$0xff]  ;;  %v10344_v45 = vld [vmem:[#allocation13 + $0xe8] sm:$0xff] }
 0x8bf   : > { %9031 = vmatprep.mubr.f32.mxu0 %v18001_v34  ;;  %v7639_v34 = vld [vmem:[#allocation3 + $0x90] sm:$0xff]  ;;  %13565 = vmatprep.subr.bf16.mxu1 %v19023_v8  ;;  %v13575_v51 = vpack.c.bf16 %v10340_v50, %v10339_v33 }
 0x8c0   : > { %v10451_v50 = vld [vmem:[#allocation13 + $0x440] sm:$0xff] }
 0x8c2   : > { %9032 = vmatmul.mubr.f32.gmra.mrb[244].mxu0 %v7637_v21  ;;  %13567 = vmatpush1.bf16.msra.mxu1 %v13566_v55  ;;  %v10342_v21 = vld [vmem:[#allocation13 + $0xd8] sm:$0xff] }
 0x8c3   : > { %9036 = vmatprep.mubr.f32.mxu0 %v18005_v2  ;;  %v7640_v2 = vld [vmem:[#allocation3 + $0x98] sm:$0xff]  ;;  %13568 = vmatprep.subr.bf16.mxu1 %v19023_v8  ;;  %v13578_v46 = vpack.c.bf16 %v10342_v21, %v10341_v15  ;;  %v10347_v21 = vld [vmem:[#allocation13 + $0x100] sm:$0xff] }
 0x8c6   : > { %9037 = vmatmul.mubr.f32.gmra.mrb[246].mxu0 %v7638_v56  ;;  %13570 = vmatpush1.bf16.msra.mxu1 %v13569_v28  ;;  %v7649_v56 = vld [vmem:[#allocation3 + $0x108] sm:$0xff] }
 0x8c7   : > { %9041 = vmatprep.mubr.f32.mxu0 %v18009_v16  ;;  %v7641_v16 = vld [vmem:[#allocation3 + $0xa8] sm:$0xff]  ;;  %13571 = vmatprep.subr.bf16.mxu1 %v19023_v8 }
 0x8ca   : > { %9042 = vmatmul.mubr.f32.gmra.mrb[248].mxu0 %v7639_v34  ;;  %13573 = vmatpush1.bf16.msra.mxu1 %v13572_v44  ;;  %v10446_v34 = vld [vmem:[#allocation13 + $0x418] sm:$0xff]  ;;  %v7654_v44 = vld [vmem:[#allocation3 + $0x140] sm:$0xff] }
 0x8cb   : > { %9046 = vmatprep.mubr.f32.mxu0 %v18013_v30  ;;  %v7642_v30 = vld [vmem:[#allocation3 + $0xb0] sm:$0xff]  ;;  %13574 = vmatprep.subr.bf16.mxu1 %v19023_v8  ;;  %v13734_v3 = vpack.c.bf16 %v10446_v34, %v10445_v35  ;;  %v10458_v34 = vld [vmem:[#allocation13 + $0x478] sm:$0xff] }
 0x8cd   : > { %13735 = vmatprep.subr.bf16.mxu0 %v13734_v3 }
 0x8ce   : > { %9047 = vmatmul.mubr.f32.gmra.mrb[250].mxu0 %v7640_v2  ;;  %13576 = vmatpush1.bf16.msra.mxu1 %v13575_v51  ;;  %v10448_v2 = vld [vmem:[#allocation13 + $0x428] sm:$0xff]  ;;  %v7655_v51 = vld [vmem:[#allocation3 + $0x150] sm:$0xff] }
 0x8cf   : > { %9051 = vmatprep.mubr.f32.mxu0 %v18017_v38  ;;  %v7643_v38 = vld [vmem:[#allocation3 + $0xc0] sm:$0xff]  ;;  %13577 = vmatprep.subr.bf16.mxu1 %v19023_v8  ;;  %v13738_v28 = vpack.c.bf16 %v10448_v2, %v10447_v10  ;;  %v10351_v10 = vld [vmem:[#allocation13 + $0x120] sm:$0xff]  ;;  %v10352_v2 = vld [vmem:[#allocation13 + $0x128] sm:$0xff] }
 0x8d0   : > { %13737 = vmatpush3.bf16.msra.mxu0 %v13734_v3  ;;  %v7724_v3 = vld [vmem:[#allocation3 + $0x189] sm:$0xff] }
 0x8d1   : > { %13739 = vmatprep.subr.bf16.mxu0 %v13738_v28 }
 0x8d2   : > { %9052 = vmatmul.mubr.f32.gmra.mrb[252].mxu0 %v7641_v16  ;;  %13579 = vmatpush1.bf16.msra.mxu1 %v13578_v46  ;;  %v10450_v16 = vld [vmem:[#allocation13 + $0x438] sm:$0xff]  ;;  %v10453_v46 = vld [vmem:[#allocation13 + $0x450] sm:$0xff] }
 0x8d3   : > { %9056 = vmatprep.mubr.f32.mxu0 %v18025_v14  ;;  %13580 = vmatprep.subr.bf16.mxu1 %v19023_v8  ;;  %v7645_v14 = vld [vmem:[#allocation3 + $0xd8] sm:$0xff] }
 0x8d4   : > { %13741 = vmatpush3.bf16.msra.mxu0 %v13738_v28  ;;  %v7726_v28 = vld [vmem:[#allocation3 + $0x1a1] sm:$0xff] }
 0x8d6   : > { %9057 = vmatmul.mubr.f32.gmra.mrb[254].mxu0 %v7642_v30  ;;  %v10452_v30 = vld [vmem:[#allocation13 + $0x448] sm:$0xff] }
 0x8d7   : > { %9061 = vmatprep.mubr.f32.mxu0 %v18029_v63  ;;  %v7646_v63 = vld [vmem:[#allocation3 + $0xe0] sm:$0xff]  ;;  %v13746_v15 = vpack.c.bf16 %v10452_v30, %v10451_v50  ;;  %v10358_v50 = vld [vmem:[#allocation13 + $0x158] sm:$0xff] }
 0x8da   : > { %9062 = vmatmul.mubr.f32.gmra.mrb[0].mxu0 %v7643_v38  ;;  %v10348_v38 = vld [vmem:[#allocation13 + $0x108] sm:$0xff] }
 0x8db   : > { %9066 = vmatprep.mubr.f32.mxu0 %v18037_v41  ;;  %v7648_v41 = vld [vmem:[#allocation3 + $0xf8] sm:$0xff] }
 0x8de   : > { %9067 = vmatmul.mubr.f32.gmra.mrb[2].mxu0 %v7644_v22  ;;  %v7656_v22 = vld [vmem:[#allocation3 + $0x158] sm:$0xff] }
 0x8df   : > { %9071 = vmatprep.mubr.f32.mxu0 %v18040_v26  ;;  %v7650_v26 = vld [vmem:[#allocation3 + $0x110] sm:$0xff] }
 0x8e2   : > { %9072 = vmatmul.mubr.f32.gmra.mrb[4].mxu0 %v7645_v14  ;;  %v13587_v14 = vpack.c.bf16 %v10348_v38, %v10347_v21  ;;  %v10362_v21 = vld [vmem:[#allocation13 + $0x178] sm:$0xff] }
 0x8e3   : > { %9076 = vmatprep.mubr.f32.mxu0 %v18047_v13  ;;  %v10343_v13 = vld [vmem:[#allocation13 + $0xe0] sm:$0xff] }
 0x8e4   : > { %v13581_v24 = vpack.c.bf16 %v10344_v45, %v10343_v13  ;;  %v7722_v45 = vld [vmem:[#allocation3 + $0x171] sm:$0xff] }
 0x8e6   : > { %9077 = vmatmul.mubr.f32.gmra.mrb[6].mxu0 %v7646_v63  ;;  %13582 = vmatpush1.bf16.msra.mxu1 %v13581_v24  ;;  %v10454_v63 = vld [vmem:[#allocation13 + $0x458] sm:$0xff]  ;;  %v10349_v24 = vld [vmem:[#allocation13 + $0x110] sm:$0xff] }
 0x8e7   : > { %9081 = vmatprep.mubr.f32.mxu0 %v18050_v5  ;;  %v7651_v5 = vld [vmem:[#allocation3 + $0x120] sm:$0xff]  ;;  %13583 = vmatprep.subr.bf16.mxu1 %v19023_v8 }
 0x8ea   : > { %9082 = vmatmul.mubr.f32.gmra.mrb[8].mxu0 %v7647_v11  ;;  %v7721_v11 = vld [vmem:[#allocation3 + $0x169] sm:$0xff] }
 0x8eb   : > { %9086 = vmatprep.mubr.f32.mxu0 %v18057_v6  ;;  %v10345_v6 = vld [vmem:[#allocation13 + $0xf0] sm:$0xff] }
 0x8ee   : > { %9087 = vmatmul.mubr.f32.gmra.mrb[10].mxu0 %v7648_v41  ;;  %v10455_v41 = vld [vmem:[#allocation13 + $0x460] sm:$0xff] }
 0x8ef   : > { %9091 = vmatprep.mubr.f32.mxu0 %v18061_v57  ;;  %v10346_v57 = vld [vmem:[#allocation13 + $0xf8] sm:$0xff] }
 0x8f0   : > { %v13584_v55 = vpack.c.bf16 %v10346_v57, %v10345_v6  ;;  %v10457_v6 = vld [vmem:[#allocation13 + $0x470] sm:$0xff]  ;;  %v7658_v57 = vld [vmem:[#allocation3 + $0x170] sm:$0xff] }
 0x8f2   : > { %9092 = vmatmul.mubr.f32.gmra.mrb[12].mxu0 %v7649_v56  ;;  %13585 = vmatpush1.bf16.msra.mxu1 %v13584_v55  ;;  %v10456_v56 = vld [vmem:[#allocation13 + $0x468] sm:$0xff]  ;;  %v7723_v55 = vld [vmem:[#allocation3 + $0x181] sm:$0xff] }
 0x8f3   : > { %9096 = vmatprep.mubr.f32.mxu0 %v18069_v54  ;;  %v7652_v54 = vld [vmem:[#allocation3 + $0x128] sm:$0xff]  ;;  %13586 = vmatprep.subr.bf16.mxu1 %v19023_v8  ;;  %v13754_v13 = vpack.c.bf16 %v10456_v56, %v10455_v41  ;;  %v10367_v41 = vld [vmem:[#allocation13 + $0x1a0] sm:$0xff]  ;;  %v10368_v56 = vld [vmem:[#allocation13 + $0x1a8] sm:$0xff] }
 0x8f6   : > { %9097 = vmatmul.mubr.f32.gmra.mrb[14].mxu0 %v7650_v26  ;;  %v7657_v26 = vld [vmem:[#allocation3 + $0x168] sm:$0xff] }
 0x8f7   : > { %9101 = vmatprep.mubr.f32.mxu0 %v18073_v9  ;;  %v9515_v9 = vld [vmem:[#allocation2 + $0x1] sm:$0xff] }
 0x8f8   : > { %10530 = vmatprep.mubr.f32.mxu1 %v9515_v9  ;;  %v7725_v9 = vld [vmem:[#allocation3 + $0x199] sm:$0xff] }
 0x8f9   : > { %10531 = vmatmul.mubr.f32.vlgmr.msra.gmra.mrb[192].mxu1 %v18146_v62 }
 0x8fa   : > { %9102 = vmatmul.mubr.f32.gmra.mrb[16].mxu0 %v7651_v5  ;;  %10535 = vmatprep.mubr.f32.mxu1 %v9516_v49  ;;  %v10350_v5 = vld [vmem:[#allocation13 + $0x118] sm:$0xff]  ;;  %v10353_v49 = vld [vmem:[#allocation13 + $0x130] sm:$0xff] }
 0x8fb   : > { %9106 = vmatprep.mubr.f32.mxu0 %v18081_v32  ;;  %v7653_v32 = vld [vmem:[#allocation3 + $0x138] sm:$0xff]  ;;  %13588 = vmatpush1.bf16.msra.mxu1 %v13587_v14  ;;  %v13590_v35 = vpack.c.bf16 %v10350_v5, %v10349_v24  ;;  %v10371_v5 = vld [vmem:[#allocation13 + $0x1c0] sm:$0xff] }
 0x8fc   : > { %13589 = vmatprep.subr.bf16.mxu1 %v19023_v8 }
 0x8fd   : > { %10536 = vmatmul.mubr.f32.gmra.mrb[194].mxu1 %v18146_v62 }
 0x8fe   : > { %9107 = vmatmul.mubr.f32.gmra.mrb[18].mxu0 %v7652_v54  ;;  %v13758_v54 = vpack.c.bf16 %v10458_v34, %v10457_v6  ;;  %v10372_v6 = vld [vmem:[#allocation13 + $0x1c8] sm:$0xff]  ;;  %v10374_v34 = vld [vmem:[#allocation13 + $0x1d8] sm:$0xff] }
 0x8ff   : > { %9111 = vmatprep.mubr.f32.mxu0 %v18085_v36  ;;  %v10449_v36 = vld [vmem:[#allocation13 + $0x430] sm:$0xff]  ;;  %13591 = vmatpush1.bf16.msra.mxu1 %v13590_v35 }
 0x900   : > { %v13742_v33 = vpack.c.bf16 %v10450_v16, %v10449_v36  ;;  %13592 = vmatprep.subr.bf16.mxu1 %v19023_v8  ;;  %v10354_v36 = vld [vmem:[#allocation13 + $0x138] sm:$0xff]  ;;  %v10373_v35 = vld [vmem:[#allocation13 + $0x1d0] sm:$0xff] }
 0x901   : > { %v13596_v16 = vpack.c.bf16 %v10354_v36, %v10353_v49 }
 0x902   : > { %9112 = vmatmul.mubr.f32.gmra.mrb[20].mxu0 %v7653_v32  ;;  %13743 = vmatprep.subr.bf16.mxu0 %v13742_v33  ;;  %v13593_v32 = vpack.c.bf16 %v10352_v2, %v10351_v10 }
 0x903   : > { %9116 = vmatprep.mubr.f32.mxu0 %v18089_v52  ;;  %13745 = vmatpush3.bf16.msra.mxu0 %v13742_v33  ;;  %v7720_v52 = vld [vmem:[#allocation3 + $0x159] sm:$0xff] }
 0x904   : > { %13747 = vmatprep.subr.bf16.mxu0 %v13746_v15  ;;  %13594 = vmatpush1.bf16.msra.mxu1 %v13593_v32  ;;  %v18178_v32 = vld [vmem:[%s18905_s8] ss:$0 sm:$0xff] }
 0x905   : > { %13595 = vmatprep.subr.bf16.mxu1 %v19023_v8 }
 0x906   : > { %9117 = vmatmul.mubr.f32.gmra.mrb[22].mxu0 %v7654_v44  ;;  %v10356_v44 = vld [vmem:[#allocation13 + $0x148] sm:$0xff] }
 0x907   : > { %9121 = vmatprep.mubr.f32.mxu0 %v18093_v53  ;;  %13749 = vmatpush3.bf16.msra.mxu0 %v13746_v15  ;;  %v13750_v53 = vpack.c.bf16 %v10454_v63, %v10453_v46  ;;  %v10360_v15 = vld [vmem:[#allocation13 + $0x168] sm:$0xff]  ;;  %v10363_v46 = vld [vmem:[#allocation13 + $0x180] sm:$0xff]  ;;  %v10365_v63 = vld [vmem:[#allocation13 + $0x190] sm:$0xff] }
 0x908   : > { %13597 = vmatpush1.bf16.msra.mxu1 %v13596_v16 }
 0x909   : > { %13751 = vmatprep.subr.bf16.mxu0 %v13750_v53  ;;  %13598 = vmatprep.subr.bf16.mxu1 %v19023_v8 }
 0x90a   : > { %9122 = vmatmul.mubr.f32.gmra.mrb[24].mxu0 %v7655_v51  ;;  %v10359_v51 = vld [vmem:[#allocation13 + $0x160] sm:$0xff] }
 0x90b   : > { %9126 = vmatprep.mubr.f32.mxu0 %v7720_v52  ;;  %13753 = vmatpush3.bf16.msra.mxu0 %v13750_v53  ;;  %v13605_v52 = vpack.c.bf16 %v10360_v15, %v10359_v51 }
 0x90c   : > { %13755 = vmatprep.subr.bf16.mxu0 %v13754_v13 }
 0x90e   : > { %9127 = vmatmul.mubr.f32.gmra.mrb[26].mxu0 %v7656_v22  ;;  %v10364_v22 = vld [vmem:[#allocation13 + $0x188] sm:$0xff] }
 0x90f   : > { %9131 = vmatprep.mubr.f32.mxu0 %v7721_v11  ;;  %13757 = vmatpush3.bf16.msra.mxu0 %v13754_v13  ;;  %v13611_v14 = vpack.c.bf16 %v10364_v22, %v10363_v46  ;;  %v10366_v11 = vld [vmem:[#allocation13 + $0x198] sm:$0xff]  ;;  %v10369_v13 = vld [vmem:[#allocation13 + $0x1b0] sm:$0xff] }
 0x910   : > { %13759 = vmatprep.subr.bf16.mxu0 %v13758_v54  ;;  %v13614_v53 = vpack.c.bf16 %v10366_v11, %v10365_v63 }
 0x912   : > { %9132 = vmatmul.mubr.f32.gmra.mrb[28].mxu0 %v7657_v26  ;;  %v13617_v26 = vpack.c.bf16 %v10368_v56, %v10367_v41 }
 0x913   : > { %9136 = vmatprep.mubr.f32.mxu0 %v7722_v45  ;;  %13761 = vmatpush3.bf16.msra.mxu0 %v13758_v54  ;;  %v10370_v45 = vld [vmem:[#allocation13 + $0x1b8] sm:$0xff] }
 0x914   : > { %v13620_v24 = vpack.c.bf16 %v10370_v45, %v10369_v13 }
 0x916   : > { %9137 = vmatmul.mubr.f32.gmra.mrb[30].mxu0 %v7658_v57  ;;  %v13623_v57 = vpack.c.bf16 %v10372_v6, %v10371_v5 }
 0x917   : > { %9141 = vmatprep.mubr.f32.mxu0 %v7723_v55  ;;  %v13626_v55 = vpack.c.bf16 %v10374_v34, %v10373_v35 }
 0x91a   : > { %9142 = vmatmul.mubr.f32.gmra.mrb[32].mxu0 %v17961_v1  ;;  %v10355_v1 = vld [vmem:[#allocation13 + $0x140] sm:$0xff] }
 0x91b   : > { %9146 = vmatprep.mubr.f32.mxu0 %v7724_v3  ;;  %v13599_v33 = vpack.c.bf16 %v10356_v44, %v10355_v1  ;;  %v10375_v3 = vld [vmem:[#allocation13 + $0x1e0] sm:$0xff]  ;;  %v10377_v1 = vld [vmem:[#allocation13 + $0x1f0] sm:$0xff]  ;;  %v10378_v44 = vld [vmem:[#allocation13 + $0x1f8] sm:$0xff] }
 0x91d   : > { %13600 = vmatpush1.bf16.msra.mxu1 %v13599_v33 }
 0x91e   : > { %9147 = vmatmul.mubr.f32.gmra.mrb[34].mxu0 %v17965_v20  ;;  %13601 = vmatprep.subr.bf16.mxu1 %v19023_v8  ;;  %v10357_v20 = vld [vmem:[#allocation13 + $0x150] sm:$0xff] }
 0x91f   : > { %9151 = vmatprep.mubr.f32.mxu0 %v7725_v9  ;;  %v13602_v30 = vpack.c.bf16 %v10358_v50, %v10357_v20  ;;  %v10376_v9 = vld [vmem:[#allocation13 + $0x1e8] sm:$0xff]  ;;  %v13632_v20 = vpack.c.bf16 %v10378_v44, %v10377_v1 }
 0x920   : > { %v13629_v10 = vpack.c.bf16 %v10376_v9, %v10375_v3 }
 0x921   : > { %13603 = vmatpush1.bf16.msra.mxu1 %v13602_v30 }
 0x922   : > { %9152 = vmatmul.mubr.f32.gmra.mrb[36].mxu0 %v18146_v62  ;;  %13604 = vmatprep.subr.bf16.mxu1 %v19023_v8 }
 0x923   : > { %9156 = vmatprep.mubr.f32.mxu0 %v7726_v28 }
 0x925   : > { %13606 = vmatpush1.bf16.msra.mxu1 %v13605_v52 }
 0x926   : > { %9157 = vmatmul.mubr.f32.gmra.mrb[38].mxu0 %v18146_v62  ;;  %13607 = vmatprep.subr.bf16.mxu1 %v19023_v8  ;;  %v10361_v62 = vld [vmem:[#allocation13 + $0x170] sm:$0xff] }
 0x927   : > { %v13608_v38 = vpack.c.bf16 %v10362_v21, %v10361_v62 }
 0x929   : > { %13609 = vmatpush1.bf16.msra.mxu1 %v13608_v38 }
 0x92a   : > { %13610 = vmatprep.subr.bf16.mxu1 %v19023_v8 }
 0x92d   : > { %13612 = vmatpush1.bf16.msra.mxu1 %v13611_v14 }
 0x92e   : > { %13613 = vmatprep.subr.bf16.mxu1 %v19023_v8 }
 0x931   : > { %13615 = vmatpush1.bf16.msra.mxu1 %v13614_v53 }
 0x932   : > { %13616 = vmatprep.subr.bf16.mxu1 %v19023_v8 }
 0x935   : > { %13618 = vmatpush1.bf16.msra.mxu1 %v13617_v26 }
 0x936   : > { %13619 = vmatprep.subr.bf16.mxu1 %v19023_v8 }
 0x939   : > { %13621 = vmatpush1.bf16.msra.mxu1 %v13620_v24 }
 0x93a   : > { %13622 = vmatprep.subr.bf16.mxu1 %v19023_v8 }
 0x93d   : > { %13624 = vmatpush1.bf16.msra.mxu1 %v13623_v57 }
 0x93e   : > { %13625 = vmatprep.subr.bf16.mxu1 %v19023_v8 }
 0x941   : > { %13627 = vmatpush1.bf16.msra.mxu1 %v13626_v55 }
 0x942   : > { %13628 = vmatprep.subr.bf16.mxu1 %v19023_v8 }
 0x945   : > { %13630 = vmatpush1.bf16.msra.mxu1 %v13629_v10 }
 0x946   : > { %13631 = vmatprep.subr.bf16.mxu1 %v19023_v8 }
 0x949   : > { %13633 = vmatpush1.bf16.msra.mxu1 %v13632_v20 }
 0x94a   : > { %13634 = vmatprep.subr.bf16.mxu1 %v19023_v8 }
 0x951   : > { %v18171_v54 = vpop.f32.mrb[190].mxu1 }
 0x952   : > { %v18173_v2 = vpop.f32.mrb[191].mxu1 }
 0x97d   : > { %v9003_v28 = vpop.f32.mrb[232].mxu0 }
 0x97e   : > { %v13942_v49 = vadd.f32 %v18178_v32, %v9003_v28  ;;  %v9005_v36 = vpop.f32.mrb[233].mxu0 }
 0x980   : > { %v9229_v16 = vadd.f32 %v13942_v49, %v17900_v18 }
 0x981   : > { %v9008_v33 = vpop.f32.mrb[234].mxu0 }
 0x982   : > { %v9387_v50 = vmax.f32 %v9229_v16, 0.0  ;;  %v13943_v30 = vadd.f32 %v18178_v32, %v9008_v33  ;;  %v9010_v51 = vpop.f32.mrb[235].mxu0 }
 0x984   : > { %9419 = vst [vmem:[#allocation2 + $0x19] sm:$0xff] %v9387_v50  ;;  %v9234_v15 = vadd.f32 %v13943_v30, %v17898_v40  ;;  %10540 = vmatprep.mubr.f32.mxu1 %v9387_v50 }
 0x985   : > { %v9013_v52 = vpop.f32.mrb[236].mxu0 }
 0x986   : > { %v9388_v62 = vmax.f32 %v9234_v15, 0.0  ;;  %v13944_v21 = vadd.f32 %v18178_v32, %v9013_v52  ;;  %v9015_v18 = vpop.f32.mrb[237].mxu0 }
 0x988   : > { %9420 = vst [vmem:[#allocation2 + $0x21] sm:$0xff] %v9388_v62  ;;  %v9239_v38 = vadd.f32 %v13944_v21, %v17910_v12 }
 0x989   : > { %v9018_v46 = vpop.f32.mrb[238].mxu0 }
 0x98a   : > { %v9389_v22 = vmax.f32 %v9239_v38, 0.0  ;;  %v13945_v14 = vadd.f32 %v18178_v32, %v9018_v46  ;;  %v9020_v63 = vpop.f32.mrb[239].mxu0 }
 0x98b   : > { %v18189_v11 = vld [vmem:[#allocation2 + $0x18] sm:$0xff] }
 0x98c   : > { %9421 = vst [vmem:[#allocation2 + $0x31] sm:$0xff] %v9389_v22  ;;  %v9244_v40 = vadd.f32 %v13945_v14, %v17908_v17  ;;  %10541 = vmatmul.mubr.f32.gmra.mrb[196].mxu1 %v18189_v11 }
 0x98d   : > { %v9023_v53 = vpop.f32.mrb[240].mxu0  ;;  %10545 = vmatprep.mubr.f32.mxu1 %v9388_v62 }
 0x98e   : > { %v9390_v41 = vmax.f32 %v9244_v40, 0.0  ;;  %v13946_v56 = vadd.f32 %v18178_v32, %v9023_v53  ;;  %v9025_v26 = vpop.f32.mrb[241].mxu0 }
 0x98f   : > { %v18194_v13 = vld [vmem:[#allocation2 + $0x20] sm:$0xff] }
 0x990   : > { %9422 = vst [vmem:[#allocation2 + $0x39] sm:$0xff] %v9390_v41  ;;  %v9249_v12 = vadd.f32 %v13946_v56, %v17918_v42  ;;  %10546 = vmatmul.mubr.f32.gmra.mrb[198].mxu1 %v18194_v13 }
 0x991   : > { %v9028_v45 = vpop.f32.mrb[242].mxu0  ;;  %10550 = vmatprep.mubr.f32.mxu1 %v9389_v22 }
 0x992   : > { %v9391_v24 = vmax.f32 %v9249_v12, 0.0  ;;  %v13947_v17 = vadd.f32 %v18178_v32, %v9028_v45  ;;  %v9030_v5 = vpop.f32.mrb[243].mxu0 }
 0x993   : > { %v18199_v6 = vld [vmem:[#allocation2 + $0x30] sm:$0xff] }
 0x994   : > { %9423 = vst [vmem:[#allocation2 + $0x49] sm:$0xff] %v9391_v24  ;;  %v9254_v57 = vadd.f32 %v13947_v17, %v17916_v25  ;;  %10551 = vmatmul.mubr.f32.gmra.mrb[200].mxu1 %v18199_v6 }
 0x995   : > { %v9033_v35 = vpop.f32.mrb[244].mxu0  ;;  %10555 = vmatprep.mubr.f32.mxu1 %v9390_v41 }
 0x996   : > { %v9392_v34 = vmax.f32 %v9254_v57, 0.0  ;;  %v13948_v42 = vadd.f32 %v18178_v32, %v9033_v35  ;;  %v9035_v55 = vpop.f32.mrb[245].mxu0 }
 0x997   : > { %v18204_v3 = vld [vmem:[#allocation2 + $0x32] sm:$0xff]  ;;  %v18208_v10 = vld [vmem:[#allocation2 + $0x3a] sm:$0xff] }
 0x998   : > { %v18206_v9 = vld [vmem:[#allocation2 + $0x38] sm:$0xff]  ;;  %9424 = vst [vmem:[#allocation2 + $0x51] sm:$0xff] %v9392_v34  ;;  %v9259_v28 = vadd.f32 %v13948_v42, %v17926_v58  ;;  %12594 = vmatprep.mubr.f32.mxu0 %v18204_v3 }
 0x999   : > { %10556 = vmatmul.mubr.f32.gmra.mrb[202].mxu1 %v18206_v9  ;;  %v9038_v25 = vpop.f32.mrb[246].mxu0  ;;  %12595 = vmatmul.mubr.f32.vlgmr.msra.gmra.mrb[40].mxu0 %v18208_v10 }
 0x99a   : > { %10560 = vmatprep.mubr.f32.mxu1 %v9391_v24  ;;  %v9393_v49 = vmax.f32 %v9259_v28, 0.0  ;;  %v13949_v36 = vadd.f32 %v18178_v32, %v9038_v25  ;;  %v9040_v16 = vpop.f32.mrb[247].mxu0 }
 0x99b   : > { %v18215_v1 = vld [vmem:[#allocation2 + $0x48] sm:$0xff] }
 0x99c   : > { %9425 = vst [vmem:[#allocation2 + $0x61] sm:$0xff] %v9393_v49  ;;  %v9264_v44 = vadd.f32 %v13949_v36, %v17924_v47 }
 0x99d   : > { %10561 = vmatmul.mubr.f32.gmra.mrb[204].mxu1 %v18215_v1  ;;  %v9043_v58 = vpop.f32.mrb[248].mxu0 }
 0x99e   : > { %10565 = vmatprep.mubr.f32.mxu1 %v9392_v34  ;;  %v9394_v33 = vmax.f32 %v9264_v44, 0.0  ;;  %v13950_v20 = vadd.f32 %v18178_v32, %v9043_v58  ;;  %v9045_v50 = vpop.f32.mrb[249].mxu0 }
 0x99f   : > { %v18220_v30 = vld [vmem:[#allocation2 + $0x4a] sm:$0xff]  ;;  %v18224_v15 = vld [vmem:[#allocation2 + $0x52] sm:$0xff] }
 0x9a0   : > { %v18222_v51 = vld [vmem:[#allocation2 + $0x50] sm:$0xff]  ;;  %9426 = vst [vmem:[#allocation2 + $0x69] sm:$0xff] %v9394_v33  ;;  %v9269_v52 = vadd.f32 %v13950_v20, %v17934_v31  ;;  %12597 = vmatprep.mubr.f32.mxu0 %v18220_v30 }
 0x9a1   : > { %10566 = vmatmul.mubr.f32.gmra.mrb[206].mxu1 %v18222_v51  ;;  %v9048_v47 = vpop.f32.mrb[250].mxu0  ;;  %12598 = vmatmul.mubr.f32.gmra.mrb[42].mxu0 %v18224_v15 }
 0x9a2   : > { %10570 = vmatprep.mubr.f32.mxu1 %v9393_v49  ;;  %v9395_v62 = vmax.f32 %v9269_v52, 0.0  ;;  %v13951_v21 = vadd.f32 %v18178_v32, %v9048_v47  ;;  %v9050_v18 = vpop.f32.mrb[251].mxu0 }
 0x9a3   : > { %v18231_v38 = vld [vmem:[#allocation2 + $0x60] sm:$0xff] }
 0x9a4   : > { %9427 = vst [vmem:[#allocation2 + $0x79] sm:$0xff] %v9395_v62  ;;  %v9274_v46 = vadd.f32 %v13951_v21, %v17932_v7 }
 0x9a5   : > { %10571 = vmatmul.mubr.f32.gmra.mrb[208].mxu1 %v18231_v38  ;;  %v9053_v31 = vpop.f32.mrb[252].mxu0 }
 0x9a6   : > { %10575 = vmatprep.mubr.f32.mxu1 %v9394_v33  ;;  %v9396_v22 = vmax.f32 %v9274_v46, 0.0  ;;  %v13952_v14 = vadd.f32 %v18178_v32, %v9053_v31  ;;  %v9055_v63 = vpop.f32.mrb[253].mxu0 }
 0x9a7   : > { %v18236_v40 = vld [vmem:[#allocation2 + $0x62] sm:$0xff]  ;;  %v18240_v41 = vld [vmem:[#allocation2 + $0x6a] sm:$0xff] }
 0x9a8   : > { %v18238_v53 = vld [vmem:[#allocation2 + $0x68] sm:$0xff]  ;;  %9428 = vst [vmem:[#allocation2 + $0x81] sm:$0xff] %v9396_v22  ;;  %v9279_v56 = vadd.f32 %v13952_v14, %v17942_v19  ;;  %12600 = vmatprep.mubr.f32.mxu0 %v18236_v40 }
 0x9a9   : > { %10576 = vmatmul.mubr.f32.gmra.mrb[210].mxu1 %v18238_v53  ;;  %v9058_v7 = vpop.f32.mrb[254].mxu0  ;;  %12601 = vmatmul.mubr.f32.gmra.mrb[44].mxu0 %v18240_v41 }
 0x9aa   : > { %10580 = vmatprep.mubr.f32.mxu1 %v9395_v62  ;;  %v9397_v26 = vmax.f32 %v9279_v56, 0.0  ;;  %v13953_v12 = vadd.f32 %v18178_v32, %v9058_v7  ;;  %v9060_v45 = vpop.f32.mrb[255].mxu0 }
 0x9ab   : > { %v18247_v24 = vld [vmem:[#allocation2 + $0x78] sm:$0xff] }
 0x9ac   : > { %9429 = vst [vmem:[#allocation2 + $0x91] sm:$0xff] %v9397_v26  ;;  %v9284_v17 = vadd.f32 %v13953_v12, %v17940_v61 }
 0x9ad   : > { %10581 = vmatmul.mubr.f32.gmra.mrb[212].mxu1 %v18247_v24  ;;  %v9063_v19 = vpop.f32.mrb[0].mxu0 }
 0x9ae   : > { %10585 = vmatprep.mubr.f32.mxu1 %v9396_v22  ;;  %v9398_v5 = vmax.f32 %v9284_v17, 0.0  ;;  %v13954_v57 = vadd.f32 %v18178_v32, %v9063_v19  ;;  %v9065_v35 = vpop.f32.mrb[1].mxu0 }
 0x9af   : > { %v18252_v34 = vld [vmem:[#allocation2 + $0x7a] sm:$0xff]  ;;  %v18256_v55 = vld [vmem:[#allocation2 + $0x82] sm:$0xff] }
 0x9b0   : > { %v18254_v42 = vld [vmem:[#allocation2 + $0x80] sm:$0xff]  ;;  %9430 = vst [vmem:[#allocation2 + $0x99] sm:$0xff] %v9398_v5  ;;  %v9289_v28 = vadd.f32 %v13954_v57, %v17950_v39  ;;  %12603 = vmatprep.mubr.f32.mxu0 %v18252_v34 }
 0x9b1   : > { %10586 = vmatmul.mubr.f32.gmra.mrb[214].mxu1 %v18254_v42  ;;  %v9068_v61 = vpop.f32.mrb[2].mxu0  ;;  %12604 = vmatmul.mubr.f32.gmra.mrb[46].mxu0 %v18256_v55 }
 0x9b2   : > { %10590 = vmatprep.mubr.f32.mxu1 %v9397_v26  ;;  %v9399_v25 = vmax.f32 %v9289_v28, 0.0  ;;  %v13955_v49 = vadd.f32 %v18178_v32, %v9068_v61  ;;  %v9070_v36 = vpop.f32.mrb[3].mxu0 }
 0x9b3   : > { %v18263_v16 = vld [vmem:[#allocation2 + $0x90] sm:$0xff] }
 0x9b4   : > { %9431 = vst [vmem:[#allocation2 + $0xa9] sm:$0xff] %v9399_v25  ;;  %v9294_v44 = vadd.f32 %v13955_v49, %v17948_v29 }
 0x9b5   : > { %10591 = vmatmul.mubr.f32.gmra.mrb[216].mxu1 %v18263_v16  ;;  %v9073_v39 = vpop.f32.mrb[4].mxu0 }
 0x9b6   : > { %10595 = vmatprep.mubr.f32.mxu1 %v9398_v5  ;;  %v9400_v58 = vmax.f32 %v9294_v44, 0.0  ;;  %v13956_v33 = vadd.f32 %v18178_v32, %v9073_v39  ;;  %v9075_v20 = vpop.f32.mrb[5].mxu0 }
 0x9b7   : > { %v18268_v50 = vld [vmem:[#allocation2 + $0x92] sm:$0xff]  ;;  %v18272_v47 = vld [vmem:[#allocation2 + $0x9a] sm:$0xff] }
 0x9b8   : > { %v18270_v52 = vld [vmem:[#allocation2 + $0x98] sm:$0xff]  ;;  %9432 = vst [vmem:[#allocation2 + $0xb1] sm:$0xff] %v9400_v58  ;;  %v9299_v62 = vadd.f32 %v13956_v33, %v17958_v4  ;;  %12606 = vmatprep.mubr.f32.mxu0 %v18268_v50 }
 0x9b9   : > { %10596 = vmatmul.mubr.f32.gmra.mrb[218].mxu1 %v18270_v52  ;;  %v9078_v29 = vpop.f32.mrb[6].mxu0  ;;  %12607 = vmatmul.mubr.f32.gmra.mrb[48].mxu0 %v18272_v47 }
 0x9ba   : > { %10600 = vmatprep.mubr.f32.mxu1 %v9399_v25  ;;  %v9401_v21 = vmax.f32 %v9299_v62, 0.0  ;;  %v13957_v18 = vadd.f32 %v18178_v32, %v9078_v29  ;;  %v9080_v46 = vpop.f32.mrb[7].mxu0 }
 0x9bb   : > { %v18279_v31 = vld [vmem:[#allocation2 + $0xa8] sm:$0xff] }
 0x9bc   : > { %9433 = vst [vmem:[#allocation2 + $0xc1] sm:$0xff] %v9401_v21  ;;  %v9304_v22 = vadd.f32 %v13957_v18, %v17956_v37 }
 0x9bd   : > { %10601 = vmatmul.mubr.f32.gmra.mrb[220].mxu1 %v18279_v31  ;;  %v9083_v4 = vpop.f32.mrb[8].mxu0 }
 0x9be   : > { %10605 = vmatprep.mubr.f32.mxu1 %v9400_v58  ;;  %v9402_v14 = vmax.f32 %v9304_v22, 0.0  ;;  %v13958_v63 = vadd.f32 %v18178_v32, %v9083_v4  ;;  %v9085_v56 = vpop.f32.mrb[9].mxu0 }
 0x9bf   : > { %v18284_v7 = vld [vmem:[#allocation2 + $0xaa] sm:$0xff]  ;;  %v18288_v12 = vld [vmem:[#allocation2 + $0xb2] sm:$0xff] }
 0x9c0   : > { %v18286_v26 = vld [vmem:[#allocation2 + $0xb0] sm:$0xff]  ;;  %9434 = vst [vmem:[#allocation2 + $0xc9] sm:$0xff] %v9402_v14  ;;  %v9309_v45 = vadd.f32 %v13958_v63, %v17970_v59  ;;  %12609 = vmatprep.mubr.f32.mxu0 %v18284_v7 }
 0x9c1   : > { %10606 = vmatmul.mubr.f32.gmra.mrb[222].mxu1 %v18286_v26  ;;  %v9088_v37 = vpop.f32.mrb[10].mxu0  ;;  %12610 = vmatmul.mubr.f32.gmra.mrb[50].mxu0 %v18288_v12 }
 0x9c2   : > { %10610 = vmatprep.mubr.f32.mxu1 %v9401_v21  ;;  %v9403_v17 = vmax.f32 %v9309_v45, 0.0  ;;  %v13959_v19 = vadd.f32 %v18178_v32, %v9088_v37  ;;  %v9090_v5 = vpop.f32.mrb[11].mxu0 }
 0x9c3   : > { %v18295_v57 = vld [vmem:[#allocation2 + $0xc0] sm:$0xff] }
 0x9c4   : > { %9435 = vst [vmem:[#allocation2 + $0xd9] sm:$0xff] %v9403_v17  ;;  %v9314_v35 = vadd.f32 %v13959_v19, %v17968_v23 }
 0x9c5   : > { %10611 = vmatmul.mubr.f32.gmra.mrb[224].mxu1 %v18295_v57  ;;  %v9093_v59 = vpop.f32.mrb[12].mxu0 }
 0x9c6   : > { %10615 = vmatprep.mubr.f32.mxu1 %v9402_v14  ;;  %v9404_v28 = vmax.f32 %v9314_v35, 0.0  ;;  %v13960_v61 = vadd.f32 %v18178_v32, %v9093_v59  ;;  %v9095_v25 = vpop.f32.mrb[13].mxu0 }
 0x9c7   : > { %v18300_v49 = vld [vmem:[#allocation2 + $0xc2] sm:$0xff]  ;;  %v18304_v44 = vld [vmem:[#allocation2 + $0xca] sm:$0xff] }
 0x9c8   : > { %v18302_v36 = vld [vmem:[#allocation2 + $0xc8] sm:$0xff]  ;;  %9436 = vst [vmem:[#allocation2 + $0xe1] sm:$0xff] %v9404_v28  ;;  %v9319_v39 = vadd.f32 %v13960_v61, %v18022_v27  ;;  %12612 = vmatprep.mubr.f32.mxu0 %v18300_v49 }
 0x9c9   : > { %10616 = vmatmul.mubr.f32.gmra.mrb[226].mxu1 %v18302_v36  ;;  %v9098_v23 = vpop.f32.mrb[14].mxu0  ;;  %12613 = vmatmul.mubr.f32.gmra.mrb[52].mxu0 %v18304_v44 }
 0x9ca   : > { %10620 = vmatprep.mubr.f32.mxu1 %v9403_v17  ;;  %v9405_v58 = vmax.f32 %v9319_v39, 0.0  ;;  %v13961_v33 = vadd.f32 %v18178_v32, %v9098_v23  ;;  %v9100_v20 = vpop.f32.mrb[15].mxu0 }
 0x9cb   : > { %v18311_v62 = vld [vmem:[#allocation2 + $0xd8] sm:$0xff] }
 0x9cc   : > { %9437 = vst [vmem:[#allocation2 + $0xf1] sm:$0xff] %v9405_v58  ;;  %v9324_v29 = vadd.f32 %v13961_v33, %v18019_v48 }
 0x9cd   : > { %10621 = vmatmul.mubr.f32.gmra.mrb[228].mxu1 %v18311_v62  ;;  %v9103_v27 = vpop.f32.mrb[16].mxu0 }
 0x9ce   : > { %10625 = vmatprep.mubr.f32.mxu1 %v9404_v28  ;;  %v9406_v21 = vmax.f32 %v9324_v29, 0.0  ;;  %v13962_v18 = vadd.f32 %v18178_v32, %v9103_v27  ;;  %v9105_v46 = vpop.f32.mrb[17].mxu0  ;;  %v19162_v29 = vld [vmem:[#allocation43_spill] sm:$0xff] }
 0x9cf   : > { %v18316_v22 = vld [vmem:[#allocation2 + $0xda] sm:$0xff]  ;;  %v18320_v14 = vld [vmem:[#allocation2 + $0xe2] sm:$0xff] }
 0x9d0   : > { %v18318_v4 = vld [vmem:[#allocation2 + $0xe0] sm:$0xff]  ;;  %9438 = vst [vmem:[#allocation2 + $0xf9] sm:$0xff] %v9406_v21  ;;  %v9329_v63 = vadd.f32 %v13962_v18, %v18034_v60  ;;  %12615 = vmatprep.mubr.f32.mxu0 %v18316_v22 }
 0x9d1   : > { %10626 = vmatmul.mubr.f32.gmra.mrb[230].mxu1 %v18318_v4  ;;  %v9108_v48 = vpop.f32.mrb[18].mxu0  ;;  %12616 = vmatmul.mubr.f32.gmra.mrb[54].mxu0 %v18320_v14 }
 0x9d2   : > { %10630 = vmatprep.mubr.f32.mxu1 %v9405_v58  ;;  %v9407_v56 = vmax.f32 %v9329_v63, 0.0  ;;  %v13963_v45 = vadd.f32 %v18178_v32, %v9108_v48  ;;  %v9110_v37 = vpop.f32.mrb[19].mxu0 }
 0x9d3   : > { %v18327_v17 = vld [vmem:[#allocation2 + $0xf0] sm:$0xff] }
 0x9d4   : > { %9439 = vst [vmem:[#allocation2 + $0x109] sm:$0xff] %v9407_v56  ;;  %v9334_v19 = vadd.f32 %v13963_v45, %v18031_v0  ;;  %v19163_v45 = vld [vmem:[#allocation45_spill] sm:$0xff] }
 0x9d5   : > { %10631 = vmatmul.mubr.f32.gmra.mrb[232].mxu1 %v18327_v17  ;;  %v9113_v60 = vpop.f32.mrb[20].mxu0 }
 0x9d6   : > { %10635 = vmatprep.mubr.f32.mxu1 %v9406_v21  ;;  %v9408_v5 = vmax.f32 %v9334_v19, 0.0  ;;  %v13964_v35 = vadd.f32 %v18178_v32, %v9113_v60  ;;  %v9115_v59 = vpop.f32.mrb[21].mxu0 }
 0x9d7   : > { %v18332_v28 = vld [vmem:[#allocation2 + $0xf2] sm:$0xff]  ;;  %v18336_v25 = vld [vmem:[#allocation2 + $0xfa] sm:$0xff] }
 0x9d8   : > { %v18334_v61 = vld [vmem:[#allocation2 + $0xf8] sm:$0xff]  ;;  %9440 = vst [vmem:[#allocation2 + $0x111] sm:$0xff] %v9408_v5  ;;  %v9339_v39 = vadd.f32 %v13964_v35, %v18045_v43  ;;  %12618 = vmatprep.mubr.f32.mxu0 %v18332_v28 }
 0x9d9   : > { %10636 = vmatmul.mubr.f32.gmra.mrb[234].mxu1 %v18334_v61  ;;  %v9118_v0 = vpop.f32.mrb[22].mxu0  ;;  %12619 = vmatmul.mubr.f32.gmra.mrb[56].mxu0 %v18336_v25 }
 0x9da   : > { %10640 = vmatprep.mubr.f32.mxu1 %v9407_v56  ;;  %v9409_v23 = vmax.f32 %v9339_v39, 0.0  ;;  %v13965_v58 = vadd.f32 %v18178_v32, %v9118_v0  ;;  %v9120_v33 = vpop.f32.mrb[23].mxu0  ;;  %v19164_v39 = vld [vmem:[#allocation44_spill] sm:$0xff] }
 0x9db   : > { %v18343_v20 = vld [vmem:[#allocation2 + $0x108] sm:$0xff] }
 0x9dc   : > { %9441 = vst [vmem:[#allocation2 + $0x121] sm:$0xff] %v9409_v23  ;;  %v9344_v27 = vadd.f32 %v13965_v58, %v19162_v29 }
 0x9dd   : > { %10641 = vmatmul.mubr.f32.gmra.mrb[236].mxu1 %v18343_v20  ;;  %v9123_v43 = vpop.f32.mrb[24].mxu0 }
 0x9de   : > { %10645 = vmatprep.mubr.f32.mxu1 %v9408_v5  ;;  %v9410_v21 = vmax.f32 %v9344_v27, 0.0  ;;  %v13966_v18 = vadd.f32 %v18178_v32, %v9123_v43  ;;  %v9125_v46 = vpop.f32.mrb[25].mxu0 }
 0x9df   : > { %v18348_v63 = vld [vmem:[#allocation2 + $0x10a] sm:$0xff]  ;;  %v18352_v56 = vld [vmem:[#allocation2 + $0x112] sm:$0xff] }
 0x9e0   : > { %v18350_v48 = vld [vmem:[#allocation2 + $0x110] sm:$0xff]  ;;  %9442 = vst [vmem:[#allocation2 + $0x129] sm:$0xff] %v9410_v21  ;;  %v9349_v37 = vadd.f32 %v13966_v18, %v19163_v45  ;;  %12621 = vmatprep.mubr.f32.mxu0 %v18348_v63 }
 0x9e1   : > { %10646 = vmatmul.mubr.f32.gmra.mrb[238].mxu1 %v18350_v48  ;;  %v9128_v19 = vpop.f32.mrb[26].mxu0  ;;  %12622 = vmatmul.mubr.f32.gmra.mrb[58].mxu0 %v18352_v56  ;;  %v19167_v46 = vld [vmem:[#allocation47_spill] sm:$0xff] }
 0x9e2   : > { %10650 = vmatprep.mubr.f32.mxu1 %v9409_v23  ;;  %v9411_v60 = vmax.f32 %v9349_v37, 0.0  ;;  %v13967_v5 = vadd.f32 %v18178_v32, %v9128_v19  ;;  %v9130_v35 = vpop.f32.mrb[27].mxu0 }
 0x9e3   : > { %v18359_v59 = vld [vmem:[#allocation2 + $0x120] sm:$0xff] }
 0x9e4   : > { %9443 = vst [vmem:[#allocation2 + $0x139] sm:$0xff] %v9411_v60  ;;  %v9354_v0 = vadd.f32 %v13967_v5, %v19164_v39  ;;  %v19168_v39 = vld [vmem:[#allocation46_spill] sm:$0xff] }
 0x9e5   : > { %10651 = vmatmul.mubr.f32.gmra.mrb[240].mxu1 %v18359_v59  ;;  %v9133_v58 = vpop.f32.mrb[28].mxu0 }
 0x9e6   : > { %10655 = vmatprep.mubr.f32.mxu1 %v9410_v21  ;;  %v9412_v33 = vmax.f32 %v9354_v0, 0.0  ;;  %v13968_v29 = vadd.f32 %v18178_v32, %v9133_v58  ;;  %v9135_v27 = vpop.f32.mrb[29].mxu0 }
 0x9e7   : > { %v18364_v43 = vld [vmem:[#allocation2 + $0x122] sm:$0xff]  ;;  %v18368_v18 = vld [vmem:[#allocation2 + $0x12a] sm:$0xff] }
 0x9e8   : > { %19165 = vst [vmem:[#allocation35_spill] sm:$0xff] %v18364_v43  ;;  %v18366_v23 = vld [vmem:[#allocation2 + $0x128] sm:$0xff]  ;;  %19166 = vst [vmem:[#allocation36_spill] sm:$0xff] %v18368_v18  ;;  %v9359_v45 = vadd.f32 %v13968_v29, %v19167_v46  ;;  %12624 = vmatprep.mubr.f32.mxu0 %v18364_v43 }
 0x9e9   : > { %9444 = vst [vmem:[#allocation2 + $0x141] sm:$0xff] %v9412_v33  ;;  %10656 = vmatmul.mubr.f32.gmra.mrb[242].mxu1 %v18366_v23  ;;  %v9138_v37 = vpop.f32.mrb[30].mxu0  ;;  %12625 = vmatmul.mubr.f32.gmra.mrb[60].mxu0 %v18368_v18 }
 0x9ea   : > { %10660 = vmatprep.mubr.f32.mxu1 %v9411_v60  ;;  %v9413_v21 = vmax.f32 %v9359_v45, 0.0  ;;  %v13969_v19 = vadd.f32 %v18178_v32, %v9138_v37  ;;  %v9140_v5 = vpop.f32.mrb[31].mxu0  ;;  %v19171_v37 = vld [vmem:[#allocation48_spill] sm:$0xff] }
 0x9eb   : > { %v18375_v35 = vld [vmem:[#allocation2 + $0x138] sm:$0xff] }
 0x9ec   : > { %9445 = vst [vmem:[#allocation2 + $0x151] sm:$0xff] %v9413_v21  ;;  %v9364_v0 = vadd.f32 %v13969_v19, %v19168_v39 }
 0x9ed   : > { %10661 = vmatmul.mubr.f32.gmra.mrb[244].mxu1 %v18375_v35  ;;  %v9143_v58 = vpop.f32.mrb[32].mxu0 }
 0x9ee   : > { %10665 = vmatprep.mubr.f32.mxu1 %v9412_v33  ;;  %v18379_v29 = vmax.f32 %v9364_v0, 0.0  ;;  %v13970_v27 = vadd.f32 %v18178_v32, %v9143_v58  ;;  %v9145_v46 = vpop.f32.mrb[33].mxu0 }
 0x9ef   : > { %v19173_v46 = vld [vmem:[#allocation50_spill] sm:$0xff] }
 0x9f0   : > { %19169 = vst [vmem:[#allocation49_spill] sm:$0xff] %v18379_v29  ;;  %v18382_v18 = vld [vmem:[#allocation2 + $0x13a] sm:$0xff]  ;;  %v18386_v45 = vld [vmem:[#allocation2 + $0x142] sm:$0xff]  ;;  %9446 = vst [vmem:[#allocation2 + $0x159] sm:$0xff] %v18379_v29  ;;  %v9369_v5 = vadd.f32 %v13970_v27, %v19171_v37 }
 0x9f1   : > { %v18384_v60 = vld [vmem:[#allocation2 + $0x140] sm:$0xff]  ;;  %19170 = vst [vmem:[#allocation52_spill] sm:$0xff] %v18386_v45  ;;  %12627 = vmatprep.mubr.f32.mxu0 %v18382_v18  ;;  %v9148_v33 = vpop.f32.mrb[34].mxu0 }
 0x9f2   : > { %10666 = vmatmul.mubr.f32.gmra.mrb[246].mxu1 %v18384_v60  ;;  %12628 = vmatmul.mubr.f32.gmra.mrb[62].mxu0 %v18386_v45  ;;  %v18393_v19 = vmax.f32 %v9369_v5, 0.0  ;;  %v13971_v39 = vadd.f32 %v18178_v32, %v9148_v33  ;;  %v9150_v0 = vpop.f32.mrb[35].mxu0 }
 0x9f3   : > { %10670 = vmatprep.mubr.f32.mxu1 %v9413_v21  ;;  %v18396_v58 = vld [vmem:[#allocation2 + $0x150] sm:$0xff] }
 0x9f4   : > { %19172 = vst [vmem:[#allocation37_spill] sm:$0xff] %v18393_v19  ;;  %9447 = vst [vmem:[#allocation2 + $0x169] sm:$0xff] %v18393_v19  ;;  %v9374_v43 = vadd.f32 %v13971_v39, %v19173_v46 }
 0x9f5   : > { %v9153_v27 = vpop.f32.mrb[36].mxu0 }
 0x9f6   : > { %10671 = vmatmul.mubr.f32.gmra.mrb[248].mxu1 %v18396_v58  ;;  %v18402_v37 = vmax.f32 %v9374_v43, 0.0  ;;  %v13972_v21 = vadd.f32 %v18178_v32, %v9153_v27  ;;  %v9155_v5 = vpop.f32.mrb[37].mxu0 }
 0x9f7   : > { %10675 = vmatprep.mubr.f32.mxu1 %v18379_v29  ;;  %v18405_v45 = vld [vmem:[#allocation2 + $0x152] sm:$0xff]  ;;  %v18409_v0 = vld [vmem:[#allocation2 + $0x15a] sm:$0xff] }
 0x9f8   : > { %19174 = vst [vmem:[#allocation51_spill] sm:$0xff] %v18402_v37  ;;  %19175 = vst [vmem:[#allocation38_spill] sm:$0xff] %v18405_v45  ;;  %v18407_v33 = vld [vmem:[#allocation2 + $0x158] sm:$0xff]  ;;  %v18413_v39 = vadd.f32 %v13972_v21, %v18173_v2  ;;  %12630 = vmatprep.mubr.f32.mxu0 %v18405_v45 }
 0x9f9   : > { %19176 = vst [vmem:[#allocation54_spill] sm:$0xff] %v18409_v0  ;;  %9448 = vst [vmem:[#allocation2 + $0x171] sm:$0xff] %v18402_v37  ;;  %v9158_v43 = vpop.f32.mrb[38].mxu0  ;;  %12631 = vmatmul.mubr.f32.gmra.mrb[64].mxu0 %v18409_v0  ;;  %v10380_v0 = vld [vmem:[#allocation13 + $0x208] sm:$0xff] }
 0x9fa   : > { %19177 = vst [vmem:[#allocation39_spill] sm:$0xff] %v18413_v39  ;;  %10676 = vmatmul.mubr.f32.gmra.mrb[250].mxu1 %v18407_v33  ;;  %v18984_v46 = vmax.f32 %v18413_v39, 0.0  ;;  %v13973_v27 = vadd.f32 %v18178_v32, %v9158_v43  ;;  %v9160_v5 = vpop.f32.mrb[39].mxu0  ;;  %v9580_v39 = vld [vmem:[#allocation2 + $0xa] sm:$0xff] }
 0x9fb   : > { %10680 = vmatprep.mubr.f32.mxu1 %v18393_v19  ;;  %v18421_v29 = vld [vmem:[#allocation2 + $0x168] sm:$0xff]  ;;  %v10379_v19 = vld [vmem:[#allocation13 + $0x200] sm:$0xff]  ;;  %v10381_v5 = vld [vmem:[#allocation13 + $0x210] sm:$0xff] }
 0x9fc   : > { %9449 = vst [vmem:[#allocation2 + $0x181] sm:$0xff] %v18984_v46  ;;  %v18426_v2 = vadd.f32 %v13973_v27, %v18171_v54  ;;  %v9579_v54 = vld [vmem:[#allocation2 + $0x2] sm:$0xff]  ;;  %v13635_v27 = vpack.c.bf16 %v10380_v0, %v10379_v19  ;;  %v10382_v46 = vld [vmem:[#allocation13 + $0x218] sm:$0xff]  ;;  %v10385_v19 = vld [vmem:[#allocation13 + $0x230] sm:$0xff] }
 0x9fd   : > { %v10386_v0 = vld [vmem:[#allocation13 + $0x238] sm:$0xff] }
 0x9fe   : > { %19178 = vst [vmem:[#allocation53_spill] sm:$0xff] %v18426_v2  ;;  %10681 = vmatmul.mubr.f32.gmra.mrb[252].mxu1 %v18421_v29  ;;  %v18986_v21 = vmax.f32 %v18426_v2, 0.0  ;;  %v10383_v2 = vld [vmem:[#allocation13 + $0x220] sm:$0xff] }
 0x9ff   : > { %10685 = vmatprep.mubr.f32.mxu1 %v18402_v37 }
 0xa00   : > { %v18431_v45 = vld [vmem:[#allocation2 + $0x16a] sm:$0xff]  ;;  %v18435_v43 = vld [vmem:[#allocation2 + $0x172] sm:$0xff]  ;;  %9450 = vst [vmem:[#allocation2 + $0x189] sm:$0xff] %v18986_v21  ;;  %v13638_v21 = vpack.c.bf16 %v10382_v46, %v10381_v5  ;;  %v13644_v46 = vpack.c.bf16 %v10386_v0, %v10385_v19 }
 0xa01   : > { %19179 = vst [vmem:[#allocation40_spill] sm:$0xff] %v18431_v45  ;;  %v18433_v32 = vld [vmem:[#allocation2 + $0x170] sm:$0xff]  ;;  %19180 = vst [vmem:[#allocation56_spill] sm:$0xff] %v18435_v43  ;;  %12633 = vmatprep.mubr.f32.mxu0 %v18431_v45  ;;  %v10392_v5 = vld [vmem:[#allocation13 + $0x268] sm:$0xff] }
 0xa02   : > { %10686 = vmatmul.mubr.f32.gmra.mrb[254].mxu1 %v18433_v32  ;;  %12634 = vmatmul.mubr.f32.gmra.mrb[66].mxu0 %v18435_v43  ;;  %v10384_v43 = vld [vmem:[#allocation13 + $0x228] sm:$0xff]  ;;  %v10394_v19 = vld [vmem:[#allocation13 + $0x278] sm:$0xff] }
 0xa03   : > { %10755 = vmatprep.mubr.f32.mxu1 %v18189_v11  ;;  %v13641_v11 = vpack.c.bf16 %v10384_v43, %v10383_v2  ;;  %v10390_v43 = vld [vmem:[#allocation13 + $0x258] sm:$0xff]  ;;  %v10396_v0 = vld [vmem:[#allocation13 + $0x288] sm:$0xff] }
 0xa06   : > { %10756 = vmatmul.mubr.f32.vlgmr.msra.gmra.mrb[192].mxu1 %v9579_v54  ;;  %v18457_v54 = vld [vmem:[#allocation2 + $0x22] sm:$0xff] }
 0xa07   : > { %10760 = vmatprep.mubr.f32.mxu1 %v18194_v13  ;;  %13636 = vmatpush1.bf16.msra.mxu1 %v13635_v27  ;;  %v18445_v37 = vld [vmem:[#allocation2 + $0x182] sm:$0xff]  ;;  %v18447_v45 = vld [vmem:[#allocation2 + $0x18a] sm:$0xff]  ;;  %v18452_v13 = vld [vmem:[#allocation2 + $0x1a] sm:$0xff] }
 0xa08   : > { %13637 = vmatprep.subr.bf16.mxu1 %v19023_v8  ;;  %12636 = vmatprep.mubr.f32.mxu0 %v18445_v37  ;;  %v10391_v27 = vld [vmem:[#allocation13 + $0x260] sm:$0xff] }
 0xa09   : > { %12637 = vmatmul.mubr.f32.gmra.mrb[68].mxu0 %v18447_v45 }
 0xa0a   : > { %10761 = vmatmul.mubr.f32.gmra.mrb[194].mxu1 %v9580_v39  ;;  %v10387_v39 = vld [vmem:[#allocation13 + $0x240] sm:$0xff] }
 0xa0b   : > { %10765 = vmatprep.mubr.f32.mxu1 %v18199_v6  ;;  %13639 = vmatpush1.bf16.msra.mxu1 %v13638_v21  ;;  %v10388_v6 = vld [vmem:[#allocation13 + $0x248] sm:$0xff]  ;;  %v10389_v21 = vld [vmem:[#allocation13 + $0x250] sm:$0xff] }
 0xa0c   : > { %13640 = vmatprep.subr.bf16.mxu1 %v19023_v8  ;;  %v13647_v2 = vpack.c.bf16 %v10388_v6, %v10387_v39  ;;  %v10400_v39 = vld [vmem:[#allocation13 + $0x2a8] sm:$0xff]  ;;  %v10402_v6 = vld [vmem:[#allocation13 + $0x2b8] sm:$0xff] }
 0xa0e   : > { %10766 = vmatmul.mubr.f32.gmra.mrb[196].mxu1 %v18452_v13 }
 0xa0f   : > { %10770 = vmatprep.mubr.f32.mxu1 %v18206_v9  ;;  %13642 = vmatpush1.bf16.msra.mxu1 %v13641_v11  ;;  %v13650_v9 = vpack.c.bf16 %v10390_v43, %v10389_v21  ;;  %v10393_v11 = vld [vmem:[#allocation13 + $0x270] sm:$0xff]  ;;  %v10406_v21 = vld [vmem:[#allocation13 + $0x2d8] sm:$0xff]  ;;  %v10408_v43 = vld [vmem:[#allocation13 + $0x2e8] sm:$0xff] }
 0xa10   : > { %13643 = vmatprep.subr.bf16.mxu1 %v19023_v8 }
 0xa12   : > { %10771 = vmatmul.mubr.f32.gmra.mrb[198].mxu1 %v18457_v54 }
 0xa13   : > { %10775 = vmatprep.mubr.f32.mxu1 %v18215_v1  ;;  %13645 = vmatpush1.bf16.msra.mxu1 %v13644_v46  ;;  %v13653_v1 = vpack.c.bf16 %v10392_v5, %v10391_v27  ;;  %v10398_v46 = vld [vmem:[#allocation13 + $0x298] sm:$0xff]  ;;  %v10415_v5 = vld [vmem:[#allocation13 + $0x320] sm:$0xff] }
 0xa14   : > { %13646 = vmatprep.subr.bf16.mxu1 %v19023_v8 }
 0xa16   : > { %10776 = vmatmul.mubr.f32.gmra.mrb[200].mxu1 %v18204_v3  ;;  %v13656_v3 = vpack.c.bf16 %v10394_v19, %v10393_v11  ;;  %v9708_v11 = vld [vmem:[#allocation2 + $0x21] sm:$0xff] }
 0xa17   : > { %10780 = vmatprep.mubr.f32.mxu1 %v18222_v51  ;;  %13648 = vmatpush1.bf16.msra.mxu1 %v13647_v2  ;;  %v10395_v51 = vld [vmem:[#allocation13 + $0x280] sm:$0xff]  ;;  %v10404_v2 = vld [vmem:[#allocation13 + $0x2c8] sm:$0xff] }
 0xa18   : > { %13649 = vmatprep.subr.bf16.mxu1 %v19023_v8 }
 0xa1a   : > { %10781 = vmatmul.mubr.f32.gmra.mrb[202].mxu1 %v18208_v10  ;;  %v13659_v10 = vpack.c.bf16 %v10396_v0, %v10395_v51  ;;  %v10418_v51 = vld [vmem:[#allocation13 + $0x338] sm:$0xff] }
 0xa1b   : > { %10785 = vmatprep.mubr.f32.mxu1 %v18231_v38  ;;  %13651 = vmatpush1.bf16.msra.mxu1 %v13650_v9  ;;  %v10397_v38 = vld [vmem:[#allocation13 + $0x290] sm:$0xff]  ;;  %v10410_v9 = vld [vmem:[#allocation13 + $0x2f8] sm:$0xff] }
 0xa1c   : > { %13652 = vmatprep.subr.bf16.mxu1 %v19023_v8  ;;  %v18554_v0 = vld [vmem:[#allocation2 + $0x31] sm:$0xff] }
 0xa1e   : > { %10786 = vmatmul.mubr.f32.gmra.mrb[204].mxu1 %v18220_v30  ;;  %v13662_v30 = vpack.c.bf16 %v10398_v46, %v10397_v38 }
 0xa1f   : > { %10790 = vmatprep.mubr.f32.mxu1 %v18238_v53  ;;  %13654 = vmatpush1.bf16.msra.mxu1 %v13653_v1  ;;  %v10399_v53 = vld [vmem:[#allocation13 + $0x2a0] sm:$0xff]  ;;  %v10416_v1 = vld [vmem:[#allocation13 + $0x328] sm:$0xff] }
 0xa20   : > { %13655 = vmatprep.subr.bf16.mxu1 %v19023_v8  ;;  %v13689_v19 = vpack.c.bf16 %v10416_v1, %v10415_v5  ;;  %v18586_v5 = vld [vmem:[#allocation2 + $0x69] sm:$0xff]  ;;  %v9779_v1 = vld [vmem:[#allocation2 + $0x7a] sm:$0xff] }
 0xa22   : > { %10791 = vmatmul.mubr.f32.gmra.mrb[206].mxu1 %v18224_v15  ;;  %v13665_v15 = vpack.c.bf16 %v10400_v39, %v10399_v53  ;;  %v10420_v53 = vld [vmem:[#allocation13 + $0x348] sm:$0xff]  ;;  %v18562_v39 = vld [vmem:[#allocation2 + $0x39] sm:$0xff] }
 0xa23   : > { %10795 = vmatprep.mubr.f32.mxu1 %v18247_v24  ;;  %13657 = vmatpush1.bf16.msra.mxu1 %v13656_v3  ;;  %v10401_v24 = vld [vmem:[#allocation13 + $0x2b0] sm:$0xff] }
 0xa24   : > { %13658 = vmatprep.subr.bf16.mxu1 %v19023_v8  ;;  %v10417_v3 = vld [vmem:[#allocation13 + $0x330] sm:$0xff] }
 0xa25   : > { %v13692_v46 = vpack.c.bf16 %v10418_v51, %v10417_v3  ;;  %v18590_v3 = vld [vmem:[#allocation2 + $0x79] sm:$0xff] }
 0xa26   : > { %10796 = vmatmul.mubr.f32.gmra.mrb[208].mxu1 %v18236_v40  ;;  %v13668_v40 = vpack.c.bf16 %v10402_v6, %v10401_v24  ;;  %v10421_v6 = vld [vmem:[#allocation13 + $0x350] sm:$0xff] }
 0xa27   : > { %10800 = vmatprep.mubr.f32.mxu1 %v18254_v42  ;;  %13660 = vmatpush1.bf16.msra.mxu1 %v13659_v10  ;;  %v10403_v42 = vld [vmem:[#allocation13 + $0x2c0] sm:$0xff] }
 0xa28   : > { %13661 = vmatprep.subr.bf16.mxu1 %v19023_v8 }
 0xa2a   : > { %10801 = vmatmul.mubr.f32.gmra.mrb[210].mxu1 %v18240_v41  ;;  %v13671_v41 = vpack.c.bf16 %v10404_v2, %v10403_v42  ;;  %v18566_v42 = vld [vmem:[#allocation2 + $0x49] sm:$0xff] }
 0xa2b   : > { %10805 = vmatprep.mubr.f32.mxu1 %v18263_v16  ;;  %13663 = vmatpush1.bf16.msra.mxu1 %v13662_v30  ;;  %v10405_v16 = vld [vmem:[#allocation13 + $0x2d0] sm:$0xff]  ;;  %v10419_v30 = vld [vmem:[#allocation13 + $0x340] sm:$0xff] }
 0xa2c   : > { %13664 = vmatprep.subr.bf16.mxu1 %v19023_v8  ;;  %v13695_v24 = vpack.c.bf16 %v10420_v53, %v10419_v30  ;;  %v10431_v53 = vld [vmem:[#allocation13 + $0x3a0] sm:$0xff] }
 0xa2e   : > { %10806 = vmatmul.mubr.f32.gmra.mrb[212].mxu1 %v18252_v34  ;;  %v13674_v34 = vpack.c.bf16 %v10406_v21, %v10405_v16 }
 0xa2f   : > { %10810 = vmatprep.mubr.f32.mxu1 %v18270_v52  ;;  %13666 = vmatpush1.bf16.msra.mxu1 %v13665_v15  ;;  %v10407_v52 = vld [vmem:[#allocation13 + $0x2e0] sm:$0xff]  ;;  %v9775_v15 = vld [vmem:[#allocation2 + $0x4a] sm:$0xff] }
 0xa30   : > { %13667 = vmatprep.subr.bf16.mxu1 %v19023_v8 }
 0xa32   : > { %10811 = vmatmul.mubr.f32.gmra.mrb[214].mxu1 %v18256_v55  ;;  %v13677_v55 = vpack.c.bf16 %v10408_v43, %v10407_v52  ;;  %v10424_v52 = vld [vmem:[#allocation13 + $0x368] sm:$0xff]  ;;  %v18574_v43 = vld [vmem:[#allocation2 + $0x51] sm:$0xff] }
 0xa33   : > { %10815 = vmatprep.mubr.f32.mxu1 %v18279_v31  ;;  %13669 = vmatpush1.bf16.msra.mxu1 %v13668_v40  ;;  %v10409_v31 = vld [vmem:[#allocation13 + $0x2f0] sm:$0xff]  ;;  %v10422_v40 = vld [vmem:[#allocation13 + $0x358] sm:$0xff] }
 0xa34   : > { %13670 = vmatprep.subr.bf16.mxu1 %v19023_v8  ;;  %v13698_v21 = vpack.c.bf16 %v10422_v40, %v10421_v6  ;;  %v9781_v6 = vld [vmem:[#allocation2 + $0x92] sm:$0xff] }
 0xa36   : > { %10816 = vmatmul.mubr.f32.gmra.mrb[216].mxu1 %v18268_v50  ;;  %v13680_v50 = vpack.c.bf16 %v10410_v9, %v10409_v31  ;;  %v10425_v9 = vld [vmem:[#allocation13 + $0x370] sm:$0xff] }
 0xa37   : > { %10820 = vmatprep.mubr.f32.mxu1 %v18286_v26  ;;  %13672 = vmatpush1.bf16.msra.mxu1 %v13671_v41  ;;  %v9776_v41 = vld [vmem:[#allocation2 + $0x52] sm:$0xff] }
 0xa38   : > { %13673 = vmatprep.subr.bf16.mxu1 %v19023_v8 }
 0xa3a   : > { %10821 = vmatmul.mubr.f32.gmra.mrb[218].mxu1 %v18272_v47  ;;  %v19181_v47 = vld [vmem:[#allocation35_spill] sm:$0xff] }
 0xa3b   : > { %10825 = vmatprep.mubr.f32.mxu1 %v18295_v57  ;;  %13675 = vmatpush1.bf16.msra.mxu1 %v13674_v34  ;;  %v19183_v57 = vld [vmem:[#allocation52_spill] sm:$0xff]  ;;  %v10423_v34 = vld [vmem:[#allocation13 + $0x360] sm:$0xff] }
 0xa3c   : > { %13676 = vmatprep.subr.bf16.mxu1 %v19023_v8  ;;  %v13701_v31 = vpack.c.bf16 %v10424_v52, %v10423_v34  ;;  %v18602_v34 = vld [vmem:[#allocation2 + $0x91] sm:$0xff] }
 0xa3e   : > { %10826 = vmatmul.mubr.f32.gmra.mrb[220].mxu1 %v18284_v7  ;;  %v19182_v7 = vld [vmem:[#allocation36_spill] sm:$0xff] }
 0xa3f   : > { %10830 = vmatprep.mubr.f32.mxu1 %v18302_v36  ;;  %13678 = vmatpush1.bf16.msra.mxu1 %v13677_v55  ;;  %v19184_v36 = vld [vmem:[#allocation38_spill] sm:$0xff] }
 0xa40   : > { %13679 = vmatprep.subr.bf16.mxu1 %v19023_v8  ;;  %v9777_v55 = vld [vmem:[#allocation2 + $0x62] sm:$0xff] }
 0xa42   : > { %10831 = vmatmul.mubr.f32.gmra.mrb[222].mxu1 %v18288_v12 }
 0xa43   : > { %10835 = vmatprep.mubr.f32.mxu1 %v18311_v62  ;;  %13681 = vmatpush1.bf16.msra.mxu1 %v13680_v50  ;;  %v19185_v62 = vld [vmem:[#allocation54_spill] sm:$0xff]  ;;  %v10426_v50 = vld [vmem:[#allocation13 + $0x378] sm:$0xff] }
 0xa44   : > { %13682 = vmatprep.subr.bf16.mxu1 %v19023_v8 }
 0xa46   : > { %10836 = vmatmul.mubr.f32.gmra.mrb[224].mxu1 %v18300_v49 }
 0xa47   : > { %10840 = vmatprep.mubr.f32.mxu1 %v18318_v4 }
 0xa4a   : > { %10841 = vmatmul.mubr.f32.gmra.mrb[226].mxu1 %v18304_v44 }
 0xa4b   : > { %10845 = vmatprep.mubr.f32.mxu1 %v18327_v17  ;;  %v19186_v17 = vld [vmem:[#allocation40_spill] sm:$0xff] }
 0xa4e   : > { %10846 = vmatmul.mubr.f32.gmra.mrb[228].mxu1 %v18316_v22  ;;  %v18534_v22 = vld [vmem:[#allocation2 + $0x180] sm:$0xff] }
 0xa4f   : > { %10850 = vmatprep.mubr.f32.mxu1 %v18334_v61  ;;  %v18540_v61 = vld [vmem:[#allocation2 + $0x188] sm:$0xff] }
 0xa52   : > { %10851 = vmatmul.mubr.f32.gmra.mrb[230].mxu1 %v18320_v14 }
 0xa53   : > { %10855 = vmatprep.mubr.f32.mxu1 %v18343_v20 }
 0xa56   : > { %10856 = vmatmul.mubr.f32.gmra.mrb[232].mxu1 %v18332_v28 }
 0xa57   : > { %10860 = vmatprep.mubr.f32.mxu1 %v18350_v48  ;;  %v10411_v48 = vld [vmem:[#allocation13 + $0x300] sm:$0xff] }
 0xa5a   : > { %10861 = vmatmul.mubr.f32.gmra.mrb[234].mxu1 %v18336_v25 }
 0xa5b   : > { %10865 = vmatprep.mubr.f32.mxu1 %v18359_v59  ;;  %v10412_v59 = vld [vmem:[#allocation13 + $0x308] sm:$0xff] }
 0xa5e   : > { %10866 = vmatmul.mubr.f32.gmra.mrb[236].mxu1 %v18348_v63 }
 0xa5f   : > { %10870 = vmatprep.mubr.f32.mxu1 %v18366_v23  ;;  %v19187_v23 = vld [vmem:[#allocation56_spill] sm:$0xff] }
 0xa62   : > { %10871 = vmatmul.mubr.f32.gmra.mrb[238].mxu1 %v18352_v56 }
 0xa63   : > { %10875 = vmatprep.mubr.f32.mxu1 %v18375_v35  ;;  %v13683_v35 = vpack.c.bf16 %v10412_v59, %v10411_v48  ;;  %v18578_v48 = vld [vmem:[#allocation2 + $0x61] sm:$0xff] }
 0xa66   : > { %10876 = vmatmul.mubr.f32.gmra.mrb[240].mxu1 %v19181_v47 }
 0xa67   : > { %10880 = vmatprep.mubr.f32.mxu1 %v18384_v60  ;;  %v10414_v60 = vld [vmem:[#allocation13 + $0x318] sm:$0xff] }
 0xa6a   : > { %10881 = vmatmul.mubr.f32.gmra.mrb[242].mxu1 %v19182_v7 }
 0xa6b   : > { %10885 = vmatprep.mubr.f32.mxu1 %v18396_v58  ;;  %v9707_v58 = vld [vmem:[#allocation2 + $0x19] sm:$0xff] }
 0xa6c   : > { %v18519_v26 = vpop.f32.mrb[40].mxu0 }
 0xa6d   : > { %v18522_v12 = vpop.f32.mrb[41].mxu0 }
 0xa6e   : > { %10886 = vmatmul.mubr.f32.gmra.mrb[244].mxu1 %v18382_v18 }
 0xa6f   : > { %10890 = vmatprep.mubr.f32.mxu1 %v18407_v33 }
 0xa72   : > { %10891 = vmatmul.mubr.f32.gmra.mrb[246].mxu1 %v19183_v57 }
 0xa73   : > { %10895 = vmatprep.mubr.f32.mxu1 %v18421_v29  ;;  %v10413_v29 = vld [vmem:[#allocation13 + $0x310] sm:$0xff] }
 0xa74   : > { %v18527_v49 = vpop.f32.mrb[42].mxu0  ;;  %v13686_v27 = vpack.c.bf16 %v10414_v60, %v10413_v29  ;;  %v13704_v60 = vpack.c.bf16 %v10426_v50, %v10425_v9  ;;  %v10435_v50 = vld [vmem:[#allocation13 + $0x3c0] sm:$0xff] }
 0xa75   : > { %v18530_v44 = vpop.f32.mrb[43].mxu0 }
 0xa76   : > { %10896 = vmatmul.mubr.f32.gmra.mrb[248].mxu1 %v19184_v36 }
 0xa77   : > { %10900 = vmatprep.mubr.f32.mxu1 %v18433_v32 }
 0xa7a   : > { %10901 = vmatmul.mubr.f32.gmra.mrb[250].mxu1 %v19185_v62 }
 0xa7b   : > { %10905 = vmatprep.mubr.f32.mxu1 %v18534_v22 }
 0xa7c   : > { %v18537_v4 = vpop.f32.mrb[44].mxu0 }
 0xa7d   : > { %v18542_v20 = vpop.f32.mrb[45].mxu0 }
 0xa7e   : > { %10906 = vmatmul.mubr.f32.gmra.mrb[252].mxu1 %v19186_v17 }
 0xa7f   : > { %10910 = vmatprep.mubr.f32.mxu1 %v18540_v61 }
 0xa82   : > { %10911 = vmatmul.mubr.f32.gmra.mrb[254].mxu1 %v19187_v23 }
 0xa83   : > { %10980 = vmatprep.mubr.f32.mxu1 %v18452_v13  ;;  %v9773_v13 = vld [vmem:[#allocation2 + $0x32] sm:$0xff] }
 0xa84   : > { %v18547_v33 = vpop.f32.mrb[46].mxu0 }
 0xa85   : > { %v18549_v32 = vpop.f32.mrb[47].mxu0 }
 0xa86   : > { %10981 = vmatmul.mubr.f32.vlgmr.msra.gmra.mrb[192].mxu1 %v9707_v58  ;;  %v10427_v58 = vld [vmem:[#allocation13 + $0x380] sm:$0xff] }
 0xa87   : > { %10985 = vmatprep.mubr.f32.mxu1 %v18457_v54  ;;  %13684 = vmatpush1.bf16.msra.mxu1 %v13683_v35  ;;  %v9774_v54 = vld [vmem:[#allocation2 + $0x3a] sm:$0xff]  ;;  %v9778_v35 = vld [vmem:[#allocation2 + $0x6a] sm:$0xff] }
 0xa88   : > { %13685 = vmatprep.subr.bf16.mxu1 %v19023_v8 }
 0xa8a   : > { %10986 = vmatmul.mubr.f32.gmra.mrb[194].mxu1 %v9708_v11 }
 0xa8b   : > { %10990 = vmatprep.mubr.f32.mxu1 %v9773_v13  ;;  %13687 = vmatpush1.bf16.msra.mxu1 %v13686_v27  ;;  %v10428_v27 = vld [vmem:[#allocation13 + $0x388] sm:$0xff]  ;;  %v10429_v13 = vld [vmem:[#allocation13 + $0x390] sm:$0xff] }
 0xa8c   : > { %13688 = vmatprep.subr.bf16.mxu1 %v19023_v8  ;;  %v18556_v10 = vpop.f32.mrb[48].mxu0  ;;  %v13707_v11 = vpack.c.bf16 %v10428_v27, %v10427_v58  ;;  %v9783_v58 = vld [vmem:[#allocation2 + $0xaa] sm:$0xff] }
 0xa8d   : > { %v18559_v38 = vpop.f32.mrb[49].mxu0 }
 0xa8e   : > { %10991 = vmatmul.mubr.f32.gmra.mrb[196].mxu1 %v18554_v0 }
 0xa8f   : > { %10995 = vmatprep.mubr.f32.mxu1 %v9774_v54  ;;  %13690 = vmatpush1.bf16.msra.mxu1 %v13689_v19  ;;  %v10430_v19 = vld [vmem:[#allocation13 + $0x398] sm:$0xff]  ;;  %v9780_v54 = vld [vmem:[#allocation2 + $0x82] sm:$0xff] }
 0xa90   : > { %13691 = vmatprep.subr.bf16.mxu1 %v19023_v8  ;;  %v13710_v30 = vpack.c.bf16 %v10430_v19, %v10429_v13  ;;  %v18614_v13 = vld [vmem:[#allocation2 + $0xa9] sm:$0xff] }
 0xa92   : > { %10996 = vmatmul.mubr.f32.gmra.mrb[198].mxu1 %v18562_v39 }
 0xa93   : > { %11000 = vmatprep.mubr.f32.mxu1 %v9775_v15  ;;  %13693 = vmatpush1.bf16.msra.mxu1 %v13692_v46  ;;  %v10432_v15 = vld [vmem:[#allocation13 + $0x3a8] sm:$0xff] }
 0xa94   : > { %13694 = vmatprep.subr.bf16.mxu1 %v19023_v8  ;;  %v18568_v2 = vpop.f32.mrb[50].mxu0  ;;  %v13713_v40 = vpack.c.bf16 %v10432_v15, %v10431_v53  ;;  %v10439_v15 = vld [vmem:[#allocation13 + $0x3e0] sm:$0xff] }
 0xa95   : > { %v18571_v16 = vpop.f32.mrb[51].mxu0 }
 0xa96   : > { %11001 = vmatmul.mubr.f32.gmra.mrb[200].mxu1 %v18566_v42 }
 0xa97   : > { %11005 = vmatprep.mubr.f32.mxu1 %v9776_v41  ;;  %13696 = vmatpush1.bf16.msra.mxu1 %v13695_v24  ;;  %v18598_v24 = vld [vmem:[#allocation2 + $0x81] sm:$0xff]  ;;  %v10433_v41 = vld [vmem:[#allocation13 + $0x3b0] sm:$0xff] }
 0xa98   : > { %13697 = vmatprep.subr.bf16.mxu1 %v19023_v8 }
 0xa9a   : > { %11006 = vmatmul.mubr.f32.gmra.mrb[202].mxu1 %v18574_v43 }
 0xa9b   : > { %11010 = vmatprep.mubr.f32.mxu1 %v9777_v55  ;;  %13699 = vmatpush1.bf16.msra.mxu1 %v13698_v21  ;;  %v10434_v21 = vld [vmem:[#allocation13 + $0x3b8] sm:$0xff] }
 0xa9c   : > { %13700 = vmatprep.subr.bf16.mxu1 %v19023_v8  ;;  %v18580_v59 = vpop.f32.mrb[52].mxu0  ;;  %v9782_v55 = vld [vmem:[#allocation2 + $0x9a] sm:$0xff]  ;;  %v13716_v9 = vpack.c.bf16 %v10434_v21, %v10433_v41  ;;  %v9785_v41 = vld [vmem:[#allocation2 + $0xc2] sm:$0xff] }
 0xa9d   : > { %v18583_v29 = vpop.f32.mrb[53].mxu0 }
 0xa9e   : > { %11011 = vmatmul.mubr.f32.gmra.mrb[204].mxu1 %v18578_v48 }
 0xa9f   : > { %11015 = vmatprep.mubr.f32.mxu1 %v9778_v35  ;;  %13702 = vmatpush1.bf16.msra.mxu1 %v13701_v31  ;;  %v10436_v35 = vld [vmem:[#allocation13 + $0x3c8] sm:$0xff] }
 0xaa0   : > { %13703 = vmatprep.subr.bf16.mxu1 %v19023_v8  ;;  %v13719_v27 = vpack.c.bf16 %v10436_v35, %v10435_v50  ;;  %v18626_v50 = vld [vmem:[#allocation2 + $0xc1] sm:$0xff] }
 0xaa2   : > { %11016 = vmatmul.mubr.f32.gmra.mrb[206].mxu1 %v18586_v5 }
 0xaa3   : > { %11020 = vmatprep.mubr.f32.mxu1 %v9779_v1  ;;  %13705 = vmatpush1.bf16.msra.mxu1 %v13704_v60  ;;  %v18610_v60 = vld [vmem:[#allocation2 + $0x99] sm:$0xff]  ;;  %v10437_v1 = vld [vmem:[#allocation13 + $0x3d0] sm:$0xff] }
 0xaa4   : > { %13706 = vmatprep.subr.bf16.mxu1 %v19023_v8  ;;  %v18592_v51 = vpop.f32.mrb[54].mxu0 }
 0xaa5   : > { %v18595_v46 = vpop.f32.mrb[55].mxu0 }
 0xaa6   : > { %11021 = vmatmul.mubr.f32.gmra.mrb[208].mxu1 %v18590_v3 }
 0xaa7   : > { %11025 = vmatprep.mubr.f32.mxu1 %v9780_v54  ;;  %13708 = vmatpush1.bf16.msra.mxu1 %v13707_v11  ;;  %v10438_v11 = vld [vmem:[#allocation13 + $0x3d8] sm:$0xff] }
 0xaa8   : > { %13709 = vmatprep.subr.bf16.mxu1 %v19023_v8  ;;  %v9784_v54 = vld [vmem:[#allocation2 + $0xb2] sm:$0xff]  ;;  %v13722_v53 = vpack.c.bf16 %v10438_v11, %v10437_v1  ;;  %v18634_v11 = vld [vmem:[#allocation2 + $0xc9] sm:$0xff] }
 0xaaa   : > { %11026 = vmatmul.mubr.f32.gmra.mrb[210].mxu1 %v18598_v24 }
 0xaab   : > { %11030 = vmatprep.mubr.f32.mxu1 %v9781_v6  ;;  %13711 = vmatpush1.bf16.msra.mxu1 %v13710_v30  ;;  %v10440_v6 = vld [vmem:[#allocation13 + $0x3e8] sm:$0xff] }
 0xaac   : > { %13712 = vmatprep.subr.bf16.mxu1 %v19023_v8  ;;  %v18604_v52 = vpop.f32.mrb[56].mxu0  ;;  %v13725_v21 = vpack.c.bf16 %v10440_v6, %v10439_v15 }
 0xaad   : > { %v18607_v31 = vpop.f32.mrb[57].mxu0 }
 0xaae   : > { %11031 = vmatmul.mubr.f32.gmra.mrb[212].mxu1 %v18602_v34 }
 0xaaf   : > { %11035 = vmatprep.mubr.f32.mxu1 %v9782_v55  ;;  %13714 = vmatpush1.bf16.msra.mxu1 %v13713_v40  ;;  %v18622_v40 = vld [vmem:[#allocation2 + $0xb1] sm:$0xff] }
 0xab0   : > { %13715 = vmatprep.subr.bf16.mxu1 %v19023_v8  ;;  %v10441_v55 = vld [vmem:[#allocation13 + $0x3f0] sm:$0xff] }
 0xab2   : > { %11036 = vmatmul.mubr.f32.gmra.mrb[214].mxu1 %v18610_v60 }
 0xab3   : > { %11040 = vmatprep.mubr.f32.mxu1 %v9783_v58  ;;  %13717 = vmatpush1.bf16.msra.mxu1 %v13716_v9  ;;  %v10442_v9 = vld [vmem:[#allocation13 + $0x3f8] sm:$0xff]  ;;  %v9786_v58 = vld [vmem:[#allocation2 + $0xca] sm:$0xff] }
 0xab4   : > { %13718 = vmatprep.subr.bf16.mxu1 %v19023_v8  ;;  %v18616_v19 = vpop.f32.mrb[58].mxu0  ;;  %v13728_v1 = vpack.c.bf16 %v10442_v9, %v10441_v55  ;;  %v18657_v9 = vld [vmem:[#allocation2 + $0xf9] sm:$0xff] }
 0xab5   : > { %v18619_v30 = vpop.f32.mrb[59].mxu0 }
 0xab6   : > { %11041 = vmatmul.mubr.f32.gmra.mrb[216].mxu1 %v18614_v13 }
 0xab7   : > { %11045 = vmatprep.mubr.f32.mxu1 %v9784_v54  ;;  %13720 = vmatpush1.bf16.msra.mxu1 %v13719_v27  ;;  %v9787_v54 = vld [vmem:[#allocation2 + $0xda] sm:$0xff] }
 0xab8   : > { %13721 = vmatprep.subr.bf16.mxu1 %v19023_v8 }
 0xaba   : > { %11046 = vmatmul.mubr.f32.gmra.mrb[218].mxu1 %v18622_v40 }
 0xabb   : > { %11050 = vmatprep.mubr.f32.mxu1 %v9785_v41  ;;  %13723 = vmatpush1.bf16.msra.mxu1 %v13722_v53  ;;  %v18637_v53 = vld [vmem:[#allocation2 + $0xd9] sm:$0xff]  ;;  %v18645_v41 = vld [vmem:[#allocation2 + $0xe1] sm:$0xff] }
 0xabc   : > { %13724 = vmatprep.subr.bf16.mxu1 %v19023_v8  ;;  %v18628_v35 = vpop.f32.mrb[60].mxu0 }
 0xabd   : > { %v18631_v27 = vpop.f32.mrb[61].mxu0 }
 0xabe   : > { %11051 = vmatmul.mubr.f32.gmra.mrb[220].mxu1 %v18626_v50 }
 0xabf   : > { %11055 = vmatprep.mubr.f32.mxu1 %v9786_v58  ;;  %13726 = vmatpush1.bf16.msra.mxu1 %v13725_v21 }
 0xac0   : > { %13727 = vmatprep.subr.bf16.mxu1 %v19023_v8  ;;  %v18649_v8 = vld [vmem:[#allocation2 + $0xf1] sm:$0xff] }
 0xac2   : > { %11056 = vmatmul.mubr.f32.gmra.mrb[222].mxu1 %v18634_v11 }
 0xac3   : > { %11060 = vmatprep.mubr.f32.mxu1 %v9787_v54  ;;  %13729 = vmatpush1.bf16.msra.mxu1 %v13728_v1  ;;  %v18669_v1 = vld [vmem:[#allocation2 + $0x111] sm:$0xff] }
 0xac5   : > { %v18639_v15 = vpop.f32.mrb[62].mxu0 }
 0xac6   : > { %11061 = vmatmul.mubr.f32.gmra.mrb[224].mxu1 %v18637_v53  ;;  %v18642_v6 = vpop.f32.mrb[63].mxu0 }
 0xac7   : > { %11065 = vmatprep.mubr.f32.mxu1 %v18320_v14  ;;  %v18661_v14 = vld [vmem:[#allocation2 + $0x109] sm:$0xff] }
 0xaca   : > { %11066 = vmatmul.mubr.f32.gmra.mrb[226].mxu1 %v18645_v41 }
 0xacb   : > { %11070 = vmatprep.mubr.f32.mxu1 %v18332_v28 }
 0xacc   : > { %v18651_v21 = vpop.f32.mrb[64].mxu0 }
 0xacd   : > { %19188 = vst [vmem:[#allocation41_spill] sm:$0xff] %v18651_v21  ;;  %v18654_v55 = vpop.f32.mrb[65].mxu0  ;;  %v9994_v21 = vld [vmem:[#allocation2 + $0x1a2] sm:$0xff] }
 0xace   : > { %11071 = vmatmul.mubr.f32.gmra.mrb[228].mxu1 %v18649_v8 }
 0xacf   : > { %11075 = vmatprep.mubr.f32.mxu1 %v18336_v25  ;;  %v18673_v25 = vld [vmem:[#allocation2 + $0x121] sm:$0xff] }
 0xad2   : > { %11076 = vmatmul.mubr.f32.gmra.mrb[230].mxu1 %v18657_v9 }
 0xad3   : > { %11080 = vmatprep.mubr.f32.mxu1 %v18348_v63 }
 0xad5   : > { %v18663_v58 = vpop.f32.mrb[66].mxu0 }
 0xad6   : > { %19189 = vst [vmem:[#allocation55_spill] sm:$0xff] %v18663_v58  ;;  %11081 = vmatmul.mubr.f32.gmra.mrb[232].mxu1 %v18661_v14  ;;  %v18666_v28 = vpop.f32.mrb[67].mxu0  ;;  %v18681_v58 = vld [vmem:[#allocation2 + $0x129] sm:$0xff] }
 0xad7   : > { %19190 = vst [vmem:[#allocation25_spill] sm:$0xff] %v18666_v28  ;;  %11085 = vmatprep.mubr.f32.mxu1 %v18352_v56  ;;  %v18685_v56 = vld [vmem:[#allocation2 + $0x139] sm:$0xff] }
 0xad8   : > { %v9993_v28 = vld [vmem:[#allocation2 + $0x19a] sm:$0xff] }
 0xad9   : > { %12639 = vmatprep.mubr.f32.mxu0 %v9993_v28  ;;  %v9859_v28 = vld [vmem:[#allocation2 + $0x150] sm:$0xff] }
 0xada   : > { %11086 = vmatmul.mubr.f32.gmra.mrb[234].mxu1 %v18669_v1  ;;  %12640 = vmatmul.mubr.f32.gmra.mrb[70].mxu0 %v9994_v21  ;;  %v9839_v21 = vld [vmem:[#allocation2 + $0x60] sm:$0xff] }
 0xadb   : > { %11090 = vmatprep.mubr.f32.mxu1 %v19181_v47  ;;  %v18689_v47 = vld [vmem:[#allocation2 + $0x141] sm:$0xff] }
 0xadc   : > { %v18675_v54 = vpop.f32.mrb[68].mxu0 }
 0xadd   : > { %19191 = vst [vmem:[#allocation27_spill] sm:$0xff] %v18675_v54  ;;  %v18678_v63 = vpop.f32.mrb[69].mxu0  ;;  %v18693_v54 = vld [vmem:[#allocation2 + $0x151] sm:$0xff] }
 0xade   : > { %11091 = vmatmul.mubr.f32.gmra.mrb[236].mxu1 %v18673_v25  ;;  %19192 = vst [vmem:[#allocation30_spill] sm:$0xff] %v18678_v63  ;;  %v19196_v63 = vld [vmem:[#allocation39_spill] sm:$0xff] }
 0xadf   : > { %11095 = vmatprep.mubr.f32.mxu1 %v19182_v7  ;;  %v19193_v7 = vld [vmem:[#allocation49_spill] sm:$0xff] }
 0xae2   : > { %11096 = vmatmul.mubr.f32.gmra.mrb[238].mxu1 %v18681_v58 }
 0xae3   : > { %11100 = vmatprep.mubr.f32.mxu1 %v18382_v18  ;;  %v19194_v18 = vld [vmem:[#allocation37_spill] sm:$0xff] }
 0xae6   : > { %11101 = vmatmul.mubr.f32.gmra.mrb[240].mxu1 %v18685_v56 }
 0xae7   : > { %11105 = vmatprep.mubr.f32.mxu1 %v19183_v57  ;;  %v19195_v57 = vld [vmem:[#allocation51_spill] sm:$0xff] }
 0xaea   : > { %11106 = vmatmul.mubr.f32.gmra.mrb[242].mxu1 %v18689_v47 }
 0xaeb   : > { %11110 = vmatprep.mubr.f32.mxu1 %v19184_v36  ;;  %v19197_v36 = vmax.f32 %v19196_v63, 0.0  ;;  %v9925_v63 = vld [vmem:[#allocation2 + $0x169] sm:$0xff] }
 0xaee   : > { %11111 = vmatmul.mubr.f32.gmra.mrb[244].mxu1 %v18693_v54 }
 0xaef   : > { %11115 = vmatprep.mubr.f32.mxu1 %v19185_v62  ;;  %v19198_v62 = vld [vmem:[#allocation53_spill] sm:$0xff] }
 0xaf2   : > { %11116 = vmatmul.mubr.f32.gmra.mrb[246].mxu1 %v19193_v7  ;;  %v19199_v7 = vmax.f32 %v19198_v62, 0.0  ;;  %v15092_v62 = vld [vmem:[#allocation2] sm:$0xff] }
 0xaf3   : > { %11120 = vmatprep.mubr.f32.mxu1 %v19186_v17  ;;  %v9835_v17 = vld [vmem:[#allocation2 + $0x30] sm:$0xff] }
 0xaf6   : > { %11121 = vmatmul.mubr.f32.gmra.mrb[248].mxu1 %v19194_v18  ;;  %v9926_v18 = vld [vmem:[#allocation2 + $0x171] sm:$0xff] }
 0xaf7   : > { %11125 = vmatprep.mubr.f32.mxu1 %v19187_v23  ;;  %v9836_v23 = vld [vmem:[#allocation2 + $0x38] sm:$0xff] }
 0xafa   : > { %11126 = vmatmul.mubr.f32.gmra.mrb[250].mxu1 %v19195_v57  ;;  %v9927_v57 = vld [vmem:[#allocation2 + $0x181] sm:$0xff] }
 0xafb   : > { %11130 = vmatprep.mubr.f32.mxu1 %v18445_v37  ;;  %v9837_v37 = vld [vmem:[#allocation2 + $0x48] sm:$0xff] }
 0xafe   : > { %11131 = vmatmul.mubr.f32.gmra.mrb[252].mxu1 %v19197_v36  ;;  %v9930_v36 = vld [vmem:[#allocation2 + $0x1a1] sm:$0xff] }
 0xaff   : > { %11135 = vmatprep.mubr.f32.mxu1 %v18447_v45  ;;  %v9838_v45 = vld [vmem:[#allocation2 + $0x50] sm:$0xff] }
 0xb02   : > { %11136 = vmatmul.mubr.f32.gmra.mrb[254].mxu1 %v19199_v7 }
 0xb03   : > { %11205 = vmatprep.mubr.f32.mxu1 %v18554_v0  ;;  %v9840_v0 = vld [vmem:[#allocation2 + $0x68] sm:$0xff] }
 0xb06   : > { %11206 = vmatmul.mubr.f32.vlgmr.msra.gmra.mrb[192].mxu1 %v9835_v17 }
 0xb07   : > { %11210 = vmatprep.mubr.f32.mxu1 %v18562_v39  ;;  %v9841_v39 = vld [vmem:[#allocation2 + $0x78] sm:$0xff] }
 0xb0a   : > { %11211 = vmatmul.mubr.f32.gmra.mrb[194].mxu1 %v9836_v23  ;;  %v18742_v23 = vld [vmem:[%s18907_s10] ss:$0 sm:$0xff] }
 0xb0b   : > { %11215 = vmatprep.mubr.f32.mxu1 %v18566_v42  ;;  %v9842_v42 = vld [vmem:[#allocation2 + $0x80] sm:$0xff] }
 0xb0e   : > { %11216 = vmatmul.mubr.f32.gmra.mrb[196].mxu1 %v9837_v37 }
 0xb0f   : > { %11220 = vmatprep.mubr.f32.mxu1 %v18574_v43  ;;  %v9843_v43 = vld [vmem:[#allocation2 + $0x90] sm:$0xff] }
 0xb12   : > { %11221 = vmatmul.mubr.f32.gmra.mrb[198].mxu1 %v9838_v45 }
 0xb13   : > { %11225 = vmatprep.mubr.f32.mxu1 %v18578_v48  ;;  %v9844_v48 = vld [vmem:[#allocation2 + $0x98] sm:$0xff] }
 0xb16   : > { %11226 = vmatmul.mubr.f32.gmra.mrb[200].mxu1 %v9839_v21 }
 0xb17   : > { %11230 = vmatprep.mubr.f32.mxu1 %v18586_v5  ;;  %v9845_v5 = vld [vmem:[#allocation2 + $0xa8] sm:$0xff] }
 0xb1a   : > { %11231 = vmatmul.mubr.f32.gmra.mrb[202].mxu1 %v9840_v0 }
 0xb1b   : > { %11235 = vmatprep.mubr.f32.mxu1 %v18590_v3  ;;  %v9846_v3 = vld [vmem:[#allocation2 + $0xb0] sm:$0xff] }
 0xb1e   : > { %11236 = vmatmul.mubr.f32.gmra.mrb[204].mxu1 %v9841_v39 }
 0xb1f   : > { %11240 = vmatprep.mubr.f32.mxu1 %v18598_v24  ;;  %v9847_v24 = vld [vmem:[#allocation2 + $0xc0] sm:$0xff] }
 0xb22   : > { %11241 = vmatmul.mubr.f32.gmra.mrb[206].mxu1 %v9842_v42 }
 0xb23   : > { %11245 = vmatprep.mubr.f32.mxu1 %v18602_v34  ;;  %v9848_v34 = vld [vmem:[#allocation2 + $0xc8] sm:$0xff] }
 0xb26   : > { %11246 = vmatmul.mubr.f32.gmra.mrb[208].mxu1 %v9843_v43 }
 0xb27   : > { %11250 = vmatprep.mubr.f32.mxu1 %v18610_v60  ;;  %v9849_v60 = vld [vmem:[#allocation2 + $0xd8] sm:$0xff] }
 0xb2a   : > { %11251 = vmatmul.mubr.f32.gmra.mrb[210].mxu1 %v9844_v48 }
 0xb2b   : > { %11255 = vmatprep.mubr.f32.mxu1 %v18614_v13  ;;  %v9850_v13 = vld [vmem:[#allocation2 + $0xe0] sm:$0xff] }
 0xb2e   : > { %11256 = vmatmul.mubr.f32.gmra.mrb[212].mxu1 %v9845_v5 }
 0xb2f   : > { %11260 = vmatprep.mubr.f32.mxu1 %v18622_v40  ;;  %v9851_v40 = vld [vmem:[#allocation2 + $0xf0] sm:$0xff] }
 0xb32   : > { %11261 = vmatmul.mubr.f32.gmra.mrb[214].mxu1 %v9846_v3 }
 0xb33   : > { %11265 = vmatprep.mubr.f32.mxu1 %v18626_v50  ;;  %v9852_v50 = vld [vmem:[#allocation2 + $0xf8] sm:$0xff] }
 0xb36   : > { %11266 = vmatmul.mubr.f32.gmra.mrb[216].mxu1 %v9847_v24 }
 0xb37   : > { %11270 = vmatprep.mubr.f32.mxu1 %v18634_v11  ;;  %v9853_v11 = vld [vmem:[#allocation2 + $0x108] sm:$0xff] }
 0xb3a   : > { %11271 = vmatmul.mubr.f32.gmra.mrb[218].mxu1 %v9848_v34 }
 0xb3b   : > { %11275 = vmatprep.mubr.f32.mxu1 %v18637_v53  ;;  %v9854_v53 = vld [vmem:[#allocation2 + $0x110] sm:$0xff] }
 0xb3e   : > { %11276 = vmatmul.mubr.f32.gmra.mrb[220].mxu1 %v9849_v60 }
 0xb3f   : > { %11280 = vmatprep.mubr.f32.mxu1 %v18645_v41  ;;  %v9855_v41 = vld [vmem:[#allocation2 + $0x120] sm:$0xff] }
 0xb42   : > { %11281 = vmatmul.mubr.f32.gmra.mrb[222].mxu1 %v9850_v13 }
 0xb43   : > { %11285 = vmatprep.mubr.f32.mxu1 %v18649_v8  ;;  %v9856_v8 = vld [vmem:[#allocation2 + $0x128] sm:$0xff] }
 0xb46   : > { %11286 = vmatmul.mubr.f32.gmra.mrb[224].mxu1 %v9851_v40 }
 0xb47   : > { %11290 = vmatprep.mubr.f32.mxu1 %v18657_v9  ;;  %v9857_v9 = vld [vmem:[#allocation2 + $0x138] sm:$0xff] }
 0xb4a   : > { %11291 = vmatmul.mubr.f32.gmra.mrb[226].mxu1 %v9852_v50 }
 0xb4b   : > { %11295 = vmatprep.mubr.f32.mxu1 %v18661_v14  ;;  %v9858_v14 = vld [vmem:[#allocation2 + $0x140] sm:$0xff] }
 0xb4e   : > { %11296 = vmatmul.mubr.f32.gmra.mrb[228].mxu1 %v9853_v11 }
 0xb4f   : > { %11300 = vmatprep.mubr.f32.mxu1 %v18669_v1  ;;  %v9924_v1 = vld [vmem:[#allocation2 + $0x159] sm:$0xff] }
 0xb52   : > { %11301 = vmatmul.mubr.f32.gmra.mrb[230].mxu1 %v9854_v53 }
 0xb53   : > { %11305 = vmatprep.mubr.f32.mxu1 %v18673_v25  ;;  %v9860_v25 = vld [vmem:[#allocation2 + $0x158] sm:$0xff] }
 0xb56   : > { %11306 = vmatmul.mubr.f32.gmra.mrb[232].mxu1 %v9855_v41 }
 0xb57   : > { %11310 = vmatprep.mubr.f32.mxu1 %v18681_v58  ;;  %v9861_v58 = vld [vmem:[#allocation2 + $0x168] sm:$0xff] }
 0xb5a   : > { %11311 = vmatmul.mubr.f32.gmra.mrb[234].mxu1 %v9856_v8 }
 0xb5b   : > { %11315 = vmatprep.mubr.f32.mxu1 %v18685_v56  ;;  %v9862_v56 = vld [vmem:[#allocation2 + $0x170] sm:$0xff] }
 0xb5e   : > { %11316 = vmatmul.mubr.f32.gmra.mrb[236].mxu1 %v9857_v9 }
 0xb5f   : > { %11320 = vmatprep.mubr.f32.mxu1 %v18689_v47  ;;  %v9928_v47 = vld [vmem:[#allocation2 + $0x189] sm:$0xff] }
 0xb62   : > { %11321 = vmatmul.mubr.f32.gmra.mrb[238].mxu1 %v9858_v14 }
 0xb63   : > { %11325 = vmatprep.mubr.f32.mxu1 %v18693_v54  ;;  %v9929_v54 = vld [vmem:[#allocation2 + $0x199] sm:$0xff] }
 0xb66   : > { %11326 = vmatmul.mubr.f32.gmra.mrb[240].mxu1 %v9859_v28 }
 0xb67   : > { %11330 = vmatprep.mubr.f32.mxu1 %v9924_v1 }
 0xb6a   : > { %11331 = vmatmul.mubr.f32.gmra.mrb[242].mxu1 %v9860_v25 }
 0xb6b   : > { %11335 = vmatprep.mubr.f32.mxu1 %v9925_v63 }
 0xb6e   : > { %11336 = vmatmul.mubr.f32.gmra.mrb[244].mxu1 %v9861_v58 }
 0xb6f   : > { %11340 = vmatprep.mubr.f32.mxu1 %v9926_v18 }
 0xb72   : > { %11341 = vmatmul.mubr.f32.gmra.mrb[246].mxu1 %v9862_v56 }
 0xb73   : > { %11345 = vmatprep.mubr.f32.mxu1 %v9927_v57 }
 0xb76   : > { %11346 = vmatmul.mubr.f32.gmra.mrb[248].mxu1 %v18534_v22 }
 0xb77   : > { %11350 = vmatprep.mubr.f32.mxu1 %v9928_v47 }
 0xb7a   : > { %11351 = vmatmul.mubr.f32.gmra.mrb[250].mxu1 %v18540_v61 }
 0xb7b   : > { %11355 = vmatprep.mubr.f32.mxu1 %v9929_v54 }
 0xb7e   : > { %11356 = vmatmul.mubr.f32.gmra.mrb[252].mxu1 %v15092_v62 }
 0xb7f   : > { %11360 = vmatprep.mubr.f32.mxu1 %v9930_v36 }
 0xb82   : > { %11361 = vmatmul.mubr.f32.gmra.mrb[254].mxu1 %v15092_v62 }
 0xbad   : > { %v18735_v7 = vpop.f32.mrb[70].mxu0 }
 0xbae   : > { %v18737_v17 = vpop.f32.mrb[71].mxu0 }
 0xbd9   : > { %v11207_v22 = vpop.f32.mrb[192].mxu1 }
 0xbda   : > { %v13974_v37 = vadd.f32 %v18742_v23, %v11207_v22  ;;  %v11209_v45 = vpop.f32.mrb[193].mxu1 }
 0xbdc   : > { %v11433_v61 = vadd.f32 %v13974_v37, %v18522_v12 }
 0xbdd   : > { %v11212_v21 = vpop.f32.mrb[194].mxu1 }
 0xbde   : > { %v11963_v0 = vmul.f32 -1.442695, %v11433_v61  ;;  %v13975_v39 = vadd.f32 %v18742_v23, %v11212_v21  ;;  %v11214_v42 = vpop.f32.mrb[195].mxu1 }
 0xbe0   : > { %14958 = vpow2.f32 %v11963_v0  ;;  %v11438_v43 = vadd.f32 %v13975_v39, %v18519_v26 }
 0xbe1   : > { %v11217_v48 = vpop.f32.mrb[196].mxu1 }
 0xbe2   : > { %v11964_v5 = vmul.f32 -1.442695, %v11438_v43  ;;  %v13976_v3 = vadd.f32 %v18742_v23, %v11217_v48  ;;  %v11219_v24 = vpop.f32.mrb[197].mxu1 }
 0xbe4   : > { %14960 = vpow2.f32 %v11964_v5  ;;  %v11443_v34 = vadd.f32 %v13976_v3, %v18530_v44 }
 0xbe5   : > { %v11222_v60 = vpop.f32.mrb[198].mxu1 }
 0xbe6   : > { %v11965_v13 = vmul.f32 -1.442695, %v11443_v34  ;;  %v13977_v12 = vadd.f32 %v18742_v23, %v11222_v60  ;;  %v11224_v40 = vpop.f32.mrb[199].mxu1 }
 0xbe8   : > { %14962 = vpow2.f32 %v11965_v13  ;;  %v11448_v50 = vadd.f32 %v13977_v12, %v18527_v49 }
 0xbe9   : > { %v11227_v11 = vpop.f32.mrb[200].mxu1 }
 0xbea   : > { %v14959_v53 = vpop.eup %14958  ;;  %v11966_v26 = vmul.f32 -1.442695, %v11448_v50  ;;  %v13978_v41 = vadd.f32 %v18742_v23, %v11227_v11  ;;  %v11229_v8 = vpop.f32.mrb[201].mxu1 }
 0xbeb   : > { %v11687_v9 = vadd.f32 1.0, %v14959_v53 }
 0xbec   : > { %14964 = vpow2.f32 %v11966_v26  ;;  %v11453_v44 = vadd.f32 %v13978_v41, %v18542_v20 }
 0xbed   : > { %14966 = vrcp.f32 %v11687_v9  ;;  %v11232_v14 = vpop.f32.mrb[202].mxu1 }
 0xbee   : > { %v14961_v28 = vpop.eup %14960  ;;  %v11967_v1 = vmul.f32 -1.442695, %v11453_v44  ;;  %v13979_v25 = vadd.f32 %v18742_v23, %v11232_v14  ;;  %v11234_v63 = vpop.f32.mrb[203].mxu1 }
 0xbef   : > { %v11688_v49 = vadd.f32 1.0, %v14961_v28 }
 0xbf0   : > { %14968 = vpow2.f32 %v11967_v1  ;;  %v11458_v58 = vadd.f32 %v13979_v25, %v18537_v4 }
 0xbf1   : > { %14970 = vrcp.f32 %v11688_v49  ;;  %v11237_v18 = vpop.f32.mrb[204].mxu1 }
 0xbf2   : > { %v14963_v56 = vpop.eup %14962  ;;  %v11968_v57 = vmul.f32 -1.442695, %v11458_v58  ;;  %v13980_v20 = vadd.f32 %v18742_v23, %v11237_v18  ;;  %v11239_v47 = vpop.f32.mrb[205].mxu1 }
 0xbf3   : > { %v11689_v54 = vadd.f32 1.0, %v14963_v56 }
 0xbf4   : > { %14972 = vpow2.f32 %v11968_v57  ;;  %v11463_v36 = vadd.f32 %v13980_v20, %v18549_v32 }
 0xbf5   : > { %14974 = vrcp.f32 %v11689_v54  ;;  %v11242_v62 = vpop.f32.mrb[206].mxu1 }
 0xbf6   : > { %v14965_v22 = vpop.eup %14964  ;;  %v11969_v37 = vmul.f32 -1.442695, %v11463_v36  ;;  %v13981_v45 = vadd.f32 %v18742_v23, %v11242_v62  ;;  %v11244_v4 = vpop.f32.mrb[207].mxu1 }
 0xbf7   : > { %v14967_v61 = vpop.eup %14966  ;;  %v11690_v21 = vadd.f32 1.0, %v14965_v22 }
 0xbf8   : > { %11783 = vst [vmem:[%s18762_s22] sm:$0xff] %v14967_v61  ;;  %14976 = vpow2.f32 %v11969_v37  ;;  %v11468_v0 = vadd.f32 %v13981_v45, %v18547_v33 }
 0xbf9   : > { %14978 = vrcp.f32 %v11690_v21  ;;  %v11247_v39 = vpop.f32.mrb[208].mxu1 }
 0xbfa   : > { %v14969_v32 = vpop.eup %14968  ;;  %v11970_v42 = vmul.f32 -1.442695, %v11468_v0  ;;  %v13982_v43 = vadd.f32 %v18742_v23, %v11247_v39  ;;  %v11249_v48 = vpop.f32.mrb[209].mxu1 }
 0xbfb   : > { %v14971_v5 = vpop.eup %14970  ;;  %v11691_v3 = vadd.f32 1.0, %v14969_v32 }
 0xbfc   : > { %11784 = vst [vmem:[%s18762_s22 + $0x8] sm:$0xff] %v14971_v5  ;;  %14980 = vpow2.f32 %v11970_v42  ;;  %v11473_v24 = vadd.f32 %v13982_v43, %v18559_v38 }
 0xbfd   : > { %14982 = vrcp.f32 %v11691_v3  ;;  %v11252_v34 = vpop.f32.mrb[210].mxu1 }
 0xbfe   : > { %v14973_v60 = vpop.eup %14972  ;;  %v11971_v13 = vmul.f32 -1.442695, %v11473_v24  ;;  %v13983_v33 = vadd.f32 %v18742_v23, %v11252_v34  ;;  %v11254_v12 = vpop.f32.mrb[211].mxu1 }
 0xbff   : > { %v14975_v40 = vpop.eup %14974  ;;  %v11692_v50 = vadd.f32 1.0, %v14973_v60 }
 0xc00   : > { %11785 = vst [vmem:[%s18762_s22 + $0x10] sm:$0xff] %v14975_v40  ;;  %14984 = vpow2.f32 %v11971_v13  ;;  %v11478_v11 = vadd.f32 %v13983_v33, %v18556_v10 }
 0xc01   : > { %14986 = vrcp.f32 %v11692_v50  ;;  %v11257_v53 = vpop.f32.mrb[212].mxu1 }
 0xc02   : > { %v14977_v26 = vpop.eup %14976  ;;  %v11972_v41 = vmul.f32 -1.442695, %v11478_v11  ;;  %v13984_v38 = vadd.f32 %v18742_v23, %v11257_v53  ;;  %v11259_v8 = vpop.f32.mrb[213].mxu1 }
 0xc03   : > { %v14979_v9 = vpop.eup %14978  ;;  %v11693_v44 = vadd.f32 1.0, %v14977_v26 }
 0xc04   : > { %11786 = vst [vmem:[%s18762_s22 + $0x18] sm:$0xff] %v14979_v9  ;;  %14988 = vpow2.f32 %v11972_v41  ;;  %v11483_v14 = vadd.f32 %v13984_v38, %v18571_v16 }
 0xc05   : > { %14990 = vrcp.f32 %v11693_v44  ;;  %v11262_v28 = vpop.f32.mrb[214].mxu1 }
 0xc06   : > { %v14981_v1 = vpop.eup %14980  ;;  %v11973_v25 = vmul.f32 -1.442695, %v11483_v14  ;;  %v13985_v10 = vadd.f32 %v18742_v23, %v11262_v28  ;;  %v11264_v63 = vpop.f32.mrb[215].mxu1 }
 0xc07   : > { %v14983_v49 = vpop.eup %14982  ;;  %v11694_v58 = vadd.f32 1.0, %v14981_v1 }
 0xc08   : > { %11787 = vst [vmem:[%s18762_s22 + $0x20] sm:$0xff] %v14983_v49  ;;  %14992 = vpow2.f32 %v11973_v25  ;;  %v11488_v18 = vadd.f32 %v13985_v10, %v18568_v2 }
 0xc09   : > { %14994 = vrcp.f32 %v11694_v58  ;;  %v11267_v56 = vpop.f32.mrb[216].mxu1 }
 0xc0a   : > { %v14985_v57 = vpop.eup %14984  ;;  %v11974_v20 = vmul.f32 -1.442695, %v11488_v18  ;;  %v13986_v16 = vadd.f32 %v18742_v23, %v11267_v56  ;;  %v11269_v47 = vpop.f32.mrb[217].mxu1 }
 0xc0b   : > { %v14987_v54 = vpop.eup %14986  ;;  %v11695_v36 = vadd.f32 1.0, %v14985_v57 }
 0xc0c   : > { %11788 = vst [vmem:[%s18762_s22 + $0x28] sm:$0xff] %v14987_v54  ;;  %14996 = vpow2.f32 %v11974_v20  ;;  %v11493_v62 = vadd.f32 %v13986_v16, %v18583_v29 }
 0xc0d   : > { %14998 = vrcp.f32 %v11695_v36  ;;  %v11272_v22 = vpop.f32.mrb[218].mxu1 }
 0xc0e   : > { %v14989_v37 = vpop.eup %14988  ;;  %v11975_v45 = vmul.f32 -1.442695, %v11493_v62  ;;  %v13987_v2 = vadd.f32 %v18742_v23, %v11272_v22  ;;  %v11274_v4 = vpop.f32.mrb[219].mxu1 }
 0xc0f   : > { %v14991_v61 = vpop.eup %14990  ;;  %v11696_v21 = vadd.f32 1.0, %v14989_v37 }
 0xc10   : > { %11789 = vst [vmem:[%s18762_s22 + $0x30] sm:$0xff] %v14991_v61  ;;  %15000 = vpow2.f32 %v11975_v45  ;;  %v11498_v0 = vadd.f32 %v13987_v2, %v18580_v59 }
 0xc11   : > { %15002 = vrcp.f32 %v11696_v21  ;;  %v11277_v39 = vpop.f32.mrb[220].mxu1 }
 0xc12   : > { %v14993_v32 = vpop.eup %14992  ;;  %v11976_v42 = vmul.f32 -1.442695, %v11498_v0  ;;  %v13988_v29 = vadd.f32 %v18742_v23, %v11277_v39  ;;  %v11279_v43 = vpop.f32.mrb[221].mxu1 }
 0xc13   : > { %v14995_v48 = vpop.eup %14994  ;;  %v11697_v5 = vadd.f32 1.0, %v14993_v32 }
 0xc14   : > { %11790 = vst [vmem:[%s18762_s22 + $0x38] sm:$0xff] %v14995_v48  ;;  %15004 = vpow2.f32 %v11976_v42  ;;  %v11503_v3 = vadd.f32 %v13988_v29, %v18595_v46 }
 0xc15   : > { %15006 = vrcp.f32 %v11697_v5  ;;  %v11282_v24 = vpop.f32.mrb[222].mxu1 }
 0xc16   : > { %v14997_v34 = vpop.eup %14996  ;;  %v11977_v60 = vmul.f32 -1.442695, %v11503_v3  ;;  %v13989_v59 = vadd.f32 %v18742_v23, %v11282_v24  ;;  %v11284_v13 = vpop.f32.mrb[223].mxu1 }
 0xc17   : > { %v14999_v33 = vpop.eup %14998  ;;  %v11698_v12 = vadd.f32 1.0, %v14997_v34 }
 0xc18   : > { %11791 = vst [vmem:[%s18762_s22 + $0x40] sm:$0xff] %v14999_v33  ;;  %15008 = vpow2.f32 %v11977_v60  ;;  %v11508_v40 = vadd.f32 %v13989_v59, %v18592_v51 }
 0xc19   : > { %15010 = vrcp.f32 %v11698_v12  ;;  %v11287_v50 = vpop.f32.mrb[224].mxu1 }
 0xc1a   : > { %v15001_v11 = vpop.eup %15000  ;;  %v11978_v53 = vmul.f32 -1.442695, %v11508_v40  ;;  %v13990_v46 = vadd.f32 %v18742_v23, %v11287_v50  ;;  %v11289_v26 = vpop.f32.mrb[225].mxu1 }
 0xc1b   : > { %v15003_v41 = vpop.eup %15002  ;;  %v11699_v38 = vadd.f32 1.0, %v15001_v11 }
 0xc1c   : > { %11792 = vst [vmem:[%s18762_s22 + $0x48] sm:$0xff] %v15003_v41  ;;  %15012 = vpow2.f32 %v11978_v53  ;;  %v11513_v8 = vadd.f32 %v13990_v46, %v18607_v31 }
 0xc1d   : > { %15014 = vrcp.f32 %v11699_v38  ;;  %v11292_v9 = vpop.f32.mrb[226].mxu1 }
 0xc1e   : > { %v15005_v44 = vpop.eup %15004  ;;  %v11979_v14 = vmul.f32 -1.442695, %v11513_v8  ;;  %v13991_v51 = vadd.f32 %v18742_v23, %v11292_v9  ;;  %v11294_v28 = vpop.f32.mrb[227].mxu1 }
 0xc1f   : > { %v15007_v1 = vpop.eup %15006  ;;  %v11700_v25 = vadd.f32 1.0, %v15005_v44 }
 0xc20   : > { %11793 = vst [vmem:[%s18762_s22 + $0x50] sm:$0xff] %v15007_v1  ;;  %15016 = vpow2.f32 %v11979_v14  ;;  %v11518_v10 = vadd.f32 %v13991_v51, %v18604_v52 }
 0xc21   : > { %15018 = vrcp.f32 %v11700_v25  ;;  %v11297_v63 = vpop.f32.mrb[228].mxu1 }
 0xc22   : > { %v15009_v49 = vpop.eup %15008  ;;  %v11980_v58 = vmul.f32 -1.442695, %v11518_v10  ;;  %v13992_v31 = vadd.f32 %v18742_v23, %v11297_v63  ;;  %v11299_v18 = vpop.f32.mrb[229].mxu1 }
 0xc23   : > { %v15011_v56 = vpop.eup %15010  ;;  %v11701_v57 = vadd.f32 1.0, %v15009_v49 }
 0xc24   : > { %11794 = vst [vmem:[%s18762_s22 + $0x58] sm:$0xff] %v15011_v56  ;;  %15020 = vpow2.f32 %v11980_v58  ;;  %v11523_v20 = vadd.f32 %v13992_v31, %v18619_v30  ;;  %v19200_v31 = vld [vmem:[#allocation41_spill] sm:$0xff] }
 0xc25   : > { %15022 = vrcp.f32 %v11701_v57  ;;  %v11302_v16 = vpop.f32.mrb[230].mxu1 }
 0xc26   : > { %v15013_v47 = vpop.eup %15012  ;;  %v11981_v54 = vmul.f32 -1.442695, %v11523_v20  ;;  %v13993_v52 = vadd.f32 %v18742_v23, %v11302_v16  ;;  %v11304_v36 = vpop.f32.mrb[231].mxu1 }
 0xc27   : > { %v15015_v62 = vpop.eup %15014  ;;  %v11702_v22 = vadd.f32 1.0, %v15013_v47 }
 0xc28   : > { %11795 = vst [vmem:[%s18762_s22 + $0x60] sm:$0xff] %v15015_v62  ;;  %15024 = vpow2.f32 %v11981_v54  ;;  %v11528_v37 = vadd.f32 %v13993_v52, %v18616_v19  ;;  %v19201_v52 = vld [vmem:[#allocation25_spill] sm:$0xff] }
 0xc29   : > { %15026 = vrcp.f32 %v11702_v22  ;;  %v11307_v45 = vpop.f32.mrb[232].mxu1 }
 0xc2a   : > { %v15017_v2 = vpop.eup %15016  ;;  %v11982_v4 = vmul.f32 -1.442695, %v11528_v37  ;;  %v13994_v30 = vadd.f32 %v18742_v23, %v11307_v45  ;;  %v11309_v61 = vpop.f32.mrb[233].mxu1 }
 0xc2b   : > { %v15019_v21 = vpop.eup %15018  ;;  %v11703_v0 = vadd.f32 1.0, %v15017_v2  ;;  %v19202_v61 = vld [vmem:[#allocation55_spill] sm:$0xff] }
 0xc2c   : > { %11796 = vst [vmem:[%s18762_s22 + $0x68] sm:$0xff] %v15019_v21  ;;  %15028 = vpow2.f32 %v11982_v4  ;;  %v11533_v39 = vadd.f32 %v13994_v30, %v18631_v27 }
 0xc2d   : > { %15030 = vrcp.f32 %v11703_v0  ;;  %v11312_v32 = vpop.f32.mrb[234].mxu1 }
 0xc2e   : > { %v15021_v42 = vpop.eup %15020  ;;  %v11983_v29 = vmul.f32 -1.442695, %v11533_v39  ;;  %v13995_v19 = vadd.f32 %v18742_v23, %v11312_v32  ;;  %v11314_v43 = vpop.f32.mrb[235].mxu1 }
 0xc2f   : > { %v15023_v48 = vpop.eup %15022  ;;  %v11704_v5 = vadd.f32 1.0, %v15021_v42 }
 0xc30   : > { %11797 = vst [vmem:[%s18762_s22 + $0x70] sm:$0xff] %v15023_v48  ;;  %15032 = vpow2.f32 %v11983_v29  ;;  %v11538_v3 = vadd.f32 %v13995_v19, %v18628_v35  ;;  %v19203_v48 = vld [vmem:[#allocation30_spill] sm:$0xff] }
 0xc31   : > { %15034 = vrcp.f32 %v11704_v5  ;;  %v11317_v24 = vpop.f32.mrb[236].mxu1 }
 0xc32   : > { %v15025_v34 = vpop.eup %15024  ;;  %v11984_v60 = vmul.f32 -1.442695, %v11538_v3  ;;  %v13996_v27 = vadd.f32 %v18742_v23, %v11317_v24  ;;  %v11319_v59 = vpop.f32.mrb[237].mxu1 }
 0xc33   : > { %v15027_v13 = vpop.eup %15026  ;;  %v11705_v33 = vadd.f32 1.0, %v15025_v34 }
 0xc34   : > { %11798 = vst [vmem:[%s18762_s22 + $0x78] sm:$0xff] %v15027_v13  ;;  %15036 = vpow2.f32 %v11984_v60  ;;  %v11543_v12 = vadd.f32 %v13996_v27, %v18642_v6 }
 0xc35   : > { %15038 = vrcp.f32 %v11705_v33  ;;  %v11322_v40 = vpop.f32.mrb[238].mxu1  ;;  %v19204_v33 = vld [vmem:[#allocation27_spill] sm:$0xff] }
 0xc36   : > { %v15029_v50 = vpop.eup %15028  ;;  %v11985_v11 = vmul.f32 -1.442695, %v11543_v12  ;;  %v13997_v35 = vadd.f32 %v18742_v23, %v11322_v40  ;;  %v11324_v53 = vpop.f32.mrb[239].mxu1 }
 0xc37   : > { %v15031_v46 = vpop.eup %15030  ;;  %v11706_v26 = vadd.f32 1.0, %v15029_v50 }
 0xc38   : > { %11799 = vst [vmem:[%s18762_s22 + $0x80] sm:$0xff] %v15031_v46  ;;  %15040 = vpow2.f32 %v11985_v11  ;;  %v11548_v41 = vadd.f32 %v13997_v35, %v18639_v15 }
 0xc39   : > { %15042 = vrcp.f32 %v11706_v26  ;;  %v11327_v38 = vpop.f32.mrb[240].mxu1 }
 0xc3a   : > { %v15033_v8 = vpop.eup %15032  ;;  %v11986_v9 = vmul.f32 -1.442695, %v11548_v41  ;;  %v13998_v6 = vadd.f32 %v18742_v23, %v11327_v38  ;;  %v11329_v44 = vpop.f32.mrb[241].mxu1 }
 0xc3b   : > { %v15035_v14 = vpop.eup %15034  ;;  %v11707_v51 = vadd.f32 1.0, %v15033_v8 }
 0xc3c   : > { %11800 = vst [vmem:[%s18762_s22 + $0x88] sm:$0xff] %v15035_v14  ;;  %15044 = vpow2.f32 %v11986_v9  ;;  %v11553_v28 = vadd.f32 %v13998_v6, %v18654_v55 }
 0xc3d   : > { %15046 = vrcp.f32 %v11707_v51  ;;  %v11332_v1 = vpop.f32.mrb[242].mxu1 }
 0xc3e   : > { %v15037_v25 = vpop.eup %15036  ;;  %v11987_v10 = vmul.f32 -1.442695, %v11553_v28  ;;  %v13999_v15 = vadd.f32 %v18742_v23, %v11332_v1  ;;  %v11334_v63 = vpop.f32.mrb[243].mxu1 }
 0xc3f   : > { %v15039_v49 = vpop.eup %15038  ;;  %v11708_v58 = vadd.f32 1.0, %v15037_v25 }
 0xc40   : > { %11801 = vst [vmem:[%s18762_s22 + $0x90] sm:$0xff] %v15039_v49  ;;  %15048 = vpow2.f32 %v11987_v10  ;;  %v11558_v18 = vadd.f32 %v13999_v15, %v19200_v31 }
 0xc41   : > { %15050 = vrcp.f32 %v11708_v58  ;;  %v11337_v56 = vpop.f32.mrb[244].mxu1 }
 0xc42   : > { %v15041_v57 = vpop.eup %15040  ;;  %v11988_v20 = vmul.f32 -1.442695, %v11558_v18  ;;  %v14000_v55 = vadd.f32 %v18742_v23, %v11337_v56  ;;  %v11339_v16 = vpop.f32.mrb[245].mxu1 }
 0xc43   : > { %v15043_v47 = vpop.eup %15042  ;;  %v11709_v54 = vadd.f32 1.0, %v15041_v57 }
 0xc44   : > { %11802 = vst [vmem:[%s18762_s22 + $0x98] sm:$0xff] %v15043_v47  ;;  %15052 = vpow2.f32 %v11988_v20  ;;  %v11563_v36 = vadd.f32 %v14000_v55, %v19201_v52 }
 0xc45   : > { %15054 = vrcp.f32 %v11709_v54  ;;  %v11342_v62 = vpop.f32.mrb[246].mxu1 }
 0xc46   : > { %v15045_v22 = vpop.eup %15044  ;;  %v11989_v37 = vmul.f32 -1.442695, %v11563_v36  ;;  %v14001_v45 = vadd.f32 %v18742_v23, %v11342_v62  ;;  %v11344_v2 = vpop.f32.mrb[247].mxu1 }
 0xc47   : > { %v15047_v4 = vpop.eup %15046  ;;  %v11710_v30 = vadd.f32 1.0, %v15045_v22 }
 0xc48   : > { %11803 = vst [vmem:[%s18762_s22 + $0xa0] sm:$0xff] %v15047_v4  ;;  %15056 = vpow2.f32 %v11989_v37  ;;  %v11568_v21 = vadd.f32 %v14001_v45, %v19202_v61 }
 0xc49   : > { %15058 = vrcp.f32 %v11710_v30  ;;  %v11347_v0 = vpop.f32.mrb[248].mxu1 }
 0xc4a   : > { %v15049_v39 = vpop.eup %15048  ;;  %v11990_v32 = vmul.f32 -1.442695, %v11568_v21  ;;  %v14002_v42 = vadd.f32 %v18742_v23, %v11347_v0  ;;  %v11349_v29 = vpop.f32.mrb[249].mxu1 }
 0xc4b   : > { %v15051_v19 = vpop.eup %15050  ;;  %v11711_v43 = vadd.f32 1.0, %v15049_v39 }
 0xc4c   : > { %11804 = vst [vmem:[%s18762_s22 + $0xa8] sm:$0xff] %v15051_v19  ;;  %15060 = vpow2.f32 %v11990_v32  ;;  %v11573_v5 = vadd.f32 %v14002_v42, %v19203_v48 }
 0xc4d   : > { %15062 = vrcp.f32 %v11711_v43  ;;  %v11352_v3 = vpop.f32.mrb[250].mxu1 }
 0xc4e   : > { %v15053_v24 = vpop.eup %15052  ;;  %v11991_v34 = vmul.f32 -1.442695, %v11573_v5  ;;  %v14003_v60 = vadd.f32 %v18742_v23, %v11352_v3  ;;  %v11354_v27 = vpop.f32.mrb[251].mxu1 }
 0xc4f   : > { %v15055_v59 = vpop.eup %15054  ;;  %v11712_v13 = vadd.f32 1.0, %v15053_v24 }
 0xc50   : > { %11805 = vst [vmem:[%s18762_s22 + $0xb0] sm:$0xff] %v15055_v59  ;;  %15064 = vpow2.f32 %v11991_v34  ;;  %v11578_v12 = vadd.f32 %v14003_v60, %v19204_v33 }
 0xc51   : > { %15066 = vrcp.f32 %v11712_v13  ;;  %v11357_v40 = vpop.f32.mrb[252].mxu1 }
 0xc52   : > { %v15057_v50 = vpop.eup %15056  ;;  %v11992_v11 = vmul.f32 -1.442695, %v11578_v12  ;;  %v14004_v35 = vadd.f32 %v18742_v23, %v11357_v40  ;;  %v11359_v53 = vpop.f32.mrb[253].mxu1 }
 0xc53   : > { %v15059_v46 = vpop.eup %15058  ;;  %v11713_v26 = vadd.f32 1.0, %v15057_v50 }
 0xc54   : > { %11806 = vst [vmem:[%s18762_s22 + $0xb8] sm:$0xff] %v15059_v46  ;;  %15068 = vpow2.f32 %v11992_v11  ;;  %v11583_v41 = vadd.f32 %v14004_v35, %v18737_v17 }
 0xc55   : > { %15070 = vrcp.f32 %v11713_v26  ;;  %v11362_v38 = vpop.f32.mrb[254].mxu1 }
 0xc56   : > { %v15061_v8 = vpop.eup %15060  ;;  %v11993_v9 = vmul.f32 -1.442695, %v11583_v41  ;;  %v14005_v6 = vadd.f32 %v18742_v23, %v11362_v38  ;;  %v11364_v44 = vpop.f32.mrb[255].mxu1 }
 0xc57   : > { %v15063_v14 = vpop.eup %15062  ;;  %v11714_v51 = vadd.f32 1.0, %v15061_v8 }
 0xc58   : > { %11807 = vst [vmem:[%s18762_s22 + $0xc0] sm:$0xff] %v15063_v14  ;;  %15072 = vpow2.f32 %v11993_v9  ;;  %v11588_v28 = vadd.f32 %v14005_v6, %v18735_v7 }
 0xc59   : > { %15074 = vrcp.f32 %v11714_v51 }
 0xc5a   : > { %v15065_v1 = vpop.eup %15064  ;;  %v11994_v25 = vmul.f32 -1.442695, %v11588_v28 }
 0xc5b   : > { %v15067_v17 = vpop.eup %15066  ;;  %v11715_v10 = vadd.f32 1.0, %v15065_v1 }
 0xc5c   : > { %11808 = vst [vmem:[%s18762_s22 + $0xc8] sm:$0xff] %v15067_v17  ;;  %15076 = vpow2.f32 %v11994_v25 }
 0xc5d   : > { %15078 = vrcp.f32 %v11715_v10 }
 0xc5e   : > { %v15069_v15 = vpop.eup %15068 }
 0xc5f   : > { %v15071_v23 = vpop.eup %15070  ;;  %v11716_v63 = vadd.f32 1.0, %v15069_v15 }
 0xc60   : > { %11809 = vst [vmem:[%s18762_s22 + $0xd0] sm:$0xff] %v15071_v23 }
 0xc61   : > { %15080 = vrcp.f32 %v11716_v63 }
 0xc62   : > { %v15073_v7 = vpop.eup %15072 }
 0xc63   : > { %v15075_v49 = vpop.eup %15074  ;;  %v11717_v58 = vadd.f32 1.0, %v15073_v7 }
 0xc64   : > { %11810 = vst [vmem:[%s18762_s22 + $0xd8] sm:$0xff] %v15075_v49 }
 0xc65   : > { %15082 = vrcp.f32 %v11717_v58 }
 0xc66   : > { %v15077_v31 = vpop.eup %15076 }
 0xc67   : > { %v15079_v18 = vpop.eup %15078  ;;  %v11718_v56 = vadd.f32 1.0, %v15077_v31 }
 0xc68   : > { %11811 = vst [vmem:[%s18762_s22 + $0xe0] sm:$0xff] %v15079_v18 }
 0xc69   : > { %15084 = vrcp.f32 %v11718_v56 }
 0xc6b   : > { %v15081_v57 = vpop.eup %15080 }
 0xc6c   : > { %11812 = vst [vmem:[%s18762_s22 + $0xe8] sm:$0xff] %v15081_v57 }
 0xc6f   : > { %v15083_v20 = vpop.eup %15082 }
 0xc70   : > { %11813 = vst [vmem:[%s18762_s22 + $0xf0] sm:$0xff] %v15083_v20 }
 0xc73   : > { %v15085_v55 = vpop.eup %15084 }
 0xc74   : > { %11814 = vst [vmem:[%s18762_s22 + $0xf8] sm:$0xff] %v15085_v55 }
 0xc75   : > { %15246 = shalt.err (!%p15243_p0)
}
 0xc76   : > { %s15247_s30 = scalar_lea.hbm %s18849_s25, 4096  ;;  %s15251_s19 = scalar_lea.hbm %s19205_s26, 8192 }
 0xc77   : > { %p15248_p10 = scmp.ne.s32.totalorder %s18849_s25, %s15247_s30  ;;  %p15252_p4 = scmp.lt.u32.totalorder %s18849_s25, %s19205_s26 }
 0xc78   : > { %p15253_p12 = scmp.lt.u32.totalorder %s15251_s19, %s15247_s30  ;;  %p15255_p8 = scmp.lt.u32.totalorder %s15247_s30, %s18849_s25 }
 0xc79   : > { %p15249_p2 = pnand %p15248_p10, %p19206_p11 }
 0xc7a   : > { %p15254_p7 = por %p15253_p12, %p15252_p4 }
 0xc7b   : > { %p15250_p3 = pneg %p15249_p2 }
 0xc7c   : > { %p15256_p13 = por %p15255_p8, %p15254_p7 }
 0xc7e   : > { %p15257_p1 = pnand %p15256_p13, %p15250_p3 }
 0xc80   : > { %15260 = shalt.err (!%p15257_p1)
}
 0xc81   : > { %s15319_s20 = smov 128   ;;  %s15320_s22 = smov 8  }
 0xc82   : > { %14882 = dma.vmem_to_hbm [thread:$0]  (%p19206_p11), %s18851_s29, 4096, %s18849_s25, %s18856_s3, %s15319_s20, %s15319_s20, %s15320_s22  }
 0xc83 PF: > { %s19207_s23 = sld [smem:[#allocation21_spill]]  ;;  %s19208_s13 = sld [smem:[#allocation19_spill]] }
 0xc84   : > { %s19209_s24 = sld [smem:[#allocation24_spill]] }
 0xc89   : > { %p14914_p6 = scmp.ge.s32.totalorder %s19207_s23, 2  ;;  %s11844_s11 = sand.u32 1, %s19208_s13  }
 0xc8a   : > { %p19210_p9 = scmp.ne.s32.totalorder %s19209_s24, 0  ;;  %s11845_s21 = scalar_lea.sflag [#allocation7], %s11844_s11 }
 0xc8c   : > { %p14901_p5 = pnand %p14914_p6, %p19210_p9 }
 0xc8e   : > { %15290 = dma.done.wait (!%p14901_p5), %s11845_s21, 4096  }
 0xc8f   : > { %15292 = vsyncadd (!%p14901_p5), %s11845_s21, 4294963200  ;;  %s19211_s20 = sld [smem:[#allocation22_spill]]  ;;  %s19212_s28 = sld [smem:[#allocation20_spill]] }
 0xc90   : > { %s19213_s19 = sld [smem:[#allocation23_spill]]  ;;  %s19214_s17 = smov %s15299_s18 }
 0xc95   : > { %p24_p0 = scmp.ge.s32.totalorder %s19211_s20, 4   ;;  %s19215_s18 = smov %s19212_s28 }
 0xc97   :  { %26 = sbr.rel (!%p24_p0) target bundleno = 9 (0x9), region = 124 }
 0xc9e   :  { %11850 = vsyncpa [#allocation6], 1 }
 0xc9f   :  { %11852 = vsyncpa [#allocation6 + $0x1], 1 }
 0xca0   :  { %11853 = vsyncpa [#allocation9], 1 }
 0xca1   :  { %11854 = vsyncpa [#allocation12], 1 }
 0xca2   :  { %11855 = vsyncpa [#allocation7], 1 }
 0xca3   :  { %11857 = vsyncpa [#allocation7 + $0x1], 1 }

</bundles_post_ra>
